<compile_context>
chip_gen: v6e
topology: v6e:2x2x1
jax: 0.10.0
libtpu: 0.0.40
codegen_flags: <defaults>
</compile_context>

<pallas_src>
import functools

import jax
import jax.numpy as jnp
from jax.experimental import pallas as pl
from jax.experimental.pallas import tpu as pltpu

EPS = 1e-5
LEAKY_SLOPE = 0.2


# ----------------------------------------------------------------------------
# Fused kernel: one grid step == one full sample through the whole block.
# ----------------------------------------------------------------------------
def _fused_block_kernel(*refs, H, W, fin, fmid, fout, L, learned_shortcut):
    if learned_shortcut:
        (idx_ref, x_ref, gb_ref, w0_ref, cb0_ref, w1_ref, cb1_ref, ws_ref,
         o_ref, pad0_ref, pad1_ref) = refs
    else:
        (idx_ref, x_ref, gb_ref, w0_ref, cb0_ref, w1_ref, cb1_ref,
         o_ref, pad0_ref, pad1_ref) = refs
        ws_ref = None

    HW = H * W
    x = x_ref[0].astype(jnp.float32)     # [HW, fin]
    idx = idx_ref[0]                     # [HW, 1] int32 class map

    # --- one-hot + ALL per-pixel affine maps in a single MXU matmul ---------
    iota = jax.lax.broadcasted_iota(jnp.int32, (HW, L), 1)
    onehot = (iota == idx).astype(jnp.float32)                      # [HW, L]
    maps = jnp.dot(onehot, gb_ref[...].astype(jnp.float32),
                   preferred_element_type=jnp.float32)              # [HW, Ctot]
    g0 = maps[:, 0:fin]
    b0 = maps[:, fin:2 * fin]
    g1 = maps[:, 2 * fin:2 * fin + fmid]
    b1 = maps[:, 2 * fin + fmid:2 * fin + 2 * fmid]

    # --- param-free instance norm, single-pass statistics --------------------
    def inorm(v):
        m = jnp.mean(v, axis=0, keepdims=True)
        ex2 = jnp.mean(v * v, axis=0, keepdims=True)
        var = jnp.maximum(ex2 - m * m, 0.0)
        return (v - m) * jax.lax.rsqrt(var + EPS)

    # --- 3x3 conv as im2col: zero-pad in VMEM scratch, one fat matmul --------
    def conv3x3(pad_ref, act, cin, w_ref, cb_ref):
        pad_ref[...] = jnp.zeros(pad_ref.shape, jnp.float32)        # halo = 0
        pad_ref[pl.ds(1, H), pl.ds(1, W), :] = act.reshape(H, W, cin)
        cols = jnp.concatenate(
            [pad_ref[pl.ds(kh, H), pl.ds(kw, W), :]
             for kh in range(3) for kw in range(3)],
            axis=-1).reshape(HW, 9 * cin)                           # [HW, 9*cin]
        return (jnp.dot(cols, w_ref[...].astype(jnp.float32),
                        preferred_element_type=jnp.float32)
                + cb_ref[...].astype(jnp.float32))

    # --- main branch ----------------------------------------------------------
    xn = inorm(x)                         # shared by norm_0 and norm_s
    a0 = xn * g0 + b0
    a0 = jnp.where(a0 >= 0, a0, LEAKY_SLOPE * a0)
    dx = conv3x3(pad0_ref, a0, fin, w0_ref, cb0_ref)                # [HW, fmid]

    a1 = inorm(dx) * g1 + b1
    a1 = jnp.where(a1 >= 0, a1, LEAKY_SLOPE * a1)
    dx = conv3x3(pad1_ref, a1, fmid, w1_ref, cb1_ref)               # [HW, fout]

    # --- shortcut branch ------------------------------------------------------
    if learned_shortcut:
        off = 2 * fin + 2 * fmid
        gs = maps[:, off:off + fin]
        bs = maps[:, off + fin:off + 2 * fin]
        xs = jnp.dot(xn * gs + bs, ws_ref[...].astype(jnp.float32),
                     preferred_element_type=jnp.float32)            # [HW, fout]
    else:
        xs = x                                                      # fin == fout

    o_ref[0] = (dx + xs).astype(o_ref.dtype)


# ----------------------------------------------------------------------------
# Public wrapper: PyTorch-style NCHW in / NCHW out.
# ----------------------------------------------------------------------------
def resnet_block_with_clade(x_nchw, seg_nchw, p):
    N, fin, H, W = x_nchw.shape
    L = seg_nchw.shape[1]
    fmid = p["w0"].shape[-1]
    fout = p["w1"].shape[-1]
    learned_shortcut = "ws" in p
    HW = H * W

    # layout plumbing (cheap, done once per call in XLA)
    x = jnp.transpose(x_nchw, (0, 2, 3, 1)).reshape(N, HW, fin)
    cls = jnp.argmax(seg_nchw, axis=1).astype(jnp.int32).reshape(N, HW, 1)

    # one combined class-affine table -> a single one-hot matmul in-kernel
    tabs = [p["g0"], p["b0"], p["g1"], p["b1"]]
    if learned_shortcut:
        tabs += [p["gs"], p["bs"]]
    gb = jnp.concatenate(tabs, axis=-1)                 # [L, Ctot]
    Ctot = gb.shape[-1]

    w0 = p["w0"].reshape(9 * fin, fmid)                 # im2col weight layout
    w1 = p["w1"].reshape(9 * fmid, fout)
    cb0 = p["bias0"].reshape(1, fmid)
    cb1 = p["bias1"].reshape(1, fout)

    in_specs = [
        pl.BlockSpec((1, HW, 1), lambda n: (n, 0, 0)),
        pl.BlockSpec((1, HW, fin), lambda n: (n, 0, 0)),
        pl.BlockSpec((L, Ctot), lambda n: (0, 0)),
        pl.BlockSpec((9 * fin, fmid), lambda n: (0, 0)),
        pl.BlockSpec((1, fmid), lambda n: (0, 0)),
        pl.BlockSpec((9 * fmid, fout), lambda n: (0, 0)),
        pl.BlockSpec((1, fout), lambda n: (0, 0)),
    ]
    args = [cls, x, gb, w0, cb0, w1, cb1]
    if learned_shortcut:
        in_specs.append(pl.BlockSpec((fin, fout), lambda n: (0, 0)))
        args.append(p["ws"])

    flops = 2 * N * HW * (L * Ctot + 9 * fin * fmid + 9 * fmid * fout
                          + (fin * fout if learned_shortcut else 0))
    bytes_accessed = 4 * (N * HW * (1 + fin + fout) + L * Ctot
                          + 9 * fin * fmid + fmid + 9 * fmid * fout + fout
                          + (fin * fout if learned_shortcut else 0))

    # TODO(synk): for production resolutions (e.g. 256x256x512) add a spatial
    # grid axis with a 1-row halo plus a stats pre-pass so per-program tiles
    # fit v7x's 64 MiB VMEM and feed its second TensorCore.
    out = pl.pallas_call(
        functools.partial(_fused_block_kernel, H=H, W=W, fin=fin, fmid=fmid,
                          fout=fout, L=L, learned_shortcut=learned_shortcut),
        out_shape=jax.ShapeDtypeStruct((N, HW, fout), x_nchw.dtype),
        grid=(N,),
        in_specs=in_specs,
        out_specs=pl.BlockSpec((1, HW, fout), lambda n: (n, 0, 0)),
        scratch_shapes=[
            pltpu.VMEM((H + 2, W + 2, fin), jnp.float32),    # conv0 halo pad
            pltpu.VMEM((H + 2, W + 2, fmid), jnp.float32),   # conv1 halo pad
        ],
        compiler_params=pltpu.CompilerParams(
            dimension_semantics=("parallel",),
            vmem_limit_bytes=32 * 1024 * 1024,
        ),
        cost_estimate=pl.CostEstimate(
            flops=flops, transcendentals=0, bytes_accessed=bytes_accessed),
    )(*args)

    return jnp.transpose(out.reshape(N, H, W, fout), (0, 3, 1, 2))


# ----------------------------------------------------------------------------
# Pure-JAX reference (correctness check)
# ----------------------------------------------------------------------------
def _clade_ref(x, seg, gamma, beta):
    mean = jnp.mean(x, axis=(1, 2), keepdims=True)
    var = jnp.mean((x - mean) ** 2, axis=(1, 2), keepdims=True)
    xn = (x - mean) * jax.lax.rsqrt(var + EPS)
    idx = jnp.argmax(seg, axis=-1)
    return xn * gamma[idx] + beta[idx]


def _conv3x3_ref(x, w_hwio, bias):
    y = jax.lax.conv_general_dilated(
        x, w_hwio, (1, 1), "SAME",
        dimension_numbers=("NHWC", "HWIO", "NHWC"))
    return y + bias


def _block_ref(x_nchw, seg_nchw, p):
    x = jnp.transpose(x_nchw, (0, 2, 3, 1))
    seg = jnp.transpose(seg_nchw, (0, 2, 3, 1))
    a0 = jax.nn.leaky_relu(_clade_ref(x, seg, p["g0"], p["b0"]), LEAKY_SLOPE)
    dx = _conv3x3_ref(a0, p["w0"], p["bias0"])
    a1 = jax.nn.leaky_relu(_clade_ref(dx, seg, p["g1"], p["b1"]), LEAKY_SLOPE)
    dx = _conv3x3_ref(a1, p["w1"], p["bias1"])
    if "ws" in p:
        xs = _clade_ref(x, seg, p["gs"], p["bs"])
        xs = jnp.einsum("nhwc,cd->nhwd", xs, p["ws"])
    else:
        xs = x
    return jnp.transpose(xs + dx, (0, 3, 1, 2))


# ----------------------------------------------------------------------------
# Synthetic, deterministic parameters (spectral norm applied in glue)
# ----------------------------------------------------------------------------
def _spectral_normalize(w_oihw):
    mat = w_oihw.reshape(w_oihw.shape[0], -1)
    sigma = jnp.linalg.norm(mat, ord=2)   # largest singular value (converged SN)
    return w_oihw / sigma


def make_params(key, fin, fout, semantic_nc):
    fmid = min(fin, fout)
    ks = jax.random.split(key, 11)
    p = {
        "g0": jax.random.uniform(ks[0], (semantic_nc, fin), jnp.float32),
        "b0": 0.1 * jax.random.normal(ks[1], (semantic_nc, fin), jnp.float32),
        "g1": jax.random.uniform(ks[2], (semantic_nc, fmid), jnp.float32),
        "b1": 0.1 * jax.random.normal(ks[3], (semantic_nc, fmid), jnp.float32),
    }
    w0 = _spectral_normalize(0.2 * jax.random.normal(ks[6], (fmid, fin, 3, 3)))
    w1 = _spectral_normalize(0.2 * jax.random.normal(ks[7], (fout, fmid, 3, 3)))
    p["w0"] = jnp.transpose(w0, (2, 3, 1, 0))            # [3,3,fin,fmid]
    p["w1"] = jnp.transpose(w1, (2, 3, 1, 0))            # [3,3,fmid,fout]
    p["bias0"] = 0.1 * jax.random.normal(ks[9], (fmid,), jnp.float32)
    p["bias1"] = 0.1 * jax.random.normal(ks[10], (fout,), jnp.float32)
    if fin != fout:
        p["gs"] = jax.random.uniform(ks[4], (semantic_nc, fin), jnp.float32)
        p["bs"] = 0.1 * jax.random.normal(ks[5], (semantic_nc, fin), jnp.float32)
        ws = _spectral_normalize(0.2 * jax.random.normal(ks[8], (fout, fin, 1, 1)))
        p["ws"] = jnp.transpose(ws, (2, 3, 1, 0))[0, 0]  # [fin, fout]
    return p


# ----------------------------------------------------------------------------
if __name__ == "__main__":
    key = jax.random.PRNGKey(0)
    N, H, W, semantic_nc = 2, 16, 16, 8

    # exercise both the learned-shortcut and the identity-shortcut code paths
    for fin, fout in ((8, 16), (8, 8)):
        k_x, k_s, k_p, key = jax.random.split(key, 4)
        x = jax.random.normal(k_x, (N, fin, H, W), jnp.float32)           # NCHW
        cls = jax.random.randint(k_s, (N, H, W), 0, semantic_nc)
        seg = jnp.transpose(jax.nn.one_hot(cls, semantic_nc, dtype=jnp.float32),
                            (0, 3, 1, 2))                                 # NCHW

        params = make_params(k_p, fin, fout, semantic_nc)

        out = jax.block_until_ready(resnet_block_with_clade(x, seg, params))
        ref = jax.block_until_ready(_block_ref(x, seg, params))

        assert out.shape == (N, fout, H, W), out.shape
        err = float(jnp.max(jnp.abs(out - ref)))
        assert err < 2e-3, f"fin={fin} fout={fout}: max abs error {err}"

    print("KERNEL_OK")
</pallas_src>

<mosaic_0001>
module attributes {stable_mosaic.version = 11 : i64} {
  func.func @_fused_block_kernel(%arg0: i32, %arg1: memref<1x256x1xi32, #tpu.memory_space<vmem>>, %arg2: memref<1x256x8xf32, #tpu.memory_space<vmem>>, %arg3: memref<8x48xf32, #tpu.memory_space<vmem>>, %arg4: memref<72x8xf32, #tpu.memory_space<vmem>>, %arg5: memref<1x8xf32, #tpu.memory_space<vmem>>, %arg6: memref<72x16xf32, #tpu.memory_space<vmem>>, %arg7: memref<1x16xf32, #tpu.memory_space<vmem>>, %arg8: memref<8x16xf32, #tpu.memory_space<vmem>>, %arg9: memref<1x256x16xf32, #tpu.memory_space<vmem>>, %arg10: memref<18x18x8xf32, #tpu.memory_space<vmem>>, %arg11: memref<18x18x8xf32, #tpu.memory_space<vmem>>) attributes {dimension_semantics = [#tpu.dimension_semantics<parallel>], iteration_bounds = array<i64: 2>, scalar_prefetch = 0 : i64, scratch_operands = 2 : i64, tpu.core_type = #tpu.core_type<tc>, window_params = [{transform_indices = @transform_0, window_bounds = array<i64: 1, 256, 1>}, {transform_indices = @transform_1, window_bounds = array<i64: 1, 256, 8>}, {pipeline_mode = #tpu.pipeline_mode<synchronous>, transform_indices = @transform_2, window_bounds = array<i64: 8, 48>}, {pipeline_mode = #tpu.pipeline_mode<synchronous>, transform_indices = @transform_3, window_bounds = array<i64: 72, 8>}, {pipeline_mode = #tpu.pipeline_mode<synchronous>, transform_indices = @transform_4, window_bounds = array<i64: 1, 8>}, {pipeline_mode = #tpu.pipeline_mode<synchronous>, transform_indices = @transform_5, window_bounds = array<i64: 72, 16>}, {pipeline_mode = #tpu.pipeline_mode<synchronous>, transform_indices = @transform_6, window_bounds = array<i64: 1, 16>}, {pipeline_mode = #tpu.pipeline_mode<synchronous>, transform_indices = @transform_7, window_bounds = array<i64: 8, 16>}, {transform_indices = @transform_8, window_bounds = array<i64: 1, 256, 16>}]} {
    %c0 = arith.constant 0 : index
    %c0_0 = arith.constant 0 : index
    %c0_1 = arith.constant 0 : index
    %0 = vector.load %arg2[%c0, %c0_0, %c0_1] : memref<1x256x8xf32, #tpu.memory_space<vmem>>, vector<1x256x8xf32>
    %1 = vector.shape_cast %0 : vector<1x256x8xf32> to vector<256x8xf32>
    %c0_2 = arith.constant 0 : index
    %c0_3 = arith.constant 0 : index
    %c0_4 = arith.constant 0 : index
    %2 = vector.load %arg1[%c0_2, %c0_3, %c0_4] : memref<1x256x1xi32, #tpu.memory_space<vmem>>, vector<1x256x1xi32>
    %3 = vector.shape_cast %2 : vector<1x256x1xi32> to vector<256x1xi32>
    %4 = tpu.iota {dimensions = array<i32: 1>} : vector<256x8xi32>
    %5 = vector.broadcast %3 : vector<256x1xi32> to vector<256x8xi32>
    %6 = arith.cmpi eq, %4, %5 : vector<256x8xi32>
    %7 = arith.extui %6 : vector<256x8xi1> to vector<256x8xi32>
    %8 = arith.sitofp %7 : vector<256x8xi32> to vector<256x8xf32>
    %c0_5 = arith.constant 0 : index
    %c0_6 = arith.constant 0 : index
    %9 = vector.load %arg3[%c0_5, %c0_6] : memref<8x48xf32, #tpu.memory_space<vmem>>, vector<8x48xf32>
    %cst = arith.constant dense<0.000000e+00> : vector<256x48xf32>
    %10 = tpu.matmul %8, %9, %cst {dimension_numbers = #tpu.dot_dimension_numbers<[1], [0], [0], [1], [0, 0, 1, 1], [], []>} : vector<256x8xf32>, vector<8x48xf32>, vector<256x48xf32> -> vector<256x48xf32>
    %11 = vector.extract_strided_slice %10 {offsets = [0, 0], sizes = [256, 8], strides = [1, 1]} : vector<256x48xf32> to vector<256x8xf32>
    %12 = vector.extract_strided_slice %10 {offsets = [0, 8], sizes = [256, 8], strides = [1, 1]} : vector<256x48xf32> to vector<256x8xf32>
    %13 = vector.extract_strided_slice %10 {offsets = [0, 16], sizes = [256, 8], strides = [1, 1]} : vector<256x48xf32> to vector<256x8xf32>
    %14 = vector.extract_strided_slice %10 {offsets = [0, 24], sizes = [256, 8], strides = [1, 1]} : vector<256x48xf32> to vector<256x8xf32>
    %cst_7 = arith.constant dense<0.000000e+00> : vector<8xf32>
    %15 = vector.multi_reduction <add>, %1, %cst_7 [0] : vector<256x8xf32> to vector<8xf32>
    %16 = vector.shape_cast %15 : vector<8xf32> to vector<1x8xf32>
    %cst_8 = arith.constant 2.560000e+02 : f32
    %17 = vector.broadcast %cst_8 : f32 to vector<1x8xf32>
    %18 = arith.divf %16, %17 : vector<1x8xf32>
    %19 = arith.mulf %1, %1 : vector<256x8xf32>
    %cst_9 = arith.constant dense<0.000000e+00> : vector<8xf32>
    %20 = vector.multi_reduction <add>, %19, %cst_9 [0] : vector<256x8xf32> to vector<8xf32>
    %21 = vector.shape_cast %20 : vector<8xf32> to vector<1x8xf32>
    %cst_10 = arith.constant 2.560000e+02 : f32
    %22 = vector.broadcast %cst_10 : f32 to vector<1x8xf32>
    %23 = arith.divf %21, %22 : vector<1x8xf32>
    %24 = arith.mulf %18, %18 : vector<1x8xf32>
    %25 = arith.subf %23, %24 : vector<1x8xf32>
    %cst_11 = arith.constant 0.000000e+00 : f32
    %26 = vector.broadcast %cst_11 : f32 to vector<1x8xf32>
    %27 = arith.maximumf %25, %26 : vector<1x8xf32>
    %28 = vector.broadcast %18 : vector<1x8xf32> to vector<256x8xf32>
    %29 = arith.subf %1, %28 : vector<256x8xf32>
    %cst_12 = arith.constant 9.99999974E-6 : f32
    %30 = vector.broadcast %cst_12 : f32 to vector<1x8xf32>
    %31 = arith.addf %27, %30 : vector<1x8xf32>
    %32 = math.rsqrt %31 : vector<1x8xf32>
    %33 = vector.broadcast %32 : vector<1x8xf32> to vector<256x8xf32>
    %34 = arith.mulf %29, %33 : vector<256x8xf32>
    %35 = arith.mulf %34, %11 : vector<256x8xf32>
    %36 = arith.addf %35, %12 : vector<256x8xf32>
    %cst_13 = arith.constant 0.000000e+00 : f32
    %37 = vector.broadcast %cst_13 : f32 to vector<256x8xf32>
    %38 = arith.cmpf oge, %36, %37 : vector<256x8xf32>
    %cst_14 = arith.constant 2.000000e-01 : f32
    %39 = vector.broadcast %cst_14 : f32 to vector<256x8xf32>
    %40 = arith.mulf %39, %36 : vector<256x8xf32>
    %41 = arith.select %38, %36, %40 : vector<256x8xi1>, vector<256x8xf32>
    %cst_15 = arith.constant 0.000000e+00 : f32
    %42 = vector.broadcast %cst_15 : f32 to vector<18x18x8xf32>
    %c0_16 = arith.constant 0 : index
    %c0_17 = arith.constant 0 : index
    %c0_18 = arith.constant 0 : index
    %43 = vector.load %arg10[%c0_16, %c0_17, %c0_18] : memref<18x18x8xf32, #tpu.memory_space<vmem>>, vector<18x18x8xf32>
    tpu.vector_store %arg10[%c0_16, %c0_17, %c0_18], %42 {strides = array<i32>} : memref<18x18x8xf32, #tpu.memory_space<vmem>>, vector<18x18x8xf32>,
    %44 = vector.shape_cast %41 : vector<256x8xf32> to vector<16x16x8xf32>
    %c1 = arith.constant 1 : index
    %c1_19 = arith.constant 1 : index
    %c0_20 = arith.constant 0 : index
    %45 = vector.load %arg10[%c1, %c1_19, %c0_20] : memref<18x18x8xf32, #tpu.memory_space<vmem>>, vector<16x16x8xf32>
    tpu.vector_store %arg10[%c1, %c1_19, %c0_20], %44 {strides = array<i32>} : memref<18x18x8xf32, #tpu.memory_space<vmem>>, vector<16x16x8xf32>,
    %c0_21 = arith.constant 0 : index
    %c0_22 = arith.constant 0 : index
    %c0_23 = arith.constant 0 : index
    %46 = vector.load %arg10[%c0_21, %c0_22, %c0_23] : memref<18x18x8xf32, #tpu.memory_space<vmem>>, vector<16x16x8xf32>
    %c0_24 = arith.constant 0 : index
    %c1_25 = arith.constant 1 : index
    %c0_26 = arith.constant 0 : index
    %47 = vector.load %arg10[%c0_24, %c1_25, %c0_26] : memref<18x18x8xf32, #tpu.memory_space<vmem>>, vector<16x16x8xf32>
    %c0_27 = arith.constant 0 : index
    %c2 = arith.constant 2 : index
    %c0_28 = arith.constant 0 : index
    %48 = vector.load %arg10[%c0_27, %c2, %c0_28] : memref<18x18x8xf32, #tpu.memory_space<vmem>>, vector<16x16x8xf32>
    %c1_29 = arith.constant 1 : index
    %c0_30 = arith.constant 0 : index
    %c0_31 = arith.constant 0 : index
    %49 = vector.load %arg10[%c1_29, %c0_30, %c0_31] : memref<18x18x8xf32, #tpu.memory_space<vmem>>, vector<16x16x8xf32>
    %c1_32 = arith.constant 1 : index
    %c1_33 = arith.constant 1 : index
    %c0_34 = arith.constant 0 : index
    %50 = vector.load %arg10[%c1_32, %c1_33, %c0_34] : memref<18x18x8xf32, #tpu.memory_space<vmem>>, vector<16x16x8xf32>
    %c1_35 = arith.constant 1 : index
    %c2_36 = arith.constant 2 : index
    %c0_37 = arith.constant 0 : index
    %51 = vector.load %arg10[%c1_35, %c2_36, %c0_37] : memref<18x18x8xf32, #tpu.memory_space<vmem>>, vector<16x16x8xf32>
    %c2_38 = arith.constant 2 : index
    %c0_39 = arith.constant 0 : index
    %c0_40 = arith.constant 0 : index
    %52 = vector.load %arg10[%c2_38, %c0_39, %c0_40] : memref<18x18x8xf32, #tpu.memory_space<vmem>>, vector<16x16x8xf32>
    %c2_41 = arith.constant 2 : index
    %c1_42 = arith.constant 1 : index
    %c0_43 = arith.constant 0 : index
    %53 = vector.load %arg10[%c2_41, %c1_42, %c0_43] : memref<18x18x8xf32, #tpu.memory_space<vmem>>, vector<16x16x8xf32>
    %c2_44 = arith.constant 2 : index
    %c2_45 = arith.constant 2 : index
    %c0_46 = arith.constant 0 : index
    %54 = vector.load %arg10[%c2_44, %c2_45, %c0_46] : memref<18x18x8xf32, #tpu.memory_space<vmem>>, vector<16x16x8xf32>
    %55 = tpu.concatenate %46, %47, %48, %49, %50, %51, %52, %53, %54 in 2 : vector<16x16x8xf32>, vector<16x16x8xf32>, vector<16x16x8xf32>, vector<16x16x8xf32>, vector<16x16x8xf32>, vector<16x16x8xf32>, vector<16x16x8xf32>, vector<16x16x8xf32>, vector<16x16x8xf32> -> vector<16x16x72xf32>
    %56 = vector.shape_cast %55 : vector<16x16x72xf32> to vector<256x72xf32>
    %c0_47 = arith.constant 0 : index
    %c0_48 = arith.constant 0 : index
    %57 = vector.load %arg4[%c0_47, %c0_48] : memref<72x8xf32, #tpu.memory_space<vmem>>, vector<72x8xf32>
    %cst_49 = arith.constant dense<0.000000e+00> : vector<256x8xf32>
    %58 = tpu.matmul %56, %57, %cst_49 {dimension_numbers = #tpu.dot_dimension_numbers<[1], [0], [0], [1], [0, 0, 1, 1], [], []>} : vector<256x72xf32>, vector<72x8xf32>, vector<256x8xf32> -> vector<256x8xf32>
    %c0_50 = arith.constant 0 : index
    %c0_51 = arith.constant 0 : index
    %59 = vector.load %arg5[%c0_50, %c0_51] : memref<1x8xf32, #tpu.memory_space<vmem>>, vector<1x8xf32>
    %60 = vector.broadcast %59 : vector<1x8xf32> to vector<256x8xf32>
    %61 = arith.addf %58, %60 : vector<256x8xf32>
    %cst_52 = arith.constant dense<0.000000e+00> : vector<8xf32>
    %62 = vector.multi_reduction <add>, %61, %cst_52 [0] : vector<256x8xf32> to vector<8xf32>
    %63 = vector.shape_cast %62 : vector<8xf32> to vector<1x8xf32>
    %cst_53 = arith.constant 2.560000e+02 : f32
    %64 = vector.broadcast %cst_53 : f32 to vector<1x8xf32>
    %65 = arith.divf %63, %64 : vector<1x8xf32>
    %66 = arith.mulf %61, %61 : vector<256x8xf32>
    %cst_54 = arith.constant dense<0.000000e+00> : vector<8xf32>
    %67 = vector.multi_reduction <add>, %66, %cst_54 [0] : vector<256x8xf32> to vector<8xf32>
    %68 = vector.shape_cast %67 : vector<8xf32> to vector<1x8xf32>
    %cst_55 = arith.constant 2.560000e+02 : f32
    %69 = vector.broadcast %cst_55 : f32 to vector<1x8xf32>
    %70 = arith.divf %68, %69 : vector<1x8xf32>
    %71 = arith.mulf %65, %65 : vector<1x8xf32>
    %72 = arith.subf %70, %71 : vector<1x8xf32>
    %cst_56 = arith.constant 0.000000e+00 : f32
    %73 = vector.broadcast %cst_56 : f32 to vector<1x8xf32>
    %74 = arith.maximumf %72, %73 : vector<1x8xf32>
    %75 = vector.broadcast %65 : vector<1x8xf32> to vector<256x8xf32>
    %76 = arith.subf %61, %75 : vector<256x8xf32>
    %cst_57 = arith.constant 9.99999974E-6 : f32
    %77 = vector.broadcast %cst_57 : f32 to vector<1x8xf32>
    %78 = arith.addf %74, %77 : vector<1x8xf32>
    %79 = math.rsqrt %78 : vector<1x8xf32>
    %80 = vector.broadcast %79 : vector<1x8xf32> to vector<256x8xf32>
    %81 = arith.mulf %76, %80 : vector<256x8xf32>
    %82 = arith.mulf %81, %13 : vector<256x8xf32>
    %83 = arith.addf %82, %14 : vector<256x8xf32>
    %cst_58 = arith.constant 0.000000e+00 : f32
    %84 = vector.broadcast %cst_58 : f32 to vector<256x8xf32>
    %85 = arith.cmpf oge, %83, %84 : vector<256x8xf32>
    %cst_59 = arith.constant 2.000000e-01 : f32
    %86 = vector.broadcast %cst_59 : f32 to vector<256x8xf32>
    %87 = arith.mulf %86, %83 : vector<256x8xf32>
    %88 = arith.select %85, %83, %87 : vector<256x8xi1>, vector<256x8xf32>
    %cst_60 = arith.constant 0.000000e+00 : f32
    %89 = vector.broadcast %cst_60 : f32 to vector<18x18x8xf32>
    %c0_61 = arith.constant 0 : index
    %c0_62 = arith.constant 0 : index
    %c0_63 = arith.constant 0 : index
    %90 = vector.load %arg11[%c0_61, %c0_62, %c0_63] : memref<18x18x8xf32, #tpu.memory_space<vmem>>, vector<18x18x8xf32>
    tpu.vector_store %arg11[%c0_61, %c0_62, %c0_63], %89 {strides = array<i32>} : memref<18x18x8xf32, #tpu.memory_space<vmem>>, vector<18x18x8xf32>,
    %91 = vector.shape_cast %88 : vector<256x8xf32> to vector<16x16x8xf32>
    %c1_64 = arith.constant 1 : index
    %c1_65 = arith.constant 1 : index
    %c0_66 = arith.constant 0 : index
    %92 = vector.load %arg11[%c1_64, %c1_65, %c0_66] : memref<18x18x8xf32, #tpu.memory_space<vmem>>, vector<16x16x8xf32>
    tpu.vector_store %arg11[%c1_64, %c1_65, %c0_66], %91 {strides = array<i32>} : memref<18x18x8xf32, #tpu.memory_space<vmem>>, vector<16x16x8xf32>,
    %c0_67 = arith.constant 0 : index
    %c0_68 = arith.constant 0 : index
    %c0_69 = arith.constant 0 : index
    %93 = vector.load %arg11[%c0_67, %c0_68, %c0_69] : memref<18x18x8xf32, #tpu.memory_space<vmem>>, vector<16x16x8xf32>
    %c0_70 = arith.constant 0 : index
    %c1_71 = arith.constant 1 : index
    %c0_72 = arith.constant 0 : index
    %94 = vector.load %arg11[%c0_70, %c1_71, %c0_72] : memref<18x18x8xf32, #tpu.memory_space<vmem>>, vector<16x16x8xf32>
    %c0_73 = arith.constant 0 : index
    %c2_74 = arith.constant 2 : index
    %c0_75 = arith.constant 0 : index
    %95 = vector.load %arg11[%c0_73, %c2_74, %c0_75] : memref<18x18x8xf32, #tpu.memory_space<vmem>>, vector<16x16x8xf32>
    %c1_76 = arith.constant 1 : index
    %c0_77 = arith.constant 0 : index
    %c0_78 = arith.constant 0 : index
    %96 = vector.load %arg11[%c1_76, %c0_77, %c0_78] : memref<18x18x8xf32, #tpu.memory_space<vmem>>, vector<16x16x8xf32>
    %c1_79 = arith.constant 1 : index
    %c1_80 = arith.constant 1 : index
    %c0_81 = arith.constant 0 : index
    %97 = vector.load %arg11[%c1_79, %c1_80, %c0_81] : memref<18x18x8xf32, #tpu.memory_space<vmem>>, vector<16x16x8xf32>
    %c1_82 = arith.constant 1 : index
    %c2_83 = arith.constant 2 : index
    %c0_84 = arith.constant 0 : index
    %98 = vector.load %arg11[%c1_82, %c2_83, %c0_84] : memref<18x18x8xf32, #tpu.memory_space<vmem>>, vector<16x16x8xf32>
    %c2_85 = arith.constant 2 : index
    %c0_86 = arith.constant 0 : index
    %c0_87 = arith.constant 0 : index
    %99 = vector.load %arg11[%c2_85, %c0_86, %c0_87] : memref<18x18x8xf32, #tpu.memory_space<vmem>>, vector<16x16x8xf32>
    %c2_88 = arith.constant 2 : index
    %c1_89 = arith.constant 1 : index
    %c0_90 = arith.constant 0 : index
    %100 = vector.load %arg11[%c2_88, %c1_89, %c0_90] : memref<18x18x8xf32, #tpu.memory_space<vmem>>, vector<16x16x8xf32>
    %c2_91 = arith.constant 2 : index
    %c2_92 = arith.constant 2 : index
    %c0_93 = arith.constant 0 : index
    %101 = vector.load %arg11[%c2_91, %c2_92, %c0_93] : memref<18x18x8xf32, #tpu.memory_space<vmem>>, vector<16x16x8xf32>
    %102 = tpu.concatenate %93, %94, %95, %96, %97, %98, %99, %100, %101 in 2 : vector<16x16x8xf32>, vector<16x16x8xf32>, vector<16x16x8xf32>, vector<16x16x8xf32>, vector<16x16x8xf32>, vector<16x16x8xf32>, vector<16x16x8xf32>, vector<16x16x8xf32>, vector<16x16x8xf32> -> vector<16x16x72xf32>
    %103 = vector.shape_cast %102 : vector<16x16x72xf32> to vector<256x72xf32>
    %c0_94 = arith.constant 0 : index
    %c0_95 = arith.constant 0 : index
    %104 = vector.load %arg6[%c0_94, %c0_95] : memref<72x16xf32, #tpu.memory_space<vmem>>, vector<72x16xf32>
    %cst_96 = arith.constant dense<0.000000e+00> : vector<256x16xf32>
    %105 = tpu.matmul %103, %104, %cst_96 {dimension_numbers = #tpu.dot_dimension_numbers<[1], [0], [0], [1], [0, 0, 1, 1], [], []>} : vector<256x72xf32>, vector<72x16xf32>, vector<256x16xf32> -> vector<256x16xf32>
    %c0_97 = arith.constant 0 : index
    %c0_98 = arith.constant 0 : index
    %106 = vector.load %arg7[%c0_97, %c0_98] : memref<1x16xf32, #tpu.memory_space<vmem>>, vector<1x16xf32>
    %107 = vector.broadcast %106 : vector<1x16xf32> to vector<256x16xf32>
    %108 = arith.addf %105, %107 : vector<256x16xf32>
    %109 = vector.extract_strided_slice %10 {offsets = [0, 32], sizes = [256, 8], strides = [1, 1]} : vector<256x48xf32> to vector<256x8xf32>
    %110 = vector.extract_strided_slice %10 {offsets = [0, 40], sizes = [256, 8], strides = [1, 1]} : vector<256x48xf32> to vector<256x8xf32>
    %111 = arith.mulf %34, %109 : vector<256x8xf32>
    %112 = arith.addf %111, %110 : vector<256x8xf32>
    %c0_99 = arith.constant 0 : index
    %c0_100 = arith.constant 0 : index
    %113 = vector.load %arg8[%c0_99, %c0_100] : memref<8x16xf32, #tpu.memory_space<vmem>>, vector<8x16xf32>
    %cst_101 = arith.constant dense<0.000000e+00> : vector<256x16xf32>
    %114 = tpu.matmul %112, %113, %cst_101 {dimension_numbers = #tpu.dot_dimension_numbers<[1], [0], [0], [1], [0, 0, 1, 1], [], []>} : vector<256x8xf32>, vector<8x16xf32>, vector<256x16xf32> -> vector<256x16xf32>
    %115 = arith.addf %108, %114 : vector<256x16xf32>
    %c0_102 = arith.constant 0 : index
    %c0_103 = arith.constant 0 : index
    %c0_104 = arith.constant 0 : index
    %116 = vector.load %arg9[%c0_102, %c0_103, %c0_104] : memref<1x256x16xf32, #tpu.memory_space<vmem>>, vector<1x256x16xf32>
    %117 = vector.shape_cast %116 : vector<1x256x16xf32> to vector<256x16xf32>
    %118 = vector.shape_cast %115 : vector<256x16xf32> to vector<1x256x16xf32>
    tpu.vector_store %arg9[%c0_102, %c0_103, %c0_104], %118 {strides = array<i32>} : memref<1x256x16xf32, #tpu.memory_space<vmem>>, vector<1x256x16xf32>,
    return
  }
  func.func @transform_0(%arg0: i32) -> (i32, i32, i32) {
    %c0_i32 = arith.constant 0 : i32
    %c0_i32_0 = arith.constant 0 : i32
    %c0_i32_1 = arith.constant 0 : i32
    return %arg0, %c0_i32, %c0_i32_0 : i32, i32, i32
  }
  func.func @transform_1(%arg0: i32) -> (i32, i32, i32) {
    %c0_i32 = arith.constant 0 : i32
    %c0_i32_0 = arith.constant 0 : i32
    %c0_i32_1 = arith.constant 0 : i32
    return %arg0, %c0_i32, %c0_i32_0 : i32, i32, i32
  }
  func.func @transform_2(%arg0: i32) -> (i32, i32) {
    %c0_i32 = arith.constant 0 : i32
    %c0_i32_0 = arith.constant 0 : i32
    %c0_i32_1 = arith.constant 0 : i32
    return %c0_i32, %c0_i32_0 : i32, i32
  }
  func.func @transform_3(%arg0: i32) -> (i32, i32) {
    %c0_i32 = arith.constant 0 : i32
    %c0_i32_0 = arith.constant 0 : i32
    %c0_i32_1 = arith.constant 0 : i32
    return %c0_i32, %c0_i32_0 : i32, i32
  }
  func.func @transform_4(%arg0: i32) -> (i32, i32) {
    %c0_i32 = arith.constant 0 : i32
    %c0_i32_0 = arith.constant 0 : i32
    %c0_i32_1 = arith.constant 0 : i32
    return %c0_i32, %c0_i32_0 : i32, i32
  }
  func.func @transform_5(%arg0: i32) -> (i32, i32) {
    %c0_i32 = arith.constant 0 : i32
    %c0_i32_0 = arith.constant 0 : i32
    %c0_i32_1 = arith.constant 0 : i32
    return %c0_i32, %c0_i32_0 : i32, i32
  }
  func.func @transform_6(%arg0: i32) -> (i32, i32) {
    %c0_i32 = arith.constant 0 : i32
    %c0_i32_0 = arith.constant 0 : i32
    %c0_i32_1 = arith.constant 0 : i32
    return %c0_i32, %c0_i32_0 : i32, i32
  }
  func.func @transform_7(%arg0: i32) -> (i32, i32) {
    %c0_i32 = arith.constant 0 : i32
    %c0_i32_0 = arith.constant 0 : i32
    %c0_i32_1 = arith.constant 0 : i32
    return %c0_i32, %c0_i32_0 : i32, i32
  }
  func.func @transform_8(%arg0: i32) -> (i32, i32, i32) {
    %c0_i32 = arith.constant 0 : i32
    %c0_i32_0 = arith.constant 0 : i32
    %c0_i32_1 = arith.constant 0 : i32
    return %arg0, %c0_i32, %c0_i32_0 : i32, i32, i32
  }
}

</mosaic_0001>

<bundles_post_ra>
// kernel: tpu_custom_call.1
= control target key start
LH: loop header
LB: loop body
LE: loop exit
PB: predicated region body
PF: predicated region fallthrough
CT: control target
= control target key end

     0   :  { %s7445_s27 = smov 0   ;;  %s12472_s0 = inlined_call_operand.vmem [shape: s32[2,256,1], index: 0, kind: input, shape index: {}]   ;;  %s12473_s1 = inlined_call_operand.vmem [shape: f32[2,256,8], index: 1, kind: input, shape index: {}]   ;;  %s12474_s2 = inlined_call_operand.vmem [shape: f32[8,48], index: 2, kind: input, shape index: {}]   ;;  %s12475_s3 = inlined_call_operand.vmem [shape: f32[72,8], index: 3, kind: input, shape index: {}]   ;;  %s12476_s4 = inlined_call_operand.vmem [shape: f32[1,8], index: 4, kind: input, shape index: {}]   ;;  %s12477_s5 = inlined_call_operand.vmem [shape: f32[72,16], index: 5, kind: input, shape index: {}]   ;;  %s12478_s6 = inlined_call_operand.vmem [shape: f32[1,16], index: 6, kind: input, shape index: {}]   ;;  %s12479_s7 = inlined_call_operand.vmem [shape: f32[8,16], index: 7, kind: input, shape index: {}]   ;;  %s12480_s8 = inlined_call_operand.vmem [shape: f32[2,256,16], index: 8, kind: output, shape index: {}]  }
   0x1 LB: > { %s6734_s28 = sadd.s32 4294967295, %s7383_s27   ;;  %p6738_p0 = scmp.ge.s32.totalorder %s7383_s27, 1  ;;  %s7383_s27 = sphi %s7445_s27, %s18_s27  }
   0x2   : > { %p272_p1 = scmp.lt.s32.totalorder %s7383_s27, 3 }
   0x4   : > { %p273_p2 = pnand %p6738_p0, %p272_p1 }
   0x6   : > { %276 = sbr.rel (%p273_p2) target bundleno = 2320 (0x910), region = 52 }
   0xb   : > { %p311_p3 = scmp.lt.s32.totalorder %s6734_s28, 1  ;;  %v7385_v0 = vmov 0   ;;  %vm585_vm0 = vcmask 64512   ;;  %v7386_v1 = vmov 0.0   ;;  %v584_v10 = vld [vmem:[%s12474_s2] sm:$0xff]  ;;  %vm1439_vm1 = vcmask 58368  }
   0xc   : > { %7318 = vset.pattern.permute.xlu1 %v7385_v0  ;;  %7317 = vset.pattern.permute.xlu0 %v7385_v0  ;;  %1437 = vst.msk [vmem:[#allocation2] sm:$0xff] %vm585_vm0, %v7386_v1  ;;  %1438 = vst.msk [vmem:[#allocation2 + $0x8] sm:$0xff] %vm585_vm0, %v7386_v1  ;;  %s7387_s13 = smov 8   ;;  %s7388_s14 = smov 16   ;;  %v390_v41 = vlaneseq }
   0xd   : > { %s13831_s28 = smov (!%p311_p3, %s6734_s28), 1  ;;  %1441 = vst.msk [vmem:[#allocation2 + $0x18] sm:$0xff] %vm585_vm0, %v7386_v1  ;;  %1442 = vst.msk [vmem:[#allocation2 + $0x20] sm:$0xff] %vm585_vm0, %v7386_v1  ;;  %7060 = vmatprep.subr.mxu0 %v584_v10  ;;  %s7389_s15 = smov 48  }
   0xe   : > { %s7453_s29 = sshll.u32 %s13831_s28, 8  ;;  %1444 = vst.msk [vmem:[#allocation2 + $0x30] sm:$0xff] %vm585_vm0, %v7386_v1  ;;  %1445 = vst.msk [vmem:[#allocation2 + $0x38] sm:$0xff] %vm585_vm0, %v7386_v1  ;;  %7061 = vmatpush3.msra.mxu0 %v584_v10  ;;  %v7718_v42 = vand.u32 127, %v390_v41  ;;  %s7390_s19 = smov 120  }
   0xf   : > { %s7459_s10 = scalar_lea.vmem %s12472_s0, %s7453_s29  ;;  %1447 = vst.msk [vmem:[#allocation2 + $0x48] sm:$0xff] %vm585_vm0, %v7386_v1  ;;  %1448 = vst.msk [vmem:[#allocation2 + $0x50] sm:$0xff] %vm585_vm0, %v7386_v1  ;;  %s7820_s18 = scalar_lea.vmem %s12473_s1, %s7453_s29 }
  0x10   : > { %1450 = vst.msk [vmem:[#allocation2 + $0x60] sm:$0xff] %vm585_vm0, %v7386_v1  ;;  %1451 = vst.msk [vmem:[#allocation2 + $0x68] sm:$0xff] %vm585_vm0, %v7386_v1  ;;  %v360_v2 = vld [vmem:[%s7459_s10 + $0x10] sm:$0xff]  ;;  %v358_v3 = vld [vmem:[%s7459_s10] sm:$0xff]  ;;  %s7391_s20 = smov 32   ;;  %s7392_s21 = smov 24  }
  0x11   : > { %1453 = vst.msk [vmem:[#allocation2 + $0x78] sm:$0xff] %vm585_vm0, %v7386_v1  ;;  %1454 = vst.msk [vmem:[#allocation2 + $0x80] sm:$0xff] %vm585_vm0, %v7386_v1  ;;  %399 = vperm.xlu1 %7318, %v360_v2   ;;  %393 = vperm.xlu0 %7317, %v358_v3   ;;  %v361_v4 = vld [vmem:[%s7459_s10 + $0x18] sm:$0xff]  ;;  %v359_v5 = vld [vmem:[%s7459_s10 + $0x8] sm:$0xff]  ;;  %s7393_s22 = smov 40   ;;  %s7394_s23 = smov 56  }
  0x12   : > { %1456 = vst.msk [vmem:[#allocation2 + $0x90] sm:$0xff] %vm585_vm0, %v7386_v1  ;;  %1457 = vst.msk [vmem:[#allocation2 + $0x98] sm:$0xff] %vm585_vm0, %v7386_v1  ;;  %v363_v6 = vld [vmem:[%s7459_s10 + $0x28] sm:$0xff]  ;;  %v362_v7 = vld [vmem:[%s7459_s10 + $0x20] sm:$0xff]  ;;  %s7395_s9 = smov 64   ;;  %s7397_s11 = smov 104  }
  0x13   : > { %1459 = vst.msk [vmem:[#allocation2 + $0xa8] sm:$0xff] %vm585_vm0, %v7386_v1  ;;  %1460 = vst.msk [vmem:[#allocation2 + $0xb0] sm:$0xff] %vm585_vm0, %v7386_v1  ;;  %v365_v8 = vld [vmem:[%s7459_s10 + $0x38] sm:$0xff]  ;;  %v364_v9 = vld [vmem:[%s7459_s10 + $0x30] sm:$0xff] }
  0x14   : > { %1462 = vst.msk [vmem:[#allocation2 + $0xc0] sm:$0xff] %vm585_vm0, %v7386_v1  ;;  %1463 = vst.msk [vmem:[#allocation2 + $0xc8] sm:$0xff] %vm585_vm0, %v7386_v1  ;;  %v367_v11 = vld [vmem:[%s7459_s10 + $0x48] sm:$0xff]  ;;  %v366_v12 = vld [vmem:[%s7459_s10 + $0x40] sm:$0xff] }
  0x15   : > { %1465 = vst.msk [vmem:[#allocation2 + $0xd8] sm:$0xff] %vm585_vm0, %v7386_v1  ;;  %1466 = vst.msk [vmem:[#allocation2 + $0xe0] sm:$0xff] %vm585_vm0, %v7386_v1  ;;  %402 = vperm.xlu1 %7318, %v361_v4   ;;  %396 = vperm.xlu0 %7317, %v359_v5   ;;  %v369_v13 = vld [vmem:[%s7459_s10 + $0x58] sm:$0xff]  ;;  %v368_v14 = vld [vmem:[%s7459_s10 + $0x50] sm:$0xff] }
  0x16   : > { %1468 = vst.msk [vmem:[#allocation2 + $0xf0] sm:$0xff] %vm585_vm0, %v7386_v1  ;;  %1469 = vst.msk [vmem:[#allocation2 + $0xf8] sm:$0xff] %vm585_vm0, %v7386_v1  ;;  %v371_v15 = vld [vmem:[%s7459_s10 + $0x68] sm:$0xff]  ;;  %v370_v16 = vld [vmem:[%s7459_s10 + $0x60] sm:$0xff] }
  0x17   : > { %1471 = vst.msk [vmem:[#allocation2 + $0x108] sm:$0xff] %vm585_vm0, %v7386_v1  ;;  %1472 = vst.msk [vmem:[#allocation2 + $0x110] sm:$0xff] %vm585_vm0, %v7386_v1  ;;  %v373_v17 = vld [vmem:[%s7459_s10 + $0x78] sm:$0xff]  ;;  %v372_v18 = vld [vmem:[%s7459_s10 + $0x70] sm:$0xff] }
  0x18   : > { %1474 = vst.msk [vmem:[#allocation2 + $0x120] sm:$0xff] %vm585_vm0, %v7386_v1  ;;  %1475 = vst.msk [vmem:[#allocation2 + $0x128] sm:$0xff] %vm585_vm0, %v7386_v1  ;;  %v375_v19 = vld [vmem:[%s7459_s10 + $0x88] sm:$0xff]  ;;  %v374_v20 = vld [vmem:[%s7459_s10 + $0x80] sm:$0xff] }
  0x19   : > { %1477 = vst.msk [vmem:[#allocation2 + $0x138] sm:$0xff] %vm585_vm0, %v7386_v1  ;;  %1478 = vst.msk [vmem:[#allocation2 + $0x140] sm:$0xff] %vm585_vm0, %v7386_v1  ;;  %408 = vperm.xlu1 %7318, %v363_v6   ;;  %405 = vperm.xlu0 %7317, %v362_v7   ;;  %v377_v21 = vld [vmem:[%s7459_s10 + $0x98] sm:$0xff]  ;;  %v376_v22 = vld [vmem:[%s7459_s10 + $0x90] sm:$0xff] }
  0x1a   : > { %1480 = vst.msk [vmem:[#allocation2 + $0x150] sm:$0xff] %vm585_vm0, %v7386_v1  ;;  %1481 = vst.msk [vmem:[#allocation2 + $0x158] sm:$0xff] %vm585_vm0, %v7386_v1  ;;  %v379_v23 = vld [vmem:[%s7459_s10 + $0xa8] sm:$0xff]  ;;  %v378_v24 = vld [vmem:[%s7459_s10 + $0xa0] sm:$0xff] }
  0x1b   : > { %1483 = vst.msk [vmem:[#allocation2 + $0x168] sm:$0xff] %vm585_vm0, %v7386_v1  ;;  %1484 = vst.msk [vmem:[#allocation2 + $0x170] sm:$0xff] %vm585_vm0, %v7386_v1  ;;  %v381_v25 = vld [vmem:[%s7459_s10 + $0xb8] sm:$0xff]  ;;  %v380_v26 = vld [vmem:[%s7459_s10 + $0xb0] sm:$0xff] }
  0x1c   : > { %1486 = vst.msk [vmem:[#allocation2 + $0x180] sm:$0xff] %vm585_vm0, %v7386_v1  ;;  %1487 = vst.msk [vmem:[#allocation2 + $0x188] sm:$0xff] %vm585_vm0, %v7386_v1  ;;  %v383_v27 = vld [vmem:[%s7459_s10 + $0xc8] sm:$0xff]  ;;  %v382_v28 = vld [vmem:[%s7459_s10 + $0xc0] sm:$0xff] }
  0x1d   : > { %1489 = vst.msk [vmem:[#allocation2 + $0x198] sm:$0xff] %vm585_vm0, %v7386_v1  ;;  %1490 = vst.msk [vmem:[#allocation2 + $0x1a0] sm:$0xff] %vm585_vm0, %v7386_v1  ;;  %414 = vperm.xlu1 %7318, %v365_v8   ;;  %411 = vperm.xlu0 %7317, %v364_v9   ;;  %v385_v29 = vld [vmem:[%s7459_s10 + $0xd8] sm:$0xff]  ;;  %v384_v30 = vld [vmem:[%s7459_s10 + $0xd0] sm:$0xff] }
  0x1e   : > { %4032 = vst.msk [vmem:[#allocation3] sm:$0xff] %vm585_vm0, %v7386_v1  ;;  %4033 = vst.msk [vmem:[#allocation3 + $0x8] sm:$0xff] %vm585_vm0, %v7386_v1  ;;  %v387_v31 = vld [vmem:[%s7459_s10 + $0xe8] sm:$0xff]  ;;  %v386_v32 = vld [vmem:[%s7459_s10 + $0xe0] sm:$0xff] }
  0x1f   : > { %4035 = vst.msk [vmem:[#allocation3 + $0x18] sm:$0xff] %vm585_vm0, %v7386_v1  ;;  %4036 = vst.msk [vmem:[#allocation3 + $0x20] sm:$0xff] %vm585_vm0, %v7386_v1  ;;  %v389_v33 = vld [vmem:[%s7459_s10 + $0xf8] sm:$0xff]  ;;  %v388_v34 = vld [vmem:[%s7459_s10 + $0xf0] sm:$0xff]  ;;  %s7396_s10 = smov 112  }
  0x20   : > { %4038 = vst.msk [vmem:[#allocation3 + $0x30] sm:$0xff] %vm585_vm0, %v7386_v1  ;;  %4039 = vst.msk [vmem:[#allocation3 + $0x38] sm:$0xff] %vm585_vm0, %v7386_v1  ;;  %v1557_v35 = vld [vmem:[#allocation2 + $0x1] sm:$0xff] }
  0x21   : > { %4041 = vst.msk [vmem:[#allocation3 + $0x48] sm:$0xff] %vm585_vm0, %v7386_v1  ;;  %4042 = vst.msk [vmem:[#allocation3 + $0x50] sm:$0xff] %vm585_vm0, %v7386_v1  ;;  %420 = vperm.xlu1 %7318, %v367_v11   ;;  %417 = vperm.xlu0 %7317, %v366_v12   ;;  %v1589_v36 = vld [vmem:[#allocation2 + $0x2] sm:$0xff] }
  0x22   : > { %4044 = vst.msk [vmem:[#allocation3 + $0x60] sm:$0xff] %vm585_vm0, %v7386_v1  ;;  %4045 = vst.msk [vmem:[#allocation3 + $0x68] sm:$0xff] %vm585_vm0, %v7386_v1 }
  0x23   : > { %4047 = vst.msk [vmem:[#allocation3 + $0x78] sm:$0xff] %vm585_vm0, %v7386_v1  ;;  %4048 = vst.msk [vmem:[#allocation3 + $0x80] sm:$0xff] %vm585_vm0, %v7386_v1 }
  0x24   : > { %4050 = vst.msk [vmem:[#allocation3 + $0x90] sm:$0xff] %vm585_vm0, %v7386_v1  ;;  %4051 = vst.msk [vmem:[#allocation3 + $0x98] sm:$0xff] %vm585_vm0, %v7386_v1  ;;  %v1748_v37 = vld [vmem:[#allocation2 + $0x198] sm:$0xff]  ;;  %v1749_v40 = vld [vmem:[#allocation2 + $0x1a0] sm:$0xff] }
  0x25   : > { %4053 = vst.msk [vmem:[#allocation3 + $0xa8] sm:$0xff] %vm585_vm0, %v7386_v1  ;;  %4054 = vst.msk [vmem:[#allocation3 + $0xb0] sm:$0xff] %vm585_vm0, %v7386_v1  ;;  %426 = vperm.xlu1 %7318, %v369_v13   ;;  %423 = vperm.xlu0 %7317, %v368_v14  }
  0x26   : > { %4056 = vst.msk [vmem:[#allocation3 + $0xc0] sm:$0xff] %vm585_vm0, %v7386_v1  ;;  %4057 = vst.msk [vmem:[#allocation3 + $0xc8] sm:$0xff] %vm585_vm0, %v7386_v1 }
  0x27   : > { %4059 = vst.msk [vmem:[#allocation3 + $0xd8] sm:$0xff] %vm585_vm0, %v7386_v1  ;;  %4060 = vst.msk [vmem:[#allocation3 + $0xe0] sm:$0xff] %vm585_vm0, %v7386_v1 }
  0x28   : > { %4062 = vst.msk [vmem:[#allocation3 + $0xf0] sm:$0xff] %vm585_vm0, %v7386_v1  ;;  %4063 = vst.msk [vmem:[#allocation3 + $0xf8] sm:$0xff] %vm585_vm0, %v7386_v1 }
  0x29   : > { %4065 = vst.msk [vmem:[#allocation3 + $0x108] sm:$0xff] %vm585_vm0, %v7386_v1  ;;  %4066 = vst.msk [vmem:[#allocation3 + $0x110] sm:$0xff] %vm585_vm0, %v7386_v1  ;;  %432 = vperm.xlu1 %7318, %v371_v15   ;;  %429 = vperm.xlu0 %7317, %v370_v16  }
  0x2a   : > { %4068 = vst.msk [vmem:[#allocation3 + $0x120] sm:$0xff] %vm585_vm0, %v7386_v1  ;;  %4069 = vst.msk [vmem:[#allocation3 + $0x128] sm:$0xff] %vm585_vm0, %v7386_v1 }
  0x2b   : > { %4071 = vst.msk [vmem:[#allocation3 + $0x138] sm:$0xff] %vm585_vm0, %v7386_v1  ;;  %4072 = vst.msk [vmem:[#allocation3 + $0x140] sm:$0xff] %vm585_vm0, %v7386_v1 }
  0x2c   : > { %4074 = vst.msk [vmem:[#allocation3 + $0x150] sm:$0xff] %vm585_vm0, %v7386_v1  ;;  %4075 = vst.msk [vmem:[#allocation3 + $0x158] sm:$0xff] %vm585_vm0, %v7386_v1 }
  0x2d   : > { %4077 = vst.msk [vmem:[#allocation3 + $0x168] sm:$0xff] %vm585_vm0, %v7386_v1  ;;  %4078 = vst.msk [vmem:[#allocation3 + $0x170] sm:$0xff] %vm585_vm0, %v7386_v1  ;;  %438 = vperm.xlu1 %7318, %v373_v17   ;;  %435 = vperm.xlu0 %7317, %v372_v18  }
  0x2e   : > { %4080 = vst.msk [vmem:[#allocation3 + $0x180] sm:$0xff] %vm585_vm0, %v7386_v1  ;;  %4081 = vst.msk [vmem:[#allocation3 + $0x188] sm:$0xff] %vm585_vm0, %v7386_v1 }
  0x2f   : > { %4083 = vst.msk [vmem:[#allocation3 + $0x198] sm:$0xff] %vm585_vm0, %v7386_v1  ;;  %4084 = vst.msk [vmem:[#allocation3 + $0x1a0] sm:$0xff] %vm585_vm0, %v7386_v1 }
  0x30   : > { %1440 = vst.msk [vmem:[#allocation2 + $0x10] sm:$0x3] %vm1439_vm1, %v7386_v1  ;;  %1443 = vst.msk [vmem:[#allocation2 + $0x28] sm:$0x3] %vm1439_vm1, %v7386_v1 }
  0x31   : > { %444 = vperm.xlu1 %7318, %v375_v19   ;;  %441 = vperm.xlu0 %7317, %v374_v20   ;;  %1446 = vst.msk [vmem:[#allocation2 + $0x40] sm:$0x3] %vm1439_vm1, %v7386_v1  ;;  %1449 = vst.msk [vmem:[#allocation2 + $0x58] sm:$0x3] %vm1439_vm1, %v7386_v1 }
  0x32   : > { %1452 = vst.msk [vmem:[#allocation2 + $0x70] sm:$0x3] %vm1439_vm1, %v7386_v1  ;;  %1455 = vst.msk [vmem:[#allocation2 + $0x88] sm:$0x3] %vm1439_vm1, %v7386_v1 }
  0x33   : > { %1458 = vst.msk [vmem:[#allocation2 + $0xa0] sm:$0x3] %vm1439_vm1, %v7386_v1  ;;  %1461 = vst.msk [vmem:[#allocation2 + $0xb8] sm:$0x3] %vm1439_vm1, %v7386_v1 }
  0x34   : > { %1464 = vst.msk [vmem:[#allocation2 + $0xd0] sm:$0x3] %vm1439_vm1, %v7386_v1  ;;  %1467 = vst.msk [vmem:[#allocation2 + $0xe8] sm:$0x3] %vm1439_vm1, %v7386_v1 }
  0x35   : > { %450 = vperm.xlu1 %7318, %v377_v21   ;;  %447 = vperm.xlu0 %7317, %v376_v22   ;;  %1470 = vst.msk [vmem:[#allocation2 + $0x100] sm:$0x3] %vm1439_vm1, %v7386_v1  ;;  %1473 = vst.msk [vmem:[#allocation2 + $0x118] sm:$0x3] %vm1439_vm1, %v7386_v1 }
  0x36   : > { %1476 = vst.msk [vmem:[#allocation2 + $0x130] sm:$0x3] %vm1439_vm1, %v7386_v1  ;;  %1479 = vst.msk [vmem:[#allocation2 + $0x148] sm:$0x3] %vm1439_vm1, %v7386_v1 }
  0x37   : > { %1482 = vst.msk [vmem:[#allocation2 + $0x160] sm:$0x3] %vm1439_vm1, %v7386_v1  ;;  %1485 = vst.msk [vmem:[#allocation2 + $0x178] sm:$0x3] %vm1439_vm1, %v7386_v1  ;;  %v1558_v38 = vld [vmem:[#allocation2 + $0x9] sm:$0xff] }
  0x38   : > { %1488 = vst.msk [vmem:[#allocation2 + $0x190] sm:$0x3] %vm1439_vm1, %v7386_v1  ;;  %1491 = vst.msk [vmem:[#allocation2 + $0x1a8] sm:$0x3] %vm1439_vm1, %v7386_v1  ;;  %v1590_v39 = vld [vmem:[#allocation2 + $0xa] sm:$0xff] }
  0x39   : > { %456 = vperm.xlu1 %7318, %v379_v23   ;;  %453 = vperm.xlu0 %7317, %v378_v24   ;;  %4034 = vst.msk [vmem:[#allocation3 + $0x10] sm:$0x3] %vm1439_vm1, %v7386_v1  ;;  %4037 = vst.msk [vmem:[#allocation3 + $0x28] sm:$0x3] %vm1439_vm1, %v7386_v1 }
  0x3a   : > { %4040 = vst.msk [vmem:[#allocation3 + $0x40] sm:$0x3] %vm1439_vm1, %v7386_v1  ;;  %4043 = vst.msk [vmem:[#allocation3 + $0x58] sm:$0x3] %vm1439_vm1, %v7386_v1 }
  0x3b   : > { %4046 = vst.msk [vmem:[#allocation3 + $0x70] sm:$0x3] %vm1439_vm1, %v7386_v1  ;;  %4049 = vst.msk [vmem:[#allocation3 + $0x88] sm:$0x3] %vm1439_vm1, %v7386_v1 }
  0x3c   : > { %4052 = vst.msk [vmem:[#allocation3 + $0xa0] sm:$0x3] %vm1439_vm1, %v7386_v1  ;;  %4055 = vst.msk [vmem:[#allocation3 + $0xb8] sm:$0x3] %vm1439_vm1, %v7386_v1 }
  0x3d   : > { %462 = vperm.xlu1 %7318, %v381_v25   ;;  %459 = vperm.xlu0 %7317, %v380_v26   ;;  %4058 = vst.msk [vmem:[#allocation3 + $0xd0] sm:$0x3] %vm1439_vm1, %v7386_v1  ;;  %4061 = vst.msk [vmem:[#allocation3 + $0xe8] sm:$0x3] %vm1439_vm1, %v7386_v1 }
  0x3e   : > { %4064 = vst.msk [vmem:[#allocation3 + $0x100] sm:$0x3] %vm1439_vm1, %v7386_v1  ;;  %4067 = vst.msk [vmem:[#allocation3 + $0x118] sm:$0x3] %vm1439_vm1, %v7386_v1 }
  0x3f   : > { %4070 = vst.msk [vmem:[#allocation3 + $0x130] sm:$0x3] %vm1439_vm1, %v7386_v1  ;;  %4073 = vst.msk [vmem:[#allocation3 + $0x148] sm:$0x3] %vm1439_vm1, %v7386_v1 }
  0x40   : > { %4076 = vst.msk [vmem:[#allocation3 + $0x160] sm:$0x3] %vm1439_vm1, %v7386_v1  ;;  %4079 = vst.msk [vmem:[#allocation3 + $0x178] sm:$0x3] %vm1439_vm1, %v7386_v1 }
  0x41   : > { %468 = vperm.xlu1 %7318, %v383_v27   ;;  %465 = vperm.xlu0 %7317, %v382_v28   ;;  %4082 = vst.msk [vmem:[#allocation3 + $0x190] sm:$0x3] %vm1439_vm1, %v7386_v1  ;;  %4085 = vst.msk [vmem:[#allocation3 + $0x1a8] sm:$0x3] %vm1439_vm1, %v7386_v1 }
  0x45   : > { %474 = vperm.xlu1 %7318, %v385_v29   ;;  %471 = vperm.xlu0 %7317, %v384_v30  }
  0x49   : > { %480 = vperm.xlu1 %7318, %v387_v31   ;;  %477 = vperm.xlu0 %7317, %v386_v32  }
  0x4d   : > { %486 = vperm.xlu1 %7318, %v389_v33   ;;  %483 = vperm.xlu0 %7317, %v388_v34  }
  0x51   : > { %1846 = vrot.lane.b32.xlu0 %v1557_v35, %s7387_s13  ;;  %1848 = vrot.lane.b32.xlu1 %v1558_v38, %s7387_s13 }
  0x55   : > { %1974 = vrot.lane.b32.xlu0 %v1589_v36, %s7388_s14  ;;  %1976 = vrot.lane.b32.xlu1 %v1590_v39, %s7388_s14 }
  0x59   : > { %2546 = vrot.lane.b32.xlu0 %v1748_v37, %s7389_s15  ;;  %2548 = vrot.lane.b32.xlu1 %v1749_v40, %s7389_s15 }
  0x8c   : > { %v400_v43 = vpop.permute.xlu1 %399  ;;  %v394_v44 = vpop.permute.xlu0 %393 }
  0x8d   : > { %vm488_vm2 = vcmp.eq.s32.totalorder %v7718_v42, %v394_v44  ;;  %vm490_vm3 = vcmp.eq.s32.totalorder %v7718_v42, %v400_v43 }
  0x8e   : > { %v6745_v45 = vsel %vm488_vm2, 1.0, %v7386_v1  ;;  %v6747_v48 = vsel %vm490_vm3, 1.0, %v7386_v1 }
  0x8f   : > { %7062 = vmatprep.mubr.msk.f32.mxu0 %vm585_vm0, %v6745_v45  ;;  %v7823_v45 = vld [vmem:[%s7820_s18] sm:$0xff] }
  0x90   : > { %v403_v46 = vpop.permute.xlu1 %402  ;;  %v397_v47 = vpop.permute.xlu0 %396 }
  0x91   : > { %vm491_vm4 = vcmp.eq.s32.totalorder %v7718_v42, %v403_v46  ;;  %vm489_vm5 = vcmp.eq.s32.totalorder %v7718_v42, %v397_v47  ;;  %v907_v46 = vsel %vm585_vm0, %v7823_v45, 0.0  ;;  %v978_v47 = vmul.f32 %v7823_v45, %v7823_v45 }
  0x92   : > { %v6746_v49 = vsel %vm489_vm5, 1.0, %v7386_v1  ;;  %v6748_v50 = vsel %vm491_vm4, 1.0, %v7386_v1 }
  0x93   : > { %7063 = vmatmul.mubr.msk.f32.vlgmr.msra.gmra.mxu0 %vm585_vm0, %v6746_v49  ;;  %v7837_v49 = vld [vmem:[%s7820_s18 + $0x10] sm:$0xff] }
  0x94   : > { %v409_v51 = vpop.permute.xlu1 %408  ;;  %v406_v52 = vpop.permute.xlu0 %405  ;;  %7065 = vmatprep.mubr.msk.f32.mxu0 %vm585_vm0, %v6747_v48 }
  0x95   : > { %vm493_vm6 = vcmp.eq.s32.totalorder %v7718_v42, %v409_v51  ;;  %vm492_vm7 = vcmp.eq.s32.totalorder %v7718_v42, %v406_v52  ;;  %v910_v51 = vsel %vm585_vm0, %v7837_v49, 0.0  ;;  %v980_v52 = vmul.f32 %v7837_v49, %v7837_v49 }
  0x96   : > { %v6749_v53 = vsel %vm492_vm7, 1.0, %v7386_v1  ;;  %v6750_v54 = vsel %vm493_vm6, 1.0, %v7386_v1 }
  0x97   : > { %7066 = vmatmul.mubr.msk.f32.gmra.mxu0 %vm585_vm0, %v6748_v50 }
  0x98   : > { %v415_v55 = vpop.permute.xlu1 %414  ;;  %7068 = vmatprep.mubr.msk.f32.mxu0 %vm585_vm0, %v6749_v53  ;;  %v412_v56 = vpop.permute.xlu0 %411  ;;  %v1010_v53 = vsel %vm585_vm0, %v978_v47, 0.0  ;;  %v7918_v47 = vld [vmem:[%s7820_s18 + $0x60] sm:$0xff] }
  0x99   : > { %vm495_vm8 = vcmp.eq.s32.totalorder %v7718_v42, %v415_v55  ;;  %vm494_vm9 = vcmp.eq.s32.totalorder %v7718_v42, %v412_v56  ;;  %v7846_v55 = vld [vmem:[%s7820_s18 + $0x18] sm:$0xff] }
  0x9a   : > { %v6751_v57 = vsel %vm494_vm9, 1.0, %v7386_v1  ;;  %v6752_v58 = vsel %vm495_vm8, 1.0, %v7386_v1 }
  0x9b   : > { %7069 = vmatmul.mubr.msk.f32.gmra.mxu0 %vm585_vm0, %v6750_v54 }
  0x9c   : > { %v421_v59 = vpop.permute.xlu1 %420  ;;  %7071 = vmatprep.mubr.msk.f32.mxu0 %vm585_vm0, %v6751_v57  ;;  %v418_v60 = vpop.permute.xlu0 %417 }
  0x9d   : > { %vm497_vm10 = vcmp.eq.s32.totalorder %v7718_v42, %v421_v59  ;;  %vm496_vm11 = vcmp.eq.s32.totalorder %v7718_v42, %v418_v60  ;;  %v981_v59 = vmul.f32 %v7846_v55, %v7846_v55  ;;  %v1013_v60 = vsel %vm585_vm0, %v980_v52, 0.0 }
  0x9e   : > { %v6753_v61 = vsel %vm496_vm11, 1.0, %v7386_v1  ;;  %v6754_v62 = vsel %vm497_vm10, 1.0, %v7386_v1  ;;  %v990_v52 = vmul.f32 %v7918_v47, %v7918_v47 }
  0x9f   : > { %7072 = vmatmul.mubr.msk.f32.gmra.mxu0 %vm585_vm0, %v6752_v58  ;;  %v912_v58 = vsel %vm585_vm0, %v7846_v55, 0.0 }
  0xa0   : > { %v427_v63 = vpop.permute.xlu1 %426  ;;  %7074 = vmatprep.mubr.msk.f32.mxu0 %vm585_vm0, %v6753_v61  ;;  %v424_v0 = vpop.permute.xlu0 %423  ;;  %v7854_v61 = vld [vmem:[%s7820_s18 + $0x20] sm:$0xff] }
  0xa1   : > { %vm498_vm12 = vcmp.eq.s32.totalorder %v7718_v42, %v424_v0  ;;  %vm499_vm13 = vcmp.eq.s32.totalorder %v7718_v42, %v427_v63  ;;  %v914_v0 = vsel %vm585_vm0, %v7854_v61, 0.0 }
  0xa2   : > { %v6755_v2 = vsel %vm498_vm12, 1.0, %v7386_v1  ;;  %v6756_v5 = vsel %vm499_vm13, 1.0, %v7386_v1 }
  0xa3   : > { %7075 = vmatmul.mubr.msk.f32.gmra.mxu0 %vm585_vm0, %v6754_v62 }
  0xa4   : > { %v433_v3 = vpop.permute.xlu1 %432  ;;  %7077 = vmatprep.mubr.msk.f32.mxu0 %vm585_vm0, %v6755_v2  ;;  %v430_v4 = vpop.permute.xlu0 %429  ;;  %v982_v2 = vmul.f32 %v7854_v61, %v7854_v61 }
  0xa5   : > { %vm500_vm14 = vcmp.eq.s32.totalorder %v7718_v42, %v430_v4  ;;  %vm501_vm15 = vcmp.eq.s32.totalorder %v7718_v42, %v433_v3  ;;  %v1015_v3 = vsel %vm585_vm0, %v981_v59, 0.0  ;;  %v7862_v4 = vld [vmem:[%s7820_s18 + $0x28] sm:$0xff] }
  0xa6   : > { %v6757_v6 = vsel %vm500_vm14, 1.0, %v7386_v1  ;;  %v6758_v9 = vsel %vm501_vm15, 1.0, %v7386_v1 }
  0xa7   : > { %7078 = vmatmul.mubr.msk.f32.gmra.mxu0 %vm585_vm0, %v6756_v5 }
  0xa8   : > { %v439_v7 = vpop.permute.xlu1 %438  ;;  %7080 = vmatprep.mubr.msk.f32.mxu0 %vm585_vm0, %v6757_v6  ;;  %v436_v8 = vpop.permute.xlu0 %435 }
  0xa9   : > { %vm502_vm1 = vcmp.eq.s32.totalorder %v7718_v42, %v436_v8  ;;  %vm503_vm2 = vcmp.eq.s32.totalorder %v7718_v42, %v439_v7  ;;  %v916_v7 = vsel %vm585_vm0, %v7862_v4, 0.0  ;;  %v983_v8 = vmul.f32 %v7862_v4, %v7862_v4 }
  0xaa   : > { %v6759_v10 = vsel %vm502_vm1, 1.0, %v7386_v1  ;;  %v6760_v13 = vsel %vm503_vm2, 1.0, %v7386_v1 }
  0xab   : > { %7081 = vmatmul.mubr.msk.f32.gmra.mxu0 %vm585_vm0, %v6758_v9  ;;  %v1017_v9 = vsel %vm585_vm0, %v982_v2, 0.0 }
  0xac   : > { %v445_v11 = vpop.permute.xlu1 %444  ;;  %7083 = vmatprep.mubr.msk.f32.mxu0 %vm585_vm0, %v6759_v10  ;;  %v442_v12 = vpop.permute.xlu0 %441  ;;  %v7870_v10 = vld [vmem:[%s7820_s18 + $0x30] sm:$0xff] }
  0xad   : > { %vm504_vm3 = vcmp.eq.s32.totalorder %v7718_v42, %v442_v12  ;;  %vm505_vm4 = vcmp.eq.s32.totalorder %v7718_v42, %v445_v11 }
  0xae   : > { %v6761_v14 = vsel %vm504_vm3, 1.0, %v7386_v1  ;;  %v6762_v17 = vsel %vm505_vm4, 1.0, %v7386_v1 }
  0xaf   : > { %7084 = vmatmul.mubr.msk.f32.gmra.mxu0 %vm585_vm0, %v6760_v13  ;;  %v918_v13 = vsel %vm585_vm0, %v7870_v10, 0.0 }
  0xb0   : > { %v451_v15 = vpop.permute.xlu1 %450  ;;  %7086 = vmatprep.mubr.msk.f32.mxu0 %vm585_vm0, %v6761_v14  ;;  %v448_v16 = vpop.permute.xlu0 %447  ;;  %v984_v14 = vmul.f32 %v7870_v10, %v7870_v10 }
  0xb1   : > { %vm506_vm5 = vcmp.eq.s32.totalorder %v7718_v42, %v448_v16  ;;  %vm507_vm6 = vcmp.eq.s32.totalorder %v7718_v42, %v451_v15  ;;  %v1019_v15 = vsel %vm585_vm0, %v983_v8, 0.0  ;;  %v7878_v16 = vld [vmem:[%s7820_s18 + $0x38] sm:$0xff] }
  0xb2   : > { %v6763_v18 = vsel %vm506_vm5, 1.0, %v7386_v1  ;;  %v6764_v21 = vsel %vm507_vm6, 1.0, %v7386_v1 }
  0xb3   : > { %7087 = vmatmul.mubr.msk.f32.gmra.mxu0 %vm585_vm0, %v6762_v17 }
  0xb4   : > { %v457_v19 = vpop.permute.xlu1 %456  ;;  %7089 = vmatprep.mubr.msk.f32.mxu0 %vm585_vm0, %v6763_v18  ;;  %v454_v20 = vpop.permute.xlu0 %453 }
  0xb5   : > { %vm508_vm7 = vcmp.eq.s32.totalorder %v7718_v42, %v454_v20  ;;  %vm509_vm8 = vcmp.eq.s32.totalorder %v7718_v42, %v457_v19  ;;  %v920_v19 = vsel %vm585_vm0, %v7878_v16, 0.0  ;;  %v985_v20 = vmul.f32 %v7878_v16, %v7878_v16 }
  0xb6   : > { %v6765_v22 = vsel %vm508_vm7, 1.0, %v7386_v1  ;;  %v6766_v25 = vsel %vm509_vm8, 1.0, %v7386_v1 }
  0xb7   : > { %7090 = vmatmul.mubr.msk.f32.gmra.mxu0 %vm585_vm0, %v6764_v21  ;;  %v1021_v21 = vsel %vm585_vm0, %v984_v14, 0.0 }
  0xb8   : > { %v463_v23 = vpop.permute.xlu1 %462  ;;  %7092 = vmatprep.mubr.msk.f32.mxu0 %vm585_vm0, %v6765_v22  ;;  %v460_v24 = vpop.permute.xlu0 %459  ;;  %v7886_v22 = vld [vmem:[%s7820_s18 + $0x40] sm:$0xff] }
  0xb9   : > { %vm510_vm9 = vcmp.eq.s32.totalorder %v7718_v42, %v460_v24  ;;  %vm511_vm10 = vcmp.eq.s32.totalorder %v7718_v42, %v463_v23 }
  0xba   : > { %v6767_v26 = vsel %vm510_vm9, 1.0, %v7386_v1  ;;  %v6768_v29 = vsel %vm511_vm10, 1.0, %v7386_v1 }
  0xbb   : > { %7093 = vmatmul.mubr.msk.f32.gmra.mxu0 %vm585_vm0, %v6766_v25  ;;  %v922_v25 = vsel %vm585_vm0, %v7886_v22, 0.0 }
  0xbc   : > { %v469_v27 = vpop.permute.xlu1 %468  ;;  %7095 = vmatprep.mubr.msk.f32.mxu0 %vm585_vm0, %v6767_v26  ;;  %v466_v28 = vpop.permute.xlu0 %465  ;;  %v986_v26 = vmul.f32 %v7886_v22, %v7886_v22 }
  0xbd   : > { %vm512_vm11 = vcmp.eq.s32.totalorder %v7718_v42, %v466_v28  ;;  %vm513_vm12 = vcmp.eq.s32.totalorder %v7718_v42, %v469_v27  ;;  %v1023_v27 = vsel %vm585_vm0, %v985_v20, 0.0  ;;  %v7894_v28 = vld [vmem:[%s7820_s18 + $0x48] sm:$0xff] }
  0xbe   : > { %v6769_v30 = vsel %vm512_vm11, 1.0, %v7386_v1  ;;  %v6770_v33 = vsel %vm513_vm12, 1.0, %v7386_v1  ;;  %v7958_v20 = vld [vmem:[%s7820_s18 + $0x88] sm:$0xff] }
  0xbf   : > { %7096 = vmatmul.mubr.msk.f32.gmra.mxu0 %vm585_vm0, %v6768_v29 }
  0xc0   : > { %v475_v31 = vpop.permute.xlu1 %474  ;;  %7098 = vmatprep.mubr.msk.f32.mxu0 %vm585_vm0, %v6769_v30  ;;  %v472_v32 = vpop.permute.xlu0 %471 }
  0xc1   : > { %vm514_vm13 = vcmp.eq.s32.totalorder %v7718_v42, %v472_v32  ;;  %vm515_vm14 = vcmp.eq.s32.totalorder %v7718_v42, %v475_v31  ;;  %v924_v31 = vsel %vm585_vm0, %v7894_v28, 0.0  ;;  %v987_v32 = vmul.f32 %v7894_v28, %v7894_v28 }
  0xc2   : > { %v6771_v34 = vsel %vm514_vm13, 1.0, %v7386_v1  ;;  %v6772_v37 = vsel %vm515_vm14, 1.0, %v7386_v1 }
  0xc3   : > { %7099 = vmatmul.mubr.msk.f32.gmra.mxu0 %vm585_vm0, %v6770_v33  ;;  %v1025_v33 = vsel %vm585_vm0, %v986_v26, 0.0 }
  0xc4   : > { %v481_v35 = vpop.permute.xlu1 %480  ;;  %7101 = vmatprep.mubr.msk.f32.mxu0 %vm585_vm0, %v6771_v34  ;;  %v478_v36 = vpop.permute.xlu0 %477  ;;  %v7902_v34 = vld [vmem:[%s7820_s18 + $0x50] sm:$0xff] }
  0xc5   : > { %vm516_vm15 = vcmp.eq.s32.totalorder %v7718_v42, %v478_v36  ;;  %vm517_vm1 = vcmp.eq.s32.totalorder %v7718_v42, %v481_v35 }
  0xc6   : > { %v6773_v38 = vsel %vm516_vm15, 1.0, %v7386_v1  ;;  %v6774_v41 = vsel %vm517_vm1, 1.0, %v7386_v1 }
  0xc7   : > { %7102 = vmatmul.mubr.msk.f32.gmra.mxu0 %vm585_vm0, %v6772_v37  ;;  %v926_v37 = vsel %vm585_vm0, %v7902_v34, 0.0 }
  0xc8   : > { %v487_v39 = vpop.permute.xlu1 %486  ;;  %7104 = vmatprep.mubr.msk.f32.mxu0 %vm585_vm0, %v6773_v38  ;;  %v484_v40 = vpop.permute.xlu0 %483  ;;  %v988_v38 = vmul.f32 %v7902_v34, %v7902_v34 }
  0xc9   : > { %vm518_vm2 = vcmp.eq.s32.totalorder %v7718_v42, %v484_v40  ;;  %vm519_vm3 = vcmp.eq.s32.totalorder %v7718_v42, %v487_v39  ;;  %v7826_v42 = vld [vmem:[%s7820_s18 + $0x8] sm:$0xff]  ;;  %v1027_v39 = vsel %vm585_vm0, %v987_v32, 0.0  ;;  %v7910_v40 = vld [vmem:[%s7820_s18 + $0x58] sm:$0xff] }
  0xca   : > { %v6775_v43 = vsel %vm518_vm2, 1.0, %v7386_v1  ;;  %v6776_v44 = vsel %vm519_vm3, 1.0, %v7386_v1  ;;  %v908_v1 = vsel %vm585_vm0, %v7826_v42, 0.0  ;;  %v979_v48 = vmul.f32 %v7826_v42, %v7826_v42 }
  0xcb   : > { %7105 = vmatmul.mubr.msk.f32.gmra.mxu0 %vm585_vm0, %v6774_v41  ;;  %v909_v50 = vadd.f32 %v908_v1, %v907_v46  ;;  %v989_v46 = vmul.f32 %v7910_v40, %v7910_v40  ;;  %v1029_v1 = vsel %vm585_vm0, %v988_v38, 0.0 }
  0xcc   : > { %7107 = vmatprep.mubr.msk.f32.mxu0 %vm585_vm0, %v6775_v43  ;;  %v1011_v54 = vsel %vm585_vm0, %v979_v48, 0.0 }
  0xcd   : > { %v911_v56 = vadd.f32 %v910_v51, %v909_v50  ;;  %v1012_v57 = vadd.f32 %v1011_v54, %v1010_v53  ;;  %v930_v51 = vsel %vm585_vm0, %v7918_v47, 0.0  ;;  %v1031_v53 = vsel %vm585_vm0, %v989_v46, 0.0  ;;  %v7926_v54 = vld [vmem:[%s7820_s18 + $0x68] sm:$0xff] }
  0xce   : > { %v991_v59 = vmul.f32 %v7926_v54, %v7926_v54 }
  0xcf   : > { %7108 = vmatmul.mubr.msk.f32.gmra.mxu0 %vm585_vm0, %v6776_v44  ;;  %v913_v62 = vadd.f32 %v912_v58, %v911_v56  ;;  %v1014_v63 = vadd.f32 %v1013_v60, %v1012_v57  ;;  %v928_v44 = vsel %vm585_vm0, %v7910_v40, 0.0  ;;  %v932_v58 = vsel %vm585_vm0, %v7926_v54, 0.0 }
  0xd0   : > { %v1033_v60 = vsel %vm585_vm0, %v990_v52, 0.0  ;;  %v7992_v52 = vld [vmem:[%s7820_s18 + $0xa8] sm:$0xff] }
  0xd1   : > { %v915_v5 = vadd.f32 %v914_v0, %v913_v62  ;;  %v1016_v6 = vadd.f32 %v1015_v3, %v1014_v63  ;;  %v7934_v62 = vld [vmem:[%s7820_s18 + $0x70] sm:$0xff] }
  0xd2   : > { %v934_v2 = vsel %vm585_vm0, %v7934_v62, 0.0  ;;  %v992_v3 = vmul.f32 %v7934_v62, %v7934_v62 }
  0xd3   : > { %v917_v11 = vadd.f32 %v916_v7, %v915_v5  ;;  %v1018_v12 = vadd.f32 %v1017_v9, %v1016_v6  ;;  %v1035_v5 = vsel %vm585_vm0, %v991_v59, 0.0  ;;  %v7942_v6 = vld [vmem:[%s7820_s18 + $0x78] sm:$0xff]  ;;  %v999_v59 = vmul.f32 %v7992_v52, %v7992_v52 }
  0xd4   : > { %v936_v9 = vsel %vm585_vm0, %v7942_v6, 0.0 }
  0xd5   : > { %v919_v17 = vadd.f32 %v918_v13, %v917_v11  ;;  %v1020_v18 = vadd.f32 %v1019_v15, %v1018_v12  ;;  %v993_v11 = vmul.f32 %v7942_v6, %v7942_v6  ;;  %v1037_v12 = vsel %vm585_vm0, %v992_v3, 0.0  ;;  %v7950_v13 = vld [vmem:[%s7820_s18 + $0x80] sm:$0xff] }
  0xd7   : > { %v921_v23 = vadd.f32 %v920_v19, %v919_v17  ;;  %v1022_v24 = vadd.f32 %v1021_v21, %v1020_v18  ;;  %v938_v17 = vsel %vm585_vm0, %v7950_v13, 0.0  ;;  %v994_v18 = vmul.f32 %v7950_v13, %v7950_v13 }
  0xd8   : > { %v1039_v19 = vsel %vm585_vm0, %v993_v11, 0.0 }
  0xd9   : > { %v923_v29 = vadd.f32 %v922_v25, %v921_v23  ;;  %v1024_v30 = vadd.f32 %v1023_v27, %v1022_v24  ;;  %v940_v24 = vsel %vm585_vm0, %v7958_v20, 0.0  ;;  %v995_v25 = vmul.f32 %v7958_v20, %v7958_v20  ;;  %v7966_v27 = vld [vmem:[%s7820_s18 + $0x90] sm:$0xff] }
  0xda   : > { %v1041_v26 = vsel %vm585_vm0, %v994_v18, 0.0  ;;  %v996_v32 = vmul.f32 %v7966_v27, %v7966_v27 }
  0xdb   : > { %v925_v35 = vadd.f32 %v924_v31, %v923_v29  ;;  %v1026_v36 = vadd.f32 %v1025_v33, %v1024_v30  ;;  %v942_v31 = vsel %vm585_vm0, %v7966_v27, 0.0  ;;  %v1043_v33 = vsel %vm585_vm0, %v995_v25, 0.0 }
  0xdd   : > { %v927_v41 = vadd.f32 %v926_v37, %v925_v35  ;;  %v1028_v43 = vadd.f32 %v1027_v39, %v1026_v36  ;;  %v7974_v35 = vld [vmem:[%s7820_s18 + $0x98] sm:$0xff] }
  0xde   : > { %v944_v38 = vsel %vm585_vm0, %v7974_v35, 0.0  ;;  %v997_v39 = vmul.f32 %v7974_v35, %v7974_v35 }
  0xdf   : > { %v929_v48 = vadd.f32 %v928_v44, %v927_v41  ;;  %v1030_v50 = vadd.f32 %v1029_v1, %v1028_v43  ;;  %v1045_v41 = vsel %vm585_vm0, %v996_v32, 0.0  ;;  %v7982_v43 = vld [vmem:[%s7820_s18 + $0xa0] sm:$0xff] }
  0xe0   : > { %v946_v1 = vsel %vm585_vm0, %v7982_v43, 0.0 }
  0xe1   : > { %v931_v56 = vadd.f32 %v930_v51, %v929_v48  ;;  %v1032_v57 = vadd.f32 %v1031_v53, %v1030_v50  ;;  %v998_v48 = vmul.f32 %v7982_v43, %v7982_v43  ;;  %v1047_v50 = vsel %vm585_vm0, %v997_v39, 0.0 }
  0xe3   : > { %v933_v63 = vadd.f32 %v932_v58, %v931_v56  ;;  %v1034_v0 = vadd.f32 %v1033_v60, %v1032_v57  ;;  %v948_v58 = vsel %vm585_vm0, %v7992_v52, 0.0  ;;  %v1049_v60 = vsel %vm585_vm0, %v998_v48, 0.0  ;;  %v8072_v48 = vld [vmem:[%s7820_s18 + $0xd0] sm:$0xff] }
  0xe4   : > { %12630 = vst [vmem:[#allocation16_spill] sm:$0xff] %v8072_v48 }
  0xe5   : > { %v935_v7 = vadd.f32 %v934_v2, %v933_v63  ;;  %v1036_v8 = vadd.f32 %v1035_v5, %v1034_v0  ;;  %v8008_v0 = vld [vmem:[%s7820_s18 + $0xb0] sm:$0xff] }
  0xe7   : > { %v937_v14 = vadd.f32 %v936_v9, %v935_v7  ;;  %v1038_v15 = vadd.f32 %v1037_v12, %v1036_v8  ;;  %v950_v7 = vsel %vm585_vm0, %v8008_v0, 0.0  ;;  %v1000_v8 = vmul.f32 %v8008_v0, %v8008_v0  ;;  %v8024_v12 = vld [vmem:[%s7820_s18 + $0xb8] sm:$0xff] }
  0xe8   : > { %v1051_v9 = vsel %vm585_vm0, %v999_v59, 0.0  ;;  %v952_v18 = vsel %vm585_vm0, %v8024_v12, 0.0  ;;  %v1004_v59 = vmul.f32 %v8072_v48, %v8072_v48 }
  0xe9   : > { %v939_v21 = vadd.f32 %v938_v17, %v937_v14  ;;  %v1040_v23 = vadd.f32 %v1039_v19, %v1038_v15  ;;  %v1001_v19 = vmul.f32 %v8024_v12, %v8024_v12 }
  0xeb   : > { %v941_v29 = vadd.f32 %v940_v24, %v939_v21  ;;  %v1042_v30 = vadd.f32 %v1041_v26, %v1040_v23  ;;  %v1053_v21 = vsel %vm585_vm0, %v1000_v8, 0.0  ;;  %v8040_v24 = vld [vmem:[%s7820_s18 + $0xc0] sm:$0xff]  ;;  %v1055_v32 = vsel %vm585_vm0, %v1001_v19, 0.0 }
  0xec   : > { %12625 = vst [vmem:[#allocation11_spill] sm:$0xff] %v8040_v24 }
  0xed   : > { %v943_v36 = vadd.f32 %v942_v31, %v941_v29  ;;  %v1044_v37 = vadd.f32 %v1043_v33, %v1042_v30  ;;  %v954_v30 = vsel %vm585_vm0, %v8040_v24, 0.0  ;;  %v1002_v31 = vmul.f32 %v8040_v24, %v8040_v24 }
  0xef   : > { %v945_v44 = vadd.f32 %v944_v38, %v943_v36  ;;  %v1046_v46 = vadd.f32 %v1045_v41, %v1044_v37  ;;  %v8056_v36 = vld [vmem:[%s7820_s18 + $0xc8] sm:$0xff] }
  0xf0   : > { %v956_v41 = vsel %vm585_vm0, %v8056_v36, 0.0 }
  0xf1   : > { %v947_v56 = vadd.f32 %v946_v1, %v945_v44  ;;  %v1048_v57 = vadd.f32 %v1047_v50, %v1046_v46  ;;  %v1003_v44 = vmul.f32 %v8056_v36, %v8056_v36  ;;  %v1057_v46 = vsel %vm585_vm0, %v1002_v31, 0.0 }
  0xf3   : > { %v949_v3 = vadd.f32 %v948_v58, %v947_v56  ;;  %v1050_v5 = vadd.f32 %v1049_v60, %v1048_v57  ;;  %v958_v58 = vsel %vm585_vm0, %v8072_v48, 0.0  ;;  %v1059_v60 = vsel %vm585_vm0, %v1003_v44, 0.0 }
  0xf5   : > { %v951_v15 = vadd.f32 %v950_v7, %v949_v3  ;;  %v1052_v17 = vadd.f32 %v1051_v9, %v1050_v5  ;;  %v8088_v5 = vld [vmem:[%s7820_s18 + $0xd8] sm:$0xff] }
  0xf6   : > { %12633 = vst [vmem:[#allocation19_spill] sm:$0xff] %v8088_v5 }
  0xf7   : > { %v953_v26 = vadd.f32 %v952_v18, %v951_v15  ;;  %v1054_v29 = vadd.f32 %v1053_v21, %v1052_v17  ;;  %v960_v15 = vsel %vm585_vm0, %v8088_v5, 0.0  ;;  %v1005_v17 = vmul.f32 %v8088_v5, %v8088_v5  ;;  %v8104_v21 = vld [vmem:[%s7820_s18 + $0xe0] sm:$0xff] }
  0xf8   : > { %v1061_v18 = vsel %vm585_vm0, %v1004_v59, 0.0  ;;  %12636 = vst [vmem:[#allocation22_spill] sm:$0xff] %v8104_v21  ;;  %v962_v31 = vsel %vm585_vm0, %v8104_v21, 0.0 }
  0xf9   : > { %v955_v38 = vadd.f32 %v954_v30, %v953_v26  ;;  %v1056_v39 = vadd.f32 %v1055_v32, %v1054_v29  ;;  %v1006_v32 = vmul.f32 %v8104_v21, %v8104_v21 }
  0xfb   : > { %v957_v56 = vadd.f32 %v956_v41, %v955_v38  ;;  %v1058_v57 = vadd.f32 %v1057_v46, %v1056_v39  ;;  %v1063_v38 = vsel %vm585_vm0, %v1005_v17, 0.0  ;;  %v8120_v41 = vld [vmem:[%s7820_s18 + $0xe8] sm:$0xff]  ;;  %v1065_v59 = vsel %vm585_vm0, %v1006_v32, 0.0  ;;  %v8152_v32 = vld [vmem:[%s7820_s18 + $0xf8] sm:$0xff] }
  0xfc   : > { %12639 = vst [vmem:[#allocation25_spill] sm:$0xff] %v8120_v41  ;;  %12645 = vst [vmem:[#allocation31_spill] sm:$0xff] %v8152_v32 }
  0xfd   : > { %v959_v8 = vadd.f32 %v958_v58, %v957_v56  ;;  %v1060_v9 = vadd.f32 %v1059_v60, %v1058_v57  ;;  %v964_v57 = vsel %vm585_vm0, %v8120_v41, 0.0  ;;  %v1007_v58 = vmul.f32 %v8120_v41, %v8120_v41 }
  0xff   : > { %v961_v29 = vadd.f32 %v960_v15, %v959_v8  ;;  %v1062_v30 = vadd.f32 %v1061_v18, %v1060_v9  ;;  %v8136_v8 = vld [vmem:[%s7820_s18 + $0xf0] sm:$0xff]  ;;  %s7399_s18 = smov 88  }
 0x100   : > { %12642 = vst [vmem:[#allocation28_spill] sm:$0xff] %v8136_v8  ;;  %v966_v18 = vsel %vm585_vm0, %v8136_v8, 0.0 }
 0x101   : > { %v963_v46 = vadd.f32 %v962_v31, %v961_v29  ;;  %v1064_v56 = vadd.f32 %v1063_v38, %v1062_v30  ;;  %v1008_v29 = vmul.f32 %v8136_v8, %v8136_v8  ;;  %v1067_v30 = vsel %vm585_vm0, %v1007_v58, 0.0 }
 0x102   : > { %v1009_v58 = vmul.f32 %v8152_v32, %v8152_v32 }
 0x103   : > { %v965_v15 = vadd.f32 %v964_v57, %v963_v46  ;;  %v1066_v17 = vadd.f32 %v1065_v59, %v1064_v56  ;;  %v968_v57 = vsel %vm585_vm0, %v8152_v32, 0.0  ;;  %v1069_v59 = vsel %vm585_vm0, %v1008_v29, 0.0 }
 0x105   : > { %v967_v46 = vadd.f32 %v966_v18, %v965_v15  ;;  %v1068_v56 = vadd.f32 %v1067_v30, %v1066_v17  ;;  %v1071_v18 = vsel %vm585_vm0, %v1009_v58, 0.0 }
 0x107   : > { %v969_v15 = vadd.f32 %v968_v57, %v967_v46  ;;  %v1070_v17 = vadd.f32 %v1069_v59, %v1068_v56 }
 0x109   : > { %v970_v32 = vrot.slane %v969_v15, 4  ;;  %v1072_v41 = vadd.f32 %v1071_v18, %v1070_v17 }
 0x10b   : > { %v971_v56 = vadd.f32 %v970_v32, %v969_v15  ;;  %v1073_v57 = vrot.slane %v1072_v41, 4 }
 0x10d   : > { %v972_v17 = vrot.slane %v971_v56, 2  ;;  %v1074_v18 = vadd.f32 %v1073_v57, %v1072_v41 }
 0x10f   : > { %v973_v15 = vadd.f32 %v972_v17, %v971_v56  ;;  %v8210_v56 = vpop.permute.xlu1 %1848  ;;  %v8212_v17 = vpop.permute.xlu0 %1846 }
 0x110   : > { %12657 = vst [vmem:[#allocation43_spill] sm:$0xff] %v8212_v17 }
 0x153   : > { %v7989_v51 = vpop.f32.mrf.mxu0 }
 0x154   : > { %12618 = vst [vmem:[#allocation4_spill] sm:$0xff] %v7989_v51  ;;  %1215 = vrot.lane.b32.xlu1 %v7989_v51, %s7390_s19 }
 0x155   : > { %v7996_v53 = vpop.f32.mrf.mxu0 }
 0x156   : > { %12619 = vst [vmem:[#allocation5_spill] sm:$0xff] %v7996_v53  ;;  %1213 = vrot.lane.b32.xlu0 %v7996_v53, %s7390_s19 }
 0x157   : > { %v8005_v63 = vpop.f32.mrf.mxu0 }
 0x158   : > { %12620 = vst [vmem:[#allocation6_spill] sm:$0xff] %v8005_v63  ;;  %1219 = vrot.lane.b32.xlu1 %v8005_v63, %s7390_s19 }
 0x159   : > { %v8012_v2 = vpop.f32.mrf.mxu0 }
 0x15a   : > { %12621 = vst [vmem:[#allocation7_spill] sm:$0xff] %v8012_v2  ;;  %1217 = vrot.lane.b32.xlu0 %v8012_v2, %s7390_s19 }
 0x15b   : > { %v8021_v11 = vpop.f32.mrf.mxu0 }
 0x15c   : > { %12622 = vst [vmem:[#allocation8_spill] sm:$0xff] %v8021_v11  ;;  %1223 = vrot.lane.b32.xlu1 %v8021_v11, %s7390_s19 }
 0x15d   : > { %v8028_v14 = vpop.f32.mrf.mxu0 }
 0x15e   : > { %12623 = vst [vmem:[#allocation9_spill] sm:$0xff] %v8028_v14  ;;  %1221 = vrot.lane.b32.xlu0 %v8028_v14, %s7390_s19 }
 0x15f   : > { %v8037_v23 = vpop.f32.mrf.mxu0 }
 0x160   : > { %12624 = vst [vmem:[#allocation10_spill] sm:$0xff] %v8037_v23  ;;  %1227 = vrot.lane.b32.xlu1 %v8037_v23, %s7390_s19 }
 0x161   : > { %v8044_v25 = vpop.f32.mrf.mxu0 }
 0x162   : > { %12626 = vst [vmem:[#allocation12_spill] sm:$0xff] %v8044_v25  ;;  %1225 = vrot.lane.b32.xlu0 %v8044_v25, %s7390_s19 }
 0x163   : > { %v8053_v33 = vpop.f32.mrf.mxu0 }
 0x164   : > { %12627 = vst [vmem:[#allocation13_spill] sm:$0xff] %v8053_v33  ;;  %1231 = vrot.lane.b32.xlu1 %v8053_v33, %s7390_s19 }
 0x165   : > { %v8060_v37 = vpop.f32.mrf.mxu0 }
 0x166   : > { %12628 = vst [vmem:[#allocation14_spill] sm:$0xff] %v8060_v37  ;;  %1229 = vrot.lane.b32.xlu0 %v8060_v37, %s7390_s19 }
 0x167   : > { %v8069_v1 = vpop.f32.mrf.mxu0 }
 0x168   : > { %12629 = vst [vmem:[#allocation15_spill] sm:$0xff] %v8069_v1  ;;  %1235 = vrot.lane.b32.xlu1 %v8069_v1, %s7390_s19 }
 0x169   : > { %v8076_v50 = vpop.f32.mrf.mxu0 }
 0x16a   : > { %12631 = vst [vmem:[#allocation17_spill] sm:$0xff] %v8076_v50  ;;  %1233 = vrot.lane.b32.xlu0 %v8076_v50, %s7390_s19 }
 0x16b   : > { %v8085_v3 = vpop.f32.mrf.mxu0 }
 0x16c   : > { %12632 = vst [vmem:[#allocation18_spill] sm:$0xff] %v8085_v3  ;;  %1239 = vrot.lane.b32.xlu1 %v8085_v3, %s7390_s19 }
 0x16d   : > { %v8092_v7 = vpop.f32.mrf.mxu0 }
 0x16e   : > { %12634 = vst [vmem:[#allocation20_spill] sm:$0xff] %v8092_v7  ;;  %1237 = vrot.lane.b32.xlu0 %v8092_v7, %s7390_s19 }
 0x16f   : > { %v8101_v19 = vpop.f32.mrf.mxu0 }
 0x170   : > { %12635 = vst [vmem:[#allocation21_spill] sm:$0xff] %v8101_v19  ;;  %1243 = vrot.lane.b32.xlu1 %v8101_v19, %s7390_s19 }
 0x171   : > { %v8108_v26 = vpop.f32.mrf.mxu0 }
 0x172   : > { %12637 = vst [vmem:[#allocation23_spill] sm:$0xff] %v8108_v26  ;;  %1241 = vrot.lane.b32.xlu0 %v8108_v26, %s7390_s19 }
 0x173   : > { %v8117_v39 = vpop.f32.mrf.mxu0 }
 0x174   : > { %12638 = vst [vmem:[#allocation24_spill] sm:$0xff] %v8117_v39  ;;  %1247 = vrot.lane.b32.xlu1 %v8117_v39, %s7390_s19 }
 0x175   : > { %v8124_v44 = vpop.f32.mrf.mxu0 }
 0x176   : > { %12640 = vst [vmem:[#allocation26_spill] sm:$0xff] %v8124_v44  ;;  %1245 = vrot.lane.b32.xlu0 %v8124_v44, %s7390_s19 }
 0x177   : > { %v8133_v60 = vpop.f32.mrf.mxu0 }
 0x178   : > { %12641 = vst [vmem:[#allocation27_spill] sm:$0xff] %v8133_v60  ;;  %1251 = vrot.lane.b32.xlu1 %v8133_v60, %s7390_s19 }
 0x179   : > { %v8140_v9 = vpop.f32.mrf.mxu0 }
 0x17a   : > { %12643 = vst [vmem:[#allocation29_spill] sm:$0xff] %v8140_v9  ;;  %1249 = vrot.lane.b32.xlu0 %v8140_v9, %s7390_s19 }
 0x17b   : > { %v8149_v31 = vpop.f32.mrf.mxu0 }
 0x17c   : > { %12644 = vst [vmem:[#allocation30_spill] sm:$0xff] %v8149_v31  ;;  %1255 = vrot.lane.b32.xlu1 %v8149_v31, %s7390_s19 }
 0x17d   : > { %v8156_v38 = vpop.f32.mrf.mxu0 }
 0x17e   : > { %12646 = vst [vmem:[#allocation32_spill] sm:$0xff] %v8156_v38  ;;  %1253 = vrot.lane.b32.xlu0 %v8156_v38, %s7390_s19 }
 0x17f   : > { %v8165_v8 = vpop.f32.mrf.mxu0 }
 0x180   : > { %12647 = vst [vmem:[#allocation33_spill] sm:$0xff] %v8165_v8  ;;  %1259 = vrot.lane.b32.xlu1 %v8165_v8, %s7390_s19 }
 0x181   : > { %v8169_v21 = vpop.f32.mrf.mxu0 }
 0x182   : > { %12648 = vst [vmem:[#allocation34_spill] sm:$0xff] %v8169_v21  ;;  %1257 = vrot.lane.b32.xlu0 %v8169_v21, %s7390_s19 }
 0x183   : > { %v8174_v30 = vpop.f32.mrf.mxu0 }
 0x184   : > { %12649 = vst [vmem:[#allocation35_spill] sm:$0xff] %v8174_v30  ;;  %1263 = vrot.lane.b32.xlu1 %v8174_v30, %s7390_s19 }
 0x185   : > { %v8178_v29 = vpop.f32.mrf.mxu0 }
 0x186   : > { %12650 = vst [vmem:[#allocation36_spill] sm:$0xff] %v8178_v29  ;;  %1261 = vrot.lane.b32.xlu0 %v8178_v29, %s7390_s19 }
 0x187   : > { %v8182_v48 = vpop.f32.mrf.mxu0 }
 0x188   : > { %12651 = vst [vmem:[#allocation37_spill] sm:$0xff] %v8182_v48  ;;  %1267 = vrot.lane.b32.xlu1 %v8182_v48, %s7390_s19 }
 0x189   : > { %v8186_v46 = vpop.f32.mrf.mxu0 }
 0x18a   : > { %12652 = vst [vmem:[#allocation38_spill] sm:$0xff] %v8186_v46  ;;  %1265 = vrot.lane.b32.xlu0 %v8186_v46, %s7390_s19  ;;  %v1075_v46 = vrot.slane %v1074_v18, 2 }
 0x18b   : > { %v8190_v58 = vpop.f32.mrf.mxu0 }
 0x18c   : > { %12653 = vst [vmem:[#allocation39_spill] sm:$0xff] %v8190_v58  ;;  %1271 = vrot.lane.b32.xlu1 %v8190_v58, %s7390_s19  ;;  %v974_v58 = vrot.slane %v973_v15, 1  ;;  %v1076_v29 = vadd.f32 %v1075_v46, %v1074_v18 }
 0x18d   : > { %v8194_v59 = vpop.f32.mrf.mxu0 }
 0x18e   : > { %12654 = vst [vmem:[#allocation40_spill] sm:$0xff] %v8194_v59  ;;  %1269 = vrot.lane.b32.xlu0 %v8194_v59, %s7390_s19  ;;  %v975_v30 = vadd.f32 %v974_v58, %v973_v15  ;;  %v1077_v21 = vrot.slane %v1076_v29, 1 }
 0x18f   : > { %v8198_v48 = vpop.f32.mrf.mxu0 }
 0x190   : > { %12655 = vst [vmem:[#allocation41_spill] sm:$0xff] %v8198_v48  ;;  %1275 = vrot.lane.b32.xlu1 %v8198_v48, %s7390_s19  ;;  %v8206_v41 = vmul.f32 0.00390625, %v975_v30  ;;  %v1078_v57 = vadd.f32 %v1077_v21, %v1076_v29  ;;  %v8220_v21 = vpop.permute.xlu0 %1974 }
 0x191   : > { %v8202_v32 = vpop.f32.mrf.mxu0  ;;  %12659 = vst [vmem:[#allocation45_spill] sm:$0xff] %v8220_v21 }
 0x192   : > { %12656 = vst [vmem:[#allocation42_spill] sm:$0xff] %v8202_v32  ;;  %1273 = vrot.lane.b32.xlu0 %v8202_v32, %s7390_s19  ;;  %v1079_v59 = vmul.f32 0.00390625, %v1078_v57  ;;  %v1080_v5 = vmul.f32 %v8206_v41, %v8206_v41  ;;  %v8214_v32 = vpop.permute.xlu1 %1976  ;;  %v1084_v46 = vsub.f32 %v7826_v42, %v8206_v41  ;;  %v1083_v29 = vsub.f32 %v7823_v45, %v8206_v41  ;;  %s12298_s19 = scalar_lea.vmem %s12480_s8, %s7453_s29 }
 0x193   : > { %12658 = vst [vmem:[#allocation44_spill] sm:$0xff] %v8214_v32  ;;  %v1085_v42 = vsub.f32 %v7837_v49, %v8206_v41  ;;  %v1087_v57 = vsub.f32 %v7854_v61, %v8206_v41 }
 0x194   : > { %v1081_v8 = vsub.f32 %v1079_v59, %v1080_v5  ;;  %v1088_v59 = vsub.f32 %v7862_v4, %v8206_v41 }
 0x196   : > { %v1082_v48 = vmax.f32 %v1081_v8, 0.0  ;;  %v8224_v5 = vpop.permute.xlu1 %2548  ;;  %v8231_v8 = vpop.permute.xlu0 %2546 }
 0x197   : > { %12660 = vst [vmem:[#allocation46_spill] sm:$0xff] %v8224_v5  ;;  %12662 = vst [vmem:[#allocation48_spill] sm:$0xff] %v8231_v8 }
 0x198   : > { %v1115_v24 = vadd.f32 1e-05, %v1082_v48  ;;  %v1086_v48 = vsub.f32 %v7846_v55, %v8206_v41 }
 0x19a   : > { %7319 = vrsqrt.f32 %v1115_v24 }
 0x1a7   : > { %v8218_v30 = vpop.eup %7319 }
 0x1a8   : > { %v8227_v24 = vmul.f32 %v8218_v30, %v1084_v46  ;;  %v8236_v58 = vmul.f32 %v8218_v30, %v1083_v29  ;;  %v8243_v18 = vmul.f32 %v8218_v30, %v1086_v48  ;;  %v8246_v55 = vmul.f32 %v8218_v30, %v1085_v42 }
 0x1a9   : > { %v8253_v4 = vmul.f32 %v8218_v30, %v1088_v59  ;;  %v1089_v59 = vsub.f32 %v7870_v10, %v8206_v41 }
 0x1aa   : > { %12661 = vst [vmem:[#allocation47_spill] sm:$0xff] %v8227_v24  ;;  %12663 = vst [vmem:[#allocation49_spill] sm:$0xff] %v8236_v58  ;;  %v1150_v45 = vmul.f32 %v7989_v51, %v8227_v24  ;;  %v1149_v46 = vmul.f32 %v8236_v58, %v7996_v53  ;;  %v1090_v24 = vsub.f32 %v7878_v16, %v8206_v41 }
 0x1ab   : > { %12664 = vst [vmem:[#allocation50_spill] sm:$0xff] %v8243_v18  ;;  %12665 = vst [vmem:[#allocation51_spill] sm:$0xff] %v8246_v55  ;;  %v1152_v42 = vmul.f32 %v8005_v63, %v8243_v18  ;;  %v1151_v61 = vmul.f32 %v8246_v55, %v8012_v2 }
 0x1ac   : > { %12666 = vst [vmem:[#allocation52_spill] sm:$0xff] %v8253_v4  ;;  %v8270_v18 = vmul.f32 %v8218_v30, %v1090_v24  ;;  %v1091_v24 = vsub.f32 %v7886_v22, %v8206_v41 }
 0x1ae   : > { %12668 = vst [vmem:[#allocation54_spill] sm:$0xff] %v8270_v18 }
 0x1c6   : > { %v1216_v15 = vpop.permute.xlu1 %1215 }
 0x1c7   : > { %v1310_v49 = vadd.f32 %v1216_v15, %v1150_v45  ;;  %v8262_v45 = vmul.f32 %v8218_v30, %v1087_v57  ;;  %v1092_v57 = vsub.f32 %v7894_v28, %v8206_v41 }
 0x1c8   : > { %v1214_v29 = vpop.permute.xlu0 %1213 }
 0x1c9   : > { %vm1342_vm4 = vcmp.ge.f32.partialorder %v1310_v49, 0.0  ;;  %v1374_v48 = vmul.f32 0.2, %v1310_v49  ;;  %v1309_v5 = vadd.f32 %v1214_v29, %v1149_v46  ;;  %12667 = vst [vmem:[#allocation53_spill] sm:$0xff] %v8262_v45  ;;  %v1154_v29 = vmul.f32 %v8021_v11, %v8253_v4 }
 0x1ca   : > { %v1220_v8 = vpop.permute.xlu1 %1219 }
 0x1cb   : > { %v1406_v15 = vsel %vm1342_vm4, %v1310_v49, %v1374_v48  ;;  %vm1341_vm5 = vcmp.ge.f32.partialorder %v1309_v5, 0.0  ;;  %v1373_v58 = vmul.f32 0.2, %v1309_v5  ;;  %v1312_v16 = vadd.f32 %v1220_v8, %v1152_v42 }
 0x1cc   : > { %1494 = vst.msk [vmem:[#allocation2 + $0x21] sm:$0xff] %vm585_vm0, %v1406_v15  ;;  %v1218_v46 = vpop.permute.xlu0 %1217  ;;  %v1153_v8 = vmul.f32 %v8262_v45, %v8028_v14  ;;  %v8278_v48 = vmul.f32 %v8218_v30, %v1089_v59 }
 0x1cd   : > { %v1405_v55 = vsel %vm1341_vm5, %v1309_v5, %v1373_v58  ;;  %vm1344_vm6 = vcmp.ge.f32.partialorder %v1312_v16, 0.0  ;;  %v1376_v21 = vmul.f32 0.2, %v1312_v16  ;;  %v1311_v10 = vadd.f32 %v1218_v46, %v1151_v61 }
 0x1ce   : > { %1493 = vst.msk [vmem:[#allocation2 + $0x19] sm:$0xff] %vm585_vm0, %v1405_v55  ;;  %v1224_v49 = vpop.permute.xlu1 %1223  ;;  %12669 = vst [vmem:[#allocation55_spill] sm:$0xff] %v8278_v48  ;;  %v1156_v58 = vmul.f32 %v8037_v23, %v8270_v18  ;;  %v8286_v55 = vmul.f32 %v8218_v30, %v1092_v57  ;;  %v1094_v61 = vsub.f32 %v7910_v40, %v8206_v41 }
 0x1cf   : > { %v1408_v42 = vsel %vm1344_vm6, %v1312_v16, %v1376_v21  ;;  %vm1343_vm7 = vcmp.ge.f32.partialorder %v1311_v10, 0.0  ;;  %v1375_v15 = vmul.f32 0.2, %v1311_v10  ;;  %v1314_v28 = vadd.f32 %v1224_v49, %v1154_v29 }
 0x1d0   : > { %1496 = vst.msk [vmem:[#allocation2 + $0x39] sm:$0xff] %vm585_vm0, %v1408_v42  ;;  %v1222_v5 = vpop.permute.xlu0 %1221  ;;  %12670 = vst [vmem:[#allocation56_spill] sm:$0xff] %v8286_v55  ;;  %v1155_v16 = vmul.f32 %v8278_v48, %v8044_v25  ;;  %v8294_v29 = vmul.f32 %v8218_v30, %v1091_v24  ;;  %v1093_v57 = vsub.f32 %v7902_v34, %v8206_v41 }
 0x1d1   : > { %v1407_v59 = vsel %vm1343_vm7, %v1311_v10, %v1375_v15  ;;  %vm1346_vm8 = vcmp.ge.f32.partialorder %v1314_v28, 0.0  ;;  %v1378_v46 = vmul.f32 0.2, %v1314_v28  ;;  %v1313_v22 = vadd.f32 %v1222_v5, %v1153_v8 }
 0x1d2   : > { %1495 = vst.msk [vmem:[#allocation2 + $0x31] sm:$0xff] %vm585_vm0, %v1407_v59  ;;  %v1228_v21 = vpop.permute.xlu1 %1227  ;;  %12671 = vst [vmem:[#allocation57_spill] sm:$0xff] %v8294_v29  ;;  %v1158_v15 = vmul.f32 %v8053_v33, %v8286_v55  ;;  %v8303_v5 = vmul.f32 %v8218_v30, %v1094_v61  ;;  %v1096_v24 = vsub.f32 %v7926_v54, %v8206_v41 }
 0x1d3   : > { %v1410_v49 = vsel %vm1346_vm8, %v1314_v28, %v1378_v46  ;;  %vm1345_vm9 = vcmp.ge.f32.partialorder %v1313_v22, 0.0  ;;  %v1377_v42 = vmul.f32 0.2, %v1313_v22  ;;  %v1316_v40 = vadd.f32 %v1228_v21, %v1156_v58  ;;  %v1560_v10 = vld [vmem:[#allocation2 + $0x21] sm:$0xff] }
 0x1d4   : > { %1498 = vst.msk [vmem:[#allocation2 + $0x51] sm:$0xff] %vm585_vm0, %v1410_v49  ;;  %1852 = vrot.lane.b32.xlu1 %v1560_v10, %s7387_s13  ;;  %v1226_v8 = vpop.permute.xlu0 %1225  ;;  %12672 = vst [vmem:[#allocation58_spill] sm:$0xff] %v8303_v5  ;;  %v1157_v21 = vmul.f32 %v8294_v29, %v8060_v37  ;;  %v8315_v61 = vmul.f32 %v8218_v30, %v1093_v57  ;;  %v1095_v54 = vsub.f32 %v7918_v47, %v8206_v41 }
 0x1d5   : > { %v1409_v34 = vsel %vm1345_vm9, %v1313_v22, %v1377_v42  ;;  %vm1348_vm10 = vcmp.ge.f32.partialorder %v1316_v40, 0.0  ;;  %v1380_v28 = vmul.f32 0.2, %v1316_v40  ;;  %v1315_v59 = vadd.f32 %v1226_v8, %v1155_v16  ;;  %v8307_v58 = vld [vmem:[#allocation2 + $0x19] sm:$0xff]  ;;  %v1592_v42 = vld [vmem:[#allocation2 + $0x22] sm:$0xff] }
 0x1d6   : > { %1497 = vst.msk [vmem:[#allocation2 + $0x49] sm:$0xff] %vm585_vm0, %v1409_v34  ;;  %v1232_v46 = vpop.permute.xlu1 %1231  ;;  %1850 = vrot.lane.b32.xlu0 %v8307_v58, %s7387_s13  ;;  %12673 = vst [vmem:[#allocation59_spill] sm:$0xff] %v8315_v61  ;;  %v1160_v34 = vmul.f32 %v8069_v1, %v8303_v5  ;;  %v8324_v55 = vmul.f32 %v8218_v30, %v1096_v24  ;;  %v1098_v57 = vsub.f32 %v7942_v6, %v8206_v41 }
 0x1d7   : > { %v1412_v22 = vsel %vm1348_vm10, %v1316_v40, %v1380_v28  ;;  %vm1347_vm11 = vcmp.ge.f32.partialorder %v1315_v59, 0.0  ;;  %v1379_v16 = vmul.f32 0.2, %v1315_v59  ;;  %v1318_v49 = vadd.f32 %v1232_v46, %v1158_v15  ;;  %v8328_v15 = vld [vmem:[#allocation2 + $0x1a] sm:$0xff] }
 0x1d8   : > { %1500 = vst.msk [vmem:[#allocation2 + $0x69] sm:$0xff] %vm585_vm0, %v1412_v22  ;;  %1980 = vrot.lane.b32.xlu1 %v1592_v42, %s7388_s14  ;;  %v1230_v8 = vpop.permute.xlu0 %1229  ;;  %12674 = vst [vmem:[#allocation60_spill] sm:$0xff] %v8324_v55  ;;  %v1159_v22 = vmul.f32 %v8315_v61, %v8076_v50  ;;  %v8336_v24 = vmul.f32 %v8218_v30, %v1095_v54  ;;  %v1097_v6 = vsub.f32 %v7934_v62, %v8206_v41 }
 0x1d9   : > { %v1411_v47 = vsel %vm1347_vm11, %v1315_v59, %v1379_v16  ;;  %vm1350_vm12 = vcmp.ge.f32.partialorder %v1318_v49, 0.0  ;;  %v1382_v40 = vmul.f32 0.2, %v1318_v49  ;;  %v1317_v28 = vadd.f32 %v1230_v8, %v1157_v21 }
 0x1da   : > { %1499 = vst.msk [vmem:[#allocation2 + $0x61] sm:$0xff] %vm585_vm0, %v1411_v47  ;;  %v1236_v46 = vpop.permute.xlu1 %1235  ;;  %1978 = vrot.lane.b32.xlu0 %v8328_v15, %s7388_s14  ;;  %12675 = vst [vmem:[#allocation61_spill] sm:$0xff] %v8336_v24  ;;  %v1162_v47 = vmul.f32 %v8085_v3, %v8324_v55  ;;  %v8345_v5 = vmul.f32 %v8218_v30, %v1098_v57  ;;  %v1100_v54 = vsub.f32 %v7958_v20, %v8206_v41 }
 0x1db   : > { %v1414_v59 = vsel %vm1350_vm12, %v1318_v49, %v1382_v40  ;;  %vm1349_vm13 = vcmp.ge.f32.partialorder %v1317_v28, 0.0  ;;  %v1381_v21 = vmul.f32 0.2, %v1317_v28  ;;  %v1320_v16 = vadd.f32 %v1236_v46, %v1160_v34  ;;  %v1621_v34 = vld [vmem:[#allocation2 + $0x18] sm:$0xff] }
 0x1dc   : > { %1502 = vst.msk [vmem:[#allocation2 + $0x81] sm:$0xff] %vm585_vm0, %v1414_v59  ;;  %2232 = vrot.lane.b32.xlu1 %v1560_v10, %s7391_s20  ;;  %v1234_v8 = vpop.permute.xlu0 %1233  ;;  %12676 = vst [vmem:[#allocation62_spill] sm:$0xff] %v8345_v5  ;;  %v1161_v10 = vmul.f32 %v8336_v24, %v8092_v7  ;;  %v8354_v57 = vmul.f32 %v8218_v30, %v1097_v6  ;;  %v1099_v20 = vsub.f32 %v7950_v13, %v8206_v41 }
 0x1dd   : > { %v1413_v62 = vsel %vm1349_vm13, %v1317_v28, %v1381_v21  ;;  %vm1352_vm14 = vcmp.ge.f32.partialorder %v1320_v16, 0.0  ;;  %v1384_v49 = vmul.f32 0.2, %v1320_v16  ;;  %v1319_v40 = vadd.f32 %v1234_v8, %v1159_v22 }
 0x1de   : > { %1501 = vst.msk [vmem:[#allocation2 + $0x79] sm:$0xff] %vm585_vm0, %v1413_v62  ;;  %v1240_v46 = vpop.permute.xlu1 %1239  ;;  %2102 = vrot.lane.b32.xlu0 %v1621_v34, %s7392_s21  ;;  %12677 = vst [vmem:[#allocation63_spill] sm:$0xff] %v8354_v57  ;;  %v1164_v8 = vmul.f32 %v8101_v19, %v8345_v5  ;;  %v8363_v62 = vmul.f32 %v8218_v30, %v1100_v54  ;;  %v1102_v6 = vsub.f32 %v7974_v35, %v8206_v41 }
 0x1df   : > { %v1416_v28 = vsel %vm1352_vm14, %v1320_v16, %v1384_v49  ;;  %vm1351_vm15 = vcmp.ge.f32.partialorder %v1319_v40, 0.0  ;;  %v1383_v59 = vmul.f32 0.2, %v1319_v40  ;;  %v1322_v22 = vadd.f32 %v1240_v46, %v1162_v47 }
 0x1e0   : > { %1504 = vst.msk [vmem:[#allocation2 + $0x99] sm:$0xff] %vm585_vm0, %v1416_v28  ;;  %2360 = vrot.lane.b32.xlu1 %v1592_v42, %s7393_s22  ;;  %v1238_v21 = vpop.permute.xlu0 %1237  ;;  %12678 = vst [vmem:[#allocation64_spill] sm:$0xff] %v8363_v62  ;;  %v1163_v42 = vmul.f32 %v8354_v57, %v8108_v26  ;;  %v8373_v34 = vmul.f32 %v8218_v30, %v1099_v20  ;;  %v1101_v54 = vsub.f32 %v7966_v27, %v8206_v41 }
 0x1e1   : > { %v1415_v13 = vsel %vm1351_vm15, %v1319_v40, %v1383_v59  ;;  %vm1354_vm1 = vcmp.ge.f32.partialorder %v1322_v22, 0.0  ;;  %v1386_v16 = vmul.f32 0.2, %v1322_v22  ;;  %v1321_v49 = vadd.f32 %v1238_v21, %v1161_v10  ;;  %v1622_v10 = vld [vmem:[#allocation2 + $0x20] sm:$0xff] }
 0x1e2   : > { %1503 = vst.msk [vmem:[#allocation2 + $0x91] sm:$0xff] %vm585_vm0, %v1415_v13  ;;  %v1244_v47 = vpop.permute.xlu1 %1243  ;;  %2230 = vrot.lane.b32.xlu0 %v8307_v58, %s7391_s20  ;;  %12679 = vst [vmem:[#allocation65_spill] sm:$0xff] %v8373_v34  ;;  %v1166_v58 = vmul.f32 %v8117_v39, %v8363_v62  ;;  %v8382_v59 = vmul.f32 %v8218_v30, %v1102_v6  ;;  %v1104_v20 = vsub.f32 %v7992_v52, %v8206_v41 }
 0x1e3   : > { %v1418_v35 = vsel %vm1354_vm1, %v1322_v22, %v1386_v16  ;;  %vm1353_vm2 = vcmp.ge.f32.partialorder %v1321_v49, 0.0  ;;  %v1385_v40 = vmul.f32 0.2, %v1321_v49  ;;  %v1324_v46 = vadd.f32 %v1244_v47, %v1164_v8 }
 0x1e4   : > { %1506 = vst.msk [vmem:[#allocation2 + $0xb1] sm:$0xff] %vm585_vm0, %v1418_v35  ;;  %2104 = vrot.lane.b32.xlu1 %v1622_v10, %s7392_s21  ;;  %v1242_v28 = vpop.permute.xlu0 %1241  ;;  %12680 = vst [vmem:[#allocation66_spill] sm:$0xff] %v8382_v59  ;;  %v1165_v13 = vmul.f32 %v8373_v34, %v8124_v44  ;;  %v8392_v16 = vmul.f32 %v8218_v30, %v1101_v54  ;;  %v1103_v6 = vsub.f32 %v7982_v43, %v8206_v41 }
 0x1e5   : > { %v1417_v27 = vsel %vm1353_vm2, %v1321_v49, %v1385_v40  ;;  %vm1356_vm3 = vcmp.ge.f32.partialorder %v1324_v46, 0.0  ;;  %v1388_v22 = vmul.f32 0.2, %v1324_v46  ;;  %v1323_v21 = vadd.f32 %v1242_v28, %v1163_v42  ;;  %v8396_v42 = vld [vmem:[#allocation2 + $0x39] sm:$0xff]  ;;  %v8408_v28 = vld [vmem:[#allocation2 + $0x31] sm:$0xff] }
 0x1e6   : > { %1505 = vst.msk [vmem:[#allocation2 + $0xa9] sm:$0xff] %vm585_vm0, %v1417_v27  ;;  %v1248_v8 = vpop.permute.xlu1 %1247  ;;  %2358 = vrot.lane.b32.xlu0 %v8328_v15, %s7393_s22  ;;  %12681 = vst [vmem:[#allocation67_spill] sm:$0xff] %v8392_v16  ;;  %v1168_v35 = vmul.f32 %v8133_v60, %v8382_v59  ;;  %v8404_v54 = vmul.f32 %v8218_v30, %v1104_v20  ;;  %v1106_v43 = vsub.f32 %v8024_v12, %v8206_v41 }
 0x1e7   : > { %v1420_v52 = vsel %vm1356_vm3, %v1324_v46, %v1388_v22  ;;  %vm1355_vm4 = vcmp.ge.f32.partialorder %v1323_v21, 0.0  ;;  %v1387_v49 = vmul.f32 0.2, %v1323_v21  ;;  %v1326_v47 = vadd.f32 %v1248_v8, %v1166_v58 }
 0x1e8   : > { %1508 = vst.msk [vmem:[#allocation2 + $0xc9] sm:$0xff] %vm585_vm0, %v1420_v52  ;;  %1856 = vrot.lane.b32.xlu1 %v8396_v42, %s7387_s13  ;;  %v1246_v15 = vpop.permute.xlu0 %1245  ;;  %12682 = vst [vmem:[#allocation68_spill] sm:$0xff] %v8404_v54  ;;  %v1167_v27 = vmul.f32 %v8392_v16, %v8140_v9  ;;  %v8416_v20 = vmul.f32 %v8218_v30, %v1103_v6  ;;  %v1105_v12 = vsub.f32 %v8008_v0, %v8206_v41  ;;  %v12693_v16 = vld [vmem:[#allocation35_spill] sm:$0xff] }
 0x1e9   : > { %v1419_v40 = vsel %vm1355_vm4, %v1323_v21, %v1387_v49  ;;  %vm1358_vm5 = vcmp.ge.f32.partialorder %v1326_v47, 0.0  ;;  %v1390_v46 = vmul.f32 0.2, %v1326_v47  ;;  %v1325_v10 = vadd.f32 %v1246_v15, %v1165_v13  ;;  %v1594_v13 = vld [vmem:[#allocation2 + $0x3a] sm:$0xff] }
 0x1ea   : > { %1507 = vst.msk [vmem:[#allocation2 + $0xc1] sm:$0xff] %vm585_vm0, %v1419_v40  ;;  %v1252_v58 = vpop.permute.xlu1 %1251  ;;  %1854 = vrot.lane.b32.xlu0 %v8408_v28, %s7387_s13  ;;  %12683 = vst [vmem:[#allocation69_spill] sm:$0xff] %v8416_v20  ;;  %v1170_v49 = vmul.f32 %v8149_v31, %v8404_v54  ;;  %v8425_v15 = vmul.f32 %v8218_v30, %v1106_v43  ;;  %v1108_v6 = vsub.f32 %v8056_v36, %v8206_v41  ;;  %v12686_v36 = vld [vmem:[#allocation11_spill] sm:$0xff]  ;;  %v1755_v31 = vld [vmem:[#allocation2 + $0x69] sm:$0xff] }
 0x1eb   : > { %v1422_v22 = vsel %vm1358_vm5, %v1326_v47, %v1390_v46  ;;  %vm1357_vm6 = vcmp.ge.f32.partialorder %v1325_v10, 0.0  ;;  %v1389_v21 = vmul.f32 0.2, %v1325_v10  ;;  %v1328_v8 = vadd.f32 %v1252_v58, %v1168_v35  ;;  %v8429_v35 = vld [vmem:[#allocation2 + $0x32] sm:$0xff] }
 0x1ec   : > { %1510 = vst.msk [vmem:[#allocation2 + $0xe1] sm:$0xff] %vm585_vm0, %v1422_v22  ;;  %1984 = vrot.lane.b32.xlu1 %v1594_v13, %s7388_s14  ;;  %v1250_v52 = vpop.permute.xlu0 %1249  ;;  %12684 = vst [vmem:[#allocation70_spill] sm:$0xff] %v8425_v15  ;;  %v1169_v58 = vmul.f32 %v8416_v20, %v8156_v38  ;;  %v8437_v43 = vmul.f32 %v8218_v30, %v1105_v12  ;;  %v8447_v20 = vmul.f32 %v8218_v30, %v1108_v6  ;;  %v12689_v12 = vld [vmem:[#allocation19_spill] sm:$0xff] }
 0x1ed   : > { %v1421_v0 = vsel %vm1357_vm6, %v1325_v10, %v1389_v21  ;;  %vm1360_vm7 = vcmp.ge.f32.partialorder %v1328_v8, 0.0  ;;  %v1392_v47 = vmul.f32 0.2, %v1328_v8  ;;  %v1327_v40 = vadd.f32 %v1250_v52, %v1167_v27  ;;  %v8614_v55 = vld [vmem:[#allocation2 + $0xb1] sm:$0xff]  ;;  %v8620_v24 = vld [vmem:[#allocation2 + $0xa9] sm:$0xff] }
 0x1ee   : > { %1509 = vst.msk [vmem:[#allocation2 + $0xd9] sm:$0xff] %vm585_vm0, %v1421_v0  ;;  %v1256_v46 = vpop.permute.xlu1 %1255  ;;  %1982 = vrot.lane.b32.xlu0 %v8429_v35, %s7388_s14  ;;  %12685 = vst [vmem:[#allocation71_spill] sm:$0xff] %v8437_v43  ;;  %v1107_v10 = vsub.f32 %v12686_v36, %v8206_v41  ;;  %v12687_v0 = vld [vmem:[#allocation33_spill] sm:$0xff]  ;;  %v1110_v59 = vsub.f32 %v12689_v12, %v8206_v41  ;;  %v12692_v12 = vld [vmem:[#allocation16_spill] sm:$0xff]  ;;  %v1174_v62 = vmul.f32 %v12693_v16, %v8447_v20  ;;  %vm12594_vm6 = vcmask 130048  }
 0x1ef   : > { %v1424_v22 = vsel %vm1360_vm7, %v1328_v8, %v1392_v47  ;;  %vm1359_vm8 = vcmp.ge.f32.partialorder %v1327_v40, 0.0  ;;  %v1391_v27 = vmul.f32 0.2, %v1327_v40  ;;  %v1330_v21 = vadd.f32 %v1256_v46, %v1170_v49  ;;  %12688 = vst [vmem:[#allocation11_spill] sm:$0xff] %v8447_v20  ;;  %v8451_v49 = vld [vmem:[#allocation2 + $0x30] sm:$0xff]  ;;  %v12701_v20 = vld [vmem:[#allocation31_spill] sm:$0xff] }
 0x1f0   : > { %1512 = vst.msk [vmem:[#allocation2 + $0xf9] sm:$0xff] %vm585_vm0, %v1424_v22  ;;  %2236 = vrot.lane.b32.xlu1 %v8396_v42, %s7391_s20  ;;  %v1254_v52 = vpop.permute.xlu0 %1253  ;;  %v1172_v54 = vmul.f32 %v12687_v0, %v8425_v15  ;;  %v12690_v22 = vld [vmem:[#allocation34_spill] sm:$0xff]  ;;  %v8459_v6 = vmul.f32 %v8218_v30, %v1107_v10  ;;  %v12695_v10 = vld [vmem:[#allocation25_spill] sm:$0xff]  ;;  %vm12593_vm7 = vcmask 195584  }
 0x1f1   : > { %v1423_v36 = vsel %vm1359_vm8, %v1327_v40, %v1391_v27  ;;  %vm1362_vm9 = vcmp.ge.f32.partialorder %v1330_v21, 0.0  ;;  %v1394_v8 = vmul.f32 0.2, %v1330_v21  ;;  %v1329_v47 = vadd.f32 %v1254_v52, %v1169_v58  ;;  %v1633_v48 = vld [vmem:[#allocation2 + $0xa8] sm:$0xff] }
 0x1f2   : > { %1511 = vst.msk [vmem:[#allocation2 + $0xf1] sm:$0xff] %vm585_vm0, %v1423_v36  ;;  %v1260_v46 = vpop.permute.xlu1 %1259  ;;  %2106 = vrot.lane.b32.xlu0 %v8451_v49, %s7392_s21  ;;  %v1171_v15 = vmul.f32 %v8437_v43, %v12690_v22  ;;  %12691 = vst [vmem:[#allocation19_spill] sm:$0xff] %v8459_v6  ;;  %v1109_v40 = vsub.f32 %v12692_v12, %v8206_v41  ;;  %v8468_v43 = vmul.f32 %v8218_v30, %v1110_v59  ;;  %v12698_v59 = vld [vmem:[#allocation22_spill] sm:$0xff]  ;;  %vm12592_vm8 = vcmask 261120  }
 0x1f3   : > { %v1426_v27 = vsel %vm1362_vm9, %v1330_v21, %v1394_v8  ;;  %vm1361_vm10 = vcmp.ge.f32.partialorder %v1329_v47, 0.0  ;;  %v1393_v58 = vmul.f32 0.2, %v1329_v47  ;;  %v1332_v52 = vadd.f32 %v1260_v46, %v1172_v54 }
 0x1f4   : > { %1514 = vst.msk [vmem:[#allocation2 + $0x111] sm:$0xff] %vm585_vm0, %v1426_v27  ;;  %2364 = vrot.lane.b32.xlu1 %v1594_v13, %s7393_s22  ;;  %v1258_v36 = vpop.permute.xlu0 %1257  ;;  %12694 = vst [vmem:[#allocation16_spill] sm:$0xff] %v8468_v43  ;;  %v1112_v34 = vsub.f32 %v12695_v10, %v8206_v41  ;;  %v12696_v13 = vld [vmem:[#allocation36_spill] sm:$0xff]  ;;  %v8478_v12 = vmul.f32 %v8218_v30, %v1109_v40  ;;  %v1111_v27 = vsub.f32 %v12698_v59, %v8206_v41  ;;  %vm12591_vm9 = vcmask 326656  }
 0x1f5   : > { %v1425_v5 = vsel %vm1361_vm10, %v1329_v47, %v1393_v58  ;;  %vm1364_vm11 = vcmp.ge.f32.partialorder %v1332_v52, 0.0  ;;  %v1396_v21 = vmul.f32 0.2, %v1332_v52  ;;  %v1331_v8 = vadd.f32 %v1258_v36, %v1171_v15  ;;  %v12699_v15 = vld [vmem:[#allocation37_spill] sm:$0xff] }
 0x1f6   : > { %1513 = vst.msk [vmem:[#allocation2 + $0x109] sm:$0xff] %vm585_vm0, %v1425_v5  ;;  %v1264_v54 = vpop.permute.xlu1 %1263  ;;  %2234 = vrot.lane.b32.xlu0 %v8408_v28, %s7391_s20  ;;  %v1173_v46 = vmul.f32 %v8459_v6, %v12696_v13  ;;  %12697 = vst [vmem:[#allocation25_spill] sm:$0xff] %v8478_v12  ;;  %v1176_v36 = vmul.f32 %v12699_v15, %v8468_v43  ;;  %v8488_v40 = vmul.f32 %v8218_v30, %v1112_v34  ;;  %v12704_v34 = vld [vmem:[#allocation28_spill] sm:$0xff]  ;;  %v8658_v15 = vld [vmem:[#allocation2 + $0xc9] sm:$0xff]  ;;  %vm12590_vm10 = vcmask 392192  }
 0x1f7   : > { %v1428_v10 = vsel %vm1364_vm11, %v1332_v52, %v1396_v21  ;;  %vm1363_vm12 = vcmp.ge.f32.partialorder %v1331_v8, 0.0  ;;  %v1395_v47 = vmul.f32 0.2, %v1331_v8  ;;  %v1334_v58 = vadd.f32 %v1264_v54, %v1174_v62  ;;  %v8664_v13 = vld [vmem:[#allocation2 + $0xc1] sm:$0xff] }
 0x1f8   : > { %1516 = vst.msk [vmem:[#allocation2 + $0x129] sm:$0xff] %vm585_vm0, %v1428_v10  ;;  %2616 = vrot.lane.b32.xlu1 %v8396_v42, %s7394_s23  ;;  %v1262_v5 = vpop.permute.xlu0 %1261  ;;  %12700 = vst [vmem:[#allocation22_spill] sm:$0xff] %v8488_v40  ;;  %v1114_v59 = vsub.f32 %v12701_v20, %v8206_v41  ;;  %v12702_v42 = vld [vmem:[#allocation38_spill] sm:$0xff]  ;;  %v8498_v43 = vmul.f32 %v8218_v30, %v1111_v27  ;;  %v1113_v6 = vsub.f32 %v12704_v34, %v8206_v41  ;;  %vm12589_vm11 = vcmask 457728  }
 0x1f9   : > { %v1427_v52 = vsel %vm1363_vm12, %v1331_v8, %v1395_v47  ;;  %vm1366_vm13 = vcmp.ge.f32.partialorder %v1334_v58, 0.0  ;;  %v1398_v21 = vmul.f32 0.2, %v1334_v58  ;;  %v1333_v62 = vadd.f32 %v1262_v5, %v1173_v46  ;;  %v1624_v46 = vld [vmem:[#allocation2 + $0x38] sm:$0xff] }
 0x1fa   : > { %1515 = vst.msk [vmem:[#allocation2 + $0x121] sm:$0xff] %vm585_vm0, %v1427_v52  ;;  %v1268_v54 = vpop.permute.xlu1 %1267  ;;  %2362 = vrot.lane.b32.xlu0 %v8429_v35, %s7393_s22  ;;  %v1175_v10 = vmul.f32 %v8478_v12, %v12702_v42  ;;  %12703 = vst [vmem:[#allocation31_spill] sm:$0xff] %v8498_v43  ;;  %v12705_v35 = vld [vmem:[#allocation39_spill] sm:$0xff]  ;;  %v8507_v12 = vmul.f32 %v8218_v30, %v1114_v59  ;;  %vm12588_vm12 = vcmask 523264  }
 0x1fb   : > { %v1430_v20 = vsel %vm1366_vm13, %v1334_v58, %v1398_v21  ;;  %vm1365_vm14 = vcmp.ge.f32.partialorder %v1333_v62, 0.0  ;;  %v1397_v8 = vmul.f32 0.2, %v1333_v62  ;;  %v1336_v47 = vadd.f32 %v1268_v54, %v1176_v36  ;;  %v12707_v36 = vld [vmem:[#allocation40_spill] sm:$0xff] }
 0x1fc   : > { %1518 = vst.msk [vmem:[#allocation2 + $0x141] sm:$0xff] %vm585_vm0, %v1430_v20  ;;  %2108 = vrot.lane.b32.xlu1 %v1624_v46, %s7392_s21  ;;  %v1266_v5 = vpop.permute.xlu0 %1265  ;;  %v1178_v52 = vmul.f32 %v12705_v35, %v8488_v40  ;;  %12706 = vst [vmem:[#allocation28_spill] sm:$0xff] %v8507_v12  ;;  %v1177_v21 = vmul.f32 %v8498_v43, %v12707_v36  ;;  %v8515_v54 = vmul.f32 %v8218_v30, %v1113_v6  ;;  %vm12587_vm13 = vcmask 588800  }
 0x1fd   : > { %v1429_v27 = vsel %vm1365_vm14, %v1333_v62, %v1397_v8  ;;  %vm1368_vm15 = vcmp.ge.f32.partialorder %v1336_v47, 0.0  ;;  %v1400_v57 = vmul.f32 0.2, %v1336_v47  ;;  %v1335_v41 = vadd.f32 %v1266_v5, %v1175_v10  ;;  %v12709_v10 = vld [vmem:[#allocation41_spill] sm:$0xff] }
 0x1fe   : > { %1517 = vst.msk [vmem:[#allocation2 + $0x139] sm:$0xff] %vm585_vm0, %v1429_v27  ;;  %v1272_v58 = vpop.permute.xlu1 %1271  ;;  %2486 = vrot.lane.b32.xlu0 %v8451_v49, %s7389_s15  ;;  %12708 = vst [vmem:[#allocation72_spill] sm:$0xff] %v8515_v54  ;;  %v1180_v8 = vmul.f32 %v12709_v10, %v8507_v12  ;;  %v1634_v10 = vld [vmem:[#allocation2 + $0xb0] sm:$0xff] }
 0x1ff   : > { %v1432_v34 = vsel %vm1368_vm15, %v1336_v47, %v1400_v57  ;;  %vm1367_vm1 = vcmp.ge.f32.partialorder %v1335_v41, 0.0  ;;  %v1399_v59 = vmul.f32 0.2, %v1335_v41  ;;  %v1338_v20 = vadd.f32 %v1272_v58, %v1178_v52  ;;  %v12710_v57 = vld [vmem:[#allocation42_spill] sm:$0xff] }
 0x200   : > { %1520 = vst.msk [vmem:[#allocation2 + $0x159] sm:$0xff] %vm585_vm0, %v1432_v34  ;;  %2488 = vrot.lane.b32.xlu1 %v1624_v46, %s7389_s15  ;;  %v1270_v62 = vpop.permute.xlu0 %1269  ;;  %v1179_v6 = vmul.f32 %v8515_v54, %v12710_v57  ;;  %v1564_v58 = vld [vmem:[#allocation2 + $0x51] sm:$0xff] }
 0x201   : > { %v1431_v5 = vsel %vm1367_vm1, %v1335_v41, %v1399_v59  ;;  %vm1370_vm2 = vcmp.ge.f32.partialorder %v1338_v20, 0.0  ;;  %v1402_v49 = vmul.f32 0.2, %v1338_v20  ;;  %v1337_v27 = vadd.f32 %v1270_v62, %v1177_v21  ;;  %v1563_v62 = vld [vmem:[#allocation2 + $0x49] sm:$0xff]  ;;  %v1632_v54 = vld [vmem:[#allocation2 + $0x98] sm:$0xff] }
 0x202   : > { %1519 = vst.msk [vmem:[#allocation2 + $0x151] sm:$0xff] %vm585_vm0, %v1431_v5  ;;  %v1276_v30 = vpop.permute.xlu1 %1275  ;;  %2614 = vrot.lane.b32.xlu0 %v8408_v28, %s7394_s23  ;;  %v1596_v5 = vld [vmem:[#allocation2 + $0x52] sm:$0xff] }
 0x203   : > { %v1434_v47 = vsel %vm1370_vm2, %v1338_v20, %v1402_v49  ;;  %vm1369_vm3 = vcmp.ge.f32.partialorder %v1337_v27, 0.0  ;;  %v1401_v46 = vmul.f32 0.2, %v1337_v27  ;;  %v1340_v52 = vadd.f32 %v1276_v30, %v1180_v8  ;;  %v1595_v49 = vld [vmem:[#allocation2 + $0x4a] sm:$0xff] }
 0x204   : > { %1522 = vst.msk [vmem:[#allocation2 + $0x171] sm:$0xff] %vm585_vm0, %v1434_v47  ;;  %1860 = vrot.lane.b32.xlu1 %v1564_v58, %s7387_s13  ;;  %v1274_v41 = vpop.permute.xlu0 %1273  ;;  %v1626_v30 = vld [vmem:[#allocation2 + $0x50] sm:$0xff]  ;;  %v1565_v47 = vld [vmem:[#allocation2 + $0x61] sm:$0xff] }
 0x205   : > { %v1433_v21 = vsel %vm1369_vm3, %v1337_v27, %v1401_v46  ;;  %vm1372_vm4 = vcmp.ge.f32.partialorder %v1340_v52, 0.0  ;;  %v1404_v34 = vmul.f32 0.2, %v1340_v52  ;;  %v1339_v59 = vadd.f32 %v1274_v41, %v1179_v6  ;;  %v1625_v27 = vld [vmem:[#allocation2 + $0x48] sm:$0xff] }
 0x206   : > { %1521 = vst.msk [vmem:[#allocation2 + $0x169] sm:$0xff] %vm585_vm0, %v1433_v21  ;;  %1858 = vrot.lane.b32.xlu0 %v1563_v62, %s7387_s13  ;;  %v1566_v6 = vld [vmem:[#allocation2 + $0x69] sm:$0xff]  ;;  %v1568_v21 = vld [vmem:[#allocation2 + $0x81] sm:$0xff] }
 0x207   : > { %v1436_v28 = vsel %vm1372_vm4, %v1340_v52, %v1404_v34  ;;  %vm1371_vm5 = vcmp.ge.f32.partialorder %v1339_v59, 0.0  ;;  %v1403_v20 = vmul.f32 0.2, %v1339_v59  ;;  %v1598_v46 = vld [vmem:[#allocation2 + $0x6a] sm:$0xff]  ;;  %v1597_v52 = vld [vmem:[#allocation2 + $0x62] sm:$0xff]  ;;  %v1567_v34 = vld [vmem:[#allocation2 + $0x79] sm:$0xff] }
 0x208   : > { %1524 = vst.msk [vmem:[#allocation2 + $0x189] sm:$0xff] %vm585_vm0, %v1436_v28  ;;  %1988 = vrot.lane.b32.xlu1 %v1596_v5, %s7388_s14  ;;  %v1628_v41 = vld [vmem:[#allocation2 + $0x68] sm:$0xff]  ;;  %v1629_v28 = vld [vmem:[#allocation2 + $0x78] sm:$0xff] }
 0x209   : > { %v1435_v8 = vsel %vm1371_vm5, %v1339_v59, %v1403_v20  ;;  %v1600_v59 = vld [vmem:[#allocation2 + $0x82] sm:$0xff] }
 0x20a   : > { %1523 = vst.msk [vmem:[#allocation2 + $0x181] sm:$0xff] %vm585_vm0, %v1435_v8  ;;  %1986 = vrot.lane.b32.xlu0 %v1595_v49, %s7388_s14 }
 0x20c   : > { %2240 = vrot.lane.b32.xlu1 %v1564_v58, %s7391_s20 }
 0x20e   : > { %2110 = vrot.lane.b32.xlu0 %v1625_v27, %s7392_s21 }
 0x210   : > { %2368 = vrot.lane.b32.xlu1 %v1596_v5, %s7393_s22  ;;  %v1630_v5 = vld [vmem:[#allocation2 + $0x80] sm:$0xff] }
 0x212   : > { %2238 = vrot.lane.b32.xlu0 %v1563_v62, %s7391_s20 }
 0x214   : > { %2620 = vrot.lane.b32.xlu1 %v1564_v58, %s7394_s23  ;;  %v1627_v58 = vld [vmem:[#allocation2 + $0x60] sm:$0xff] }
 0x216   : > { %2366 = vrot.lane.b32.xlu0 %v1595_v49, %s7393_s22 }
 0x218   : > { %2112 = vrot.lane.b32.xlu1 %v1626_v30, %s7392_s21 }
 0x21a   : > { %2490 = vrot.lane.b32.xlu0 %v1625_v27, %s7389_s15 }
 0x21c   : > { %2492 = vrot.lane.b32.xlu1 %v1626_v30, %s7389_s15 }
 0x21e   : > { %2618 = vrot.lane.b32.xlu0 %v1563_v62, %s7394_s23  ;;  %v1599_v62 = vld [vmem:[#allocation2 + $0x7a] sm:$0xff] }
 0x220   : > { %1864 = vrot.lane.b32.xlu1 %v1566_v6, %s7387_s13 }
 0x222   : > { %1862 = vrot.lane.b32.xlu0 %v1565_v47, %s7387_s13 }
 0x224   : > { %1992 = vrot.lane.b32.xlu1 %v1598_v46, %s7388_s14 }
 0x226   : > { %1990 = vrot.lane.b32.xlu0 %v1597_v52, %s7388_s14 }
 0x228   : > { %2244 = vrot.lane.b32.xlu1 %v1566_v6, %s7391_s20  ;;  %v1570_v6 = vld [vmem:[#allocation2 + $0x99] sm:$0xff] }
 0x22a   : > { %2114 = vrot.lane.b32.xlu0 %v1627_v58, %s7392_s21 }
 0x22c   : > { %2372 = vrot.lane.b32.xlu1 %v1598_v46, %s7393_s22  ;;  %v1569_v46 = vld [vmem:[#allocation2 + $0x91] sm:$0xff] }
 0x22e   : > { %2242 = vrot.lane.b32.xlu0 %v1565_v47, %s7391_s20 }
 0x230   : > { %2116 = vrot.lane.b32.xlu1 %v1628_v41, %s7392_s21 }
 0x232   : > { %2370 = vrot.lane.b32.xlu0 %v1597_v52, %s7393_s22 }
 0x234   : > { %2496 = vrot.lane.b32.xlu1 %v1628_v41, %s7389_s15 }
 0x236   : > { %2494 = vrot.lane.b32.xlu0 %v1627_v58, %s7389_s15  ;;  %v1602_v58 = vld [vmem:[#allocation2 + $0x9a] sm:$0xff] }
 0x238   : > { %1868 = vrot.lane.b32.xlu1 %v1568_v21, %s7387_s13 }
 0x23a   : > { %1866 = vrot.lane.b32.xlu0 %v1567_v34, %s7387_s13 }
 0x23c   : > { %1996 = vrot.lane.b32.xlu1 %v1600_v59, %s7388_s14 }
 0x23e   : > { %1994 = vrot.lane.b32.xlu0 %v1599_v62, %s7388_s14 }
 0x240   : > { %2248 = vrot.lane.b32.xlu1 %v1568_v21, %s7391_s20  ;;  %v1601_v21 = vld [vmem:[#allocation2 + $0x92] sm:$0xff] }
 0x242   : > { %2118 = vrot.lane.b32.xlu0 %v1629_v28, %s7392_s21 }
 0x244   : > { %2376 = vrot.lane.b32.xlu1 %v1600_v59, %s7393_s22 }
 0x246   : > { %v8563_v20 = vpop.permute.xlu1 %1852  ;;  %2246 = vrot.lane.b32.xlu0 %v1567_v34, %s7391_s20 }
 0x247   : > { %12711 = vst [vmem:[#allocation73_spill] sm:$0xff] %v8563_v20  ;;  %v9067_v20 = vld [vmem:[#allocation2 + $0x18a] sm:$0xff] }
 0x248   : > { %2120 = vrot.lane.b32.xlu1 %v1630_v5, %s7392_s21  ;;  %v8567_v8 = vpop.permute.xlu0 %1850 }
 0x249   : > { %12712 = vst [vmem:[#allocation74_spill] sm:$0xff] %v8567_v8 }
 0x24a   : > { %v8569_v49 = vpop.permute.xlu1 %1980  ;;  %2374 = vrot.lane.b32.xlu0 %v1599_v62, %s7393_s22  ;;  %v1631_v62 = vld [vmem:[#allocation2 + $0x90] sm:$0xff] }
 0x24b   : > { %12713 = vst [vmem:[#allocation75_spill] sm:$0xff] %v8569_v49 }
 0x24c   : > { %2500 = vrot.lane.b32.xlu1 %v1630_v5, %s7389_s15  ;;  %v8573_v27 = vpop.permute.xlu0 %1978 }
 0x24d   : > { %12714 = vst [vmem:[#allocation76_spill] sm:$0xff] %v8573_v27 }
 0x24e   : > { %v8575_v30 = vpop.permute.xlu1 %2232  ;;  %2498 = vrot.lane.b32.xlu0 %v1629_v28, %s7389_s15 }
 0x24f   : > { %12715 = vst [vmem:[#allocation77_spill] sm:$0xff] %v8575_v30 }
 0x250   : > { %1872 = vrot.lane.b32.xlu1 %v1570_v6, %s7387_s13  ;;  %v8579_v47 = vpop.permute.xlu0 %2102 }
 0x251   : > { %12716 = vst [vmem:[#allocation78_spill] sm:$0xff] %v8579_v47 }
 0x252   : > { %v8581_v52 = vpop.permute.xlu1 %2360  ;;  %1870 = vrot.lane.b32.xlu0 %v1569_v46, %s7387_s13 }
 0x253   : > { %12717 = vst [vmem:[#allocation79_spill] sm:$0xff] %v8581_v52 }
 0x254   : > { %2000 = vrot.lane.b32.xlu1 %v1602_v58, %s7388_s14  ;;  %v8585_v41 = vpop.permute.xlu0 %2230 }
 0x255   : > { %12718 = vst [vmem:[#allocation80_spill] sm:$0xff] %v8585_v41 }
 0x256   : > { %v8587_v34 = vpop.permute.xlu1 %2104  ;;  %1998 = vrot.lane.b32.xlu0 %v1601_v21, %s7388_s14 }
 0x257   : > { %12719 = vst [vmem:[#allocation81_spill] sm:$0xff] %v8587_v34 }
 0x258   : > { %2252 = vrot.lane.b32.xlu1 %v1570_v6, %s7391_s20  ;;  %v8591_v59 = vpop.permute.xlu0 %2358 }
 0x259   : > { %12720 = vst [vmem:[#allocation82_spill] sm:$0xff] %v8591_v59 }
 0x25a   : > { %v8593_v28 = vpop.permute.xlu1 %1856  ;;  %2122 = vrot.lane.b32.xlu0 %v1631_v62, %s7392_s21 }
 0x25b   : > { %12721 = vst [vmem:[#allocation83_spill] sm:$0xff] %v8593_v28 }
 0x25c   : > { %2380 = vrot.lane.b32.xlu1 %v1602_v58, %s7393_s22  ;;  %v8597_v5 = vpop.permute.xlu0 %1854 }
 0x25d   : > { %12722 = vst [vmem:[#allocation84_spill] sm:$0xff] %v8597_v5 }
 0x25e   : > { %v8599_v12 = vpop.permute.xlu1 %1984  ;;  %2250 = vrot.lane.b32.xlu0 %v1569_v46, %s7391_s20 }
 0x25f   : > { %12723 = vst [vmem:[#allocation85_spill] sm:$0xff] %v8599_v12 }
 0x260   : > { %2124 = vrot.lane.b32.xlu1 %v1632_v54, %s7392_s21  ;;  %v8603_v40 = vpop.permute.xlu0 %1982 }
 0x261   : > { %12724 = vst [vmem:[#allocation86_spill] sm:$0xff] %v8603_v40 }
 0x262   : > { %v8605_v6 = vpop.permute.xlu1 %2236  ;;  %2378 = vrot.lane.b32.xlu0 %v1601_v21, %s7393_s22 }
 0x263   : > { %12725 = vst [vmem:[#allocation87_spill] sm:$0xff] %v8605_v6 }
 0x264   : > { %2504 = vrot.lane.b32.xlu1 %v1632_v54, %s7389_s15  ;;  %v8609_v43 = vpop.permute.xlu0 %2106  ;;  %v1604_v54 = vld [vmem:[#allocation2 + $0xb2] sm:$0xff] }
 0x265   : > { %12726 = vst [vmem:[#allocation88_spill] sm:$0xff] %v8609_v43 }
 0x266   : > { %v8611_v58 = vpop.permute.xlu1 %2364  ;;  %2502 = vrot.lane.b32.xlu0 %v1631_v62, %s7389_s15  ;;  %v1603_v62 = vld [vmem:[#allocation2 + $0xaa] sm:$0xff] }
 0x267   : > { %12727 = vst [vmem:[#allocation89_spill] sm:$0xff] %v8611_v58 }
 0x268   : > { %1876 = vrot.lane.b32.xlu1 %v8614_v55, %s7387_s13  ;;  %v8618_v46 = vpop.permute.xlu0 %2234 }
 0x269   : > { %12728 = vst [vmem:[#allocation90_spill] sm:$0xff] %v8618_v46 }
 0x26a   : > { %v8622_v61 = vpop.permute.xlu1 %2616  ;;  %1874 = vrot.lane.b32.xlu0 %v8620_v24, %s7387_s13 }
 0x26b   : > { %12729 = vst [vmem:[#allocation91_spill] sm:$0xff] %v8622_v61 }
 0x26c   : > { %2004 = vrot.lane.b32.xlu1 %v1604_v54, %s7388_s14  ;;  %v8627_v21 = vpop.permute.xlu0 %2362 }
 0x26d   : > { %12730 = vst [vmem:[#allocation92_spill] sm:$0xff] %v8627_v21 }
 0x26e   : > { %v8629_v29 = vpop.permute.xlu1 %2108  ;;  %2002 = vrot.lane.b32.xlu0 %v1603_v62, %s7388_s14 }
 0x26f   : > { %12731 = vst [vmem:[#allocation93_spill] sm:$0xff] %v8629_v29 }
 0x270   : > { %2256 = vrot.lane.b32.xlu1 %v8614_v55, %s7391_s20  ;;  %v8634_v18 = vpop.permute.xlu0 %2486 }
 0x271   : > { %12732 = vst [vmem:[#allocation94_spill] sm:$0xff] %v8634_v18 }
 0x272   : > { %v8636_v4 = vpop.permute.xlu1 %2488  ;;  %2126 = vrot.lane.b32.xlu0 %v1633_v48, %s7392_s21 }
 0x273   : > { %12733 = vst [vmem:[#allocation95_spill] sm:$0xff] %v8636_v4 }
 0x274   : > { %2384 = vrot.lane.b32.xlu1 %v1604_v54, %s7393_s22  ;;  %v8640_v45 = vpop.permute.xlu0 %2614 }
 0x275   : > { %12734 = vst [vmem:[#allocation96_spill] sm:$0xff] %v8640_v45 }
 0x276   : > { %v8642_v57 = vpop.permute.xlu1 %1860  ;;  %2254 = vrot.lane.b32.xlu0 %v8620_v24, %s7391_s20 }
 0x277   : > { %12735 = vst [vmem:[#allocation97_spill] sm:$0xff] %v8642_v57 }
 0x278   : > { %2128 = vrot.lane.b32.xlu1 %v1634_v10, %s7392_s21  ;;  %v8647_v36 = vpop.permute.xlu0 %1858 }
 0x279   : > { %12736 = vst [vmem:[#allocation98_spill] sm:$0xff] %v8647_v36 }
 0x27a   : > { %v8649_v35 = vpop.permute.xlu1 %1988  ;;  %2382 = vrot.lane.b32.xlu0 %v1603_v62, %s7393_s22 }
 0x27b   : > { %12737 = vst [vmem:[#allocation99_spill] sm:$0xff] %v8649_v35 }
 0x27c   : > { %2508 = vrot.lane.b32.xlu1 %v1634_v10, %s7389_s15  ;;  %v8653_v42 = vpop.permute.xlu0 %1986  ;;  %v1606_v10 = vld [vmem:[#allocation2 + $0xca] sm:$0xff] }
 0x27d   : > { %12738 = vst [vmem:[#allocation100_spill] sm:$0xff] %v8653_v42 }
 0x27e   : > { %v8655_v54 = vpop.permute.xlu1 %2240  ;;  %2506 = vrot.lane.b32.xlu0 %v1633_v48, %s7389_s15  ;;  %v1605_v48 = vld [vmem:[#allocation2 + $0xc2] sm:$0xff] }
 0x27f   : > { %12739 = vst [vmem:[#allocation101_spill] sm:$0xff] %v8655_v54 }
 0x280   : > { %1880 = vrot.lane.b32.xlu1 %v8658_v15, %s7387_s13  ;;  %v8662_v45 = vpop.permute.xlu0 %2110 }
 0x281   : > { %12740 = vst [vmem:[#allocation102_spill] sm:$0xff] %v8662_v45  ;;  %v1635_v45 = vld [vmem:[#allocation2 + $0xc0] sm:$0xff] }
 0x282   : > { %v8666_v61 = vpop.permute.xlu1 %2368  ;;  %1878 = vrot.lane.b32.xlu0 %v8664_v13, %s7387_s13 }
 0x283   : > { %12741 = vst [vmem:[#allocation103_spill] sm:$0xff] %v8666_v61 }
 0x284   : > { %2008 = vrot.lane.b32.xlu1 %v1606_v10, %s7388_s14  ;;  %v8671_v62 = vpop.permute.xlu0 %2238 }
 0x285   : > { %12742 = vst [vmem:[#allocation104_spill] sm:$0xff] %v8671_v62 }
 0x286   : > { %v8673_v54 = vpop.permute.xlu1 %2620  ;;  %2006 = vrot.lane.b32.xlu0 %v1605_v48, %s7388_s14 }
 0x287   : > { %12743 = vst [vmem:[#allocation105_spill] sm:$0xff] %v8673_v54  ;;  %v1636_v54 = vld [vmem:[#allocation2 + $0xc8] sm:$0xff] }
 0x288   : > { %2260 = vrot.lane.b32.xlu1 %v8658_v15, %s7391_s20  ;;  %v8678_v42 = vpop.permute.xlu0 %2366 }
 0x289   : > { %12744 = vst [vmem:[#allocation106_spill] sm:$0xff] %v8678_v42 }
 0x28a   : > { %v8680_v61 = vpop.permute.xlu1 %2112  ;;  %2130 = vrot.lane.b32.xlu0 %v1635_v45, %s7392_s21 }
 0x28b   : > { %12745 = vst [vmem:[#allocation107_spill] sm:$0xff] %v8680_v61 }
 0x28c   : > { %2388 = vrot.lane.b32.xlu1 %v1606_v10, %s7393_s22  ;;  %v8684_v35 = vpop.permute.xlu0 %2490 }
 0x28d   : > { %12746 = vst [vmem:[#allocation108_spill] sm:$0xff] %v8684_v35 }
 0x28e   : > { %v8686_v62 = vpop.permute.xlu1 %2492  ;;  %2258 = vrot.lane.b32.xlu0 %v8664_v13, %s7391_s20 }
 0x28f   : > { %12747 = vst [vmem:[#allocation109_spill] sm:$0xff] %v8686_v62  ;;  %v8702_v62 = vld [vmem:[#allocation2 + $0xe1] sm:$0xff] }
 0x290   : > { %2132 = vrot.lane.b32.xlu1 %v1636_v54, %s7392_s21  ;;  %v8691_v36 = vpop.permute.xlu0 %2618 }
 0x291   : > { %12748 = vst [vmem:[#allocation110_spill] sm:$0xff] %v8691_v36  ;;  %v8708_v36 = vld [vmem:[#allocation2 + $0xd9] sm:$0xff] }
 0x292   : > { %v8693_v42 = vpop.permute.xlu1 %1864  ;;  %2386 = vrot.lane.b32.xlu0 %v1605_v48, %s7393_s22 }
 0x293   : > { %12749 = vst [vmem:[#allocation111_spill] sm:$0xff] %v8693_v42 }
 0x294   : > { %2512 = vrot.lane.b32.xlu1 %v1636_v54, %s7389_s15  ;;  %v8697_v58 = vpop.permute.xlu0 %1862  ;;  %v1608_v54 = vld [vmem:[#allocation2 + $0xe2] sm:$0xff] }
 0x295   : > { %12750 = vst [vmem:[#allocation112_spill] sm:$0xff] %v8697_v58 }
 0x296   : > { %v8699_v10 = vpop.permute.xlu1 %1992  ;;  %2510 = vrot.lane.b32.xlu0 %v1635_v45, %s7389_s15  ;;  %v1607_v45 = vld [vmem:[#allocation2 + $0xda] sm:$0xff] }
 0x297   : > { %12751 = vst [vmem:[#allocation113_spill] sm:$0xff] %v8699_v10  ;;  %v1637_v10 = vld [vmem:[#allocation2 + $0xd8] sm:$0xff] }
 0x298   : > { %1884 = vrot.lane.b32.xlu1 %v8702_v62, %s7387_s13  ;;  %v8706_v35 = vpop.permute.xlu0 %1990 }
 0x299   : > { %12752 = vst [vmem:[#allocation114_spill] sm:$0xff] %v8706_v35 }
 0x29a   : > { %v8710_v42 = vpop.permute.xlu1 %2244  ;;  %1882 = vrot.lane.b32.xlu0 %v8708_v36, %s7387_s13 }
 0x29b   : > { %12753 = vst [vmem:[#allocation115_spill] sm:$0xff] %v8710_v42 }
 0x29c   : > { %2012 = vrot.lane.b32.xlu1 %v1608_v54, %s7388_s14  ;;  %v8715_v48 = vpop.permute.xlu0 %2114 }
 0x29d   : > { %12754 = vst [vmem:[#allocation116_spill] sm:$0xff] %v8715_v48 }
 0x29e   : > { %v8717_v58 = vpop.permute.xlu1 %2372  ;;  %2010 = vrot.lane.b32.xlu0 %v1607_v45, %s7388_s14 }
 0x29f   : > { %12755 = vst [vmem:[#allocation117_spill] sm:$0xff] %v8717_v58  ;;  %v1638_v58 = vld [vmem:[#allocation2 + $0xe0] sm:$0xff] }
 0x2a0   : > { %2264 = vrot.lane.b32.xlu1 %v8702_v62, %s7391_s20  ;;  %v8722_v35 = vpop.permute.xlu0 %2242 }
 0x2a1   : > { %12756 = vst [vmem:[#allocation118_spill] sm:$0xff] %v8722_v35 }
 0x2a2   : > { %v8724_v42 = vpop.permute.xlu1 %2116  ;;  %2134 = vrot.lane.b32.xlu0 %v1637_v10, %s7392_s21 }
 0x2a3   : > { %12757 = vst [vmem:[#allocation119_spill] sm:$0xff] %v8724_v42 }
 0x2a4   : > { %2392 = vrot.lane.b32.xlu1 %v1608_v54, %s7393_s22  ;;  %v8728_v61 = vpop.permute.xlu0 %2370 }
 0x2a5   : > { %12758 = vst [vmem:[#allocation120_spill] sm:$0xff] %v8728_v61 }
 0x2a6   : > { %v8730_v48 = vpop.permute.xlu1 %2496  ;;  %2262 = vrot.lane.b32.xlu0 %v8708_v36, %s7391_s20 }
 0x2a7   : > { %12759 = vst [vmem:[#allocation121_spill] sm:$0xff] %v8730_v48  ;;  %v8746_v48 = vld [vmem:[#allocation2 + $0xf9] sm:$0xff] }
 0x2a8   : > { %2136 = vrot.lane.b32.xlu1 %v1638_v58, %s7392_s21  ;;  %v8735_v57 = vpop.permute.xlu0 %2494 }
 0x2a9   : > { %12760 = vst [vmem:[#allocation122_spill] sm:$0xff] %v8735_v57  ;;  %v8752_v57 = vld [vmem:[#allocation2 + $0xf1] sm:$0xff] }
 0x2aa   : > { %v8737_v35 = vpop.permute.xlu1 %1868  ;;  %2390 = vrot.lane.b32.xlu0 %v1607_v45, %s7393_s22  ;;  %v8764_v45 = vld [vmem:[#allocation2 + $0xf2] sm:$0xff] }
 0x2ab   : > { %12761 = vst [vmem:[#allocation123_spill] sm:$0xff] %v8737_v35 }
 0x2ac   : > { %2516 = vrot.lane.b32.xlu1 %v1638_v58, %s7389_s15  ;;  %v8741_v42 = vpop.permute.xlu0 %1866  ;;  %v8758_v58 = vld [vmem:[#allocation2 + $0xfa] sm:$0xff] }
 0x2ad   : > { %12762 = vst [vmem:[#allocation124_spill] sm:$0xff] %v8741_v42  ;;  %v1639_v42 = vld [vmem:[#allocation2 + $0xf0] sm:$0xff] }
 0x2ae   : > { %v8743_v54 = vpop.permute.xlu1 %1996  ;;  %2514 = vrot.lane.b32.xlu0 %v1637_v10, %s7389_s15 }
 0x2af   : > { %12763 = vst [vmem:[#allocation125_spill] sm:$0xff] %v8743_v54 }
 0x2b0   : > { %1888 = vrot.lane.b32.xlu1 %v8746_v48, %s7387_s13  ;;  %v8750_v61 = vpop.permute.xlu0 %1994 }
 0x2b1   : > { %12764 = vst [vmem:[#allocation126_spill] sm:$0xff] %v8750_v61 }
 0x2b2   : > { %v8754_v35 = vpop.permute.xlu1 %2248  ;;  %1886 = vrot.lane.b32.xlu0 %v8752_v57, %s7387_s13 }
 0x2b3   : > { %12765 = vst [vmem:[#allocation127_spill] sm:$0xff] %v8754_v35 }
 0x2b4   : > { %2016 = vrot.lane.b32.xlu1 %v8758_v58, %s7388_s14  ;;  %v8762_v10 = vpop.permute.xlu0 %2118 }
 0x2b5   : > { %12766 = vst [vmem:[#allocation128_spill] sm:$0xff] %v8762_v10 }
 0x2b6   : > { %v8766_v54 = vpop.permute.xlu1 %2376  ;;  %2014 = vrot.lane.b32.xlu0 %v8764_v45, %s7388_s14 }
 0x2b7   : > { %12767 = vst [vmem:[#allocation129_spill] sm:$0xff] %v8766_v54  ;;  %v1640_v54 = vld [vmem:[#allocation2 + $0xf8] sm:$0xff] }
 0x2b8   : > { %2268 = vrot.lane.b32.xlu1 %v8746_v48, %s7391_s20  ;;  %v8772_v61 = vpop.permute.xlu0 %2246 }
 0x2b9   : > { %12768 = vst [vmem:[#allocation130_spill] sm:$0xff] %v8772_v61 }
 0x2ba   : > { %v8774_v35 = vpop.permute.xlu1 %2120  ;;  %2138 = vrot.lane.b32.xlu0 %v1639_v42, %s7392_s21 }
 0x2bb   : > { %12769 = vst [vmem:[#allocation131_spill] sm:$0xff] %v8774_v35 }
 0x2bc   : > { %2396 = vrot.lane.b32.xlu1 %v8758_v58, %s7393_s22  ;;  %v8779_v10 = vpop.permute.xlu0 %2374 }
 0x2bd   : > { %12770 = vst [vmem:[#allocation132_spill] sm:$0xff] %v8779_v10 }
 0x2be   : > { %v8781_v18 = vpop.permute.xlu1 %2500  ;;  %2266 = vrot.lane.b32.xlu0 %v8752_v57, %s7391_s20 }
 0x2bf   : > { %12771 = vst [vmem:[#allocation133_spill] sm:$0xff] %v8781_v18  ;;  %v8798_v18 = vld [vmem:[#allocation2 + $0x111] sm:$0xff] }
 0x2c0   : > { %2140 = vrot.lane.b32.xlu1 %v1640_v54, %s7392_s21  ;;  %v8786_v16 = vpop.permute.xlu0 %2498 }
 0x2c1   : > { %12772 = vst [vmem:[#allocation134_spill] sm:$0xff] %v8786_v16  ;;  %v8804_v16 = vld [vmem:[#allocation2 + $0x109] sm:$0xff] }
 0x2c2   : > { %v8788_v61 = vpop.permute.xlu1 %1872  ;;  %2394 = vrot.lane.b32.xlu0 %v8764_v45, %s7393_s22 }
 0x2c3   : > { %12773 = vst [vmem:[#allocation135_spill] sm:$0xff] %v8788_v61 }
 0x2c4   : > { %2520 = vrot.lane.b32.xlu1 %v1640_v54, %s7389_s15  ;;  %v8793_v35 = vpop.permute.xlu0 %1870  ;;  %v8810_v54 = vld [vmem:[#allocation2 + $0x112] sm:$0xff] }
 0x2c5   : > { %12774 = vst [vmem:[#allocation136_spill] sm:$0xff] %v8793_v35  ;;  %v8816_v35 = vld [vmem:[#allocation2 + $0x10a] sm:$0xff] }
 0x2c6   : > { %v8795_v10 = vpop.permute.xlu1 %2000  ;;  %2518 = vrot.lane.b32.xlu0 %v1639_v42, %s7389_s15 }
 0x2c7   : > { %12775 = vst [vmem:[#allocation137_spill] sm:$0xff] %v8795_v10 }
 0x2c8   : > { %1892 = vrot.lane.b32.xlu1 %v8798_v18, %s7387_s13  ;;  %v8802_v21 = vpop.permute.xlu0 %1998 }
 0x2c9   : > { %12776 = vst [vmem:[#allocation138_spill] sm:$0xff] %v8802_v21 }
 0x2ca   : > { %v8806_v61 = vpop.permute.xlu1 %2252  ;;  %1890 = vrot.lane.b32.xlu0 %v8804_v16, %s7387_s13 }
 0x2cb   : > { %12777 = vst [vmem:[#allocation139_spill] sm:$0xff] %v8806_v61  ;;  %v1641_v61 = vld [vmem:[#allocation2 + $0x108] sm:$0xff] }
 0x2cc   : > { %2020 = vrot.lane.b32.xlu1 %v8810_v54, %s7388_s14  ;;  %v8814_v42 = vpop.permute.xlu0 %2122 }
 0x2cd   : > { %12778 = vst [vmem:[#allocation140_spill] sm:$0xff] %v8814_v42 }
 0x2ce   : > { %v8818_v10 = vpop.permute.xlu1 %2380  ;;  %2018 = vrot.lane.b32.xlu0 %v8816_v35, %s7388_s14 }
 0x2cf   : > { %12779 = vst [vmem:[#allocation141_spill] sm:$0xff] %v8818_v10  ;;  %v1642_v10 = vld [vmem:[#allocation2 + $0x110] sm:$0xff] }
 0x2d0   : > { %2272 = vrot.lane.b32.xlu1 %v8798_v18, %s7391_s20  ;;  %v8824_v21 = vpop.permute.xlu0 %2250 }
 0x2d1   : > { %12780 = vst [vmem:[#allocation142_spill] sm:$0xff] %v8824_v21 }
 0x2d2   : > { %v8826_v40 = vpop.permute.xlu1 %2124  ;;  %2142 = vrot.lane.b32.xlu0 %v1641_v61, %s7392_s21 }
 0x2d3   : > { %12781 = vst [vmem:[#allocation143_spill] sm:$0xff] %v8826_v40 }
 0x2d4   : > { %2400 = vrot.lane.b32.xlu1 %v8810_v54, %s7393_s22  ;;  %v8831_v42 = vpop.permute.xlu0 %2378 }
 0x2d5   : > { %12782 = vst [vmem:[#allocation144_spill] sm:$0xff] %v8831_v42 }
 0x2d6   : > { %v8833_v12 = vpop.permute.xlu1 %2504  ;;  %2270 = vrot.lane.b32.xlu0 %v8804_v16, %s7391_s20 }
 0x2d7   : > { %12783 = vst [vmem:[#allocation145_spill] sm:$0xff] %v8833_v12  ;;  %v8850_v12 = vld [vmem:[#allocation2 + $0x129] sm:$0xff] }
 0x2d8   : > { %2144 = vrot.lane.b32.xlu1 %v1642_v10, %s7392_s21  ;;  %v8838_v59 = vpop.permute.xlu0 %2502 }
 0x2d9   : > { %12784 = vst [vmem:[#allocation146_spill] sm:$0xff] %v8838_v59  ;;  %v8856_v59 = vld [vmem:[#allocation2 + $0x121] sm:$0xff] }
 0x2da   : > { %v8840_v21 = vpop.permute.xlu1 %1876  ;;  %2398 = vrot.lane.b32.xlu0 %v8816_v35, %s7393_s22 }
 0x2db   : > { %12785 = vst [vmem:[#allocation147_spill] sm:$0xff] %v8840_v21 }
 0x2dc   : > { %2524 = vrot.lane.b32.xlu1 %v1642_v10, %s7389_s15  ;;  %v8845_v40 = vpop.permute.xlu0 %1874  ;;  %v8862_v10 = vld [vmem:[#allocation2 + $0x12a] sm:$0xff] }
 0x2dd   : > { %12786 = vst [vmem:[#allocation148_spill] sm:$0xff] %v8845_v40 }
 0x2de   : > { %v8847_v42 = vpop.permute.xlu1 %2004  ;;  %2522 = vrot.lane.b32.xlu0 %v1641_v61, %s7389_s15 }
 0x2df   : > { %12787 = vst [vmem:[#allocation149_spill] sm:$0xff] %v8847_v42  ;;  %v8868_v42 = vld [vmem:[#allocation2 + $0x122] sm:$0xff] }
 0x2e0   : > { %1896 = vrot.lane.b32.xlu1 %v8850_v12, %s7387_s13  ;;  %v8854_v4 = vpop.permute.xlu0 %2002 }
 0x2e1   : > { %12788 = vst [vmem:[#allocation150_spill] sm:$0xff] %v8854_v4 }
 0x2e2   : > { %v8858_v21 = vpop.permute.xlu1 %2256  ;;  %1894 = vrot.lane.b32.xlu0 %v8856_v59, %s7387_s13 }
 0x2e3   : > { %12789 = vst [vmem:[#allocation151_spill] sm:$0xff] %v8858_v21  ;;  %v1643_v21 = vld [vmem:[#allocation2 + $0x120] sm:$0xff] }
 0x2e4   : > { %2024 = vrot.lane.b32.xlu1 %v8862_v10, %s7388_s14  ;;  %v8866_v61 = vpop.permute.xlu0 %2126 }
 0x2e5   : > { %12790 = vst [vmem:[#allocation152_spill] sm:$0xff] %v8866_v61 }
 0x2e6   : > { %v8870_v40 = vpop.permute.xlu1 %2384  ;;  %2022 = vrot.lane.b32.xlu0 %v8868_v42, %s7388_s14 }
 0x2e7   : > { %12791 = vst [vmem:[#allocation153_spill] sm:$0xff] %v8870_v40  ;;  %v1644_v40 = vld [vmem:[#allocation2 + $0x128] sm:$0xff] }
 0x2e8   : > { %2276 = vrot.lane.b32.xlu1 %v8850_v12, %s7391_s20  ;;  %v8876_v4 = vpop.permute.xlu0 %2254 }
 0x2e9   : > { %12792 = vst [vmem:[#allocation154_spill] sm:$0xff] %v8876_v4 }
 0x2ea   : > { %v8878_v46 = vpop.permute.xlu1 %2128  ;;  %2146 = vrot.lane.b32.xlu0 %v1643_v21, %s7392_s21 }
 0x2eb   : > { %12793 = vst [vmem:[#allocation155_spill] sm:$0xff] %v8878_v46 }
 0x2ec   : > { %2404 = vrot.lane.b32.xlu1 %v8862_v10, %s7393_s22  ;;  %v8883_v61 = vpop.permute.xlu0 %2382 }
 0x2ed   : > { %12794 = vst [vmem:[#allocation156_spill] sm:$0xff] %v8883_v61 }
 0x2ee   : > { %v8885_v5 = vpop.permute.xlu1 %2508  ;;  %2274 = vrot.lane.b32.xlu0 %v8856_v59, %s7391_s20 }
 0x2ef   : > { %12795 = vst [vmem:[#allocation157_spill] sm:$0xff] %v8885_v5  ;;  %v8902_v5 = vld [vmem:[#allocation2 + $0x141] sm:$0xff] }
 0x2f0   : > { %2148 = vrot.lane.b32.xlu1 %v1644_v40, %s7392_s21  ;;  %v8890_v28 = vpop.permute.xlu0 %2506 }
 0x2f1   : > { %12796 = vst [vmem:[#allocation158_spill] sm:$0xff] %v8890_v28  ;;  %v8908_v28 = vld [vmem:[#allocation2 + $0x139] sm:$0xff] }
 0x2f2   : > { %v8892_v4 = vpop.permute.xlu1 %1880  ;;  %2402 = vrot.lane.b32.xlu0 %v8868_v42, %s7393_s22 }
 0x2f3   : > { %12797 = vst [vmem:[#allocation159_spill] sm:$0xff] %v8892_v4 }
 0x2f4   : > { %2528 = vrot.lane.b32.xlu1 %v1644_v40, %s7389_s15  ;;  %v8897_v46 = vpop.permute.xlu0 %1878  ;;  %v8914_v40 = vld [vmem:[#allocation2 + $0x142] sm:$0xff] }
 0x2f5   : > { %12798 = vst [vmem:[#allocation160_spill] sm:$0xff] %v8897_v46 }
 0x2f6   : > { %v8899_v61 = vpop.permute.xlu1 %2008  ;;  %2526 = vrot.lane.b32.xlu0 %v1643_v21, %s7389_s15 }
 0x2f7   : > { %12799 = vst [vmem:[#allocation161_spill] sm:$0xff] %v8899_v61  ;;  %v8920_v61 = vld [vmem:[#allocation2 + $0x13a] sm:$0xff] }
 0x2f8   : > { %1900 = vrot.lane.b32.xlu1 %v8902_v5, %s7387_s13  ;;  %v8906_v22 = vpop.permute.xlu0 %2006 }
 0x2f9   : > { %12800 = vst [vmem:[#allocation162_spill] sm:$0xff] %v8906_v22 }
 0x2fa   : > { %v8910_v4 = vpop.permute.xlu1 %2260  ;;  %1898 = vrot.lane.b32.xlu0 %v8908_v28, %s7387_s13 }
 0x2fb   : > { %12801 = vst [vmem:[#allocation163_spill] sm:$0xff] %v8910_v4  ;;  %v1645_v4 = vld [vmem:[#allocation2 + $0x138] sm:$0xff] }
 0x2fc   : > { %2028 = vrot.lane.b32.xlu1 %v8914_v40, %s7388_s14  ;;  %v8918_v21 = vpop.permute.xlu0 %2130 }
 0x2fd   : > { %12802 = vst [vmem:[#allocation164_spill] sm:$0xff] %v8918_v21 }
 0x2fe   : > { %v8922_v46 = vpop.permute.xlu1 %2388  ;;  %2026 = vrot.lane.b32.xlu0 %v8920_v61, %s7388_s14 }
 0x2ff   : > { %12803 = vst [vmem:[#allocation165_spill] sm:$0xff] %v8922_v46  ;;  %v1646_v46 = vld [vmem:[#allocation2 + $0x140] sm:$0xff] }
 0x300   : > { %2280 = vrot.lane.b32.xlu1 %v8902_v5, %s7391_s20  ;;  %v8928_v22 = vpop.permute.xlu0 %2258 }
 0x301   : > { %12804 = vst [vmem:[#allocation166_spill] sm:$0xff] %v8928_v22 }
 0x302   : > { %v8930_v52 = vpop.permute.xlu1 %2132  ;;  %2150 = vrot.lane.b32.xlu0 %v1645_v4, %s7392_s21 }
 0x303   : > { %12805 = vst [vmem:[#allocation167_spill] sm:$0xff] %v8930_v52 }
 0x304   : > { %2408 = vrot.lane.b32.xlu1 %v8914_v40, %s7393_s22  ;;  %v8935_v21 = vpop.permute.xlu0 %2386 }
 0x305   : > { %12806 = vst [vmem:[#allocation168_spill] sm:$0xff] %v8935_v21 }
 0x306   : > { %v8937_v6 = vpop.permute.xlu1 %2512  ;;  %2278 = vrot.lane.b32.xlu0 %v8908_v28, %s7391_s20 }
 0x307   : > { %12807 = vst [vmem:[#allocation169_spill] sm:$0xff] %v8937_v6  ;;  %v8954_v6 = vld [vmem:[#allocation2 + $0x159] sm:$0xff] }
 0x308   : > { %2152 = vrot.lane.b32.xlu1 %v1646_v46, %s7392_s21  ;;  %v8942_v43 = vpop.permute.xlu0 %2510 }
 0x309   : > { %12808 = vst [vmem:[#allocation170_spill] sm:$0xff] %v8942_v43  ;;  %v8960_v43 = vld [vmem:[#allocation2 + $0x151] sm:$0xff] }
 0x30a   : > { %v8944_v22 = vpop.permute.xlu1 %1884  ;;  %2406 = vrot.lane.b32.xlu0 %v8920_v61, %s7393_s22 }
 0x30b   : > { %12809 = vst [vmem:[#allocation171_spill] sm:$0xff] %v8944_v22 }
 0x30c   : > { %2532 = vrot.lane.b32.xlu1 %v1646_v46, %s7389_s15  ;;  %v8949_v52 = vpop.permute.xlu0 %1882  ;;  %v8966_v46 = vld [vmem:[#allocation2 + $0x15a] sm:$0xff] }
 0x30d   : > { %12810 = vst [vmem:[#allocation172_spill] sm:$0xff] %v8949_v52 }
 0x30e   : > { %v8951_v21 = vpop.permute.xlu1 %2012  ;;  %2530 = vrot.lane.b32.xlu0 %v1645_v4, %s7389_s15 }
 0x30f   : > { %12811 = vst [vmem:[#allocation173_spill] sm:$0xff] %v8951_v21  ;;  %v8972_v21 = vld [vmem:[#allocation2 + $0x152] sm:$0xff] }
 0x310   : > { %1904 = vrot.lane.b32.xlu1 %v8954_v6, %s7387_s13  ;;  %v8958_v41 = vpop.permute.xlu0 %2010 }
 0x311   : > { %12812 = vst [vmem:[#allocation174_spill] sm:$0xff] %v8958_v41 }
 0x312   : > { %v8962_v22 = vpop.permute.xlu1 %2264  ;;  %1902 = vrot.lane.b32.xlu0 %v8960_v43, %s7387_s13 }
 0x313   : > { %12813 = vst [vmem:[#allocation175_spill] sm:$0xff] %v8962_v22  ;;  %v1647_v22 = vld [vmem:[#allocation2 + $0x150] sm:$0xff] }
 0x314   : > { %2032 = vrot.lane.b32.xlu1 %v8966_v46, %s7388_s14  ;;  %v8970_v4 = vpop.permute.xlu0 %2134 }
 0x315   : > { %12814 = vst [vmem:[#allocation176_spill] sm:$0xff] %v8970_v4 }
 0x316   : > { %v8974_v52 = vpop.permute.xlu1 %2392  ;;  %2030 = vrot.lane.b32.xlu0 %v8972_v21, %s7388_s14 }
 0x317   : > { %12815 = vst [vmem:[#allocation177_spill] sm:$0xff] %v8974_v52  ;;  %v1648_v52 = vld [vmem:[#allocation2 + $0x158] sm:$0xff] }
 0x318   : > { %2284 = vrot.lane.b32.xlu1 %v8954_v6, %s7391_s20  ;;  %v8980_v41 = vpop.permute.xlu0 %2262 }
 0x319   : > { %12816 = vst [vmem:[#allocation178_spill] sm:$0xff] %v8980_v41 }
 0x31a   : > { %v8982_v47 = vpop.permute.xlu1 %2136  ;;  %2154 = vrot.lane.b32.xlu0 %v1647_v22, %s7392_s21 }
 0x31b   : > { %12817 = vst [vmem:[#allocation179_spill] sm:$0xff] %v8982_v47 }
 0x31c   : > { %2412 = vrot.lane.b32.xlu1 %v8966_v46, %s7393_s22  ;;  %v8987_v4 = vpop.permute.xlu0 %2390 }
 0x31d   : > { %12818 = vst [vmem:[#allocation180_spill] sm:$0xff] %v8987_v4 }
 0x31e   : > { %v8989_v27 = vpop.permute.xlu1 %2516  ;;  %2282 = vrot.lane.b32.xlu0 %v8960_v43, %s7391_s20 }
 0x31f   : > { %12819 = vst [vmem:[#allocation181_spill] sm:$0xff] %v8989_v27  ;;  %v9006_v27 = vld [vmem:[#allocation2 + $0x171] sm:$0xff] }
 0x320   : > { %2156 = vrot.lane.b32.xlu1 %v1648_v52, %s7392_s21  ;;  %v8994_v0 = vpop.permute.xlu0 %2514 }
 0x321   : > { %12820 = vst [vmem:[#allocation182_spill] sm:$0xff] %v8994_v0  ;;  %v9012_v0 = vld [vmem:[#allocation2 + $0x169] sm:$0xff] }
 0x322   : > { %v8996_v41 = vpop.permute.xlu1 %1888  ;;  %2410 = vrot.lane.b32.xlu0 %v8972_v21, %s7393_s22 }
 0x323   : > { %12821 = vst [vmem:[#allocation183_spill] sm:$0xff] %v8996_v41 }
 0x324   : > { %2536 = vrot.lane.b32.xlu1 %v1648_v52, %s7389_s15  ;;  %v9001_v47 = vpop.permute.xlu0 %1886  ;;  %v9018_v52 = vld [vmem:[#allocation2 + $0x172] sm:$0xff] }
 0x325   : > { %12822 = vst [vmem:[#allocation184_spill] sm:$0xff] %v9001_v47 }
 0x326   : > { %v9003_v4 = vpop.permute.xlu1 %2016  ;;  %2534 = vrot.lane.b32.xlu0 %v1647_v22, %s7389_s15 }
 0x327   : > { %12823 = vst [vmem:[#allocation185_spill] sm:$0xff] %v9003_v4  ;;  %v9024_v4 = vld [vmem:[#allocation2 + $0x16a] sm:$0xff] }
 0x328   : > { %1908 = vrot.lane.b32.xlu1 %v9006_v27, %s7387_s13  ;;  %v9010_v8 = vpop.permute.xlu0 %2014 }
 0x329   : > { %12824 = vst [vmem:[#allocation186_spill] sm:$0xff] %v9010_v8  ;;  %v1649_v8 = vld [vmem:[#allocation2 + $0x168] sm:$0xff] }
 0x32a   : > { %v9014_v41 = vpop.permute.xlu1 %2268  ;;  %1906 = vrot.lane.b32.xlu0 %v9012_v0, %s7387_s13 }
 0x32b   : > { %12825 = vst [vmem:[#allocation187_spill] sm:$0xff] %v9014_v41 }
 0x32c   : > { %2036 = vrot.lane.b32.xlu1 %v9018_v52, %s7388_s14  ;;  %v9022_v22 = vpop.permute.xlu0 %2138 }
 0x32d   : > { %12826 = vst [vmem:[#allocation188_spill] sm:$0xff] %v9022_v22 }
 0x32e   : > { %v9026_v47 = vpop.permute.xlu1 %2396  ;;  %2034 = vrot.lane.b32.xlu0 %v9024_v4, %s7388_s14 }
 0x32f   : > { %12827 = vst [vmem:[#allocation189_spill] sm:$0xff] %v9026_v47  ;;  %v1650_v47 = vld [vmem:[#allocation2 + $0x170] sm:$0xff] }
 0x330   : > { %2288 = vrot.lane.b32.xlu1 %v9006_v27, %s7391_s20  ;;  %v9032_v41 = vpop.permute.xlu0 %2266 }
 0x331   : > { %12828 = vst [vmem:[#allocation190_spill] sm:$0xff] %v9032_v41 }
 0x332   : > { %v9034_v29 = vpop.permute.xlu1 %2140  ;;  %2158 = vrot.lane.b32.xlu0 %v1649_v8, %s7392_s21 }
 0x333   : > { %12829 = vst [vmem:[#allocation191_spill] sm:$0xff] %v9034_v29 }
 0x334   : > { %2416 = vrot.lane.b32.xlu1 %v9018_v52, %s7393_s22  ;;  %v9039_v22 = vpop.permute.xlu0 %2394 }
 0x335   : > { %12830 = vst [vmem:[#allocation192_spill] sm:$0xff] %v9039_v22 }
 0x336   : > { %v9041_v30 = vpop.permute.xlu1 %2520  ;;  %2286 = vrot.lane.b32.xlu0 %v9012_v0, %s7391_s20 }
 0x337   : > { %12831 = vst [vmem:[#allocation193_spill] sm:$0xff] %v9041_v30  ;;  %v9058_v30 = vld [vmem:[#allocation2 + $0x189] sm:$0xff] }
 0x338   : > { %2160 = vrot.lane.b32.xlu1 %v1650_v47, %s7392_s21  ;;  %v9046_v38 = vpop.permute.xlu0 %2518 }
 0x339   : > { %12832 = vst [vmem:[#allocation194_spill] sm:$0xff] %v9046_v38  ;;  %v1651_v38 = vld [vmem:[#allocation2 + $0x180] sm:$0xff] }
 0x33a   : > { %v9048_v41 = vpop.permute.xlu1 %1892  ;;  %2414 = vrot.lane.b32.xlu0 %v9024_v4, %s7393_s22 }
 0x33b   : > { %12833 = vst [vmem:[#allocation195_spill] sm:$0xff] %v9048_v41 }
 0x33c   : > { %2540 = vrot.lane.b32.xlu1 %v1650_v47, %s7389_s15  ;;  %v9053_v29 = vpop.permute.xlu0 %1890 }
 0x33d   : > { %12834 = vst [vmem:[#allocation196_spill] sm:$0xff] %v9053_v29  ;;  %v9082_v29 = vld [vmem:[#allocation2 + $0x182] sm:$0xff] }
 0x33e   : > { %v9055_v22 = vpop.permute.xlu1 %2020  ;;  %2538 = vrot.lane.b32.xlu0 %v1649_v8, %s7389_s15  ;;  %v9073_v8 = vld [vmem:[#allocation2 + $0x181] sm:$0xff] }
 0x33f   : > { %12835 = vst [vmem:[#allocation197_spill] sm:$0xff] %v9055_v22 }
 0x340   : > { %2292 = vrot.lane.b32.xlu1 %v9058_v30, %s7391_s20  ;;  %v9062_v49 = vpop.permute.xlu0 %2018 }
 0x341   : > { %12836 = vst [vmem:[#allocation198_spill] sm:$0xff] %v9062_v49  ;;  %v1652_v49 = vld [vmem:[#allocation2 + $0x188] sm:$0xff] }
 0x342   : > { %v9064_v41 = vpop.permute.xlu1 %2272  ;;  %2162 = vrot.lane.b32.xlu0 %v1651_v38, %s7392_s21 }
 0x343   : > { %12837 = vst [vmem:[#allocation199_spill] sm:$0xff] %v9064_v41 }
 0x344   : > { %2420 = vrot.lane.b32.xlu1 %v9067_v20, %s7393_s22  ;;  %v9071_v47 = vpop.permute.xlu0 %2142 }
 0x345   : > { %12838 = vst [vmem:[#allocation200_spill] sm:$0xff] %v9071_v47 }
 0x346   : > { %v9075_v22 = vpop.permute.xlu1 %2400  ;;  %2290 = vrot.lane.b32.xlu0 %v9073_v8, %s7391_s20 }
 0x347   : > { %12839 = vst [vmem:[#allocation201_spill] sm:$0xff] %v9075_v22 }
 0x348   : > { %2164 = vrot.lane.b32.xlu1 %v1652_v49, %s7392_s21  ;;  %v9080_v41 = vpop.permute.xlu0 %2270 }
 0x349   : > { %12840 = vst [vmem:[#allocation202_spill] sm:$0xff] %v9080_v41  ;;  %v1754_v41 = vld [vmem:[#allocation2 + $0x61] sm:$0xff] }
 0x34a   : > { %v9084_v17 = vpop.permute.xlu1 %2144  ;;  %2418 = vrot.lane.b32.xlu0 %v9082_v29, %s7393_s22 }
 0x34b   : > { %12841 = vst [vmem:[#allocation203_spill] sm:$0xff] %v9084_v17  ;;  %v1757_v17 = vld [vmem:[#allocation2 + $0x81] sm:$0xff] }
 0x34c   : > { %2544 = vrot.lane.b32.xlu1 %v1652_v49, %s7389_s15  ;;  %v9089_v47 = vpop.permute.xlu0 %2398 }
 0x34d   : > { %12842 = vst [vmem:[#allocation204_spill] sm:$0xff] %v9089_v47  ;;  %v1756_v47 = vld [vmem:[#allocation2 + $0x79] sm:$0xff] }
 0x34e   : > { %v9091_v22 = vpop.permute.xlu1 %2524  ;;  %2542 = vrot.lane.b32.xlu0 %v1651_v38, %s7389_s15  ;;  %v1759_v38 = vld [vmem:[#allocation2 + $0x99] sm:$0xff] }
 0x34f   : > { %12843 = vst [vmem:[#allocation205_spill] sm:$0xff] %v9091_v22  ;;  %v1758_v22 = vld [vmem:[#allocation2 + $0x91] sm:$0xff] }
 0x350   : > { %2624 = vrot.lane.b32.xlu1 %v1755_v31, %s7394_s23  ;;  %v9095_v34 = vpop.permute.xlu0 %2522 }
 0x351   : > { %12844 = vst [vmem:[#allocation206_spill] sm:$0xff] %v9095_v34 }
 0x352   : > { %v9097_v32 = vpop.permute.xlu1 %1896  ;;  %2622 = vrot.lane.b32.xlu0 %v1754_v41, %s7394_s23 }
 0x354   : > { %2628 = vrot.lane.b32.xlu1 %v1757_v17, %s7394_s23  ;;  %v9101_v49 = vpop.permute.xlu0 %1894 }
 0x356   : > { %v9103_v9 = vpop.permute.xlu1 %2024  ;;  %2626 = vrot.lane.b32.xlu0 %v1756_v47, %s7394_s23 }
 0x358   : > { %2632 = vrot.lane.b32.xlu1 %v1759_v38, %s7394_s23  ;;  %v9107_v31 = vpop.permute.xlu0 %2022 }
 0x35a   : > { %v9109_v34 = vpop.permute.xlu1 %2276  ;;  %2630 = vrot.lane.b32.xlu0 %v1758_v22, %s7394_s23 }
 0x35c   : > { %2636 = vrot.lane.b32.xlu1 %v8614_v55, %s7394_s23  ;;  %v9114_v17 = vpop.permute.xlu0 %2146 }
 0x35e   : > { %v9116_v41 = vpop.permute.xlu1 %2404  ;;  %2634 = vrot.lane.b32.xlu0 %v8620_v24, %s7394_s23 }
 0x35f   : > { %12845 = vst [vmem:[#allocation207_spill] sm:$0xff] %v9116_v41 }
 0x360   : > { %2640 = vrot.lane.b32.xlu1 %v8658_v15, %s7394_s23  ;;  %v9122_v47 = vpop.permute.xlu0 %2274 }
 0x362   : > { %v9124_v38 = vpop.permute.xlu1 %2148  ;;  %2638 = vrot.lane.b32.xlu0 %v8664_v13, %s7394_s23 }
 0x364   : > { %2644 = vrot.lane.b32.xlu1 %v8702_v62, %s7394_s23  ;;  %v9130_v55 = vpop.permute.xlu0 %2402  ;;  %v3109_v62 = vld [vmem:[%s12475_s3 + $0x40] sm:$0xff] }
 0x365   : > { %12846 = vst [vmem:[#allocation208_spill] sm:$0xff] %v9130_v55  ;;  %7110 = vmatprep.subr.mxu1 %v3109_v62 }
 0x366   : > { %v9132_v22 = vpop.permute.xlu1 %2528  ;;  %2642 = vrot.lane.b32.xlu0 %v8708_v36, %s7394_s23  ;;  %7111 = vmatpush3.msra.mxu1 %v3109_v62  ;;  %v3105_v62 = vld [vmem:[%s12475_s3 + $0x20] sm:$0xff] }
 0x367   : > { %12847 = vst [vmem:[#allocation209_spill] sm:$0xff] %v9132_v22 }
 0x368   : > { %2648 = vrot.lane.b32.xlu1 %v8746_v48, %s7394_s23  ;;  %v9138_v24 = vpop.permute.xlu0 %2526  ;;  %v3107_v48 = vld [vmem:[%s12475_s3 + $0x30] sm:$0xff] }
 0x36a   : > { %v9140_v15 = vpop.permute.xlu1 %1900  ;;  %2646 = vrot.lane.b32.xlu0 %v8752_v57, %s7394_s23  ;;  %v3108_v57 = vld [vmem:[%s12475_s3 + $0x38] sm:$0xff] }
 0x36b   : > { %12848 = vst [vmem:[#allocation210_spill] sm:$0xff] %v9140_v15  ;;  %7112 = vmatprep.subr.mxu1 %v3108_v57  ;;  %v12928_v15 = vld [vmem:[#allocation86_spill] sm:$0xff] }
 0x36c   : > { %2652 = vrot.lane.b32.xlu1 %v8798_v18, %s7394_s23  ;;  %v9146_v13 = vpop.permute.xlu0 %1898  ;;  %7113 = vmatpush3.msra.mxu1 %v3108_v57 }
 0x36d   : > { %12849 = vst [vmem:[#allocation211_spill] sm:$0xff] %v9146_v13  ;;  %7114 = vmatprep.subr.mxu1 %v3107_v48  ;;  %v7326_v13 = vld [vmem:[#allocation2 + $0x30] sm:$0xff] }
 0x36e   : > { %v9151_v36 = vpop.permute.xlu1 %2028  ;;  %2650 = vrot.lane.b32.xlu0 %v8804_v16, %s7394_s23  ;;  %7115 = vmatpush3.msra.mxu1 %v3107_v48  ;;  %v3106_v16 = vld [vmem:[%s12475_s3 + $0x28] sm:$0xff]  ;;  %v3103_v48 = vld [vmem:[%s12475_s3 + $0x10] sm:$0xff] }
 0x36f   : > { %12850 = vst [vmem:[#allocation212_spill] sm:$0xff] %v9151_v36  ;;  %7116 = vmatprep.subr.mxu1 %v3106_v16 }
 0x370   : > { %2656 = vrot.lane.b32.xlu1 %v8850_v12, %s7394_s23  ;;  %v9160_v18 = vpop.permute.xlu0 %2026  ;;  %7117 = vmatpush3.msra.mxu1 %v3106_v16 }
 0x371   : > { %12851 = vst [vmem:[#allocation213_spill] sm:$0xff] %v9160_v18  ;;  %7118 = vmatprep.subr.mxu1 %v3105_v62  ;;  %v7323_v18 = vld [vmem:[#allocation2 + $0x20] sm:$0xff] }
 0x372   : > { %v9165_v36 = vpop.permute.xlu1 %2280  ;;  %2654 = vrot.lane.b32.xlu0 %v8856_v59, %s7394_s23  ;;  %7119 = vmatpush3.msra.mxu1 %v3105_v62  ;;  %v3104_v59 = vld [vmem:[%s12475_s3 + $0x18] sm:$0xff]  ;;  %v3101_v62 = vld [vmem:[%s12475_s3] sm:$0xff] }
 0x373   : > { %12852 = vst [vmem:[#allocation214_spill] sm:$0xff] %v9165_v36  ;;  %7120 = vmatprep.subr.mxu1 %v3104_v59 }
 0x374   : > { %2660 = vrot.lane.b32.xlu1 %v8902_v5, %s7394_s23  ;;  %v9174_v12 = vpop.permute.xlu0 %2150  ;;  %7121 = vmatpush3.msra.mxu1 %v3104_v59 }
 0x375   : > { %12853 = vst [vmem:[#allocation215_spill] sm:$0xff] %v9174_v12  ;;  %7122 = vmatprep.subr.mxu1 %v3103_v48 }
 0x376   : > { %v9179_v57 = vpop.permute.xlu1 %2408  ;;  %2658 = vrot.lane.b32.xlu0 %v8908_v28, %s7394_s23  ;;  %7123 = vmatpush3.msra.mxu1 %v3103_v48  ;;  %v3102_v28 = vld [vmem:[%s12475_s3 + $0x8] sm:$0xff] }
 0x377   : > { %12854 = vst [vmem:[#allocation216_spill] sm:$0xff] %v9179_v57  ;;  %7124 = vmatprep.subr.mxu1 %v3102_v28  ;;  %v1780_v57 = vld [vmem:[#allocation2 + $0x199] sm:$0xff] }
 0x378   : > { %2664 = vrot.lane.b32.xlu1 %v8954_v6, %s7394_s23  ;;  %v9188_v5 = vpop.permute.xlu0 %2278  ;;  %7125 = vmatpush3.msra.mxu1 %v3102_v28 }
 0x379   : > { %12855 = vst [vmem:[#allocation217_spill] sm:$0xff] %v9188_v5  ;;  %7126 = vmatprep.subr.mxu1 %v3101_v62 }
 0x37a   : > { %v9193_v16 = vpop.permute.xlu1 %2152  ;;  %2662 = vrot.lane.b32.xlu0 %v8960_v43, %s7394_s23  ;;  %7127 = vmatpush3.msra.mxu1 %v3101_v62  ;;  %v1782_v62 = vld [vmem:[#allocation2 + $0x32] sm:$0xff] }
 0x37c   : > { %2668 = vrot.lane.b32.xlu1 %v9006_v27, %s7394_s23  ;;  %v9202_v6 = vpop.permute.xlu0 %2406  ;;  %v1781_v27 = vld [vmem:[#allocation2 + $0x1a1] sm:$0xff] }
 0x37d   : > { %12856 = vst [vmem:[#allocation218_spill] sm:$0xff] %v9202_v6 }
 0x37e   : > { %v9207_v59 = vpop.permute.xlu1 %2532  ;;  %2666 = vrot.lane.b32.xlu0 %v9012_v0, %s7394_s23  ;;  %v1783_v0 = vld [vmem:[#allocation2 + $0x3a] sm:$0xff] }
 0x37f   : > { %12857 = vst [vmem:[#allocation219_spill] sm:$0xff] %v9207_v59 }
 0x380   : > { %2672 = vrot.lane.b32.xlu1 %v9058_v30, %s7394_s23  ;;  %v9213_v43 = vpop.permute.xlu0 %2530 }
 0x381   : > { %12858 = vst [vmem:[#allocation220_spill] sm:$0xff] %v9213_v43 }
 0x382   : > { %v9215_v48 = vpop.permute.xlu1 %1904  ;;  %2670 = vrot.lane.b32.xlu0 %v9073_v8, %s7394_s23  ;;  %v1785_v8 = vld [vmem:[#allocation2 + $0x52] sm:$0xff] }
 0x383   : > { %12859 = vst [vmem:[#allocation221_spill] sm:$0xff] %v9215_v48 }
 0x384   : > { %2676 = vrot.lane.b32.xlu1 %v1781_v27, %s7394_s23  ;;  %v9220_v28 = vpop.permute.xlu0 %1902 }
 0x385   : > { %12860 = vst [vmem:[#allocation222_spill] sm:$0xff] %v9220_v28  ;;  %v1784_v28 = vld [vmem:[#allocation2 + $0x4a] sm:$0xff] }
 0x386   : > { %v9222_v59 = vpop.permute.xlu1 %2032  ;;  %2674 = vrot.lane.b32.xlu0 %v1780_v57, %s7394_s23  ;;  %v1787_v57 = vld [vmem:[#allocation2 + $0x6a] sm:$0xff] }
 0x387   : > { %12861 = vst [vmem:[#allocation223_spill] sm:$0xff] %v9222_v59 }
 0x388   : > { %2744 = vrot.lane.b32.xlu1 %v1783_v0, %s7395_s9  ;;  %v9226_v30 = vpop.permute.xlu0 %2030 }
 0x389   : > { %12862 = vst [vmem:[#allocation224_spill] sm:$0xff] %v9226_v30  ;;  %v1786_v30 = vld [vmem:[#allocation2 + $0x62] sm:$0xff] }
 0x38a   : > { %v9228_v48 = vpop.permute.xlu1 %2284  ;;  %2742 = vrot.lane.b32.xlu0 %v1782_v62, %s7395_s9  ;;  %v1789_v62 = vld [vmem:[#allocation2 + $0x82] sm:$0xff] }
 0x38b   : > { %12863 = vst [vmem:[#allocation225_spill] sm:$0xff] %v9228_v48  ;;  %v1788_v48 = vld [vmem:[#allocation2 + $0x7a] sm:$0xff] }
 0x38c   : > { %2748 = vrot.lane.b32.xlu1 %v1785_v8, %s7395_s9  ;;  %v9232_v27 = vpop.permute.xlu0 %2154 }
 0x38d   : > { %12864 = vst [vmem:[#allocation226_spill] sm:$0xff] %v9232_v27 }
 0x38e   : > { %v9234_v59 = vpop.permute.xlu1 %2412  ;;  %2746 = vrot.lane.b32.xlu0 %v1784_v28, %s7395_s9  ;;  %v1791_v28 = vld [vmem:[#allocation2 + $0x9a] sm:$0xff] }
 0x38f   : > { %12865 = vst [vmem:[#allocation227_spill] sm:$0xff] %v9234_v59  ;;  %v1790_v59 = vld [vmem:[#allocation2 + $0x92] sm:$0xff] }
 0x390   : > { %2752 = vrot.lane.b32.xlu1 %v1787_v57, %s7395_s9  ;;  %v9238_v0 = vpop.permute.xlu0 %2282 }
 0x391   : > { %12866 = vst [vmem:[#allocation228_spill] sm:$0xff] %v9238_v0 }
 0x392   : > { %v9240_v6 = vpop.permute.xlu1 %2156  ;;  %2750 = vrot.lane.b32.xlu0 %v1786_v30, %s7395_s9  ;;  %v1793_v30 = vld [vmem:[#allocation2 + $0xb2] sm:$0xff] }
 0x393   : > { %12867 = vst [vmem:[#allocation229_spill] sm:$0xff] %v9240_v6 }
 0x394   : > { %2756 = vrot.lane.b32.xlu1 %v1789_v62, %s7395_s9  ;;  %v9244_v8 = vpop.permute.xlu0 %2410 }
 0x395   : > { %12868 = vst [vmem:[#allocation230_spill] sm:$0xff] %v9244_v8  ;;  %v1792_v8 = vld [vmem:[#allocation2 + $0xaa] sm:$0xff] }
 0x396   : > { %v9246_v27 = vpop.permute.xlu1 %2536  ;;  %2754 = vrot.lane.b32.xlu0 %v1788_v48, %s7395_s9  ;;  %v1795_v48 = vld [vmem:[#allocation2 + $0xca] sm:$0xff] }
 0x397   : > { %12869 = vst [vmem:[#allocation231_spill] sm:$0xff] %v9246_v27  ;;  %v1794_v27 = vld [vmem:[#allocation2 + $0xc2] sm:$0xff] }
 0x398   : > { %2760 = vrot.lane.b32.xlu1 %v1791_v28, %s7395_s9  ;;  %v9250_v57 = vpop.permute.xlu0 %2534 }
 0x399   : > { %12870 = vst [vmem:[#allocation232_spill] sm:$0xff] %v9250_v57 }
 0x39a   : > { %v9252_v0 = vpop.permute.xlu1 %1908  ;;  %2758 = vrot.lane.b32.xlu0 %v1790_v59, %s7395_s9  ;;  %v1797_v59 = vld [vmem:[#allocation2 + $0xe2] sm:$0xff] }
 0x39b   : > { %12871 = vst [vmem:[#allocation233_spill] sm:$0xff] %v9252_v0 }
 0x39c   : > { %2764 = vrot.lane.b32.xlu1 %v1793_v30, %s7395_s9  ;;  %v9256_v62 = vpop.permute.xlu0 %1906 }
 0x39d   : > { %12872 = vst [vmem:[#allocation234_spill] sm:$0xff] %v9256_v62  ;;  %v1796_v62 = vld [vmem:[#allocation2 + $0xda] sm:$0xff] }
 0x39e   : > { %v9258_v6 = vpop.permute.xlu1 %2036  ;;  %2762 = vrot.lane.b32.xlu0 %v1792_v8, %s7395_s9 }
 0x39f   : > { %12873 = vst [vmem:[#allocation235_spill] sm:$0xff] %v9258_v6 }
 0x3a0   : > { %2768 = vrot.lane.b32.xlu1 %v1795_v48, %s7395_s9  ;;  %v9262_v28 = vpop.permute.xlu0 %2034 }
 0x3a1   : > { %12874 = vst [vmem:[#allocation236_spill] sm:$0xff] %v9262_v28 }
 0x3a2   : > { %v9264_v57 = vpop.permute.xlu1 %2288  ;;  %2766 = vrot.lane.b32.xlu0 %v1794_v27, %s7395_s9 }
 0x3a3   : > { %12875 = vst [vmem:[#allocation237_spill] sm:$0xff] %v9264_v57 }
 0x3a4   : > { %2772 = vrot.lane.b32.xlu1 %v1797_v59, %s7395_s9  ;;  %v9268_v30 = vpop.permute.xlu0 %2158 }
 0x3a5   : > { %12876 = vst [vmem:[#allocation238_spill] sm:$0xff] %v9268_v30 }
 0x3a6   : > { %v9270_v0 = vpop.permute.xlu1 %2416  ;;  %2770 = vrot.lane.b32.xlu0 %v1796_v62, %s7395_s9 }
 0x3a7   : > { %12877 = vst [vmem:[#allocation239_spill] sm:$0xff] %v9270_v0 }
 0x3a8   : > { %2776 = vrot.lane.b32.xlu1 %v8758_v58, %s7395_s9  ;;  %v9275_v8 = vpop.permute.xlu0 %2286 }
 0x3a9   : > { %12878 = vst [vmem:[#allocation240_spill] sm:$0xff] %v9275_v8 }
 0x3aa   : > { %v9277_v48 = vpop.permute.xlu1 %2160  ;;  %2774 = vrot.lane.b32.xlu0 %v8764_v45, %s7395_s9 }
 0x3ab   : > { %12879 = vst [vmem:[#allocation241_spill] sm:$0xff] %v9277_v48 }
 0x3ac   : > { %2780 = vrot.lane.b32.xlu1 %v8810_v54, %s7395_s9  ;;  %v9283_v27 = vpop.permute.xlu0 %2414 }
 0x3ad   : > { %12880 = vst [vmem:[#allocation242_spill] sm:$0xff] %v9283_v27 }
 0x3ae   : > { %v9285_v59 = vpop.permute.xlu1 %2540  ;;  %2778 = vrot.lane.b32.xlu0 %v8816_v35, %s7395_s9 }
 0x3af   : > { %12881 = vst [vmem:[#allocation243_spill] sm:$0xff] %v9285_v59 }
 0x3b0   : > { %2784 = vrot.lane.b32.xlu1 %v8862_v10, %s7395_s9  ;;  %v9291_v58 = vpop.permute.xlu0 %2538 }
 0x3b1   : > { %12882 = vst [vmem:[#allocation244_spill] sm:$0xff] %v9291_v58  ;;  %v1526_v58 = vld [vmem:[#allocation2 + $0x8] sm:$0xff] }
 0x3b2   : > { %v9293_v62 = vpop.permute.xlu1 %2292  ;;  %2782 = vrot.lane.b32.xlu0 %v8868_v42, %s7395_s9  ;;  %v2839_v6 = vsel %vm585_vm0, %v1526_v58, %v8210_v56  ;;  %v12901_v56 = vld [vmem:[#allocation30_spill] sm:$0xff] }
 0x3b3   : > { %12883 = vst [vmem:[#allocation245_spill] sm:$0xff] %v9293_v62 }
 0x3b4   : > { %2788 = vrot.lane.b32.xlu1 %v8914_v40, %s7395_s9  ;;  %v9299_v45 = vpop.permute.xlu0 %2162 }
 0x3b5   : > { %12884 = vst [vmem:[#allocation246_spill] sm:$0xff] %v9299_v45 }
 0x3b6   : > { %v9301_v54 = vpop.permute.xlu1 %2420  ;;  %2786 = vrot.lane.b32.xlu0 %v8920_v61, %s7395_s9 }
 0x3b7   : > { %12885 = vst [vmem:[#allocation247_spill] sm:$0xff] %v9301_v54 }
 0x3b8   : > { %2792 = vrot.lane.b32.xlu1 %v8966_v46, %s7395_s9  ;;  %v9307_v35 = vpop.permute.xlu0 %2290  ;;  %v1813_v46 = vld [vmem:[#allocation2 + $0x1a2] sm:$0xff] }
 0x3b9   : > { %12886 = vst [vmem:[#allocation248_spill] sm:$0xff] %v9307_v35 }
 0x3ba   : > { %v9309_v10 = vpop.permute.xlu1 %2164  ;;  %2790 = vrot.lane.b32.xlu0 %v8972_v21, %s7395_s9  ;;  %v1812_v21 = vld [vmem:[#allocation2 + $0x19a] sm:$0xff] }
 0x3bb   : > { %12887 = vst [vmem:[#allocation249_spill] sm:$0xff] %v9309_v10 }
 0x3bc   : > { %2796 = vrot.lane.b32.xlu1 %v9018_v52, %s7395_s9  ;;  %v9315_v42 = vpop.permute.xlu0 %2418 }
 0x3bd   : > { %12888 = vst [vmem:[#allocation250_spill] sm:$0xff] %v9315_v42 }
 0x3be   : > { %v9317_v40 = vpop.permute.xlu1 %2544  ;;  %2794 = vrot.lane.b32.xlu0 %v9024_v4, %s7395_s9 }
 0x3bf   : > { %12889 = vst [vmem:[#allocation251_spill] sm:$0xff] %v9317_v40 }
 0x3c0   : > { %2800 = vrot.lane.b32.xlu1 %v9067_v20, %s7395_s9  ;;  %v9323_v61 = vpop.permute.xlu0 %2542 }
 0x3c1   : > { %12890 = vst [vmem:[#allocation252_spill] sm:$0xff] %v9323_v61 }
 0x3c2   : > { %v9325_v54 = vpop.permute.xlu1 %2624  ;;  %2798 = vrot.lane.b32.xlu0 %v9082_v29, %s7395_s9 }
 0x3c4   : > { %2804 = vrot.lane.b32.xlu1 %v1813_v46, %s7395_s9  ;;  %v9330_v52 = vpop.permute.xlu0 %2622 }
 0x3c6   : > { %v9332_v40 = vpop.permute.xlu1 %2628  ;;  %2802 = vrot.lane.b32.xlu0 %v1812_v21, %s7395_s9 }
 0x3c8   : > { %3682 = vrot.lane.b32.xlu1 %v7989_v51, %s7396_s10  ;;  %v9337_v20 = vpop.permute.xlu0 %2626 }
 0x3ca   : > { %v9339_v4 = vpop.permute.xlu1 %2632  ;;  %3680 = vrot.lane.b32.xlu0 %v7996_v53, %s7396_s10 }
 0x3cc   : > { %3686 = vrot.lane.b32.xlu1 %v8005_v63, %s7396_s10  ;;  %v9345_v29 = vpop.permute.xlu0 %2630 }
 0x3ce   : > { %v9347_v46 = vpop.permute.xlu1 %2636  ;;  %3684 = vrot.lane.b32.xlu0 %v8012_v2, %s7396_s10 }
 0x3d0   : > { %3690 = vrot.lane.b32.xlu1 %v8021_v11, %s7396_s10  ;;  %v9353_v21 = vpop.permute.xlu0 %2634 }
 0x3d2   : > { %v9355_v42 = vpop.permute.xlu1 %2640  ;;  %3688 = vrot.lane.b32.xlu0 %v8028_v14, %s7396_s10 }
 0x3d4   : > { %3694 = vrot.lane.b32.xlu1 %v8037_v23, %s7396_s10  ;;  %v9361_v61 = vpop.permute.xlu0 %2638 }
 0x3d6   : > { %v9363_v0 = vpop.permute.xlu1 %2644  ;;  %3692 = vrot.lane.b32.xlu0 %v8044_v25, %s7396_s10 }
 0x3d8   : > { %3698 = vrot.lane.b32.xlu1 %v8053_v33, %s7396_s10  ;;  %v9369_v35 = vpop.permute.xlu0 %2642 }
 0x3da   : > { %v9371_v62 = vpop.permute.xlu1 %2648  ;;  %3696 = vrot.lane.b32.xlu0 %v8060_v37, %s7396_s10 }
 0x3dc   : > { %3702 = vrot.lane.b32.xlu1 %v8069_v1, %s7396_s10  ;;  %v9377_v45 = vpop.permute.xlu0 %2646 }
 0x3de   : > { %v9379_v27 = vpop.permute.xlu1 %2652  ;;  %3700 = vrot.lane.b32.xlu0 %v8076_v50, %s7396_s10 }
 0x3e0   : > { %3706 = vrot.lane.b32.xlu1 %v8085_v3, %s7396_s10  ;;  %v9385_v28 = vpop.permute.xlu0 %2650 }
 0x3e2   : > { %v9387_v59 = vpop.permute.xlu1 %2656  ;;  %3704 = vrot.lane.b32.xlu0 %v8092_v7, %s7396_s10 }
 0x3e3   : > { %12891 = vst [vmem:[#allocation253_spill] sm:$0xff] %v9387_v59 }
 0x3e4   : > { %3710 = vrot.lane.b32.xlu1 %v8101_v19, %s7396_s10  ;;  %v9393_v57 = vpop.permute.xlu0 %2654 }
 0x3e5   : > { %12892 = vst [vmem:[#allocation254_spill] sm:$0xff] %v9393_v57  ;;  %v12938_v57 = vld [vmem:[#allocation102_spill] sm:$0xff] }
 0x3e6   : > { %v9395_v8 = vpop.permute.xlu1 %2660  ;;  %3708 = vrot.lane.b32.xlu0 %v8108_v26, %s7396_s10 }
 0x3e7   : > { %12893 = vst [vmem:[#allocation255_spill] sm:$0xff] %v9395_v8  ;;  %v1525_v8 = vld [vmem:[#allocation2] sm:$0xff] }
 0x3e8   : > { %3714 = vrot.lane.b32.xlu1 %v8117_v39, %s7396_s10  ;;  %v9401_v10 = vpop.permute.xlu0 %2658  ;;  %v12898_v39 = vld [vmem:[#allocation29_spill] sm:$0xff] }
 0x3e9   : > { %12894 = vst [vmem:[#allocation256_spill] sm:$0xff] %v9401_v10  ;;  %v12899_v10 = vld [vmem:[#allocation44_spill] sm:$0xff] }
 0x3ea   : > { %v9403_v30 = vpop.permute.xlu1 %2664  ;;  %3712 = vrot.lane.b32.xlu0 %v8124_v44, %s7396_s10  ;;  %v12900_v44 = vld [vmem:[#allocation81_spill] sm:$0xff] }
 0x3eb   : > { %12895 = vst [vmem:[#allocation257_spill] sm:$0xff] %v9403_v30  ;;  %v2872_v30 = vsel %vm12594_vm6, %v2839_v6, %v12899_v10 }
 0x3ec   : > { %3718 = vrot.lane.b32.xlu1 %v8133_v60, %s7396_s10  ;;  %v9411_v48 = vpop.permute.xlu0 %2662  ;;  %v2905_v5 = vsel %vm12593_vm7, %v2872_v30, %v12900_v44  ;;  %v12903_v60 = vld [vmem:[#allocation43_spill] sm:$0xff]  ;;  %v12907_v44 = vld [vmem:[#allocation32_spill] sm:$0xff]  ;;  %v12908_v30 = vld [vmem:[#allocation77_spill] sm:$0xff] }
 0x3ed   : > { %12896 = vst [vmem:[#allocation258_spill] sm:$0xff] %v9411_v48  ;;  %v2838_v48 = vsel %vm585_vm0, %v1525_v8, %v12903_v60  ;;  %v2938_v10 = vsel %vm12592_vm8, %v2905_v5, %v12908_v30  ;;  %v12910_v8 = vld [vmem:[#allocation45_spill] sm:$0xff]  ;;  %v12915_v5 = vld [vmem:[#allocation78_spill] sm:$0xff] }
 0x3ee   : > { %v9413_v43 = vpop.permute.xlu1 %2668  ;;  %3716 = vrot.lane.b32.xlu0 %v12898_v39, %s7396_s10  ;;  %v12905_v39 = vld [vmem:[#allocation75_spill] sm:$0xff] }
 0x3ef   : > { %12897 = vst [vmem:[#allocation259_spill] sm:$0xff] %v9413_v43  ;;  %v12904_v43 = vld [vmem:[#allocation73_spill] sm:$0xff] }
 0x3f0   : > { %3722 = vrot.lane.b32.xlu1 %v12901_v56, %s7396_s10  ;;  %v9423_v58 = vpop.permute.xlu0 %2666  ;;  %v2841_v26 = vsel %vm585_vm0, %v7323_v18, %v12904_v43  ;;  %v12909_v56 = vld [vmem:[#allocation93_spill] sm:$0xff]  ;;  %v7324_v18 = vld [vmem:[#allocation2 + $0x18] sm:$0xff]  ;;  %v12911_v43 = vld [vmem:[#allocation74_spill] sm:$0xff] }
 0x3f1   : > { %12902 = vst [vmem:[#allocation44_spill] sm:$0xff] %v9423_v58  ;;  %v2874_v36 = vsel %vm12594_vm6, %v2841_v26, %v12905_v39  ;;  %v2871_v58 = vsel %vm12594_vm6, %v2838_v48, %v12910_v8  ;;  %v2840_v26 = vsel %vm585_vm0, %v7324_v18, %v12911_v43  ;;  %v12912_v39 = vld [vmem:[#allocation33_spill] sm:$0xff]  ;;  %v12918_v18 = vld [vmem:[#allocation87_spill] sm:$0xff] }
 0x3f2   : > { %v9431_v6 = vpop.permute.xlu1 %2672  ;;  %3720 = vrot.lane.b32.xlu0 %v12907_v44, %s7396_s10  ;;  %v2907_v60 = vsel %vm12593_vm7, %v2874_v36, %v12909_v56  ;;  %v12914_v44 = vld [vmem:[#allocation76_spill] sm:$0xff]  ;;  %v2904_v30 = vsel %vm12593_vm7, %v2871_v58, %v12915_v5  ;;  %v7325_v58 = vld [vmem:[#allocation2 + $0x38] sm:$0xff] }
 0x3f3   : > { %12906 = vst [vmem:[#allocation81_spill] sm:$0xff] %v9431_v6  ;;  %v2873_v12 = vsel %vm12594_vm6, %v2840_v26, %v12914_v44  ;;  %v12916_v36 = vld [vmem:[#allocation80_spill] sm:$0xff]  ;;  %v2940_v43 = vsel %vm12592_vm8, %v2907_v60, %v12918_v18  ;;  %v12921_v44 = vld [vmem:[#allocation34_spill] sm:$0xff]  ;;  %v12922_v26 = vld [vmem:[#allocation83_spill] sm:$0xff] }
 0x3f4   : > { %3726 = vrot.lane.b32.xlu1 %v12912_v39, %s7396_s10  ;;  %v9445_v6 = vpop.permute.xlu0 %2670  ;;  %v2937_v48 = vsel %vm12592_vm8, %v2904_v30, %v12916_v36  ;;  %v12917_v56 = vld [vmem:[#allocation88_spill] sm:$0xff]  ;;  %v12919_v39 = vld [vmem:[#allocation79_spill] sm:$0xff]  ;;  %v2843_v5 = vsel %vm585_vm0, %v7325_v58, %v12922_v26 }
 0x3f5   : > { %12913 = vst [vmem:[#allocation43_spill] sm:$0xff] %v9445_v6  ;;  %v2906_v8 = vsel %vm12593_vm7, %v2873_v12, %v12917_v56  ;;  %v2971_v6 = vsel %vm12591_vm9, %v2938_v10, %v12919_v39  ;;  %v12923_v30 = vld [vmem:[#allocation84_spill] sm:$0xff]  ;;  %v12924_v12 = vld [vmem:[#allocation90_spill] sm:$0xff]  ;;  %v12925_v60 = vld [vmem:[#allocation95_spill] sm:$0xff] }
 0x3f6   : > { %v9459_v59 = vpop.permute.xlu1 %2676  ;;  %3724 = vrot.lane.b32.xlu0 %v12921_v44, %s7396_s10  ;;  %v2842_v36 = vsel %vm585_vm0, %v7326_v13, %v12923_v30  ;;  %v2939_v56 = vsel %vm12592_vm8, %v2906_v8, %v12924_v12  ;;  %v3004_v18 = vsel %vm12590_vm10, %v2971_v6, %v12925_v60  ;;  %v12926_v10 = vld [vmem:[#allocation82_spill] sm:$0xff]  ;;  %v12929_v58 = vld [vmem:[#allocation92_spill] sm:$0xff]  ;;  %v12930_v13 = vld [vmem:[#allocation35_spill] sm:$0xff] }
 0x3f7   : > { %12920 = vst [vmem:[#allocation73_spill] sm:$0xff] %v9459_v59  ;;  %v2970_v39 = vsel %vm12591_vm9, %v2937_v48, %v12926_v10  ;;  %v12927_v59 = vld [vmem:[#allocation85_spill] sm:$0xff]  ;;  %v2875_v19 = vsel %vm12594_vm6, %v2842_v36, %v12928_v15  ;;  %v2972_v26 = vsel %vm12591_vm9, %v2939_v56, %v12929_v58  ;;  %v12932_v8 = vld [vmem:[#allocation94_spill] sm:$0xff]  ;;  %v12934_v10 = vld [vmem:[#allocation107_spill] sm:$0xff] }
 0x3f8   : > { %v2876_v44 = vsel %vm12594_vm6, %v2843_v5, %v12927_v59  ;;  %3730 = vrot.lane.b32.xlu1 %v12930_v13, %s7396_s10  ;;  %v9481_v30 = vpop.permute.xlu0 %2674  ;;  %v3003_v6 = vsel %vm12590_vm10, %v2970_v39, %v12932_v8  ;;  %v7327_v12 = vld [vmem:[#allocation2 + $0x50] sm:$0xff]  ;;  %v12933_v60 = vld [vmem:[#allocation97_spill] sm:$0xff]  ;;  %v12937_v13 = vld [vmem:[#allocation99_spill] sm:$0xff]  ;;  %v2908_v39 = vsel %vm12593_vm7, %v2875_v19, %v12938_v57 }
 0x3f9   : > { %12931 = vst [vmem:[#allocation75_spill] sm:$0xff] %v9481_v30  ;;  %v2845_v48 = vsel %vm585_vm0, %v7327_v12, %v12933_v60  ;;  %v2909_v59 = vsel %vm12593_vm7, %v2876_v44, %v12934_v10  ;;  %v12935_v5 = vld [vmem:[#allocation89_spill] sm:$0xff]  ;;  %v12936_v56 = vld [vmem:[#allocation98_spill] sm:$0xff]  ;;  %v12939_v8 = vld [vmem:[#allocation91_spill] sm:$0xff] }
 0x3fa   : > { %v2973_v15 = vsel %vm12591_vm9, %v2940_v43, %v12935_v5  ;;  %v7328_v36 = vld [vmem:[#allocation2 + $0x48] sm:$0xff]  ;;  %v2878_v30 = vsel %vm12594_vm6, %v2845_v48, %v12937_v13  ;;  %v3037_v41 = vsel %vm12589_vm11, %v3004_v18, %v12939_v8  ;;  %v2745_v12 = vpop.permute.xlu1 %2744  ;;  %v12940_v60 = vld [vmem:[#allocation36_spill] sm:$0xff]  ;;  %v12942_v10 = vld [vmem:[#allocation119_spill] sm:$0xff] }
 0x3fb   : > { %v2844_v58 = vsel %vm585_vm0, %v7328_v36, %v12936_v56  ;;  %3728 = vrot.lane.b32.xlu0 %v12940_v60, %s7396_s10  ;;  %v12941_v44 = vld [vmem:[#allocation104_spill] sm:$0xff]  ;;  %v2911_v5 = vsel %vm12593_vm7, %v2878_v30, %v12942_v10  ;;  %v12945_v57 = vld [vmem:[#allocation106_spill] sm:$0xff]  ;;  %v12946_v56 = vld [vmem:[#allocation101_spill] sm:$0xff] }
 0x3fc   : > { %v2941_v43 = vsel %vm12592_vm8, %v2908_v39, %v12941_v44  ;;  %v12943_v36 = vld [vmem:[#allocation96_spill] sm:$0xff]  ;;  %v2942_v8 = vsel %vm12592_vm8, %v2909_v59, %v12946_v56  ;;  %v12947_v60 = vld [vmem:[#allocation37_spill] sm:$0xff]  ;;  %v2743_v39 = vpop.permute.xlu0 %2742  ;;  %v12952_v59 = vld [vmem:[#allocation115_spill] sm:$0xff] }
 0x3fd   : > { %v3036_v13 = vsel %vm12589_vm11, %v3003_v6, %v12943_v36  ;;  %v12944_v48 = vld [vmem:[#allocation100_spill] sm:$0xff]  ;;  %v2974_v18 = vsel %vm12591_vm9, %v2941_v43, %v12945_v57  ;;  %3734 = vrot.lane.b32.xlu1 %v12947_v60, %s7396_s10  ;;  %v12949_v10 = vld [vmem:[#allocation109_spill] sm:$0xff]  ;;  %v12950_v36 = vld [vmem:[#allocation111_spill] sm:$0xff]  ;;  %v2944_v56 = vsel %vm12592_vm8, %v2911_v5, %v12952_v59  ;;  %v3070_v60 = vsel %vm12588_vm12, %v3037_v41, %v2745_v12 }
 0x3fe   : > { %v2877_v19 = vsel %vm12594_vm6, %v2844_v58, %v12944_v48  ;;  %v12948_v44 = vld [vmem:[#allocation108_spill] sm:$0xff]  ;;  %v3006_v22 = vsel %vm12590_vm10, %v2973_v15, %v12949_v10  ;;  %v7329_v6 = vld [vmem:[#allocation2 + $0x68] sm:$0xff]  ;;  %v3069_v48 = vsel %vm12588_vm12, %v3036_v13, %v2743_v39  ;;  %v2749_v55 = vpop.permute.xlu1 %2748  ;;  %v12956_v39 = vld [vmem:[#allocation103_spill] sm:$0xff] }
 0x3ff   : > { %v3005_v30 = vsel %vm12590_vm10, %v2972_v26, %v12948_v44  ;;  %v2847_v58 = vsel %vm585_vm0, %v7329_v6, %v12950_v36  ;;  %v12951_v43 = vld [vmem:[#allocation113_spill] sm:$0xff]  ;;  %v12953_v26 = vld [vmem:[#allocation38_spill] sm:$0xff]  ;;  %7128 = vmatprep.mubr.msk.f32.mxu1 %vm12587_vm13, %v3069_v48  ;;  %v7330_v15 = vld [vmem:[#allocation2 + $0x60] sm:$0xff]  ;;  %v2975_v36 = vsel %vm12591_vm9, %v2942_v8, %v12956_v39 }
 0x400   : > { %v2880_v57 = vsel %vm12594_vm6, %v2847_v58, %v12951_v43  ;;  %3732 = vrot.lane.b32.xlu0 %v12953_v26, %s7396_s10  ;;  %v12954_v44 = vld [vmem:[#allocation112_spill] sm:$0xff]  ;;  %v12957_v58 = vld [vmem:[#allocation131_spill] sm:$0xff]  ;;  %7129 = vmatmul.mubr.msk.f32.vlgmr.msra.gmra.mxu1 %vm12587_vm13, %v3070_v60  ;;  %v12958_v41 = vld [vmem:[#allocation110_spill] sm:$0xff]  ;;  %v2747_v8 = vpop.permute.xlu0 %2746 }
 0x401   : > { %v2846_v10 = vsel %vm585_vm0, %v7330_v15, %v12954_v44  ;;  %v12955_v6 = vld [vmem:[#allocation116_spill] sm:$0xff]  ;;  %v2913_v5 = vsel %vm12593_vm7, %v2880_v57, %v12957_v58  ;;  %v3038_v12 = vsel %vm12589_vm11, %v3005_v30, %v12958_v41  ;;  %v12959_v43 = vld [vmem:[#allocation114_spill] sm:$0xff]  ;;  %v12961_v44 = vld [vmem:[#allocation105_spill] sm:$0xff] }
 0x402   : > { %v2910_v13 = vsel %vm12593_vm7, %v2877_v19, %v12955_v6  ;;  %v2879_v48 = vsel %vm12594_vm6, %v2846_v10, %v12959_v43  ;;  %v12960_v59 = vld [vmem:[#allocation118_spill] sm:$0xff]  ;;  %v3039_v19 = vsel %vm12589_vm11, %v3006_v22, %v12961_v44  ;;  %v12962_v6 = vld [vmem:[#allocation39_spill] sm:$0xff]  ;;  %v12963_v39 = vld [vmem:[#allocation120_spill] sm:$0xff]  ;;  %v3071_v10 = vsel %vm12588_vm12, %v3038_v12, %v2747_v8  ;;  %v2753_v26 = vpop.permute.xlu1 %2752 }
 0x403   : > { %v2943_v15 = vsel %vm12592_vm8, %v2910_v13, %v12960_v59  ;;  %3738 = vrot.lane.b32.xlu1 %v12962_v6, %s7396_s10  ;;  %v12964_v60 = vld [vmem:[#allocation121_spill] sm:$0xff]  ;;  %v7331_v43 = vld [vmem:[#allocation2 + $0x80] sm:$0xff]  ;;  %v12966_v13 = vld [vmem:[#allocation123_spill] sm:$0xff]  ;;  %v3072_v6 = vsel %vm12588_vm12, %v3039_v19, %v2749_v55  ;;  %7131 = vmatprep.mubr.msk.f32.mxu1 %vm12587_vm13, %v3071_v10 }
 0x404   : > { %v2976_v57 = vsel %vm12591_vm9, %v2943_v15, %v12963_v39  ;;  %v3008_v58 = vsel %vm12590_vm10, %v2975_v36, %v12964_v60  ;;  %v12965_v30 = vld [vmem:[#allocation117_spill] sm:$0xff]  ;;  %v2849_v59 = vsel %vm585_vm0, %v7331_v43, %v12966_v13  ;;  %v12967_v22 = vld [vmem:[#allocation127_spill] sm:$0xff]  ;;  %v12968_v15 = vld [vmem:[#allocation40_spill] sm:$0xff]  ;;  %7132 = vmatmul.mubr.msk.f32.gmra.mxu1 %vm12587_vm13, %v3072_v6 }
 0x405   : > { %v2977_v41 = vsel %vm12591_vm9, %v2944_v56, %v12965_v30  ;;  %v2946_v44 = vsel %vm12592_vm8, %v2913_v5, %v12967_v22  ;;  %3736 = vrot.lane.b32.xlu0 %v12968_v15, %s7396_s10  ;;  %v12969_v36 = vld [vmem:[#allocation122_spill] sm:$0xff]  ;;  %v7332_v39 = vld [vmem:[#allocation2 + $0x78] sm:$0xff]  ;;  %v12970_v12 = vld [vmem:[#allocation124_spill] sm:$0xff] }
 0x406   : > { %v3007_v56 = vsel %vm12590_vm10, %v2974_v18, %v12969_v36  ;;  %v2848_v8 = vsel %vm585_vm0, %v7332_v39, %v12970_v12  ;;  %v12971_v60 = vld [vmem:[#allocation125_spill] sm:$0xff]  ;;  %v12972_v43 = vld [vmem:[#allocation128_spill] sm:$0xff]  ;;  %v12973_v55 = vld [vmem:[#allocation126_spill] sm:$0xff] }
 0x407   : > { %v2882_v30 = vsel %vm12594_vm6, %v2849_v59, %v12971_v60  ;;  %v2912_v5 = vsel %vm12593_vm7, %v2879_v48, %v12972_v43  ;;  %v2881_v19 = vsel %vm12594_vm6, %v2848_v8, %v12973_v55  ;;  %v12974_v13 = vld [vmem:[#allocation130_spill] sm:$0xff]  ;;  %v12975_v22 = vld [vmem:[#allocation143_spill] sm:$0xff]  ;;  %v3040_v36 = vsel %vm12589_vm11, %v3007_v56, %v9330_v52  ;;  %v12976_v39 = vld [vmem:[#allocation41_spill] sm:$0xff]  ;;  %v2751_v59 = vpop.permute.xlu0 %2750 }
 0x408   : > { %v2945_v10 = vsel %vm12592_vm8, %v2912_v5, %v12974_v13  ;;  %v2915_v18 = vsel %vm12593_vm7, %v2882_v30, %v12975_v22  ;;  %3742 = vrot.lane.b32.xlu1 %v12976_v39, %s7396_s10  ;;  %v12977_v12 = vld [vmem:[#allocation132_spill] sm:$0xff]  ;;  %v12978_v6 = vld [vmem:[#allocation129_spill] sm:$0xff]  ;;  %v3041_v8 = vsel %vm12589_vm11, %v3008_v58, %v9325_v54  ;;  %v3073_v43 = vsel %vm12588_vm12, %v3040_v36, %v2751_v59  ;;  %v7333_v55 = vld [vmem:[#allocation2 + $0x98] sm:$0xff]  ;;  %v2757_v22 = vpop.permute.xlu1 %2756 }
 0x409   : > { %v2978_v48 = vsel %vm12591_vm9, %v2945_v10, %v12977_v12  ;;  %v2979_v60 = vsel %vm12591_vm9, %v2946_v44, %v12978_v6  ;;  %v12979_v5 = vld [vmem:[#allocation133_spill] sm:$0xff]  ;;  %v12980_v52 = vld [vmem:[#allocation135_spill] sm:$0xff]  ;;  %v3074_v13 = vsel %vm12588_vm12, %v3041_v8, %v2753_v26  ;;  %v12981_v10 = vld [vmem:[#allocation42_spill] sm:$0xff]  ;;  %7134 = vmatprep.mubr.msk.f32.mxu1 %vm12587_vm13, %v3073_v43 }
 0x40a   : > { %v3010_v30 = vsel %vm12590_vm10, %v2977_v41, %v12979_v5  ;;  %v2851_v56 = vsel %vm585_vm0, %v7333_v55, %v12980_v52  ;;  %3740 = vrot.lane.b32.xlu0 %v12981_v10, %s7396_s10  ;;  %v12982_v44 = vld [vmem:[#allocation134_spill] sm:$0xff]  ;;  %v12983_v58 = vld [vmem:[#allocation137_spill] sm:$0xff]  ;;  %v12984_v59 = vld [vmem:[#allocation140_spill] sm:$0xff]  ;;  %7135 = vmatmul.mubr.msk.f32.gmra.mxu1 %vm12587_vm13, %v3074_v13 }
 0x40b   : > { %v3009_v54 = vsel %vm12590_vm10, %v2976_v57, %v12982_v44  ;;  %v2884_v36 = vsel %vm12594_vm6, %v2851_v56, %v12983_v58  ;;  %v2914_v41 = vsel %vm12593_vm7, %v2881_v19, %v12984_v59  ;;  %v12985_v12 = vld [vmem:[#allocation139_spill] sm:$0xff]  ;;  %v7334_v26 = vld [vmem:[#allocation2 + $0x90] sm:$0xff]  ;;  %v12986_v8 = vld [vmem:[#allocation136_spill] sm:$0xff]  ;;  %v2755_v19 = vpop.permute.xlu0 %2754  ;;  %v3043_v59 = vsel %vm12589_vm11, %v3010_v30, %v9332_v40 }
 0x40c   : > { %v2948_v6 = vsel %vm12592_vm8, %v2915_v18, %v12985_v12  ;;  %v2850_v5 = vsel %vm585_vm0, %v7334_v26, %v12986_v8  ;;  %v12987_v55 = vld [vmem:[#allocation142_spill] sm:$0xff]  ;;  %v12988_v52 = vld [vmem:[#allocation155_spill] sm:$0xff]  ;;  %v3042_v56 = vsel %vm12589_vm11, %v3009_v54, %v9337_v20  ;;  %3810 = vrot.lane.b32.xlu1 %v7989_v51, %s7397_s11  ;;  %v12990_v44 = vld [vmem:[#allocation144_spill] sm:$0xff]  ;;  %v3076_v26 = vsel %vm12588_vm12, %v3043_v59, %v2757_v22  ;;  %v2761_v8 = vpop.permute.xlu1 %2760 }
 0x40d   : > { %v2947_v43 = vsel %vm12592_vm8, %v2914_v41, %v12987_v55  ;;  %v2917_v57 = vsel %vm12593_vm7, %v2884_v36, %v12988_v52  ;;  %v12989_v18 = vld [vmem:[#allocation138_spill] sm:$0xff]  ;;  %v3075_v41 = vsel %vm12588_vm12, %v3042_v56, %v2755_v19  ;;  %v12991_v36 = vld [vmem:[#allocation145_spill] sm:$0xff]  ;;  %v12994_v30 = vld [vmem:[#allocation147_spill] sm:$0xff] }
 0x40e   : > { %v2883_v13 = vsel %vm12594_vm6, %v2850_v5, %v12989_v18  ;;  %v2980_v58 = vsel %vm12591_vm9, %v2947_v43, %v12990_v44  ;;  %v3012_v12 = vsel %vm12590_vm10, %v2979_v60, %v12991_v36  ;;  %v12992_v20 = vld [vmem:[#allocation141_spill] sm:$0xff]  ;;  %3808 = vrot.lane.b32.xlu0 %v7996_v53, %s7397_s11  ;;  %7137 = vmatprep.mubr.msk.f32.mxu1 %vm12587_vm13, %v3075_v41  ;;  %v12993_v5 = vld [vmem:[#allocation146_spill] sm:$0xff]  ;;  %v12995_v60 = vld [vmem:[#allocation148_spill] sm:$0xff] }
 0x40f   : > { %v2981_v54 = vsel %vm12591_vm9, %v2948_v6, %v12992_v20  ;;  %v3011_v55 = vsel %vm12590_vm10, %v2978_v48, %v12993_v5  ;;  %v7335_v40 = vld [vmem:[#allocation2 + $0xb0] sm:$0xff]  ;;  %v7336_v52 = vld [vmem:[#allocation2 + $0xa8] sm:$0xff]  ;;  %v12996_v6 = vld [vmem:[#allocation151_spill] sm:$0xff]  ;;  %7138 = vmatmul.mubr.msk.f32.gmra.mxu1 %vm12587_vm13, %v3076_v26  ;;  %v2759_v20 = vpop.permute.xlu0 %2758 }
 0x410   : > { %v2853_v43 = vsel %vm585_vm0, %v7335_v40, %v12994_v30  ;;  %v2852_v56 = vsel %vm585_vm0, %v7336_v52, %v12995_v60  ;;  %v2950_v22 = vsel %vm12592_vm8, %v2917_v57, %v12996_v6  ;;  %v12997_v19 = vld [vmem:[#allocation149_spill] sm:$0xff]  ;;  %v12998_v44 = vld [vmem:[#allocation150_spill] sm:$0xff]  ;;  %v12999_v48 = vld [vmem:[#allocation152_spill] sm:$0xff]  ;;  %v3044_v36 = vsel %vm12589_vm11, %v3011_v55, %v9345_v29  ;;  %3814 = vrot.lane.b32.xlu1 %v8005_v63, %s7397_s11 }
 0x411   : > { %v2886_v18 = vsel %vm12594_vm6, %v2853_v43, %v12997_v19  ;;  %v2885_v59 = vsel %vm12594_vm6, %v2852_v56, %v12998_v44  ;;  %v2916_v41 = vsel %vm12593_vm7, %v2883_v13, %v12999_v48  ;;  %v13000_v5 = vld [vmem:[#allocation154_spill] sm:$0xff]  ;;  %v13001_v26 = vld [vmem:[#allocation167_spill] sm:$0xff]  ;;  %v3045_v30 = vsel %vm12589_vm11, %v3012_v12, %v9339_v4  ;;  %v13002_v52 = vld [vmem:[#allocation156_spill] sm:$0xff]  ;;  %v2765_v56 = vpop.permute.xlu1 %2764 }
 0x412   : > { %v2949_v57 = vsel %vm12592_vm8, %v2916_v41, %v13000_v5  ;;  %v2919_v40 = vsel %vm12593_vm7, %v2886_v18, %v13001_v26  ;;  %v3077_v43 = vsel %vm12588_vm12, %v3044_v36, %v2759_v20  ;;  %v13003_v60 = vld [vmem:[#allocation153_spill] sm:$0xff]  ;;  %v3078_v55 = vsel %vm12588_vm12, %v3045_v30, %v2761_v8  ;;  %3812 = vrot.lane.b32.xlu0 %v8012_v2, %s7397_s11  ;;  %v13005_v4 = vld [vmem:[#allocation158_spill] sm:$0xff]  ;;  %v13006_v44 = vld [vmem:[#allocation159_spill] sm:$0xff] }
 0x413   : > { %v2982_v13 = vsel %vm12591_vm9, %v2949_v57, %v13002_v52  ;;  %v2983_v29 = vsel %vm12591_vm9, %v2950_v22, %v13003_v60  ;;  %7140 = vmatprep.mubr.msk.f32.mxu1 %vm12587_vm13, %v3077_v43  ;;  %v13004_v6 = vld [vmem:[#allocation157_spill] sm:$0xff]  ;;  %v3013_v12 = vsel %vm12590_vm10, %v2980_v58, %v13005_v4  ;;  %v7338_v41 = vld [vmem:[#allocation2 + $0xc0] sm:$0xff]  ;;  %v2763_v30 = vpop.permute.xlu0 %2762  ;;  %v13011_v43 = vld [vmem:[#allocation166_spill] sm:$0xff] }
 0x414   : > { %v3014_v19 = vsel %vm12590_vm10, %v2981_v54, %v13004_v6  ;;  %v7337_v18 = vld [vmem:[#allocation2 + $0xc8] sm:$0xff]  ;;  %v13007_v22 = vld [vmem:[#allocation160_spill] sm:$0xff]  ;;  %7141 = vmatmul.mubr.msk.f32.gmra.mxu1 %vm12587_vm13, %v3078_v55  ;;  %v13010_v54 = vld [vmem:[#allocation163_spill] sm:$0xff]  ;;  %v3046_v58 = vsel %vm12589_vm11, %v3013_v12, %v9353_v21  ;;  %3818 = vrot.lane.b32.xlu1 %v8021_v11, %s7397_s11 }
 0x415   : > { %v2855_v48 = vsel %vm585_vm0, %v7337_v18, %v13006_v44  ;;  %v2854_v8 = vsel %vm585_vm0, %v7338_v41, %v13007_v22  ;;  %v13008_v36 = vld [vmem:[#allocation161_spill] sm:$0xff]  ;;  %v13009_v5 = vld [vmem:[#allocation164_spill] sm:$0xff]  ;;  %v2952_v26 = vsel %vm12592_vm8, %v2919_v40, %v13010_v54  ;;  %v13012_v60 = vld [vmem:[#allocation179_spill] sm:$0xff]  ;;  %v3047_v6 = vsel %vm12589_vm11, %v3014_v19, %v9347_v46  ;;  %v2769_v44 = vpop.permute.xlu1 %2768 }
 0x416   : > { %v2888_v20 = vsel %vm12594_vm6, %v2855_v48, %v13008_v36  ;;  %v2918_v57 = vsel %vm12593_vm7, %v2885_v59, %v13009_v5  ;;  %v3079_v59 = vsel %vm12588_vm12, %v3046_v58, %v2763_v30  ;;  %v13013_v4 = vld [vmem:[#allocation162_spill] sm:$0xff]  ;;  %v13014_v18 = vld [vmem:[#allocation168_spill] sm:$0xff]  ;;  %v3080_v12 = vsel %vm12588_vm12, %v3047_v6, %v2765_v56  ;;  %3816 = vrot.lane.b32.xlu0 %v8028_v14, %s7397_s11  ;;  %v13015_v48 = vld [vmem:[#allocation169_spill] sm:$0xff] }
 0x417   : > { %v2951_v52 = vsel %vm12592_vm8, %v2918_v57, %v13011_v43  ;;  %v2921_v55 = vsel %vm12593_vm7, %v2888_v20, %v13012_v60  ;;  %v2887_v40 = vsel %vm12594_vm6, %v2854_v8, %v13013_v4  ;;  %7143 = vmatprep.mubr.msk.f32.mxu1 %vm12587_vm13, %v3079_v59  ;;  %v3016_v41 = vsel %vm12590_vm10, %v2983_v29, %v13015_v48  ;;  %v13016_v46 = vld [vmem:[#allocation170_spill] sm:$0xff]  ;;  %v7339_v22 = vld [vmem:[#allocation2 + $0xe0] sm:$0xff]  ;;  %v13017_v36 = vld [vmem:[#allocation171_spill] sm:$0xff] }
 0x418   : > { %v2984_v21 = vsel %vm12591_vm9, %v2951_v52, %v13014_v18  ;;  %v3015_v19 = vsel %vm12590_vm10, %v2982_v13, %v13016_v46  ;;  %v2857_v8 = vsel %vm585_vm0, %v7339_v22, %v13017_v36  ;;  %v13018_v20 = vld [vmem:[#allocation165_spill] sm:$0xff]  ;;  %7144 = vmatmul.mubr.msk.f32.gmra.mxu1 %vm12587_vm13, %v3080_v12  ;;  %v7340_v56 = vld [vmem:[#allocation2 + $0xd8] sm:$0xff]  ;;  %v13019_v57 = vld [vmem:[#allocation172_spill] sm:$0xff]  ;;  %3822 = vrot.lane.b32.xlu1 %v8037_v23, %s7397_s11  ;;  %v2767_v52 = vpop.permute.xlu0 %2766 }
 0x419   : > { %v2985_v5 = vsel %vm12591_vm9, %v2952_v26, %v13018_v20  ;;  %v2856_v54 = vsel %vm585_vm0, %v7340_v56, %v13019_v57  ;;  %v13020_v58 = vld [vmem:[#allocation176_spill] sm:$0xff]  ;;  %v13021_v29 = vld [vmem:[#allocation175_spill] sm:$0xff]  ;;  %v3048_v13 = vsel %vm12589_vm11, %v3015_v19, %v9361_v61  ;;  %v13022_v26 = vld [vmem:[#allocation173_spill] sm:$0xff]  ;;  %v3049_v4 = vsel %vm12589_vm11, %v3016_v41, %v9355_v42  ;;  %v2773_v46 = vpop.permute.xlu1 %2772 }
 0x41a   : > { %v2920_v30 = vsel %vm12593_vm7, %v2887_v40, %v13020_v58  ;;  %v2954_v43 = vsel %vm12592_vm8, %v2921_v55, %v13021_v29  ;;  %v2890_v60 = vsel %vm12594_vm6, %v2857_v8, %v13022_v26  ;;  %v13023_v6 = vld [vmem:[#allocation178_spill] sm:$0xff]  ;;  %v3081_v40 = vsel %vm12588_vm12, %v3048_v13, %v2767_v52  ;;  %v13025_v12 = vld [vmem:[#allocation180_spill] sm:$0xff]  ;;  %3820 = vrot.lane.b32.xlu0 %v8044_v25, %s7397_s11  ;;  %v13026_v19 = vld [vmem:[#allocation181_spill] sm:$0xff] }
 0x41b   : > { %v2953_v59 = vsel %vm12592_vm8, %v2920_v30, %v13023_v6  ;;  %v13024_v18 = vld [vmem:[#allocation174_spill] sm:$0xff]  ;;  %v3082_v48 = vsel %vm12588_vm12, %v3049_v4, %v2769_v44  ;;  %7146 = vmatprep.mubr.msk.f32.mxu1 %vm12587_vm13, %v3081_v40  ;;  %v3018_v22 = vsel %vm12590_vm10, %v2985_v5, %v13026_v19  ;;  %v7341_v36 = vld [vmem:[#allocation2 + $0xf8] sm:$0xff]  ;;  %v13029_v56 = vld [vmem:[#allocation177_spill] sm:$0xff] }
 0x41c   : > { %v2889_v55 = vsel %vm12594_vm6, %v2856_v54, %v13024_v18  ;;  %v2986_v61 = vsel %vm12591_vm9, %v2953_v59, %v13025_v12  ;;  %v13027_v42 = vld [vmem:[#allocation182_spill] sm:$0xff]  ;;  %v13028_v8 = vld [vmem:[#allocation183_spill] sm:$0xff]  ;;  %v2987_v57 = vsel %vm12591_vm9, %v2954_v43, %v13029_v56  ;;  %7147 = vmatmul.mubr.msk.f32.gmra.mxu1 %vm12587_vm13, %v3082_v48  ;;  %v13030_v54 = vld [vmem:[#allocation184_spill] sm:$0xff]  ;;  %3826 = vrot.lane.b32.xlu1 %v8053_v33, %s7397_s11  ;;  %v2771_v52 = vpop.permute.xlu0 %2770 }
 0x41d   : > { %v3017_v41 = vsel %vm12590_vm10, %v2984_v21, %v13027_v42  ;;  %v2859_v20 = vsel %vm585_vm0, %v7341_v36, %v13028_v8  ;;  %v7342_v44 = vld [vmem:[#allocation2 + $0xf0] sm:$0xff]  ;;  %v13031_v30 = vld [vmem:[#allocation185_spill] sm:$0xff]  ;;  %v13032_v5 = vld [vmem:[#allocation191_spill] sm:$0xff]  ;;  %v3051_v4 = vsel %vm12589_vm11, %v3018_v22, %v9363_v0  ;;  %v2777_v19 = vpop.permute.xlu1 %2776 }
 0x41e   : > { %v2858_v58 = vsel %vm585_vm0, %v7342_v44, %v13030_v54  ;;  %v2892_v29 = vsel %vm12594_vm6, %v2859_v20, %v13031_v30  ;;  %v2923_v13 = vsel %vm12593_vm7, %v2890_v60, %v13032_v5  ;;  %v3050_v21 = vsel %vm12589_vm11, %v3017_v41, %v9369_v35  ;;  %v13033_v43 = vld [vmem:[#allocation186_spill] sm:$0xff]  ;;  %v13034_v6 = vld [vmem:[#allocation188_spill] sm:$0xff]  ;;  %v13036_v12 = vld [vmem:[#allocation203_spill] sm:$0xff]  ;;  %3824 = vrot.lane.b32.xlu0 %v8060_v37, %s7397_s11 }
 0x41f   : > { %v2891_v26 = vsel %vm12594_vm6, %v2858_v58, %v13033_v43  ;;  %v2922_v59 = vsel %vm12593_vm7, %v2889_v55, %v13034_v6  ;;  %v3083_v40 = vsel %vm12588_vm12, %v3050_v21, %v2771_v52  ;;  %v13035_v18 = vld [vmem:[#allocation190_spill] sm:$0xff]  ;;  %v2925_v35 = vsel %vm12593_vm7, %v2892_v29, %v13036_v12  ;;  %v13037_v55 = vld [vmem:[#allocation187_spill] sm:$0xff]  ;;  %v13038_v0 = vld [vmem:[#allocation192_spill] sm:$0xff] }
 0x420   : > { %v2955_v60 = vsel %vm12592_vm8, %v2922_v59, %v13035_v18  ;;  %v3084_v48 = vsel %vm12588_vm12, %v3051_v4, %v2773_v46  ;;  %7149 = vmatprep.mubr.msk.f32.mxu1 %vm12587_vm13, %v3083_v40  ;;  %v2956_v42 = vsel %vm12592_vm8, %v2923_v13, %v13037_v55  ;;  %v13039_v41 = vld [vmem:[#allocation194_spill] sm:$0xff]  ;;  %v13040_v20 = vld [vmem:[#allocation195_spill] sm:$0xff]  ;;  %v13041_v46 = vld [vmem:[#allocation193_spill] sm:$0xff]  ;;  %3830 = vrot.lane.b32.xlu1 %v8069_v1, %s7397_s11 }
 0x421   : > { %v2988_v22 = vsel %vm12591_vm9, %v2955_v60, %v13038_v0  ;;  %v3019_v36 = vsel %vm12590_vm10, %v2986_v61, %v13039_v41  ;;  %v7343_v8 = vld [vmem:[#allocation2 + $0x110] sm:$0xff]  ;;  %7150 = vmatmul.mubr.msk.f32.gmra.mxu1 %vm12587_vm13, %v3084_v48  ;;  %v3020_v44 = vsel %vm12590_vm10, %v2987_v57, %v13041_v46  ;;  %v7344_v54 = vld [vmem:[#allocation2 + $0x108] sm:$0xff]  ;;  %v13042_v58 = vld [vmem:[#allocation196_spill] sm:$0xff]  ;;  %v2775_v61 = vpop.permute.xlu0 %2774  ;;  %v2781_v60 = vpop.permute.xlu1 %2780 }
 0x422   : > { %v2861_v56 = vsel %vm585_vm0, %v7343_v8, %v13040_v20  ;;  %v2860_v30 = vsel %vm585_vm0, %v7344_v54, %v13042_v58  ;;  %v13043_v29 = vld [vmem:[#allocation197_spill] sm:$0xff]  ;;  %v3052_v13 = vsel %vm12589_vm11, %v3019_v36, %v9377_v45  ;;  %v13044_v21 = vld [vmem:[#allocation200_spill] sm:$0xff]  ;;  %v13045_v43 = vld [vmem:[#allocation199_spill] sm:$0xff]  ;;  %v3053_v6 = vsel %vm12589_vm11, %v3020_v44, %v9371_v62  ;;  %3828 = vrot.lane.b32.xlu0 %v8076_v50, %s7397_s11 }
 0x423   : > { %v2894_v5 = vsel %vm12594_vm6, %v2861_v56, %v13043_v29  ;;  %v2924_v52 = vsel %vm12593_vm7, %v2891_v26, %v13044_v21  ;;  %v2958_v57 = vsel %vm12592_vm8, %v2925_v35, %v13045_v43  ;;  %v3085_v59 = vsel %vm12588_vm12, %v3052_v13, %v2775_v61  ;;  %v13046_v4 = vld [vmem:[#allocation202_spill] sm:$0xff]  ;;  %v13048_v62 = vld [vmem:[#allocation204_spill] sm:$0xff]  ;;  %v13049_v48 = vld [vmem:[#allocation189_spill] sm:$0xff] }
 0x424   : > { %v2957_v40 = vsel %vm12592_vm8, %v2924_v52, %v13046_v4  ;;  %v2927_v45 = vsel %vm12593_vm7, %v2894_v5, %v9124_v38  ;;  %v3086_v18 = vsel %vm12588_vm12, %v3053_v6, %v2777_v19  ;;  %7152 = vmatprep.mubr.msk.f32.mxu1 %vm12587_vm13, %v3085_v59  ;;  %v13047_v26 = vld [vmem:[#allocation198_spill] sm:$0xff]  ;;  %v2989_v55 = vsel %vm12591_vm9, %v2956_v42, %v13049_v48  ;;  %v13051_v19 = vld [vmem:[#allocation205_spill] sm:$0xff]  ;;  %v13055_v52 = vld [vmem:[#allocation207_spill] sm:$0xff] }
 0x425   : > { %v2893_v12 = vsel %vm12594_vm6, %v2860_v30, %v13047_v26  ;;  %v2990_v35 = vsel %vm12591_vm9, %v2957_v40, %v13048_v62  ;;  %v13050_v0 = vld [vmem:[#allocation206_spill] sm:$0xff]  ;;  %7153 = vmatmul.mubr.msk.f32.gmra.mxu1 %vm12587_vm13, %v3086_v18  ;;  %v3022_v41 = vsel %vm12590_vm10, %v2989_v55, %v13051_v19  ;;  %v7345_v36 = vld [vmem:[#allocation2 + $0x128] sm:$0xff]  ;;  %3834 = vrot.lane.b32.xlu1 %v8085_v3, %s7397_s11  ;;  %v2779_v42 = vpop.permute.xlu0 %2778  ;;  %v2785_v5 = vpop.permute.xlu1 %2784  ;;  %v7347_v6 = vld [vmem:[#allocation2 + $0x140] sm:$0xff] }
 0x426   : > { %v3021_v38 = vsel %vm12590_vm10, %v2988_v22, %v13050_v0  ;;  %v2863_v8 = vsel %vm585_vm0, %v7345_v36, %v9097_v32  ;;  %v13052_v20 = vld [vmem:[#allocation201_spill] sm:$0xff]  ;;  %v7346_v22 = vld [vmem:[#allocation2 + $0x120] sm:$0xff]  ;;  %v2960_v54 = vsel %vm12592_vm8, %v2927_v45, %v9109_v34  ;;  %v3055_v32 = vsel %vm12589_vm11, %v3022_v41, %v9379_v27  ;;  %3832 = vrot.lane.b32.xlu0 %v8092_v7, %s7397_s11  ;;  %v13056_v43 = vld [vmem:[#allocation254_spill] sm:$0xff] }
 0x427   : > { %v2991_v56 = vsel %vm12591_vm9, %v2958_v57, %v13052_v20  ;;  %v3054_v46 = vsel %vm12589_vm11, %v3021_v38, %v9385_v28  ;;  %v2862_v44 = vsel %vm585_vm0, %v7346_v22, %v9101_v49  ;;  %v2896_v30 = vsel %vm12594_vm6, %v2863_v8, %v9103_v9  ;;  %v13053_v27 = vld [vmem:[#allocation208_spill] sm:$0xff]  ;;  %v13054_v61 = vld [vmem:[#allocation209_spill] sm:$0xff]  ;;  %v7348_v4 = vld [vmem:[#allocation2 + $0x138] sm:$0xff] }
 0x428   : > { %v3087_v58 = vsel %vm12588_vm12, %v3054_v46, %v2779_v42  ;;  %v2926_v28 = vsel %vm12593_vm7, %v2893_v12, %v9114_v17  ;;  %v3088_v29 = vsel %vm12588_vm12, %v3055_v32, %v2781_v60  ;;  %v2895_v34 = vsel %vm12594_vm6, %v2862_v44, %v9107_v31  ;;  %v13057_v57 = vld [vmem:[#allocation21_spill] sm:$0xff]  ;;  %v13059_v40 = vld [vmem:[#allocation211_spill] sm:$0xff]  ;;  %v13064_v19 = vld [vmem:[#allocation212_spill] sm:$0xff] }
 0x429   : > { %7155 = vmatprep.mubr.msk.f32.mxu1 %vm12587_vm13, %v3087_v58  ;;  %v2959_v49 = vsel %vm12592_vm8, %v2926_v28, %v9122_v47  ;;  %v3023_v9 = vsel %vm12590_vm10, %v2990_v35, %v9138_v24  ;;  %v2929_v17 = vsel %vm12593_vm7, %v2896_v30, %v9193_v16  ;;  %v3024_v21 = vsel %vm12590_vm10, %v2991_v56, %v13054_v61  ;;  %v2783_v24 = vpop.permute.xlu0 %2782  ;;  %v13058_v16 = vld [vmem:[#allocation210_spill] sm:$0xff]  ;;  %v13060_v18 = vld [vmem:[#allocation253_spill] sm:$0xff]  ;;  %v13061_v12 = vld [vmem:[#allocation215_spill] sm:$0xff]  ;;  %v2789_v0 = vpop.permute.xlu1 %2788 }
 0x42a   : > { %7156 = vmatmul.mubr.msk.f32.gmra.mxu1 %vm12587_vm13, %v3088_v29  ;;  %v2992_v13 = vsel %vm12591_vm9, %v2959_v49, %v13053_v27  ;;  %v2993_v31 = vsel %vm12591_vm9, %v2960_v54, %v13055_v52  ;;  %v3056_v47 = vsel %vm12589_vm11, %v3023_v9, %v13056_v43  ;;  %3838 = vrot.lane.b32.xlu1 %v13057_v57, %s7397_s11  ;;  %v13062_v35 = vld [vmem:[#allocation214_spill] sm:$0xff]  ;;  %v13063_v38 = vld [vmem:[#allocation23_spill] sm:$0xff]  ;;  %v13065_v36 = vld [vmem:[#allocation213_spill] sm:$0xff] }
 0x42b   : > { %v2865_v59 = vsel %vm585_vm0, %v7347_v6, %v13058_v16  ;;  %v2864_v45 = vsel %vm585_vm0, %v7348_v4, %v13059_v40  ;;  %v3057_v60 = vsel %vm12589_vm11, %v3024_v21, %v13060_v18  ;;  %v3089_v26 = vsel %vm12588_vm12, %v3056_v47, %v2783_v24  ;;  %3836 = vrot.lane.b32.xlu0 %v13063_v38, %s7397_s11  ;;  %v13066_v20 = vld [vmem:[#allocation217_spill] sm:$0xff]  ;;  %v13067_v46 = vld [vmem:[#allocation220_spill] sm:$0xff]  ;;  %v13068_v22 = vld [vmem:[#allocation218_spill] sm:$0xff] }
 0x42c   : > { %v2928_v62 = vsel %vm12593_vm7, %v2895_v34, %v13061_v12  ;;  %v2962_v48 = vsel %vm12592_vm8, %v2929_v17, %v13062_v35  ;;  %v3090_v55 = vsel %vm12588_vm12, %v3057_v60, %v2785_v5  ;;  %7158 = vmatprep.mubr.msk.f32.mxu1 %vm12587_vm13, %v3089_v26  ;;  %v2898_v41 = vsel %vm12594_vm6, %v2865_v59, %v13064_v19  ;;  %v13069_v54 = vld [vmem:[#allocation219_spill] sm:$0xff]  ;;  %v13070_v58 = vld [vmem:[#allocation229_spill] sm:$0xff]  ;;  %v13071_v28 = vld [vmem:[#allocation256_spill] sm:$0xff] }
 0x42d   : > { %v2897_v8 = vsel %vm12594_vm6, %v2864_v45, %v13065_v36  ;;  %v2961_v56 = vsel %vm12592_vm8, %v2928_v62, %v13066_v20  ;;  %v3025_v42 = vsel %vm12590_vm10, %v2992_v13, %v13067_v46  ;;  %v3026_v32 = vsel %vm12590_vm10, %v2993_v31, %v13069_v54  ;;  %v13072_v5 = vld [vmem:[#allocation24_spill] sm:$0xff]  ;;  %v2787_v34 = vpop.permute.xlu0 %2786  ;;  %v7349_v49 = vld [vmem:[#allocation2 + $0x158] sm:$0xff]  ;;  %v13073_v9 = vld [vmem:[#allocation221_spill] sm:$0xff]  ;;  %v2793_v59 = vpop.permute.xlu1 %2792 }
 0x42e   : > { %7159 = vmatmul.mubr.msk.f32.gmra.mxu1 %vm12587_vm13, %v3090_v55  ;;  %v2994_v44 = vsel %vm12591_vm9, %v2961_v56, %v13068_v22  ;;  %v2931_v30 = vsel %vm12593_vm7, %v2898_v41, %v13070_v58  ;;  %v3058_v29 = vsel %vm12589_vm11, %v3025_v42, %v13071_v28  ;;  %3842 = vrot.lane.b32.xlu1 %v13072_v5, %s7397_s11  ;;  %v13074_v27 = vld [vmem:[#allocation216_spill] sm:$0xff]  ;;  %v13075_v61 = vld [vmem:[#allocation255_spill] sm:$0xff]  ;;  %v7350_v31 = vld [vmem:[#allocation2 + $0x150] sm:$0xff] }
 0x42f   : > { %v2867_v17 = vsel %vm585_vm0, %v7349_v49, %v13073_v9  ;;  %v2995_v13 = vsel %vm12591_vm9, %v2962_v48, %v13074_v27  ;;  %v3059_v21 = vsel %vm12589_vm11, %v3026_v32, %v13075_v61  ;;  %v3091_v52 = vsel %vm12588_vm12, %v3058_v29, %v2787_v34  ;;  %v13076_v43 = vld [vmem:[#allocation222_spill] sm:$0xff]  ;;  %v13079_v40 = vld [vmem:[#allocation223_spill] sm:$0xff]  ;;  %v13080_v18 = vld [vmem:[#allocation228_spill] sm:$0xff] }
 0x430   : > { %v2866_v47 = vsel %vm585_vm0, %v7350_v31, %v13076_v43  ;;  %v13077_v24 = vld [vmem:[#allocation226_spill] sm:$0xff]  ;;  %v3092_v16 = vsel %vm12588_vm12, %v3059_v21, %v2789_v0  ;;  %7161 = vmatprep.mubr.msk.f32.mxu1 %vm12587_vm13, %v3091_v52  ;;  %v2900_v45 = vsel %vm12594_vm6, %v2867_v17, %v13079_v40  ;;  %v13081_v26 = vld [vmem:[#allocation225_spill] sm:$0xff]  ;;  %v13082_v62 = vld [vmem:[#allocation232_spill] sm:$0xff] }
 0x431   : > { %v2930_v6 = vsel %vm12593_vm7, %v2897_v8, %v13077_v24  ;;  %v13078_v4 = vld [vmem:[#allocation26_spill] sm:$0xff]  ;;  %v2964_v12 = vsel %vm12592_vm8, %v2931_v30, %v13081_v26  ;;  %v3027_v35 = vsel %vm12590_vm10, %v2994_v44, %v13082_v62  ;;  %v13083_v48 = vld [vmem:[#allocation224_spill] sm:$0xff]  ;;  %v13085_v41 = vld [vmem:[#allocation231_spill] sm:$0xff]  ;;  %v2791_v46 = vpop.permute.xlu0 %2790  ;;  %v2797_v27 = vpop.permute.xlu1 %2796 }
 0x432   : > { %3840 = vrot.lane.b32.xlu0 %v13078_v4, %s7397_s11  ;;  %v2963_v60 = vsel %vm12592_vm8, %v2930_v6, %v13080_v18  ;;  %7162 = vmatmul.mubr.msk.f32.gmra.mxu1 %vm12587_vm13, %v3092_v16  ;;  %v2899_v55 = vsel %vm12594_vm6, %v2866_v47, %v13083_v48  ;;  %v13084_v0 = vld [vmem:[#allocation230_spill] sm:$0xff]  ;;  %v3028_v36 = vsel %vm12590_vm10, %v2995_v13, %v13085_v41  ;;  %v13087_v56 = vld [vmem:[#allocation27_spill] sm:$0xff]  ;;  %v13088_v22 = vld [vmem:[#allocation233_spill] sm:$0xff] }
 0x433   : > { %v2996_v19 = vsel %vm12591_vm9, %v2963_v60, %v13084_v0  ;;  %v13086_v8 = vld [vmem:[#allocation258_spill] sm:$0xff]  ;;  %3846 = vrot.lane.b32.xlu1 %v13087_v56, %s7397_s11  ;;  %v13089_v54 = vld [vmem:[#allocation241_spill] sm:$0xff]  ;;  %v13091_v29 = vld [vmem:[#allocation235_spill] sm:$0xff] }
 0x434   : > { %v3060_v20 = vsel %vm12589_vm11, %v3027_v35, %v13086_v8  ;;  %v7351_v42 = vld [vmem:[#allocation2 + $0x170] sm:$0xff]  ;;  %v2933_v32 = vsel %vm12593_vm7, %v2900_v45, %v13089_v54  ;;  %v13090_v58 = vld [vmem:[#allocation257_spill] sm:$0xff]  ;;  %v13092_v49 = vld [vmem:[#allocation227_spill] sm:$0xff] }
 0x435   : > { %v2869_v44 = vsel %vm585_vm0, %v7351_v42, %v13088_v22  ;;  %v3061_v30 = vsel %vm12589_vm11, %v3028_v36, %v13090_v58  ;;  %v3093_v28 = vsel %vm12588_vm12, %v3060_v20, %v2791_v46  ;;  %v2997_v9 = vsel %vm12591_vm9, %v2964_v12, %v13092_v49  ;;  %v13093_v13 = vld [vmem:[#allocation29_spill] sm:$0xff]  ;;  %v13094_v21 = vld [vmem:[#allocation234_spill] sm:$0xff]  ;;  %v13096_v47 = vld [vmem:[#allocation244_spill] sm:$0xff]  ;;  %v2795_v48 = vpop.permute.xlu0 %2794 }
 0x436   : > { %v2902_v34 = vsel %vm12594_vm6, %v2869_v44, %v13091_v29  ;;  %v3094_v17 = vsel %vm12588_vm12, %v3061_v30, %v2793_v59  ;;  %3844 = vrot.lane.b32.xlu0 %v13093_v13, %s7397_s11  ;;  %7164 = vmatprep.mubr.msk.f32.mxu1 %vm12587_vm13, %v3093_v28  ;;  %v7352_v61 = vld [vmem:[#allocation2 + $0x168] sm:$0xff]  ;;  %v13095_v31 = vld [vmem:[#allocation238_spill] sm:$0xff]  ;;  %v3029_v24 = vsel %vm12590_vm10, %v2996_v19, %v13096_v47  ;;  %v13098_v59 = vld [vmem:[#allocation240_spill] sm:$0xff] }
 0x437   : > { %v2868_v52 = vsel %vm585_vm0, %v7352_v61, %v13094_v21  ;;  %v2932_v43 = vsel %vm12593_vm7, %v2899_v55, %v13095_v31  ;;  %v13097_v6 = vld [vmem:[#allocation249_spill] sm:$0xff]  ;;  %7165 = vmatmul.mubr.msk.f32.gmra.mxu1 %vm12587_vm13, %v3094_v17  ;;  %v13100_v60 = vld [vmem:[#allocation243_spill] sm:$0xff]  ;;  %v13101_v12 = vld [vmem:[#allocation44_spill] sm:$0xff] }
 0x438   : > { %v2935_v16 = vsel %vm12593_vm7, %v2902_v34, %v13097_v6  ;;  %v2965_v40 = vsel %vm12592_vm8, %v2932_v43, %v13098_v59  ;;  %v13099_v45 = vld [vmem:[#allocation237_spill] sm:$0xff]  ;;  %v3030_v26 = vsel %vm12590_vm10, %v2997_v9, %v13100_v60  ;;  %v3062_v62 = vsel %vm12589_vm11, %v3029_v24, %v13101_v12  ;;  %v13102_v35 = vld [vmem:[#allocation30_spill] sm:$0xff]  ;;  %v13103_v55 = vld [vmem:[#allocation236_spill] sm:$0xff] }
 0x439   : > { %v2966_v18 = vsel %vm12592_vm8, %v2933_v32, %v13099_v45  ;;  %3850 = vrot.lane.b32.xlu1 %v13102_v35, %s7397_s11  ;;  %v2901_v0 = vsel %vm12594_vm6, %v2868_v52, %v13103_v55  ;;  %v13104_v19 = vld [vmem:[#allocation242_spill] sm:$0xff]  ;;  %v13105_v36 = vld [vmem:[#allocation259_spill] sm:$0xff]  ;;  %v3095_v20 = vsel %vm12588_vm12, %v3062_v62, %v2795_v48  ;;  %v13107_v22 = vld [vmem:[#allocation245_spill] sm:$0xff]  ;;  %v2801_v32 = vpop.permute.xlu1 %2800  ;;  %v2799_v47 = vpop.permute.xlu0 %2798 }
 0x43a   : > { %v2998_v41 = vsel %vm12591_vm9, %v2965_v40, %v13104_v19  ;;  %v3063_v8 = vsel %vm12589_vm11, %v3030_v26, %v13105_v36  ;;  %v13106_v46 = vld [vmem:[#allocation246_spill] sm:$0xff]  ;;  %v2968_v44 = vsel %vm12592_vm8, %v2935_v16, %v13107_v22  ;;  %v13108_v58 = vld [vmem:[#allocation32_spill] sm:$0xff]  ;;  %7167 = vmatprep.mubr.msk.f32.mxu1 %vm12587_vm13, %v3095_v20  ;;  %v13110_v29 = vld [vmem:[#allocation239_spill] sm:$0xff] }
 0x43b   : > { %v2934_v42 = vsel %vm12593_vm7, %v2901_v0, %v13106_v46  ;;  %v3096_v54 = vsel %vm12588_vm12, %v3063_v8, %v2797_v27  ;;  %3848 = vrot.lane.b32.xlu0 %v13108_v58, %s7397_s11  ;;  %v13109_v30 = vld [vmem:[#allocation248_spill] sm:$0xff]  ;;  %v2999_v34 = vsel %vm12591_vm9, %v2966_v18, %v13110_v29  ;;  %v13112_v17 = vld [vmem:[#allocation250_spill] sm:$0xff]  ;;  %v13113_v61 = vld [vmem:[#allocation251_spill] sm:$0xff] }
 0x43c   : > { %v2967_v28 = vsel %vm12592_vm8, %v2934_v42, %v13109_v30  ;;  %v13111_v49 = vld [vmem:[#allocation252_spill] sm:$0xff]  ;;  %7168 = vmatmul.mubr.msk.f32.gmra.mxu1 %vm12587_vm13, %v3096_v54  ;;  %v3032_v21 = vsel %vm12590_vm10, %v2999_v34, %v13113_v61  ;;  %v13114_v52 = vld [vmem:[#allocation43_spill] sm:$0xff]  ;;  %v13115_v43 = vld [vmem:[#allocation33_spill] sm:$0xff] }
 0x43d   : > { %v3031_v9 = vsel %vm12590_vm10, %v2998_v41, %v13111_v49  ;;  %v3000_v27 = vsel %vm12591_vm9, %v2967_v28, %v13112_v17  ;;  %3854 = vrot.lane.b32.xlu1 %v13115_v43, %s7397_s11  ;;  %v13116_v24 = vld [vmem:[#allocation81_spill] sm:$0xff]  ;;  %v13117_v16 = vld [vmem:[#allocation247_spill] sm:$0xff]  ;;  %v13118_v18 = vld [vmem:[#allocation34_spill] sm:$0xff]  ;;  %v2805_v12 = vpop.permute.xlu1 %2804  ;;  %v2803_v41 = vpop.permute.xlu0 %2802 }
 0x43e   : > { %v3064_v31 = vsel %vm12589_vm11, %v3031_v9, %v13114_v52  ;;  %v3065_v6 = vsel %vm12589_vm11, %v3032_v21, %v13116_v24  ;;  %v3001_v59 = vsel %vm12591_vm9, %v2968_v44, %v13117_v16  ;;  %v13119_v60 = vld [vmem:[#allocation48_spill] sm:$0xff]  ;;  %v13120_v62 = vld [vmem:[#allocation46_spill] sm:$0xff]  ;;  %v13121_v55 = vld [vmem:[#allocation75_spill] sm:$0xff] }
 0x43f   : > { %v3097_v40 = vsel %vm12588_vm12, %v3064_v31, %v2799_v47  ;;  %v3098_v45 = vsel %vm12588_vm12, %v3065_v6, %v2801_v32  ;;  %3852 = vrot.lane.b32.xlu0 %v13118_v18, %s7397_s11  ;;  %v3033_v26 = vsel %vm12590_vm10, %v3000_v27, %v13119_v60  ;;  %v3034_v48 = vsel %vm12590_vm10, %v3001_v59, %v13120_v62  ;;  %v13122_v19 = vld [vmem:[#allocation35_spill] sm:$0xff]  ;;  %v13123_v36 = vld [vmem:[#allocation73_spill] sm:$0xff]  ;;  %v13124_v42 = vld [vmem:[#allocation36_spill] sm:$0xff] }
 0x440   : > { %7170 = vmatprep.mubr.msk.f32.mxu1 %vm12587_vm13, %v3097_v40  ;;  %v3066_v0 = vsel %vm12589_vm11, %v3033_v26, %v13121_v55  ;;  %v3067_v8 = vsel %vm12589_vm11, %v3034_v48, %v13123_v36  ;;  %v13125_v22 = vld [vmem:[#allocation37_spill] sm:$0xff]  ;;  %v13126_v44 = vld [vmem:[#allocation38_spill] sm:$0xff]  ;;  %v13127_v54 = vld [vmem:[#allocation39_spill] sm:$0xff] }
 0x441   : > { %7171 = vmatmul.mubr.msk.f32.gmra.mxu1 %vm12587_vm13, %v3098_v45  ;;  %3858 = vrot.lane.b32.xlu1 %v13122_v19, %s7397_s11  ;;  %v3099_v20 = vsel %vm12588_vm12, %v3066_v0, %v2803_v41  ;;  %v3100_v46 = vsel %vm12588_vm12, %v3067_v8, %v2805_v12  ;;  %v10025_v32 = vpop.permute.xlu0 %3680  ;;  %v10035_v49 = vpop.permute.xlu1 %3682  ;;  %v4152_v59 = vld [vmem:[#allocation3 + $0x9] sm:$0xff]  ;;  %v4151_v40 = vld [vmem:[#allocation3 + $0x1] sm:$0xff] }
 0x442   : > { %7173 = vmatprep.mubr.msk.f32.mxu1 %vm12587_vm13, %v3099_v20  ;;  %v4184_v12 = vld [vmem:[#allocation3 + $0xa] sm:$0xff]  ;;  %v4183_v20 = vld [vmem:[#allocation3 + $0x2] sm:$0xff] }
 0x443   : > { %3856 = vrot.lane.b32.xlu0 %v13124_v42, %s7397_s11  ;;  %v10073_v48 = vld [vmem:[%s12476_s4] ss:$0 sm:$0xff] }
 0x445   : > { %7174 = vmatmul.mubr.msk.f32.gmra.mxu1 %vm12587_vm13, %v3100_v46  ;;  %3862 = vrot.lane.b32.xlu1 %v13125_v22, %s7397_s11  ;;  %v10027_v30 = vpop.permute.xlu0 %3684  ;;  %v10039_v17 = vpop.permute.xlu1 %3686 }
 0x447   : > { %3860 = vrot.lane.b32.xlu0 %v13126_v44, %s7397_s11 }
 0x449   : > { %3866 = vrot.lane.b32.xlu1 %v13127_v54, %s7397_s11  ;;  %v10029_v28 = vpop.permute.xlu0 %3688  ;;  %v10043_v61 = vpop.permute.xlu1 %3690 }
 0x44b   : > { %3864 = vrot.lane.b32.xlu0 %v12968_v15, %s7397_s11 }
 0x44d   : > { %3870 = vrot.lane.b32.xlu1 %v12976_v39, %s7397_s11  ;;  %v10031_v29 = vpop.permute.xlu0 %3692  ;;  %v10047_v52 = vpop.permute.xlu1 %3694 }
 0x44f   : > { %3868 = vrot.lane.b32.xlu0 %v12981_v10, %s7397_s11 }
 0x451   : > { %v10033_v34 = vpop.permute.xlu0 %3696  ;;  %v10051_v47 = vpop.permute.xlu1 %3698  ;;  %4442 = vrot.lane.b32.xlu1 %v4152_v59, %s7387_s13 }
 0x453   : > { %4440 = vrot.lane.b32.xlu0 %v4151_v40, %s7387_s13 }
 0x455   : > { %v10037_v9 = vpop.permute.xlu0 %3700  ;;  %v10055_v6 = vpop.permute.xlu1 %3702  ;;  %4570 = vrot.lane.b32.xlu1 %v4184_v12, %s7388_s14 }
 0x456   : > { %13128 = vst [vmem:[#allocation77_spill] sm:$0xff] %v10037_v9  ;;  %13133 = vst [vmem:[#allocation78_spill] sm:$0xff] %v10055_v6 }
 0x457   : > { %4568 = vrot.lane.b32.xlu0 %v4183_v20, %s7388_s14 }
 0x459   : > { %v10041_v27 = vpop.permute.xlu0 %3704  ;;  %v10059_v45 = vpop.permute.xlu1 %3706 }
 0x45a   : > { %13129 = vst [vmem:[#allocation93_spill] sm:$0xff] %v10041_v27  ;;  %13135 = vst [vmem:[#allocation88_spill] sm:$0xff] %v10059_v45 }
 0x45d   : > { %v10045_v21 = vpop.permute.xlu0 %3708  ;;  %v10065_v26 = vpop.permute.xlu1 %3710 }
 0x45e   : > { %13130 = vst [vmem:[#allocation45_spill] sm:$0xff] %v10045_v21  ;;  %13137 = vst [vmem:[#allocation79_spill] sm:$0xff] %v10065_v26 }
 0x461   : > { %v10049_v31 = vpop.permute.xlu0 %3712  ;;  %v10075_v55 = vpop.permute.xlu1 %3714 }
 0x462   : > { %13131 = vst [vmem:[#allocation74_spill] sm:$0xff] %v10049_v31  ;;  %13139 = vst [vmem:[#allocation84_spill] sm:$0xff] %v10075_v55 }
 0x465   : > { %v10053_v24 = vpop.permute.xlu0 %3716  ;;  %v10095_v39 = vpop.permute.xlu1 %3718 }
 0x466   : > { %13132 = vst [vmem:[#allocation76_spill] sm:$0xff] %v10053_v24  ;;  %13141 = vst [vmem:[#allocation95_spill] sm:$0xff] %v10095_v39 }
 0x469   : > { %v10057_v16 = vpop.permute.xlu0 %3720 }
 0x46a   : > { %13134 = vst [vmem:[#allocation80_spill] sm:$0xff] %v10057_v16 }
 0x46d   : > { %v10063_v60 = vpop.permute.xlu0 %3724 }
 0x46e   : > { %13136 = vst [vmem:[#allocation87_spill] sm:$0xff] %v10063_v60 }
 0x471   : > { %v10067_v62 = vpop.permute.xlu0 %3728 }
 0x472   : > { %13138 = vst [vmem:[#allocation83_spill] sm:$0xff] %v10067_v62 }
 0x475   : > { %v10077_v41 = vpop.permute.xlu0 %3732 }
 0x476   : > { %13140 = vst [vmem:[#allocation90_spill] sm:$0xff] %v10077_v41 }
 0x4c0   : > { %v7130_v0 = vpop.f32.mrf.mxu1 }
 0x4c1   : > { %v10080_v36 = vadd.f32 %v7130_v0, %v10073_v48 }
 0x4c2   : > { %v3280_v8 = vpop.f32.mrf.mxu1 }
 0x4c3   : > { %v10083_v46 = vadd.f32 %v10073_v48, %v3280_v8  ;;  %v3510_v40 = vmul.f32 %v10080_v36, %v10080_v36  ;;  %v10097_v8 = vpop.permute.xlu0 %3736  ;;  %v3440_v20 = vsel %vm585_vm0, %v10080_v36, 0.0 }
 0x4c4   : > { %v7133_v59 = vpop.f32.mrf.mxu1  ;;  %13142 = vst [vmem:[#allocation82_spill] sm:$0xff] %v10097_v8 }
 0x4c5   : > { %v3439_v12 = vsel %vm585_vm0, %v10083_v46, 0.0  ;;  %v3509_v63 = vmul.f32 %v10083_v46, %v10083_v46  ;;  %v10093_v0 = vadd.f32 %v7133_v59, %v10073_v48  ;;  %v3542_v59 = vsel %vm585_vm0, %v3510_v40, 0.0  ;;  %v10121_v40 = vpop.permute.xlu1 %3722 }
 0x4c6   : > { %v3290_v2 = vpop.f32.mrf.mxu1  ;;  %v3441_v54 = vadd.f32 %v3440_v20, %v3439_v12  ;;  %13143 = vst [vmem:[#allocation85_spill] sm:$0xff] %v10121_v40 }
 0x4c7   : > { %v3541_v10 = vsel %vm585_vm0, %v3509_v63, 0.0  ;;  %v10103_v51 = vadd.f32 %v10073_v48, %v3290_v2  ;;  %v3512_v53 = vmul.f32 %v10093_v0, %v10093_v0  ;;  %v3444_v12 = vsel %vm585_vm0, %v10093_v0, 0.0 }
 0x4c8   : > { %v3543_v63 = vadd.f32 %v3542_v59, %v3541_v10 }
 0x4c9   : > { %v3442_v22 = vsel %vm585_vm0, %v10103_v51, 0.0  ;;  %v3511_v44 = vmul.f32 %v10103_v51, %v10103_v51  ;;  %v3546_v18 = vsel %vm585_vm0, %v3512_v53, 0.0 }
 0x4ca   : > { %v7136_v15 = vpop.f32.mrf.mxu1  ;;  %v3443_v42 = vadd.f32 %v3442_v22, %v3441_v54 }
 0x4cb   : > { %v10113_v19 = vadd.f32 %v7136_v15, %v10073_v48  ;;  %v3544_v20 = vsel %vm585_vm0, %v3511_v44, 0.0  ;;  %v10124_v15 = vpop.permute.xlu0 %3740 }
 0x4cc   : > { %v3300_v2 = vpop.f32.mrf.mxu1  ;;  %v3545_v35 = vadd.f32 %v3544_v20, %v3543_v63  ;;  %v3445_v58 = vadd.f32 %v3444_v12, %v3443_v42 }
 0x4cd   : > { %v10119_v43 = vadd.f32 %v10073_v48, %v3300_v2  ;;  %v3514_v10 = vmul.f32 %v10113_v19, %v10113_v19  ;;  %v3448_v42 = vsel %vm585_vm0, %v10113_v19, 0.0 }
 0x4ce   : > { %v3547_v2 = vadd.f32 %v3546_v18, %v3545_v35 }
 0x4cf   : > { %v7139_v56 = vpop.f32.mrf.mxu1  ;;  %v3446_v22 = vsel %vm585_vm0, %v10119_v43, 0.0  ;;  %v3513_v44 = vmul.f32 %v10119_v43, %v10119_v43 }
 0x4d0   : > { %v10133_v54 = vadd.f32 %v7139_v56, %v10073_v48  ;;  %v3447_v59 = vadd.f32 %v3446_v22, %v3445_v58  ;;  %v3550_v56 = vsel %vm585_vm0, %v3514_v10, 0.0  ;;  %v10151_v22 = vpop.permute.xlu1 %3726 }
 0x4d1   : > { %v3310_v53 = vpop.f32.mrf.mxu1  ;;  %v3548_v63 = vsel %vm585_vm0, %v3513_v44, 0.0  ;;  %13144 = vst [vmem:[#allocation86_spill] sm:$0xff] %v10151_v22 }
 0x4d2   : > { %v10139_v12 = vadd.f32 %v10073_v48, %v3310_v53  ;;  %v3549_v20 = vadd.f32 %v3548_v63, %v3547_v2  ;;  %v3516_v13 = vmul.f32 %v10133_v54, %v10133_v54  ;;  %v3449_v5 = vadd.f32 %v3448_v42, %v3447_v59  ;;  %v10153_v63 = vpop.permute.xlu0 %3808 }
 0x4d3   : > { %13145 = vst [vmem:[#allocation92_spill] sm:$0xff] %v10153_v63  ;;  %v3452_v59 = vsel %vm585_vm0, %v10133_v54, 0.0 }
 0x4d4   : > { %v7142_v4 = vpop.f32.mrf.mxu1  ;;  %v3450_v35 = vsel %vm585_vm0, %v10139_v12, 0.0  ;;  %v3515_v58 = vmul.f32 %v10139_v12, %v10139_v12  ;;  %v3551_v2 = vadd.f32 %v3550_v56, %v3549_v20  ;;  %v3554_v57 = vsel %vm585_vm0, %v3516_v13, 0.0 }
 0x4d5   : > { %v10149_v18 = vadd.f32 %v7142_v4, %v10073_v48  ;;  %v3451_v44 = vadd.f32 %v3450_v35, %v3449_v5 }
 0x4d6   : > { %v3320_v53 = vpop.f32.mrf.mxu1  ;;  %v3552_v10 = vsel %vm585_vm0, %v3515_v58, 0.0  ;;  %v10181_v33 = vpop.permute.xlu0 %3812 }
 0x4d7   : > { %v10159_v42 = vadd.f32 %v10073_v48, %v3320_v53  ;;  %v3553_v38 = vadd.f32 %v3552_v10, %v3551_v2  ;;  %v3453_v4 = vadd.f32 %v3452_v59, %v3451_v44  ;;  %v3518_v5 = vmul.f32 %v10149_v18, %v10149_v18  ;;  %v10177_v59 = vpop.permute.xlu1 %3730  ;;  %13147 = vst [vmem:[#allocation97_spill] sm:$0xff] %v10181_v33 }
 0x4d8   : > { %v7145_v3 = vpop.f32.mrf.mxu1  ;;  %v3456_v13 = vsel %vm585_vm0, %v10149_v18, 0.0  ;;  %13146 = vst [vmem:[#allocation94_spill] sm:$0xff] %v10177_v59 }
 0x4d9   : > { %v3454_v20 = vsel %vm585_vm0, %v10159_v42, 0.0  ;;  %v3517_v56 = vmul.f32 %v10159_v42, %v10159_v42  ;;  %v10169_v35 = vadd.f32 %v7145_v3, %v10073_v48  ;;  %v3555_v53 = vadd.f32 %v3554_v57, %v3553_v38 }
 0x4da   : > { %v3455_v58 = vadd.f32 %v3454_v20, %v3453_v4  ;;  %v3330_v7 = vpop.f32.mrf.mxu1  ;;  %v3558_v57 = vsel %vm585_vm0, %v3518_v5, 0.0 }
 0x4db   : > { %v3556_v44 = vsel %vm585_vm0, %v3517_v56, 0.0  ;;  %v10175_v2 = vadd.f32 %v10073_v48, %v3330_v7  ;;  %v3520_v1 = vmul.f32 %v10169_v35, %v10169_v35 }
 0x4dc   : > { %v3557_v10 = vadd.f32 %v3556_v44, %v3555_v53  ;;  %v3457_v50 = vadd.f32 %v3456_v13, %v3455_v58  ;;  %v7148_v3 = vpop.f32.mrf.mxu1  ;;  %v3460_v58 = vsel %vm585_vm0, %v10169_v35, 0.0 }
 0x4dd   : > { %v3458_v38 = vsel %vm585_vm0, %v10175_v2, 0.0  ;;  %v3519_v4 = vmul.f32 %v10175_v2, %v10175_v2  ;;  %v10189_v7 = vadd.f32 %v7148_v3, %v10073_v48  ;;  %v3562_v5 = vsel %vm585_vm0, %v3520_v1, 0.0 }
 0x4de   : > { %v3459_v20 = vadd.f32 %v3458_v38, %v3457_v50  ;;  %v3559_v56 = vadd.f32 %v3558_v57, %v3557_v10  ;;  %v3340_v53 = vpop.f32.mrf.mxu1  ;;  %v10207_v38 = vpop.permute.xlu1 %3734 }
 0x4df   : > { %v3560_v13 = vsel %vm585_vm0, %v3519_v4, 0.0  ;;  %v10195_v44 = vadd.f32 %v10073_v48, %v3340_v53  ;;  %v3522_v3 = vmul.f32 %v10189_v7, %v10189_v7  ;;  %13148 = vst [vmem:[#allocation107_spill] sm:$0xff] %v10207_v38 }
 0x4e0   : > { %v3561_v37 = vadd.f32 %v3560_v13, %v3559_v56  ;;  %v3461_v23 = vadd.f32 %v3460_v58, %v3459_v20  ;;  %v10209_v56 = vpop.permute.xlu0 %3816  ;;  %v3464_v20 = vsel %vm585_vm0, %v10189_v7, 0.0 }
 0x4e1   : > { %v7151_v25 = vpop.f32.mrf.mxu1  ;;  %v3462_v50 = vsel %vm585_vm0, %v10195_v44, 0.0  ;;  %v3521_v10 = vmul.f32 %v10195_v44, %v10195_v44  ;;  %13149 = vst [vmem:[#allocation89_spill] sm:$0xff] %v10209_v56 }
 0x4e2   : > { %v10205_v57 = vadd.f32 %v7151_v25, %v10073_v48  ;;  %v3463_v4 = vadd.f32 %v3462_v50, %v3461_v23  ;;  %v3563_v53 = vadd.f32 %v3562_v5, %v3561_v37  ;;  %v3566_v23 = vsel %vm585_vm0, %v3522_v3, 0.0  ;;  %v10233_v3 = vpop.permute.xlu1 %3738 }
 0x4e3   : > { %v3350_v1 = vpop.f32.mrf.mxu1  ;;  %v3564_v58 = vsel %vm585_vm0, %v3521_v10, 0.0  ;;  %13150 = vst [vmem:[#allocation98_spill] sm:$0xff] %v10233_v3 }
 0x4e4   : > { %v10215_v13 = vadd.f32 %v10073_v48, %v3350_v1  ;;  %v3565_v11 = vadd.f32 %v3564_v58, %v3563_v53  ;;  %v3524_v25 = vmul.f32 %v10205_v57, %v10205_v57  ;;  %v3465_v14 = vadd.f32 %v3464_v20, %v3463_v4 }
 0x4e5   : > { %v7154_v33 = vpop.f32.mrf.mxu1  ;;  %v3468_v53 = vsel %vm585_vm0, %v10205_v57, 0.0 }
 0x4e6   : > { %v3466_v37 = vsel %vm585_vm0, %v10215_v13, 0.0  ;;  %v3523_v5 = vmul.f32 %v10215_v13, %v10215_v13  ;;  %v10225_v50 = vadd.f32 %v7154_v33, %v10073_v48  ;;  %v3567_v1 = vadd.f32 %v3566_v23, %v3565_v11  ;;  %v10236_v33 = vpop.permute.xlu0 %3820 }
 0x4e7   : > { %v3467_v10 = vadd.f32 %v3466_v37, %v3465_v14  ;;  %v3360_v56 = vpop.f32.mrf.mxu1  ;;  %v3570_v58 = vsel %vm585_vm0, %v3524_v25, 0.0  ;;  %13151 = vst [vmem:[#allocation99_spill] sm:$0xff] %v10236_v33 }
 0x4e8   : > { %v3568_v4 = vsel %vm585_vm0, %v3523_v5, 0.0  ;;  %v10231_v20 = vadd.f32 %v10073_v48, %v3360_v56  ;;  %v3526_v11 = vmul.f32 %v10225_v50, %v10225_v50 }
 0x4e9   : > { %v3569_v63 = vadd.f32 %v3568_v4, %v3567_v1  ;;  %v3469_v8 = vadd.f32 %v3468_v53, %v3467_v10  ;;  %v3472_v10 = vsel %vm585_vm0, %v10225_v50, 0.0 }
 0x4ea   : > { %v7157_v38 = vpop.f32.mrf.mxu1  ;;  %v3470_v14 = vsel %vm585_vm0, %v10231_v20, 0.0  ;;  %v3525_v23 = vmul.f32 %v10231_v20, %v10231_v20 }
 0x4eb   : > { %v10245_v56 = vadd.f32 %v7157_v38, %v10073_v48  ;;  %v3471_v37 = vadd.f32 %v3470_v14, %v3469_v8  ;;  %v3571_v5 = vadd.f32 %v3570_v58, %v3569_v63  ;;  %v3574_v38 = vsel %vm585_vm0, %v3526_v11, 0.0  ;;  %v10263_v14 = vpop.permute.xlu1 %3742 }
 0x4ec   : > { %v3370_v25 = vpop.f32.mrf.mxu1  ;;  %v3572_v1 = vsel %vm585_vm0, %v3525_v23, 0.0  ;;  %13152 = vst [vmem:[#allocation102_spill] sm:$0xff] %v10263_v14 }
 0x4ed   : > { %v10251_v53 = vadd.f32 %v10073_v48, %v3370_v25  ;;  %v3573_v4 = vadd.f32 %v3572_v1, %v3571_v5  ;;  %v3528_v33 = vmul.f32 %v10245_v56, %v10245_v56  ;;  %v3473_v3 = vadd.f32 %v3472_v10, %v3471_v37  ;;  %v10265_v1 = vpop.permute.xlu0 %3824 }
 0x4ee   : > { %v7160_v41 = vpop.f32.mrf.mxu1  ;;  %13153 = vst [vmem:[#allocation91_spill] sm:$0xff] %v10265_v1  ;;  %v3476_v37 = vsel %vm585_vm0, %v10245_v56, 0.0 }
 0x4ef   : > { %v3474_v8 = vsel %vm585_vm0, %v10251_v53, 0.0  ;;  %v3527_v63 = vmul.f32 %v10251_v53, %v10251_v53  ;;  %v10261_v58 = vadd.f32 %v7160_v41, %v10073_v48  ;;  %v3575_v5 = vadd.f32 %v3574_v38, %v3573_v4 }
 0x4f0   : > { %v3475_v23 = vadd.f32 %v3474_v8, %v3473_v3  ;;  %v3380_v25 = vpop.f32.mrf.mxu1  ;;  %v3578_v59 = vsel %vm585_vm0, %v3528_v33, 0.0 }
 0x4f1   : > { %v3576_v11 = vsel %vm585_vm0, %v3527_v63, 0.0  ;;  %v10271_v10 = vadd.f32 %v10073_v48, %v3380_v25  ;;  %v3530_v3 = vmul.f32 %v10261_v58, %v10261_v58  ;;  %v3480_v33 = vsel %vm585_vm0, %v10261_v58, 0.0  ;;  %v10293_v40 = vpop.permute.xlu0 %3828 }
 0x4f2   : > { %v3577_v62 = vadd.f32 %v3576_v11, %v3575_v5  ;;  %v3477_v41 = vadd.f32 %v3476_v37, %v3475_v23  ;;  %v7163_v22 = vpop.f32.mrf.mxu1  ;;  %v10289_v37 = vpop.permute.xlu1 %3810  ;;  %13155 = vst [vmem:[#allocation119_spill] sm:$0xff] %v10293_v40 }
 0x4f3   : > { %v3478_v4 = vsel %vm585_vm0, %v10271_v10, 0.0  ;;  %v3529_v38 = vmul.f32 %v10271_v10, %v10271_v10  ;;  %v10281_v8 = vadd.f32 %v7163_v22, %v10073_v48  ;;  %13154 = vst [vmem:[#allocation104_spill] sm:$0xff] %v10289_v37 }
 0x4f4   : > { %v3479_v63 = vadd.f32 %v3478_v4, %v3477_v41  ;;  %v3579_v25 = vadd.f32 %v3578_v59, %v3577_v62  ;;  %v3390_v1 = vpop.f32.mrf.mxu1  ;;  %v3582_v62 = vsel %vm585_vm0, %v3530_v3, 0.0 }
 0x4f5   : > { %v3580_v23 = vsel %vm585_vm0, %v3529_v38, 0.0  ;;  %v10287_v5 = vadd.f32 %v10073_v48, %v3390_v1  ;;  %v3532_v14 = vmul.f32 %v10281_v8, %v10281_v8 }
 0x4f6   : > { %v3581_v11 = vadd.f32 %v3580_v23, %v3579_v25  ;;  %v3481_v60 = vadd.f32 %v3480_v33, %v3479_v63  ;;  %v3484_v63 = vsel %vm585_vm0, %v10281_v8, 0.0 }
 0x4f7   : > { %v7166_v22 = vpop.f32.mrf.mxu1  ;;  %v3482_v59 = vsel %vm585_vm0, %v10287_v5, 0.0  ;;  %v3531_v41 = vmul.f32 %v10287_v5, %v10287_v5  ;;  %v3586_v3 = vsel %vm585_vm0, %v3532_v14, 0.0 }
 0x4f8   : > { %v10301_v1 = vadd.f32 %v7166_v22, %v10073_v48  ;;  %v3483_v4 = vadd.f32 %v3482_v59, %v3481_v60  ;;  %v3583_v38 = vadd.f32 %v3582_v62, %v3581_v11  ;;  %v10319_v59 = vpop.permute.xlu1 %3814 }
 0x4f9   : > { %v3400_v25 = vpop.f32.mrf.mxu1  ;;  %v3584_v33 = vsel %vm585_vm0, %v3531_v41, 0.0  ;;  %13156 = vst [vmem:[#allocation96_spill] sm:$0xff] %v10319_v59 }
 0x4fa   : > { %v10307_v23 = vadd.f32 %v10073_v48, %v3400_v25  ;;  %v3585_v40 = vadd.f32 %v3584_v33, %v3583_v38  ;;  %v3485_v37 = vadd.f32 %v3484_v63, %v3483_v4  ;;  %v3534_v22 = vmul.f32 %v10301_v1, %v10301_v1  ;;  %v10321_v38 = vpop.permute.xlu0 %3832 }
 0x4fb   : > { %13157 = vst [vmem:[#allocation100_spill] sm:$0xff] %v10321_v38  ;;  %v3488_v4 = vsel %vm585_vm0, %v10301_v1, 0.0 }
 0x4fc   : > { %v7169_v16 = vpop.f32.mrf.mxu1  ;;  %v3486_v60 = vsel %vm585_vm0, %v10307_v23, 0.0  ;;  %v3533_v11 = vmul.f32 %v10307_v23, %v10307_v23  ;;  %v3587_v25 = vadd.f32 %v3586_v3, %v3585_v40 }
 0x4fd   : > { %v10317_v62 = vadd.f32 %v7169_v16, %v10073_v48  ;;  %v3487_v41 = vadd.f32 %v3486_v60, %v3485_v37  ;;  %v3590_v37 = vsel %vm585_vm0, %v3534_v22, 0.0  ;;  %v10345_v22 = vpop.permute.xlu1 %3818 }
 0x4fe   : > { %v3410_v14 = vpop.f32.mrf.mxu1  ;;  %v3588_v63 = vsel %vm585_vm0, %v3533_v11, 0.0  ;;  %13158 = vst [vmem:[#allocation106_spill] sm:$0xff] %v10345_v22 }
 0x4ff   : > { %v10327_v33 = vadd.f32 %v10073_v48, %v3410_v14  ;;  %v3589_v39 = vadd.f32 %v3588_v63, %v3587_v25  ;;  %v3536_v16 = vmul.f32 %v10317_v62, %v10317_v62  ;;  %v3489_v24 = vadd.f32 %v3488_v4, %v3487_v41 }
 0x500   : > { %v3492_v25 = vsel %vm585_vm0, %v10317_v62, 0.0 }
 0x501   : > { %v7172_v55 = vpop.f32.mrf.mxu1  ;;  %v3490_v40 = vsel %vm585_vm0, %v10327_v33, 0.0  ;;  %v3535_v3 = vmul.f32 %v10327_v33, %v10327_v33  ;;  %v3591_v14 = vadd.f32 %v3590_v37, %v3589_v39  ;;  %v3594_v63 = vsel %vm585_vm0, %v3536_v16, 0.0 }
 0x502   : > { %v10337_v60 = vadd.f32 %v7172_v55, %v10073_v48  ;;  %v3491_v11 = vadd.f32 %v3490_v40, %v3489_v24  ;;  %v10348_v55 = vpop.permute.xlu0 %3836 }
 0x503   : > { %v3420_v38 = vpop.f32.mrf.mxu1  ;;  %v3592_v41 = vsel %vm585_vm0, %v3535_v3, 0.0  ;;  %13159 = vst [vmem:[#allocation101_spill] sm:$0xff] %v10348_v55 }
 0x504   : > { %v10343_v4 = vadd.f32 %v10073_v48, %v3420_v38  ;;  %v3593_v59 = vadd.f32 %v3592_v41, %v3591_v14  ;;  %v3493_v31 = vadd.f32 %v3492_v25, %v3491_v11  ;;  %v3538_v39 = vmul.f32 %v10337_v60, %v10337_v60 }
 0x505   : > { %v7175_v26 = vpop.f32.mrf.mxu1  ;;  %v3496_v11 = vsel %vm585_vm0, %v10337_v60, 0.0 }
 0x506   : > { %v3494_v24 = vsel %vm585_vm0, %v10343_v4, 0.0  ;;  %v3537_v37 = vmul.f32 %v10343_v4, %v10343_v4  ;;  %v10357_v38 = vadd.f32 %v7175_v26, %v10073_v48  ;;  %v3595_v3 = vadd.f32 %v3594_v63, %v3593_v59 }
 0x507   : > { %v3495_v40 = vadd.f32 %v3494_v24, %v3493_v31  ;;  %v3430_v16 = vpop.f32.mrf.mxu1  ;;  %v3598_v22 = vsel %vm585_vm0, %v3538_v39, 0.0  ;;  %v10367_v31 = vpop.permute.xlu1 %3822 }
 0x508   : > { %v3596_v14 = vsel %vm585_vm0, %v3537_v37, 0.0  ;;  %v3431_v25 = vadd.f32 %v10073_v48, %v3430_v16  ;;  %v3540_v21 = vmul.f32 %v10357_v38, %v10357_v38  ;;  %13160 = vst [vmem:[#allocation108_spill] sm:$0xff] %v10367_v31  ;;  %v10369_v24 = vpop.permute.xlu0 %3840  ;;  %v3500_v37 = vsel %vm585_vm0, %v10357_v38, 0.0 }
 0x509   : > { %v3597_v41 = vadd.f32 %v3596_v14, %v3595_v3  ;;  %v3497_v55 = vadd.f32 %v3496_v11, %v3495_v40  ;;  %13161 = vst [vmem:[#allocation109_spill] sm:$0xff] %v10369_v24 }
 0x50a   : > { %v3498_v26 = vsel %vm585_vm0, %v3431_v25, 0.0  ;;  %v3539_v45 = vmul.f32 %v3431_v25, %v3431_v25  ;;  %v3602_v39 = vsel %vm585_vm0, %v3540_v21, 0.0 }
 0x50b   : > { %v3499_v59 = vadd.f32 %v3498_v26, %v3497_v55  ;;  %v3599_v63 = vadd.f32 %v3598_v22, %v3597_v41  ;;  %v10375_v14 = vpop.permute.xlu1 %3826 }
 0x50c   : > { %v3600_v48 = vsel %vm585_vm0, %v3539_v45, 0.0  ;;  %v10377_v31 = vpop.permute.xlu0 %3844 }
 0x50d   : > { %v3501_v40 = vadd.f32 %v3500_v37, %v3499_v59  ;;  %v3601_v3 = vadd.f32 %v3600_v48, %v3599_v63 }
 0x50f   : > { %v3502_v16 = vrot.slane %v3501_v40, 4  ;;  %v3603_v11 = vadd.f32 %v3602_v39, %v3601_v3  ;;  %v10379_v24 = vpop.permute.xlu1 %3830 }
 0x510   : > { %v10381_v59 = vpop.permute.xlu0 %3848 }
 0x511   : > { %v3503_v27 = vadd.f32 %v3502_v16, %v3501_v40  ;;  %v3604_v6 = vrot.slane %v3603_v11, 4 }
 0x513   : > { %v3504_v22 = vrot.slane %v3503_v27, 2  ;;  %v3605_v55 = vadd.f32 %v3604_v6, %v3603_v11  ;;  %v10385_v3 = vpop.permute.xlu1 %3834 }
 0x514   : > { %v10389_v6 = vpop.permute.xlu0 %3852 }
 0x515   : > { %v3505_v41 = vadd.f32 %v3504_v22, %v3503_v27  ;;  %v3606_v26 = vrot.slane %v3605_v55, 2  ;;  %13162 = vst [vmem:[#allocation111_spill] sm:$0xff] %v10389_v6 }
 0x517   : > { %v3506_v9 = vrot.slane %v3505_v41, 1  ;;  %v3607_v45 = vadd.f32 %v3606_v26, %v3605_v55  ;;  %v10391_v11 = vpop.permute.xlu1 %3838 }
 0x518   : > { %v10393_v55 = vpop.permute.xlu0 %3856 }
 0x519   : > { %v3507_v63 = vadd.f32 %v3506_v9, %v3505_v41  ;;  %v3608_v21 = vrot.slane %v3607_v45, 1  ;;  %13163 = vst [vmem:[#allocation113_spill] sm:$0xff] %v10393_v55 }
 0x51b   : > { %v10383_v37 = vmul.f32 0.00390625, %v3507_v63  ;;  %v3609_v48 = vadd.f32 %v3608_v21, %v3607_v45  ;;  %v10395_v9 = vpop.permute.xlu1 %3842 }
 0x51c   : > { %v10397_v41 = vpop.permute.xlu0 %3860 }
 0x51d   : > { %v3610_v40 = vmul.f32 0.00390625, %v3609_v48  ;;  %v3611_v39 = vmul.f32 %v10383_v37, %v10383_v37  ;;  %13164 = vst [vmem:[#allocation115_spill] sm:$0xff] %v10397_v41  ;;  %v3644_v63 = vsub.f32 %v3431_v25, %v10383_v37  ;;  %v3614_v21 = vsub.f32 %v10083_v46, %v10383_v37 }
 0x51e   : > { %v3615_v48 = vsub.f32 %v10080_v36, %v10383_v37  ;;  %v3620_v25 = vsub.f32 %v10139_v12, %v10383_v37  ;;  %v3621_v36 = vsub.f32 %v10133_v54, %v10383_v37  ;;  %v3623_v46 = vsub.f32 %v10149_v18, %v10383_v37 }
 0x51f   : > { %v3612_v27 = vsub.f32 %v3610_v40, %v3611_v39  ;;  %v10399_v26 = vpop.permute.xlu1 %3846  ;;  %v3616_v40 = vsub.f32 %v10103_v51, %v10383_v37  ;;  %v3617_v39 = vsub.f32 %v10093_v0, %v10383_v37  ;;  %v3622_v51 = vsub.f32 %v10159_v42, %v10383_v37 }
 0x520   : > { %v10401_v45 = vpop.permute.xlu0 %3864  ;;  %v3626_v12 = vsub.f32 %v10195_v44, %v10383_v37  ;;  %v3627_v54 = vsub.f32 %v10189_v7, %v10383_v37  ;;  %v3628_v42 = vsub.f32 %v10215_v13, %v10383_v37  ;;  %v3629_v18 = vsub.f32 %v10205_v57, %v10383_v37 }
 0x521   : > { %v3613_v16 = vmax.f32 %v3612_v27, 0.0  ;;  %13165 = vst [vmem:[#allocation112_spill] sm:$0xff] %v10401_v45  ;;  %v3618_v27 = vsub.f32 %v10119_v43, %v10383_v37  ;;  %v3624_v43 = vsub.f32 %v10175_v2, %v10383_v37  ;;  %v3630_v2 = vsub.f32 %v10231_v20, %v10383_v37 }
 0x522   : > { %v3632_v44 = vsub.f32 %v10251_v53, %v10383_v37  ;;  %v3633_v7 = vsub.f32 %v10245_v56, %v10383_v37  ;;  %v3634_v13 = vsub.f32 %v10271_v10, %v10383_v37  ;;  %v3635_v20 = vsub.f32 %v10261_v58, %v10383_v37 }
 0x523   : > { %v3646_v22 = vadd.f32 1e-05, %v3613_v16  ;;  %v3619_v16 = vsub.f32 %v10113_v19, %v10383_v37  ;;  %v3625_v19 = vsub.f32 %v10169_v35, %v10383_v37  ;;  %v10443_v45 = vpop.permute.xlu1 %3850  ;;  %v3637_v41 = vsub.f32 %v10281_v8, %v10383_v37 }
 0x524   : > { %v3869_v57 = vpop.permute.xlu0 %3868  ;;  %v3639_v56 = vsub.f32 %v10301_v1, %v10383_v37  ;;  %v3640_v10 = vsub.f32 %v10327_v33, %v10383_v37  ;;  %v3642_v58 = vsub.f32 %v10343_v4, %v10383_v37  ;;  %v3645_v8 = vsub.f32 %v10357_v38, %v10383_v37 }
 0x525   : > { %7321 = vrsqrt.f32 %v3646_v22 }
 0x532   : > { %v10418_v22 = vpop.eup %7321 }
 0x533   : > { %v3678_v0 = vmul.f32 %v10418_v22, %v3644_v63  ;;  %v3631_v63 = vsub.f32 %v10225_v50, %v10383_v37  ;;  %v3636_v50 = vsub.f32 %v10287_v5, %v10383_v37  ;;  %v3643_v5 = vsub.f32 %v10337_v60, %v10383_v37  ;;  %v10479_v60 = vpop.permute.xlu1 %3854 }
 0x534   : > { %v3649_v1 = vmul.f32 %v10418_v22, %v3615_v48  ;;  %v3650_v33 = vmul.f32 %v10418_v22, %v3616_v40  ;;  %v3653_v4 = vmul.f32 %v10418_v22, %v3619_v16  ;;  %v3654_v55 = vmul.f32 %v10418_v22, %v3620_v25 }
 0x535   : > { %v3806_v35 = vmul.f32 %v10124_v15, %v3678_v0  ;;  %v3638_v15 = vsub.f32 %v10307_v23, %v10383_v37  ;;  %v3641_v0 = vsub.f32 %v10317_v62, %v10383_v37  ;;  %v3648_v23 = vmul.f32 %v10418_v22, %v3614_v21 }
 0x536   : > { %v3652_v62 = vmul.f32 %v10418_v22, %v3618_v27  ;;  %v3655_v38 = vmul.f32 %v10418_v22, %v3621_v36  ;;  %v3656_v37 = vmul.f32 %v10418_v22, %v3622_v51  ;;  %v3657_v21 = vmul.f32 %v10418_v22, %v3623_v46 }
 0x537   : > { %v3934_v53 = vadd.f32 %v3869_v57, %v3806_v35  ;;  %v3651_v57 = vmul.f32 %v10418_v22, %v3617_v39  ;;  %v3658_v48 = vmul.f32 %v10418_v22, %v3624_v43  ;;  %v3659_v40 = vmul.f32 %v10418_v22, %v3625_v19 }
 0x538   : > { %v3660_v39 = vmul.f32 %v10418_v22, %v3626_v12  ;;  %v3661_v27 = vmul.f32 %v10418_v22, %v3627_v54  ;;  %v3662_v16 = vmul.f32 %v10418_v22, %v3628_v42  ;;  %v3663_v25 = vmul.f32 %v10418_v22, %v3629_v18 }
 0x539   : > { %vm3966_vm14 = vcmp.ge.f32.partialorder %v3934_v53, 0.0  ;;  %v3998_v35 = vmul.f32 0.2, %v3934_v53  ;;  %v3664_v36 = vmul.f32 %v10418_v22, %v3630_v2  ;;  %v3665_v51 = vmul.f32 %v10418_v22, %v3631_v63 }
 0x53a   : > { %v3666_v46 = vmul.f32 %v10418_v22, %v3632_v44  ;;  %v3668_v43 = vmul.f32 %v10418_v22, %v3634_v13  ;;  %v3669_v19 = vmul.f32 %v10418_v22, %v3635_v20  ;;  %v3670_v12 = vmul.f32 %v10418_v22, %v3636_v50 }
 0x53b   : > { %v4030_v6 = vsel %vm3966_vm14, %v3934_v53, %v3998_v35  ;;  %v3671_v54 = vmul.f32 %v10418_v22, %v3637_v41  ;;  %v3672_v42 = vmul.f32 %v10418_v22, %v3638_v15  ;;  %v3673_v18 = vmul.f32 %v10418_v22, %v3639_v56  ;;  %v3859_v53 = vpop.permute.xlu1 %3858  ;;  %v13168_v35 = vld [vmem:[#allocation93_spill] sm:$0xff] }
 0x53c   : > { %4117 = vst.msk [vmem:[#allocation3 + $0x181] sm:$0xff] %vm585_vm0, %v4030_v6  ;;  %v3667_v6 = vmul.f32 %v10418_v22, %v3633_v7  ;;  %v3674_v2 = vmul.f32 %v10418_v22, %v3640_v10  ;;  %v3675_v63 = vmul.f32 %v10418_v22, %v3641_v0  ;;  %v3676_v44 = vmul.f32 %v10418_v22, %v3642_v58 }
 0x53d   : > { %v3677_v7 = vmul.f32 %v10418_v22, %v3643_v5  ;;  %v3679_v13 = vmul.f32 %v10418_v22, %v3645_v8  ;;  %v3776_v20 = vmul.f32 %v10025_v32, %v3648_v23  ;;  %v3777_v50 = vmul.f32 %v10035_v49, %v3649_v1  ;;  %v13166_v8 = vld [vmem:[#allocation77_spill] sm:$0xff]  ;;  %v13167_v23 = vld [vmem:[#allocation78_spill] sm:$0xff]  ;;  %v13169_v1 = vld [vmem:[#allocation88_spill] sm:$0xff] }
 0x53e   : > { %v3778_v41 = vmul.f32 %v10027_v30, %v3650_v33  ;;  %v3779_v15 = vmul.f32 %v10039_v17, %v3651_v57  ;;  %v3780_v56 = vmul.f32 %v10029_v28, %v3652_v62  ;;  %v3781_v10 = vmul.f32 %v10043_v61, %v3653_v4  ;;  %v13170_v33 = vld [vmem:[#allocation45_spill] sm:$0xff]  ;;  %v13171_v57 = vld [vmem:[#allocation79_spill] sm:$0xff]  ;;  %v13172_v62 = vld [vmem:[#allocation74_spill] sm:$0xff] }
 0x53f   : > { %v3782_v0 = vmul.f32 %v10031_v29, %v3654_v55  ;;  %v3783_v58 = vmul.f32 %v10047_v52, %v3655_v38  ;;  %v3784_v5 = vmul.f32 %v10033_v34, %v3656_v37  ;;  %v3785_v22 = vmul.f32 %v10051_v47, %v3657_v21  ;;  %v13173_v55 = vld [vmem:[#allocation84_spill] sm:$0xff]  ;;  %v13175_v38 = vld [vmem:[#allocation95_spill] sm:$0xff] }
 0x540   : > { %v3786_v32 = vmul.f32 %v13166_v8, %v3658_v48  ;;  %v3787_v49 = vmul.f32 %v13167_v23, %v3659_v40  ;;  %v3788_v30 = vmul.f32 %v13168_v35, %v3660_v39  ;;  %v3789_v17 = vmul.f32 %v13169_v1, %v3661_v27  ;;  %v13174_v4 = vld [vmem:[#allocation76_spill] sm:$0xff]  ;;  %v13177_v48 = vld [vmem:[#allocation85_spill] sm:$0xff]  ;;  %v13178_v8 = vld [vmem:[#allocation87_spill] sm:$0xff]  ;;  %v3863_v23 = vpop.permute.xlu1 %3862 }
 0x541   : > { %v3790_v28 = vmul.f32 %v13170_v33, %v3662_v16  ;;  %v3791_v61 = vmul.f32 %v13171_v57, %v3663_v25  ;;  %v3792_v29 = vmul.f32 %v13172_v62, %v3664_v36  ;;  %v3793_v52 = vmul.f32 %v13173_v55, %v3665_v51  ;;  %v13176_v37 = vld [vmem:[#allocation80_spill] sm:$0xff]  ;;  %v13179_v27 = vld [vmem:[#allocation86_spill] sm:$0xff]  ;;  %v13180_v16 = vld [vmem:[#allocation83_spill] sm:$0xff] }
 0x542   : > { %v3794_v34 = vmul.f32 %v13174_v4, %v3666_v46  ;;  %v3795_v47 = vmul.f32 %v13175_v38, %v3667_v6  ;;  %v3796_v21 = vmul.f32 %v13176_v37, %v3668_v43  ;;  %v3797_v40 = vmul.f32 %v13177_v48, %v3669_v19  ;;  %v13181_v25 = vld [vmem:[#allocation94_spill] sm:$0xff]  ;;  %v13183_v51 = vld [vmem:[#allocation107_spill] sm:$0xff]  ;;  %v13187_v19 = vld [vmem:[#allocation92_spill] sm:$0xff] }
 0x543   : > { %v3798_v39 = vmul.f32 %v13178_v8, %v3670_v12  ;;  %v3799_v35 = vmul.f32 %v13179_v27, %v3671_v54  ;;  %v3800_v1 = vmul.f32 %v13180_v16, %v3672_v42  ;;  %v3801_v33 = vmul.f32 %v13181_v25, %v3673_v18  ;;  %v13182_v36 = vld [vmem:[#allocation90_spill] sm:$0xff]  ;;  %v13188_v12 = vld [vmem:[#allocation104_spill] sm:$0xff]  ;;  %v13189_v54 = vld [vmem:[#allocation97_spill] sm:$0xff] }
 0x544   : > { %v3802_v57 = vmul.f32 %v13182_v36, %v3674_v2  ;;  %v3803_v62 = vmul.f32 %v13183_v51, %v3675_v63  ;;  %v13184_v46 = vld [vmem:[#allocation82_spill] sm:$0xff]  ;;  %v10538_v37 = vadd.f32 %v13187_v19, %v3776_v20  ;;  %v10541_v48 = vadd.f32 %v13188_v12, %v3777_v50  ;;  %v13190_v18 = vld [vmem:[#allocation96_spill] sm:$0xff]  ;;  %v13191_v2 = vld [vmem:[#allocation89_spill] sm:$0xff] }
 0x545   : > { %v3804_v55 = vmul.f32 %v13184_v46, %v3676_v44  ;;  %v13185_v6 = vld [vmem:[#allocation98_spill] sm:$0xff]  ;;  %v10544_v42 = vadd.f32 %v13189_v54, %v3778_v41  ;;  %v10547_v8 = vadd.f32 %v13190_v18, %v3779_v15  ;;  %v10550_v63 = vadd.f32 %v13191_v2, %v3780_v56  ;;  %v13194_v20 = vld [vmem:[#allocation108_spill] sm:$0xff]  ;;  %v13195_v50 = vld [vmem:[#allocation91_spill] sm:$0xff] }
 0x546   : > { %v3805_v4 = vmul.f32 %v13185_v6, %v3677_v7  ;;  %v13186_v43 = vld [vmem:[#allocation102_spill] sm:$0xff]  ;;  %v13193_v7 = vld [vmem:[#allocation99_spill] sm:$0xff]  ;;  %v10559_v16 = vadd.f32 %v13194_v20, %v3783_v58  ;;  %v10562_v25 = vadd.f32 %v13195_v50, %v3784_v5  ;;  %v10565_v41 = vadd.f32 %v10375_v14, %v3785_v22  ;;  %v13198_v58 = vld [vmem:[#allocation101_spill] sm:$0xff]  ;;  %v3867_v14 = vpop.permute.xlu1 %3866 }
 0x547   : > { %v3807_v38 = vmul.f32 %v13186_v43, %v3679_v13  ;;  %v13192_v44 = vld [vmem:[#allocation106_spill] sm:$0xff]  ;;  %v10556_v13 = vadd.f32 %v13193_v7, %v3782_v0  ;;  %v13196_v15 = vld [vmem:[#allocation119_spill] sm:$0xff]  ;;  %v10571_v56 = vadd.f32 %v10379_v24, %v3787_v49  ;;  %v10577_v0 = vadd.f32 %v10385_v3, %v3789_v17  ;;  %v13199_v22 = vld [vmem:[#allocation109_spill] sm:$0xff] }
 0x548   : > { %v10553_v27 = vadd.f32 %v13192_v44, %v3781_v10  ;;  %v10568_v36 = vadd.f32 %v13196_v15, %v3786_v32  ;;  %v13197_v10 = vld [vmem:[#allocation100_spill] sm:$0xff]  ;;  %v10580_v46 = vadd.f32 %v13198_v58, %v3790_v28  ;;  %v10583_v5 = vadd.f32 %v10391_v11, %v3791_v61  ;;  %v13200_v11 = vld [vmem:[#allocation111_spill] sm:$0xff] }
 0x549   : > { %v10574_v51 = vadd.f32 %v13197_v10, %v3788_v30  ;;  %v10586_v6 = vadd.f32 %v13199_v22, %v3792_v29  ;;  %v10589_v32 = vadd.f32 %v10395_v9, %v3793_v52  ;;  %v10592_v24 = vadd.f32 %v10377_v31, %v3794_v34  ;;  %v13201_v9 = vld [vmem:[#allocation113_spill] sm:$0xff]  ;;  %v13202_v29 = vld [vmem:[#allocation115_spill] sm:$0xff] }
 0x54a   : > { %v10595_v49 = vadd.f32 %v10399_v26, %v3795_v47  ;;  %v10598_v3 = vadd.f32 %v10381_v59, %v3796_v21  ;;  %v10601_v30 = vadd.f32 %v10443_v45, %v3797_v40  ;;  %v10604_v17 = vadd.f32 %v13200_v11, %v3798_v39  ;;  %v13203_v59 = vld [vmem:[#allocation112_spill] sm:$0xff] }
 0x54b   : > { %v10607_v28 = vadd.f32 %v10479_v60, %v3799_v35  ;;  %v10610_v61 = vadd.f32 %v13201_v9, %v3800_v1  ;;  %v10612_v31 = vadd.f32 %v3859_v53, %v3801_v33  ;;  %v10615_v26 = vadd.f32 %v13202_v29, %v3802_v57  ;;  %v3871_v60 = vpop.permute.xlu1 %3870 }
 0x54c   : > { %v10617_v52 = vadd.f32 %v3863_v23, %v3803_v62  ;;  %v10620_v34 = vadd.f32 %v13203_v59, %v3804_v55  ;;  %v10622_v45 = vadd.f32 %v3867_v14, %v3805_v4  ;;  %vm3936_vm15 = vcmp.ge.f32.partialorder %v10538_v37, 0.0 }
 0x54d   : > { %vm3937_vm1 = vcmp.ge.f32.partialorder %v10541_v48, 0.0  ;;  %vm3938_vm2 = vcmp.ge.f32.partialorder %v10544_v42, 0.0  ;;  %vm3939_vm3 = vcmp.ge.f32.partialorder %v10547_v8, 0.0  ;;  %vm3940_vm4 = vcmp.ge.f32.partialorder %v10550_v63, 0.0 }
 0x54e   : > { %vm3941_vm5 = vcmp.ge.f32.partialorder %v10553_v27, 0.0  ;;  %vm3942_vm14 = vcmp.ge.f32.partialorder %v10556_v13, 0.0  ;;  %vm3943_vm13 = vcmp.ge.f32.partialorder %v10559_v16, 0.0  ;;  %v3968_v53 = vmul.f32 0.2, %v10538_v37 }
 0x54f   : > { %v3969_v47 = vmul.f32 0.2, %v10541_v48  ;;  %v10640_v21 = vadd.f32 %v3871_v60, %v3807_v38  ;;  %vm3951_vm12 = vcmp.ge.f32.partialorder %v10583_v5, 0.0  ;;  %vm3952_vm11 = vcmp.ge.f32.partialorder %v10586_v6, 0.0 }
 0x550   : > { %v3970_v40 = vmul.f32 0.2, %v10544_v42  ;;  %v3971_v39 = vmul.f32 0.2, %v10547_v8  ;;  %v3972_v23 = vmul.f32 0.2, %v10550_v63  ;;  %v4000_v43 = vsel %vm3936_vm15, %v10538_v37, %v3968_v53 }
 0x551   : > { %vm3957_vm6 = vcmp.ge.f32.partialorder %v10601_v30, 0.0  ;;  %v3973_v35 = vmul.f32 0.2, %v10553_v27  ;;  %v3974_v1 = vmul.f32 0.2, %v10556_v13  ;;  %v4001_v57 = vsel %vm3937_vm1, %v10541_v48, %v3969_v47  ;;  %4087 = vst.msk [vmem:[#allocation3 + $0x19] sm:$0xff] %vm585_vm0, %v4000_v43 }
 0x552   : > { %v3975_v33 = vmul.f32 0.2, %v10559_v16  ;;  %vm3958_vm10 = vcmp.ge.f32.partialorder %v10604_v17, 0.0  ;;  %v3976_v62 = vmul.f32 0.2, %v10562_v25  ;;  %4088 = vst.msk [vmem:[#allocation3 + $0x21] sm:$0xff] %vm585_vm0, %v4001_v57  ;;  %v4002_v48 = vsel %vm3938_vm2, %v10544_v42, %v3970_v40 }
 0x553   : > { %v3977_v55 = vmul.f32 0.2, %v10565_v41  ;;  %v3978_v4 = vmul.f32 0.2, %v10568_v36  ;;  %vm3962_vm1 = vcmp.ge.f32.partialorder %v10615_v26, 0.0  ;;  %vm3963_vm7 = vcmp.ge.f32.partialorder %v10617_v52, 0.0 }
 0x554   : > { %vm3964_vm8 = vcmp.ge.f32.partialorder %v10620_v34, 0.0  ;;  %vm3965_vm9 = vcmp.ge.f32.partialorder %v10622_v45, 0.0  ;;  %v3979_v38 = vmul.f32 0.2, %v10571_v56  ;;  %v3980_v19 = vmul.f32 0.2, %v10574_v51 }
 0x555   : > { %v3981_v12 = vmul.f32 0.2, %v10577_v0  ;;  %vm3967_vm15 = vcmp.ge.f32.partialorder %v10640_v21, 0.0  ;;  %v3982_v37 = vmul.f32 0.2, %v10580_v46  ;;  %v4003_v2 = vsel %vm3939_vm3, %v10547_v8, %v3971_v39  ;;  %4089 = vst.msk [vmem:[#allocation3 + $0x31] sm:$0xff] %vm585_vm0, %v4002_v48 }
 0x556   : > { %v3983_v54 = vmul.f32 0.2, %v10583_v5  ;;  %v3984_v18 = vmul.f32 0.2, %v10586_v6  ;;  %v3985_v44 = vmul.f32 0.2, %v10589_v32  ;;  %v4004_v20 = vsel %vm3940_vm4, %v10550_v63, %v3972_v23 }
 0x557   : > { %v3986_v42 = vmul.f32 0.2, %v10592_v24  ;;  %v3987_v7 = vmul.f32 0.2, %v10595_v49  ;;  %4090 = vst.msk [vmem:[#allocation3 + $0x39] sm:$0xff] %vm585_vm0, %v4003_v2  ;;  %v4005_v10 = vsel %vm3941_vm5, %v10553_v27, %v3973_v35  ;;  %4091 = vst.msk [vmem:[#allocation3 + $0x49] sm:$0xff] %vm585_vm0, %v4004_v20  ;;  %v4006_v22 = vsel %vm3942_vm14, %v10556_v13, %v3974_v1 }
 0x558   : > { %v3988_v50 = vmul.f32 0.2, %v10598_v3  ;;  %v3989_v15 = vmul.f32 0.2, %v10601_v30  ;;  %v3990_v8 = vmul.f32 0.2, %v10604_v17  ;;  %v4007_v29 = vsel %vm3943_vm13, %v10559_v16, %v3975_v33 }
 0x559   : > { %v3991_v58 = vmul.f32 0.2, %v10607_v28  ;;  %v3992_v14 = vmul.f32 0.2, %v10610_v61  ;;  %v3993_v63 = vmul.f32 0.2, %v10612_v31 }
 0x55a   : > { %4092 = vst.msk [vmem:[#allocation3 + $0x51] sm:$0xff] %vm585_vm0, %v4005_v10  ;;  %v3994_v11 = vmul.f32 0.2, %v10615_v26  ;;  %v3995_v9 = vmul.f32 0.2, %v10617_v52  ;;  %4093 = vst.msk [vmem:[#allocation3 + $0x61] sm:$0xff] %vm585_vm0, %v4006_v22 }
 0x55b   : > { %v3996_v27 = vmul.f32 0.2, %v10620_v34  ;;  %v3997_v59 = vmul.f32 0.2, %v10622_v45  ;;  %v3999_v60 = vmul.f32 0.2, %v10640_v21 }
 0x55c   : > { %v10719_v53 = vld [vmem:[#allocation3 + $0x21] sm:$0xff]  ;;  %vm13204_vm2 = vcmp.ge.f32.partialorder %v10562_v25, 0.0  ;;  %vm13205_vm3 = vcmp.ge.f32.partialorder %v10565_v41, 0.0  ;;  %4094 = vst.msk [vmem:[#allocation3 + $0x69] sm:$0xff] %vm585_vm0, %v4007_v29  ;;  %vm13206_vm13 = vcmp.ge.f32.partialorder %v10568_v36, 0.0  ;;  %vm13207_vm4 = vcmp.ge.f32.partialorder %v10571_v56, 0.0 }
 0x55d   : > { %v4008_v13 = vsel %vm13204_vm2, %v10562_v25, %v3976_v62  ;;  %v4009_v47 = vsel %vm13205_vm3, %v10565_v41, %v3977_v55  ;;  %4446 = vrot.lane.b32.xlu1 %v10719_v53, %s7387_s13  ;;  %v4010_v16 = vsel %vm13206_vm13, %v10568_v36, %v3978_v4  ;;  %v4011_v40 = vsel %vm13207_vm4, %v10571_v56, %v3979_v38  ;;  %v10742_v39 = vld [vmem:[#allocation3 + $0x19] sm:$0xff]  ;;  %v10932_v10 = vld [vmem:[#allocation3 + $0x22] sm:$0xff] }
 0x55e   : > { %vm13208_vm5 = vcmp.ge.f32.partialorder %v10574_v51, 0.0  ;;  %vm13209_vm14 = vcmp.ge.f32.partialorder %v10577_v0, 0.0  ;;  %4095 = vst.msk [vmem:[#allocation3 + $0x79] sm:$0xff] %vm585_vm0, %v4008_v13  ;;  %4096 = vst.msk [vmem:[#allocation3 + $0x81] sm:$0xff] %vm585_vm0, %v4009_v47  ;;  %vm13210_vm2 = vcmp.ge.f32.partialorder %v10580_v46, 0.0  ;;  %v4015_v56 = vsel %vm3951_vm12, %v10583_v5, %v3983_v54  ;;  %4444 = vrot.lane.b32.xlu0 %v10742_v39, %s7387_s13 }
 0x55f   : > { %v4012_v25 = vsel %vm13208_vm5, %v10574_v51, %v3980_v19  ;;  %v4013_v41 = vsel %vm13209_vm14, %v10577_v0, %v3981_v12  ;;  %v4014_v36 = vsel %vm13210_vm2, %v10580_v46, %v3982_v37  ;;  %v4016_v51 = vsel %vm3952_vm11, %v10586_v6, %v3984_v18  ;;  %4097 = vst.msk [vmem:[#allocation3 + $0x91] sm:$0xff] %vm585_vm0, %v4010_v16 }
 0x560   : > { %vm13211_vm3 = vcmp.ge.f32.partialorder %v10589_v32, 0.0  ;;  %4098 = vst.msk [vmem:[#allocation3 + $0x99] sm:$0xff] %vm585_vm0, %v4011_v40  ;;  %4099 = vst.msk [vmem:[#allocation3 + $0xa9] sm:$0xff] %vm585_vm0, %v4012_v25  ;;  %vm13212_vm12 = vcmp.ge.f32.partialorder %v10592_v24, 0.0  ;;  %vm13213_vm11 = vcmp.ge.f32.partialorder %v10595_v49, 0.0  ;;  %vm13214_vm13 = vcmp.ge.f32.partialorder %v10598_v3, 0.0 }
 0x561   : > { %v4017_v0 = vsel %vm13211_vm3, %v10589_v32, %v3985_v44  ;;  %4100 = vst.msk [vmem:[#allocation3 + $0xb1] sm:$0xff] %vm585_vm0, %v4013_v41  ;;  %v4018_v46 = vsel %vm13212_vm12, %v10592_v24, %v3986_v42  ;;  %v4019_v5 = vsel %vm13213_vm11, %v10595_v49, %v3987_v7  ;;  %v4020_v6 = vsel %vm13214_vm13, %v10598_v3, %v3988_v50  ;;  %v10840_v35 = vld [vmem:[#allocation3 + $0x61] sm:$0xff]  ;;  %v10948_v22 = vld [vmem:[#allocation3 + $0x52] sm:$0xff] }
 0x562   : > { %v4021_v32 = vsel %vm3957_vm6, %v10601_v30, %v3989_v15  ;;  %4101 = vst.msk [vmem:[#allocation3 + $0xc1] sm:$0xff] %vm585_vm0, %v4014_v36  ;;  %4102 = vst.msk [vmem:[#allocation3 + $0xc9] sm:$0xff] %vm585_vm0, %v4015_v56  ;;  %v4022_v24 = vsel %vm3958_vm10, %v10604_v17, %v3990_v8  ;;  %vm13215_vm4 = vcmp.ge.f32.partialorder %v10607_v28, 0.0  ;;  %vm13216_vm5 = vcmp.ge.f32.partialorder %v10610_v61, 0.0  ;;  %v10796_v17 = vld [vmem:[#allocation3 + $0x39] sm:$0xff] }
 0x563   : > { %4103 = vst.msk [vmem:[#allocation3 + $0xd9] sm:$0xff] %vm585_vm0, %v4016_v51  ;;  %4104 = vst.msk [vmem:[#allocation3 + $0xe1] sm:$0xff] %vm585_vm0, %v4017_v0  ;;  %v4023_v49 = vsel %vm13215_vm4, %v10607_v28, %v3991_v58  ;;  %v4024_v3 = vsel %vm13216_vm5, %v10610_v61, %v3992_v14  ;;  %vm13217_vm6 = vcmp.ge.f32.partialorder %v10612_v31, 0.0  ;;  %v4026_v28 = vsel %vm3962_vm1, %v10615_v26, %v3994_v11  ;;  %v10816_v26 = vld [vmem:[#allocation3 + $0x31] sm:$0xff]  ;;  %v10936_v58 = vld [vmem:[#allocation3 + $0x1a] sm:$0xff] }
 0x564   : > { %v4025_v30 = vsel %vm13217_vm6, %v10612_v31, %v3993_v63  ;;  %4105 = vst.msk [vmem:[#allocation3 + $0xf1] sm:$0xff] %vm585_vm0, %v4018_v46  ;;  %4106 = vst.msk [vmem:[#allocation3 + $0xf9] sm:$0xff] %vm585_vm0, %v4019_v5  ;;  %v4027_v61 = vsel %vm3963_vm7, %v10617_v52, %v3995_v9  ;;  %v4028_v31 = vsel %vm3964_vm8, %v10620_v34, %v3996_v27  ;;  %4450 = vrot.lane.b32.xlu1 %v10796_v17, %s7387_s13  ;;  %v10828_v34 = vld [vmem:[#allocation3 + $0x51] sm:$0xff]  ;;  %v10940_v14 = vld [vmem:[#allocation3 + $0x3a] sm:$0xff]  ;;  %vm13378_vm7 = vcmask 130048  }
 0x565   : > { %4107 = vst.msk [vmem:[#allocation3 + $0x109] sm:$0xff] %vm585_vm0, %v4020_v6  ;;  %4108 = vst.msk [vmem:[#allocation3 + $0x111] sm:$0xff] %vm585_vm0, %v4021_v32  ;;  %v4029_v23 = vsel %vm3965_vm9, %v10622_v45, %v3997_v59  ;;  %v4031_v52 = vsel %vm3967_vm15, %v10640_v21, %v3999_v60  ;;  %4448 = vrot.lane.b32.xlu0 %v10816_v26, %s7387_s13  ;;  %v10832_v45 = vld [vmem:[#allocation3 + $0x49] sm:$0xff]  ;;  %v10844_v1 = vld [vmem:[#allocation3 + $0x81] sm:$0xff]  ;;  %v11022_v6 = vpop.permute.xlu1 %4442  ;;  %vm13379_vm8 = vcmask 195584   ;;  %vm13381_vm9 = vcmask 261120  }
 0x566   : > { %4109 = vst.msk [vmem:[#allocation3 + $0x121] sm:$0xff] %vm585_vm0, %v4022_v24  ;;  %4110 = vst.msk [vmem:[#allocation3 + $0x129] sm:$0xff] %vm585_vm0, %v4023_v49  ;;  %v10836_v21 = vld [vmem:[#allocation3 + $0x69] sm:$0xff]  ;;  %v10848_v33 = vld [vmem:[#allocation3 + $0x79] sm:$0xff]  ;;  %v11028_v24 = vpop.permute.xlu0 %4440  ;;  %vm13382_vm10 = vcmask 326656   ;;  %vm13383_vm1 = vcmask 392192  }
 0x567   : > { %4111 = vst.msk [vmem:[#allocation3 + $0x139] sm:$0xff] %vm585_vm0, %v4024_v3  ;;  %4112 = vst.msk [vmem:[#allocation3 + $0x141] sm:$0xff] %vm585_vm0, %v4025_v30  ;;  %v10852_v57 = vld [vmem:[#allocation3 + $0x99] sm:$0xff]  ;;  %v10856_v62 = vld [vmem:[#allocation3 + $0x91] sm:$0xff]  ;;  %vm13386_vm14 = vcmask 457728   ;;  %vm13388_vm3 = vcmask 523264  }
 0x568   : > { %4113 = vst.msk [vmem:[#allocation3 + $0x151] sm:$0xff] %vm585_vm0, %v4026_v28  ;;  %4114 = vst.msk [vmem:[#allocation3 + $0x159] sm:$0xff] %vm585_vm0, %v4027_v61  ;;  %4454 = vrot.lane.b32.xlu1 %v10828_v34, %s7387_s13  ;;  %v10860_v55 = vld [vmem:[#allocation3 + $0xb1] sm:$0xff]  ;;  %v10864_v4 = vld [vmem:[#allocation3 + $0xa9] sm:$0xff]  ;;  %vm13390_vm11 = vcmask 588800  }
 0x569   : > { %4115 = vst.msk [vmem:[#allocation3 + $0x169] sm:$0xff] %vm585_vm0, %v4028_v31  ;;  %4116 = vst.msk [vmem:[#allocation3 + $0x171] sm:$0xff] %vm585_vm0, %v4029_v23  ;;  %4452 = vrot.lane.b32.xlu0 %v10832_v45, %s7387_s13  ;;  %v10868_v43 = vld [vmem:[#allocation3 + $0xc9] sm:$0xff]  ;;  %v10872_v38 = vld [vmem:[#allocation3 + $0xc1] sm:$0xff]  ;;  %v11040_v30 = vpop.permute.xlu1 %4570 }
 0x56a   : > { %4118 = vst.msk [vmem:[#allocation3 + $0x189] sm:$0xff] %vm585_vm0, %v4031_v52  ;;  %v10876_v19 = vld [vmem:[#allocation3 + $0xe1] sm:$0xff]  ;;  %v10880_v12 = vld [vmem:[#allocation3 + $0xd9] sm:$0xff]  ;;  %v10952_v11 = vld [vmem:[#allocation3 + $0x4a] sm:$0xff]  ;;  %v11042_v28 = vpop.permute.xlu0 %4568 }
 0x56b   : > { %v10884_v48 = vld [vmem:[#allocation3 + $0xf9] sm:$0xff]  ;;  %v10888_v37 = vld [vmem:[#allocation3 + $0xf1] sm:$0xff]  ;;  %v10960_v27 = vld [vmem:[#allocation3 + $0x62] sm:$0xff]  ;;  %13218 = vst [vmem:[#allocation116_spill] sm:$0xff] %v11022_v6 }
 0x56c   : > { %4458 = vrot.lane.b32.xlu1 %v10836_v21, %s7387_s13  ;;  %v10892_v54 = vld [vmem:[#allocation3 + $0x111] sm:$0xff]  ;;  %v10896_v18 = vld [vmem:[#allocation3 + $0x109] sm:$0xff]  ;;  %v10968_v59 = vld [vmem:[#allocation3 + $0x7a] sm:$0xff]  ;;  %13219 = vst [vmem:[#allocation103_spill] sm:$0xff] %v11028_v24 }
 0x56d   : > { %4456 = vrot.lane.b32.xlu0 %v10840_v35, %s7387_s13  ;;  %v10900_v2 = vld [vmem:[#allocation3 + $0x129] sm:$0xff]  ;;  %v10904_v44 = vld [vmem:[#allocation3 + $0x121] sm:$0xff]  ;;  %v10944_v63 = vld [vmem:[#allocation3 + $0x32] sm:$0xff]  ;;  %13222 = vst [vmem:[#allocation114_spill] sm:$0xff] %v11040_v30 }
 0x56e   : > { %v10908_v42 = vld [vmem:[#allocation3 + $0x141] sm:$0xff]  ;;  %v10912_v7 = vld [vmem:[#allocation3 + $0x139] sm:$0xff]  ;;  %v10956_v9 = vld [vmem:[#allocation3 + $0x6a] sm:$0xff]  ;;  %13223 = vst [vmem:[#allocation118_spill] sm:$0xff] %v11042_v28 }
 0x56f   : > { %v10916_v20 = vld [vmem:[#allocation3 + $0x159] sm:$0xff]  ;;  %v10920_v50 = vld [vmem:[#allocation3 + $0x151] sm:$0xff]  ;;  %v10964_v29 = vld [vmem:[#allocation3 + $0x82] sm:$0xff] }
 0x570   : > { %4462 = vrot.lane.b32.xlu1 %v10844_v1, %s7387_s13  ;;  %v10924_v15 = vld [vmem:[#allocation3 + $0x171] sm:$0xff]  ;;  %v10928_v8 = vld [vmem:[#allocation3 + $0x169] sm:$0xff]  ;;  %v10972_v60 = vld [vmem:[#allocation3 + $0x9a] sm:$0xff] }
 0x571   : > { %4460 = vrot.lane.b32.xlu0 %v10848_v33, %s7387_s13  ;;  %v10976_v13 = vld [vmem:[#allocation3 + $0x92] sm:$0xff]  ;;  %v10984_v16 = vld [vmem:[#allocation3 + $0xaa] sm:$0xff]  ;;  %v10992_v25 = vld [vmem:[#allocation3 + $0xc2] sm:$0xff] }
 0x572   : > { %v10980_v47 = vld [vmem:[#allocation3 + $0xb2] sm:$0xff]  ;;  %v10988_v40 = vld [vmem:[#allocation3 + $0xca] sm:$0xff]  ;;  %v10996_v41 = vld [vmem:[#allocation3 + $0xe2] sm:$0xff] }
 0x573   : > { %v11000_v36 = vld [vmem:[#allocation3 + $0xda] sm:$0xff]  ;;  %v11008_v51 = vld [vmem:[#allocation3 + $0xf2] sm:$0xff]  ;;  %v11016_v46 = vld [vmem:[#allocation3 + $0x10a] sm:$0xff] }
 0x574   : > { %4466 = vrot.lane.b32.xlu1 %v10852_v57, %s7387_s13  ;;  %v11004_v56 = vld [vmem:[#allocation3 + $0xfa] sm:$0xff]  ;;  %v11012_v0 = vld [vmem:[#allocation3 + $0x112] sm:$0xff]  ;;  %v11020_v5 = vld [vmem:[#allocation3 + $0x12a] sm:$0xff] }
 0x575   : > { %4464 = vrot.lane.b32.xlu0 %v10856_v62, %s7387_s13  ;;  %v11026_v32 = vld [vmem:[#allocation3 + $0x122] sm:$0xff]  ;;  %v11036_v3 = vld [vmem:[#allocation3 + $0x13a] sm:$0xff]  ;;  %v11048_v31 = vld [vmem:[#allocation3 + $0x152] sm:$0xff] }
 0x576   : > { %v11032_v49 = vld [vmem:[#allocation3 + $0x142] sm:$0xff]  ;;  %13221 = vst [vmem:[#allocation110_spill] sm:$0xff] %v11036_v3  ;;  %v11044_v61 = vld [vmem:[#allocation3 + $0x15a] sm:$0xff]  ;;  %13225 = vst [vmem:[#allocation120_spill] sm:$0xff] %v11048_v31 }
 0x577   : > { %13220 = vst [vmem:[#allocation131_spill] sm:$0xff] %v11032_v49  ;;  %13224 = vst [vmem:[#allocation105_spill] sm:$0xff] %v11044_v61  ;;  %v4214_v6 = vld [vmem:[#allocation3 + $0x172] sm:$0xff]  ;;  %v11057_v30 = vld [vmem:[#allocation3 + $0x16a] sm:$0xff] }
 0x578   : > { %4470 = vrot.lane.b32.xlu1 %v10860_v55, %s7387_s13  ;;  %13228 = vst [vmem:[#allocation123_spill] sm:$0xff] %v11057_v30  ;;  %v11063_v24 = vld [vmem:[#allocation3 + $0x20] sm:$0xff]  ;;  %vm13385_vm15 = vmmov %vm13378_vm7 }
 0x579   : > { %4468 = vrot.lane.b32.xlu0 %v10864_v4, %s7387_s13  ;;  %13230 = vst [vmem:[#allocation122_spill] sm:$0xff] %v11063_v24  ;;  %vm13387_vm2 = vmmov %vm13379_vm8 }
 0x57a   : > { %vm13389_vm12 = vmmov %vm13381_vm9 }
 0x57b   : > { %vm13391_vm13 = vmmov %vm13382_vm10 }
 0x57c   : > { %4474 = vrot.lane.b32.xlu1 %v10868_v43, %s7387_s13  ;;  %vm13392_vm4 = vmmov %vm13383_vm1 }
 0x57d   : > { %4472 = vrot.lane.b32.xlu0 %v10872_v38, %s7387_s13  ;;  %vm13393_vm5 = vmmov %vm13386_vm14 }
 0x57e   : > { %vm13396_vm6 = vmmov %vm13388_vm3 }
 0x580   : > { %4478 = vrot.lane.b32.xlu1 %v10876_v19, %s7387_s13 }
 0x581   : > { %4476 = vrot.lane.b32.xlu0 %v10880_v12, %s7387_s13 }
 0x584   : > { %4482 = vrot.lane.b32.xlu1 %v10884_v48, %s7387_s13 }
 0x585   : > { %4480 = vrot.lane.b32.xlu0 %v10888_v37, %s7387_s13 }
 0x588   : > { %4486 = vrot.lane.b32.xlu1 %v10892_v54, %s7387_s13 }
 0x589   : > { %4484 = vrot.lane.b32.xlu0 %v10896_v18, %s7387_s13 }
 0x58c   : > { %4490 = vrot.lane.b32.xlu1 %v10900_v2, %s7387_s13 }
 0x58d   : > { %4488 = vrot.lane.b32.xlu0 %v10904_v44, %s7387_s13 }
 0x590   : > { %4494 = vrot.lane.b32.xlu1 %v10908_v42, %s7387_s13 }
 0x591   : > { %4492 = vrot.lane.b32.xlu0 %v10912_v7, %s7387_s13 }
 0x594   : > { %4498 = vrot.lane.b32.xlu1 %v10916_v20, %s7387_s13 }
 0x595   : > { %4496 = vrot.lane.b32.xlu0 %v10920_v50, %s7387_s13 }
 0x598   : > { %4502 = vrot.lane.b32.xlu1 %v10924_v15, %s7387_s13 }
 0x599   : > { %4500 = vrot.lane.b32.xlu0 %v10928_v8, %s7387_s13 }
 0x59c   : > { %4574 = vrot.lane.b32.xlu1 %v10932_v10, %s7388_s14 }
 0x59d   : > { %4572 = vrot.lane.b32.xlu0 %v10936_v58, %s7388_s14 }
 0x5a0   : > { %4578 = vrot.lane.b32.xlu1 %v10940_v14, %s7388_s14 }
 0x5a1   : > { %4576 = vrot.lane.b32.xlu0 %v10944_v63, %s7388_s14 }
 0x5a4   : > { %4582 = vrot.lane.b32.xlu1 %v10948_v22, %s7388_s14 }
 0x5a5   : > { %4580 = vrot.lane.b32.xlu0 %v10952_v11, %s7388_s14 }
 0x5a8   : > { %4586 = vrot.lane.b32.xlu1 %v10956_v9, %s7388_s14 }
 0x5a9   : > { %4584 = vrot.lane.b32.xlu0 %v10960_v27, %s7388_s14 }
 0x5ac   : > { %4590 = vrot.lane.b32.xlu1 %v10964_v29, %s7388_s14 }
 0x5ad   : > { %4588 = vrot.lane.b32.xlu0 %v10968_v59, %s7388_s14 }
 0x5b0   : > { %4594 = vrot.lane.b32.xlu1 %v10972_v60, %s7388_s14 }
 0x5b1   : > { %4592 = vrot.lane.b32.xlu0 %v10976_v13, %s7388_s14 }
 0x5b4   : > { %4598 = vrot.lane.b32.xlu1 %v10980_v47, %s7388_s14 }
 0x5b5   : > { %4596 = vrot.lane.b32.xlu0 %v10984_v16, %s7388_s14 }
 0x5b8   : > { %4602 = vrot.lane.b32.xlu1 %v10988_v40, %s7388_s14 }
 0x5b9   : > { %4600 = vrot.lane.b32.xlu0 %v10992_v25, %s7388_s14 }
 0x5bc   : > { %4606 = vrot.lane.b32.xlu1 %v10996_v41, %s7388_s14 }
 0x5bd   : > { %4604 = vrot.lane.b32.xlu0 %v11000_v36, %s7388_s14 }
 0x5c0   : > { %4610 = vrot.lane.b32.xlu1 %v11004_v56, %s7388_s14 }
 0x5c1   : > { %4608 = vrot.lane.b32.xlu0 %v11008_v51, %s7388_s14 }
 0x5c4   : > { %4614 = vrot.lane.b32.xlu1 %v11012_v0, %s7388_s14 }
 0x5c5   : > { %4612 = vrot.lane.b32.xlu0 %v11016_v46, %s7388_s14 }
 0x5c8   : > { %4618 = vrot.lane.b32.xlu1 %v11020_v5, %s7388_s14 }
 0x5c9   : > { %4616 = vrot.lane.b32.xlu0 %v11026_v32, %s7388_s14 }
 0x5cc   : > { %4622 = vrot.lane.b32.xlu1 %v11032_v49, %s7388_s14  ;;  %v4137_v49 = vld [vmem:[#allocation3 + $0xd8] sm:$0xff] }
 0x5cd   : > { %4620 = vrot.lane.b32.xlu0 %v11036_v3, %s7388_s14  ;;  %v11067_v3 = vld [vmem:[#allocation3 + $0x18] sm:$0xff] }
 0x5ce   : > { %13232 = vst [vmem:[#allocation125_spill] sm:$0xff] %v11067_v3 }
 0x5cf   : > { %v11052_v23 = vpop.permute.xlu1 %4446 }
 0x5d0   : > { %4626 = vrot.lane.b32.xlu1 %v11044_v61, %s7388_s14  ;;  %13226 = vst [vmem:[#allocation121_spill] sm:$0xff] %v11052_v23  ;;  %v11054_v52 = vpop.permute.xlu0 %4444  ;;  %v11075_v23 = vld [vmem:[#allocation3 + $0x38] sm:$0xff] }
 0x5d1   : > { %4624 = vrot.lane.b32.xlu0 %v11048_v31, %s7388_s14  ;;  %13227 = vst [vmem:[#allocation117_spill] sm:$0xff] %v11054_v52  ;;  %13234 = vst [vmem:[#allocation126_spill] sm:$0xff] %v11075_v23 }
 0x5d4   : > { %4630 = vrot.lane.b32.xlu1 %v4214_v6, %s7388_s14 }
 0x5d5   : > { %4628 = vrot.lane.b32.xlu0 %v11057_v30, %s7388_s14  ;;  %v11079_v30 = vld [vmem:[#allocation3 + $0x30] sm:$0xff] }
 0x5d6   : > { %v11061_v28 = vpop.permute.xlu1 %4450  ;;  %13236 = vst [vmem:[#allocation143_spill] sm:$0xff] %v11079_v30 }
 0x5d7   : > { %13229 = vst [vmem:[#allocation127_spill] sm:$0xff] %v11061_v28  ;;  %v11065_v61 = vpop.permute.xlu0 %4448 }
 0x5d8   : > { %13231 = vst [vmem:[#allocation124_spill] sm:$0xff] %v11065_v61  ;;  %4698 = vrot.lane.b32.xlu1 %v11063_v24, %s7392_s21  ;;  %v11087_v61 = vld [vmem:[#allocation3 + $0x50] sm:$0xff] }
 0x5d9   : > { %4696 = vrot.lane.b32.xlu0 %v11067_v3, %s7392_s21  ;;  %13238 = vst [vmem:[#allocation129_spill] sm:$0xff] %v11087_v61  ;;  %v11091_v3 = vld [vmem:[#allocation3 + $0x48] sm:$0xff] }
 0x5da   : > { %v11073_v6 = vpop.permute.xlu1 %4454  ;;  %13240 = vst [vmem:[#allocation135_spill] sm:$0xff] %v11091_v3 }
 0x5db   : > { %13233 = vst [vmem:[#allocation128_spill] sm:$0xff] %v11073_v6  ;;  %v11077_v52 = vpop.permute.xlu0 %4452 }
 0x5dc   : > { %13235 = vst [vmem:[#allocation130_spill] sm:$0xff] %v11077_v52  ;;  %4702 = vrot.lane.b32.xlu1 %v11075_v23, %s7392_s21  ;;  %v11099_v52 = vld [vmem:[#allocation3 + $0x68] sm:$0xff] }
 0x5dd   : > { %4700 = vrot.lane.b32.xlu0 %v11079_v30, %s7392_s21  ;;  %13242 = vst [vmem:[#allocation137_spill] sm:$0xff] %v11099_v52  ;;  %v11103_v30 = vld [vmem:[#allocation3 + $0x60] sm:$0xff] }
 0x5de   : > { %v11085_v28 = vpop.permute.xlu1 %4458  ;;  %13244 = vst [vmem:[#allocation139_spill] sm:$0xff] %v11103_v30 }
 0x5df   : > { %13237 = vst [vmem:[#allocation132_spill] sm:$0xff] %v11085_v28  ;;  %v11089_v24 = vpop.permute.xlu0 %4456 }
 0x5e0   : > { %13239 = vst [vmem:[#allocation133_spill] sm:$0xff] %v11089_v24  ;;  %4706 = vrot.lane.b32.xlu1 %v11087_v61, %s7392_s21  ;;  %v11111_v24 = vld [vmem:[#allocation3 + $0x80] sm:$0xff] }
 0x5e1   : > { %4704 = vrot.lane.b32.xlu0 %v11091_v3, %s7392_s21  ;;  %13246 = vst [vmem:[#allocation142_spill] sm:$0xff] %v11111_v24  ;;  %v11115_v3 = vld [vmem:[#allocation3 + $0x78] sm:$0xff] }
 0x5e2   : > { %v11097_v6 = vpop.permute.xlu1 %4462  ;;  %13248 = vst [vmem:[#allocation138_spill] sm:$0xff] %v11115_v3 }
 0x5e3   : > { %13241 = vst [vmem:[#allocation134_spill] sm:$0xff] %v11097_v6  ;;  %v11101_v23 = vpop.permute.xlu0 %4460 }
 0x5e4   : > { %13243 = vst [vmem:[#allocation140_spill] sm:$0xff] %v11101_v23  ;;  %4710 = vrot.lane.b32.xlu1 %v11099_v52, %s7392_s21  ;;  %v11123_v23 = vld [vmem:[#allocation3 + $0x98] sm:$0xff] }
 0x5e5   : > { %4708 = vrot.lane.b32.xlu0 %v11103_v30, %s7392_s21  ;;  %13250 = vst [vmem:[#allocation145_spill] sm:$0xff] %v11123_v23  ;;  %v11127_v30 = vld [vmem:[#allocation3 + $0x90] sm:$0xff] }
 0x5e6   : > { %v11109_v28 = vpop.permute.xlu1 %4466  ;;  %13252 = vst [vmem:[#allocation146_spill] sm:$0xff] %v11127_v30 }
 0x5e7   : > { %13245 = vst [vmem:[#allocation136_spill] sm:$0xff] %v11109_v28  ;;  %v11113_v61 = vpop.permute.xlu0 %4464 }
 0x5e8   : > { %13247 = vst [vmem:[#allocation155_spill] sm:$0xff] %v11113_v61  ;;  %4714 = vrot.lane.b32.xlu1 %v11111_v24, %s7392_s21  ;;  %v11135_v61 = vld [vmem:[#allocation3 + $0xb0] sm:$0xff] }
 0x5e9   : > { %4712 = vrot.lane.b32.xlu0 %v11115_v3, %s7392_s21  ;;  %13254 = vst [vmem:[#allocation148_spill] sm:$0xff] %v11135_v61  ;;  %v11139_v3 = vld [vmem:[#allocation3 + $0xa8] sm:$0xff] }
 0x5ea   : > { %v11121_v6 = vpop.permute.xlu1 %4470  ;;  %13256 = vst [vmem:[#allocation149_spill] sm:$0xff] %v11139_v3 }
 0x5eb   : > { %13249 = vst [vmem:[#allocation144_spill] sm:$0xff] %v11121_v6  ;;  %v11125_v52 = vpop.permute.xlu0 %4468 }
 0x5ec   : > { %13251 = vst [vmem:[#allocation141_spill] sm:$0xff] %v11125_v52  ;;  %4718 = vrot.lane.b32.xlu1 %v11123_v23, %s7392_s21  ;;  %v4136_v52 = vld [vmem:[#allocation3 + $0xc8] sm:$0xff] }
 0x5ed   : > { %4716 = vrot.lane.b32.xlu0 %v11127_v30, %s7392_s21  ;;  %v4135_v30 = vld [vmem:[#allocation3 + $0xc0] sm:$0xff] }
 0x5ee   : > { %v11133_v28 = vpop.permute.xlu1 %4474 }
 0x5ef   : > { %13253 = vst [vmem:[#allocation147_spill] sm:$0xff] %v11133_v28  ;;  %v11137_v24 = vpop.permute.xlu0 %4472 }
 0x5f0   : > { %13255 = vst [vmem:[#allocation151_spill] sm:$0xff] %v11137_v24  ;;  %4722 = vrot.lane.b32.xlu1 %v11135_v61, %s7392_s21  ;;  %v4138_v24 = vld [vmem:[#allocation3 + $0xe0] sm:$0xff] }
 0x5f1   : > { %4720 = vrot.lane.b32.xlu0 %v11139_v3, %s7392_s21 }
 0x5f2   : > { %v11145_v6 = vpop.permute.xlu1 %4478 }
 0x5f3   : > { %13257 = vst [vmem:[#allocation150_spill] sm:$0xff] %v11145_v6  ;;  %v11147_v23 = vpop.permute.xlu0 %4476  ;;  %v4140_v6 = vld [vmem:[#allocation3 + $0xf8] sm:$0xff] }
 0x5f4   : > { %13258 = vst [vmem:[#allocation152_spill] sm:$0xff] %v11147_v23  ;;  %4726 = vrot.lane.b32.xlu1 %v4136_v52, %s7392_s21  ;;  %v4139_v23 = vld [vmem:[#allocation3 + $0xf0] sm:$0xff] }
 0x5f5   : > { %4724 = vrot.lane.b32.xlu0 %v4135_v30, %s7392_s21  ;;  %v4142_v52 = vld [vmem:[#allocation3 + $0x110] sm:$0xff] }
 0x5f6   : > { %v11151_v28 = vpop.permute.xlu1 %4482 }
 0x5f7   : > { %13259 = vst [vmem:[#allocation154_spill] sm:$0xff] %v11151_v28  ;;  %v11153_v31 = vpop.permute.xlu0 %4480 }
 0x5f8   : > { %13260 = vst [vmem:[#allocation167_spill] sm:$0xff] %v11153_v31  ;;  %4730 = vrot.lane.b32.xlu1 %v4138_v24, %s7392_s21  ;;  %v4141_v31 = vld [vmem:[#allocation3 + $0x108] sm:$0xff] }
 0x5f9   : > { %4728 = vrot.lane.b32.xlu0 %v4137_v49, %s7392_s21  ;;  %v4144_v49 = vld [vmem:[#allocation3 + $0x128] sm:$0xff] }
 0x5fa   : > { %v11157_v61 = vpop.permute.xlu1 %4486 }
 0x5fb   : > { %13261 = vst [vmem:[#allocation156_spill] sm:$0xff] %v11157_v61  ;;  %v11159_v3 = vpop.permute.xlu0 %4484 }
 0x5fc   : > { %13262 = vst [vmem:[#allocation153_spill] sm:$0xff] %v11159_v3  ;;  %4734 = vrot.lane.b32.xlu1 %v4140_v6, %s7392_s21  ;;  %v4143_v3 = vld [vmem:[#allocation3 + $0x120] sm:$0xff] }
 0x5fd   : > { %4732 = vrot.lane.b32.xlu0 %v4139_v23, %s7392_s21  ;;  %v4146_v6 = vld [vmem:[#allocation3 + $0x140] sm:$0xff] }
 0x5fe   : > { %v11163_v30 = vpop.permute.xlu1 %4490 }
 0x5ff   : > { %13263 = vst [vmem:[#allocation157_spill] sm:$0xff] %v11163_v30  ;;  %v11165_v28 = vpop.permute.xlu0 %4488 }
 0x600   : > { %13264 = vst [vmem:[#allocation158_spill] sm:$0xff] %v11165_v28  ;;  %4738 = vrot.lane.b32.xlu1 %v4142_v52, %s7392_s21  ;;  %v4145_v28 = vld [vmem:[#allocation3 + $0x138] sm:$0xff] }
 0x601   : > { %4736 = vrot.lane.b32.xlu0 %v4141_v31, %s7392_s21  ;;  %v4148_v52 = vld [vmem:[#allocation3 + $0x158] sm:$0xff] }
 0x602   : > { %v11169_v24 = vpop.permute.xlu1 %4494 }
 0x603   : > { %13265 = vst [vmem:[#allocation159_spill] sm:$0xff] %v11169_v24  ;;  %v11171_v61 = vpop.permute.xlu0 %4492 }
 0x604   : > { %13266 = vst [vmem:[#allocation160_spill] sm:$0xff] %v11171_v61  ;;  %4742 = vrot.lane.b32.xlu1 %v4144_v49, %s7392_s21  ;;  %v4147_v61 = vld [vmem:[#allocation3 + $0x150] sm:$0xff] }
 0x605   : > { %4740 = vrot.lane.b32.xlu0 %v4143_v3, %s7392_s21  ;;  %v4150_v49 = vld [vmem:[#allocation3 + $0x170] sm:$0xff] }
 0x606   : > { %v11175_v23 = vpop.permute.xlu1 %4498 }
 0x607   : > { %13267 = vst [vmem:[#allocation161_spill] sm:$0xff] %v11175_v23  ;;  %v11177_v30 = vpop.permute.xlu0 %4496 }
 0x608   : > { %13268 = vst [vmem:[#allocation164_spill] sm:$0xff] %v11177_v30  ;;  %4746 = vrot.lane.b32.xlu1 %v4146_v6, %s7392_s21  ;;  %v4149_v30 = vld [vmem:[#allocation3 + $0x168] sm:$0xff] }
 0x609   : > { %4744 = vrot.lane.b32.xlu0 %v4145_v28, %s7392_s21 }
 0x60a   : > { %v11181_v31 = vpop.permute.xlu1 %4502 }
 0x60b   : > { %13269 = vst [vmem:[#allocation163_spill] sm:$0xff] %v11181_v31  ;;  %v11183_v24 = vpop.permute.xlu0 %4500  ;;  %v4246_v31 = vld [vmem:[#allocation3 + $0x188] sm:$0xff] }
 0x60c   : > { %13270 = vst [vmem:[#allocation166_spill] sm:$0xff] %v11183_v24  ;;  %4750 = vrot.lane.b32.xlu1 %v4148_v52, %s7392_s21  ;;  %v4245_v52 = vld [vmem:[#allocation3 + $0x180] sm:$0xff] }
 0x60d   : > { %4748 = vrot.lane.b32.xlu0 %v4147_v61, %s7392_s21 }
 0x60e   : > { %v11187_v3 = vpop.permute.xlu1 %4574 }
 0x60f   : > { %v11189_v23 = vpop.permute.xlu0 %4572 }
 0x610   : > { %4754 = vrot.lane.b32.xlu1 %v4150_v49, %s7392_s21 }
 0x611   : > { %4752 = vrot.lane.b32.xlu0 %v4149_v30, %s7392_s21 }
 0x612   : > { %v11193_v28 = vpop.permute.xlu1 %4578 }
 0x613   : > { %v11195_v6 = vpop.permute.xlu0 %4576 }
 0x614   : > { %4758 = vrot.lane.b32.xlu1 %v4246_v31, %s7392_s21 }
 0x615   : > { %4756 = vrot.lane.b32.xlu0 %v4245_v52, %s7392_s21 }
 0x616   : > { %v11199_v61 = vpop.permute.xlu1 %4582 }
 0x617   : > { %v11201_v24 = vpop.permute.xlu0 %4580 }
 0x618   : > { %4826 = vrot.lane.b32.xlu1 %v10719_v53, %s7391_s20 }
 0x619   : > { %4824 = vrot.lane.b32.xlu0 %v10742_v39, %s7391_s20 }
 0x61a   : > { %v11207_v30 = vpop.permute.xlu1 %4586 }
 0x61b   : > { %v11209_v49 = vpop.permute.xlu0 %4584 }
 0x61c   : > { %4830 = vrot.lane.b32.xlu1 %v10796_v17, %s7391_s20 }
 0x61d   : > { %4828 = vrot.lane.b32.xlu0 %v10816_v26, %s7391_s20 }
 0x61e   : > { %v11215_v31 = vpop.permute.xlu1 %4590 }
 0x61f   : > { %v11217_v52 = vpop.permute.xlu0 %4588 }
 0x620   : > { %4834 = vrot.lane.b32.xlu1 %v10828_v34, %s7391_s20 }
 0x621   : > { %4832 = vrot.lane.b32.xlu0 %v10832_v45, %s7391_s20 }
 0x622   : > { %v11223_v53 = vpop.permute.xlu1 %4594 }
 0x623   : > { %13271 = vst [vmem:[#allocation179_spill] sm:$0xff] %v11223_v53  ;;  %v11225_v39 = vpop.permute.xlu0 %4592  ;;  %v13362_v53 = vld [vmem:[#allocation13_spill] sm:$0xff] }
 0x624   : > { %13272 = vst [vmem:[#allocation162_spill] sm:$0xff] %v11225_v39  ;;  %4838 = vrot.lane.b32.xlu1 %v10836_v21, %s7391_s20  ;;  %v4120_v39 = vld [vmem:[#allocation3 + $0x8] sm:$0xff] }
 0x625   : > { %4836 = vrot.lane.b32.xlu0 %v10840_v35, %s7391_s20 }
 0x626   : > { %v11231_v17 = vpop.permute.xlu1 %4598 }
 0x627   : > { %13273 = vst [vmem:[#allocation168_spill] sm:$0xff] %v11231_v17  ;;  %v11233_v26 = vpop.permute.xlu0 %4596  ;;  %v13353_v17 = vld [vmem:[#allocation148_spill] sm:$0xff] }
 0x628   : > { %13274 = vst [vmem:[#allocation169_spill] sm:$0xff] %v11233_v26  ;;  %4842 = vrot.lane.b32.xlu1 %v10844_v1, %s7391_s20 }
 0x629   : > { %4840 = vrot.lane.b32.xlu0 %v10848_v33, %s7391_s20 }
 0x62a   : > { %v11239_v34 = vpop.permute.xlu1 %4602 }
 0x62b   : > { %13275 = vst [vmem:[#allocation170_spill] sm:$0xff] %v11239_v34  ;;  %v11241_v45 = vpop.permute.xlu0 %4600 }
 0x62c   : > { %13276 = vst [vmem:[#allocation171_spill] sm:$0xff] %v11241_v45  ;;  %4846 = vrot.lane.b32.xlu1 %v10852_v57, %s7391_s20  ;;  %v13351_v45 = vld [vmem:[#allocation10_spill] sm:$0xff] }
 0x62d   : > { %4844 = vrot.lane.b32.xlu0 %v10856_v62, %s7391_s20 }
 0x62e   : > { %v11247_v21 = vpop.permute.xlu1 %4606 }
 0x62f   : > { %13277 = vst [vmem:[#allocation165_spill] sm:$0xff] %v11247_v21  ;;  %v11249_v35 = vpop.permute.xlu0 %4604 }
 0x630   : > { %13278 = vst [vmem:[#allocation172_spill] sm:$0xff] %v11249_v35  ;;  %4850 = vrot.lane.b32.xlu1 %v10860_v55, %s7391_s20 }
 0x631   : > { %4848 = vrot.lane.b32.xlu0 %v10864_v4, %s7391_s20 }
 0x632   : > { %v11255_v1 = vpop.permute.xlu1 %4610 }
 0x633   : > { %13279 = vst [vmem:[#allocation176_spill] sm:$0xff] %v11255_v1  ;;  %v11257_v33 = vpop.permute.xlu0 %4608  ;;  %v13326_v1 = vld [vmem:[#allocation139_spill] sm:$0xff] }
 0x634   : > { %13280 = vst [vmem:[#allocation175_spill] sm:$0xff] %v11257_v33  ;;  %4854 = vrot.lane.b32.xlu1 %v10868_v43, %s7391_s20 }
 0x635   : > { %4852 = vrot.lane.b32.xlu0 %v10872_v38, %s7391_s20 }
 0x636   : > { %v11263_v57 = vpop.permute.xlu1 %4614 }
 0x637   : > { %13281 = vst [vmem:[#allocation173_spill] sm:$0xff] %v11263_v57  ;;  %v11265_v62 = vpop.permute.xlu0 %4612  ;;  %v4346_v57 = vld [vmem:[#allocation3 + $0x49] sm:$0xff] }
 0x638   : > { %13282 = vst [vmem:[#allocation178_spill] sm:$0xff] %v11265_v62  ;;  %4858 = vrot.lane.b32.xlu1 %v10876_v19, %s7391_s20  ;;  %v4347_v62 = vld [vmem:[#allocation3 + $0x51] sm:$0xff] }
 0x639   : > { %4856 = vrot.lane.b32.xlu0 %v10880_v12, %s7391_s20 }
 0x63a   : > { %v11271_v55 = vpop.permute.xlu1 %4618 }
 0x63b   : > { %13283 = vst [vmem:[#allocation174_spill] sm:$0xff] %v11271_v55  ;;  %v11273_v4 = vpop.permute.xlu0 %4616 }
 0x63c   : > { %13284 = vst [vmem:[#allocation180_spill] sm:$0xff] %v11273_v4  ;;  %4862 = vrot.lane.b32.xlu1 %v10884_v48, %s7391_s20  ;;  %v13319_v4 = vld [vmem:[#allocation135_spill] sm:$0xff] }
 0x63d   : > { %4860 = vrot.lane.b32.xlu0 %v10888_v37, %s7391_s20 }
 0x63e   : > { %v11279_v43 = vpop.permute.xlu1 %4622 }
 0x63f   : > { %13285 = vst [vmem:[#allocation181_spill] sm:$0xff] %v11279_v43  ;;  %v11281_v38 = vpop.permute.xlu0 %4620 }
 0x640   : > { %13286 = vst [vmem:[#allocation182_spill] sm:$0xff] %v11281_v38  ;;  %4866 = vrot.lane.b32.xlu1 %v10892_v54, %s7391_s20  ;;  %v4344_v38 = vld [vmem:[#allocation3 + $0x31] sm:$0xff] }
 0x641   : > { %4864 = vrot.lane.b32.xlu0 %v10896_v18, %s7391_s20 }
 0x642   : > { %v11287_v19 = vpop.permute.xlu1 %4626 }
 0x643   : > { %13287 = vst [vmem:[#allocation183_spill] sm:$0xff] %v11287_v19  ;;  %v11289_v12 = vpop.permute.xlu0 %4624 }
 0x644   : > { %13288 = vst [vmem:[#allocation177_spill] sm:$0xff] %v11289_v12  ;;  %4870 = vrot.lane.b32.xlu1 %v10900_v2, %s7391_s20 }
 0x645   : > { %4868 = vrot.lane.b32.xlu0 %v10904_v44, %s7391_s20 }
 0x646   : > { %v11295_v48 = vpop.permute.xlu1 %4630 }
 0x647   : > { %13289 = vst [vmem:[#allocation184_spill] sm:$0xff] %v11295_v48  ;;  %v11297_v37 = vpop.permute.xlu0 %4628  ;;  %v4278_v48 = vld [vmem:[#allocation3 + $0x189] sm:$0xff] }
 0x648   : > { %13290 = vst [vmem:[#allocation185_spill] sm:$0xff] %v11297_v37  ;;  %4874 = vrot.lane.b32.xlu1 %v10908_v42, %s7391_s20 }
 0x649   : > { %4872 = vrot.lane.b32.xlu0 %v10912_v7, %s7391_s20 }
 0x64a   : > { %v11303_v54 = vpop.permute.xlu1 %4698 }
 0x64b   : > { %v11305_v18 = vpop.permute.xlu0 %4696 }
 0x64c   : > { %4878 = vrot.lane.b32.xlu1 %v10916_v20, %s7391_s20  ;;  %v4277_v20 = vld [vmem:[#allocation3 + $0x181] sm:$0xff] }
 0x64d   : > { %4876 = vrot.lane.b32.xlu0 %v10920_v50, %s7391_s20 }
 0x64e   : > { %v11311_v2 = vpop.permute.xlu1 %4702 }
 0x64f   : > { %v11313_v44 = vpop.permute.xlu0 %4700 }
 0x650   : > { %4882 = vrot.lane.b32.xlu1 %v10924_v15, %s7391_s20 }
 0x651   : > { %4880 = vrot.lane.b32.xlu0 %v10928_v8, %s7391_s20 }
 0x652   : > { %v11319_v42 = vpop.permute.xlu1 %4706 }
 0x653   : > { %v11321_v7 = vpop.permute.xlu0 %4704 }
 0x654   : > { %4886 = vrot.lane.b32.xlu1 %v4278_v48, %s7391_s20 }
 0x655   : > { %4884 = vrot.lane.b32.xlu0 %v4277_v20, %s7391_s20  ;;  %s7398_s20 = smov 96  }
 0x656   : > { %v11325_v50 = vpop.permute.xlu1 %4710 }
 0x657   : > { %v11327_v37 = vpop.permute.xlu0 %4708 }
 0x658   : > { %4954 = vrot.lane.b32.xlu1 %v10932_v10, %s7393_s22 }
 0x659   : > { %4952 = vrot.lane.b32.xlu0 %v10936_v58, %s7393_s22 }
 0x65a   : > { %v11333_v15 = vpop.permute.xlu1 %4714 }
 0x65b   : > { %v11335_v8 = vpop.permute.xlu0 %4712 }
 0x65c   : > { %4958 = vrot.lane.b32.xlu1 %v10940_v14, %s7393_s22 }
 0x65d   : > { %4956 = vrot.lane.b32.xlu0 %v10944_v63, %s7393_s22 }
 0x65e   : > { %v11341_v48 = vpop.permute.xlu1 %4718 }
 0x65f   : > { %13291 = vst [vmem:[#allocation191_spill] sm:$0xff] %v11341_v48  ;;  %v11343_v20 = vpop.permute.xlu0 %4716  ;;  %v4359_v48 = vld [vmem:[#allocation3 + $0xe1] sm:$0xff] }
 0x660   : > { %4962 = vrot.lane.b32.xlu1 %v10948_v22, %s7393_s22 }
 0x661   : > { %4960 = vrot.lane.b32.xlu0 %v10952_v11, %s7393_s22 }
 0x662   : > { %v11349_v10 = vpop.permute.xlu1 %4722 }
 0x663   : > { %13292 = vst [vmem:[#allocation186_spill] sm:$0xff] %v11349_v10  ;;  %v11351_v58 = vpop.permute.xlu0 %4720  ;;  %v13359_v10 = vld [vmem:[#allocation14_spill] sm:$0xff] }
 0x664   : > { %13293 = vst [vmem:[#allocation188_spill] sm:$0xff] %v11351_v58  ;;  %4966 = vrot.lane.b32.xlu1 %v10956_v9, %s7393_s22  ;;  %v4358_v58 = vld [vmem:[#allocation3 + $0xd9] sm:$0xff] }
 0x665   : > { %4964 = vrot.lane.b32.xlu0 %v10960_v27, %s7393_s22 }
 0x666   : > { %v11357_v19 = vpop.permute.xlu1 %4726 }
 0x667   : > { %13294 = vst [vmem:[#allocation190_spill] sm:$0xff] %v11357_v19  ;;  %v11359_v12 = vpop.permute.xlu0 %4724  ;;  %v4354_v19 = vld [vmem:[#allocation3 + $0xa9] sm:$0xff] }
 0x668   : > { %13295 = vst [vmem:[#allocation203_spill] sm:$0xff] %v11359_v12  ;;  %4970 = vrot.lane.b32.xlu1 %v10964_v29, %s7393_s22  ;;  %v4355_v12 = vld [vmem:[#allocation3 + $0xb1] sm:$0xff] }
 0x669   : > { %4968 = vrot.lane.b32.xlu0 %v10968_v59, %s7393_s22 }
 0x66a   : > { %v11365_v22 = vpop.permute.xlu1 %4730 }
 0x66b   : > { %13296 = vst [vmem:[#allocation187_spill] sm:$0xff] %v11365_v22  ;;  %v11367_v43 = vpop.permute.xlu0 %4728 }
 0x66c   : > { %13297 = vst [vmem:[#allocation192_spill] sm:$0xff] %v11367_v43  ;;  %4974 = vrot.lane.b32.xlu1 %v10972_v60, %s7393_s22 }
 0x66d   : > { %4972 = vrot.lane.b32.xlu0 %v10976_v13, %s7393_s22 }
 0x66e   : > { %v11373_v9 = vpop.permute.xlu1 %4734 }
 0x66f   : > { %13298 = vst [vmem:[#allocation194_spill] sm:$0xff] %v11373_v9  ;;  %v11375_v27 = vpop.permute.xlu0 %4732  ;;  %v4348_v9 = vld [vmem:[#allocation3 + $0x61] sm:$0xff] }
 0x670   : > { %13299 = vst [vmem:[#allocation195_spill] sm:$0xff] %v11375_v27  ;;  %4978 = vrot.lane.b32.xlu1 %v10980_v47, %s7393_s22  ;;  %v4380_v27 = vld [vmem:[#allocation3 + $0x62] sm:$0xff] }
 0x671   : > { %4976 = vrot.lane.b32.xlu0 %v10984_v16, %s7393_s22 }
 0x672   : > { %v11381_v29 = vpop.permute.xlu1 %4738 }
 0x673   : > { %13300 = vst [vmem:[#allocation193_spill] sm:$0xff] %v11381_v29  ;;  %v11383_v59 = vpop.permute.xlu0 %4736 }
 0x674   : > { %13301 = vst [vmem:[#allocation196_spill] sm:$0xff] %v11383_v59  ;;  %4982 = vrot.lane.b32.xlu1 %v10988_v40, %s7393_s22  ;;  %v5696_v40 = vld [vmem:[%s12477_s5 + $0x40] sm:$0xff] }
 0x675   : > { %4980 = vrot.lane.b32.xlu0 %v10992_v25, %s7393_s22  ;;  %7176 = vmatprep.subr.mxu0 %v5696_v40 }
 0x676   : > { %v11389_v60 = vpop.permute.xlu1 %4742  ;;  %7177 = vmatpush3.msra.mxu0 %v5696_v40 }
 0x677   : > { %13302 = vst [vmem:[#allocation197_spill] sm:$0xff] %v11389_v60  ;;  %v11391_v13 = vpop.permute.xlu0 %4740 }
 0x678   : > { %13303 = vst [vmem:[#allocation200_spill] sm:$0xff] %v11391_v13  ;;  %4986 = vrot.lane.b32.xlu1 %v10996_v41, %s7393_s22 }
 0x679   : > { %4984 = vrot.lane.b32.xlu0 %v11000_v36, %s7393_s22  ;;  %v5695_v36 = vld [vmem:[%s12477_s5 + $0x38] sm:$0xff] }
 0x67a   : > { %v11397_v47 = vpop.permute.xlu1 %4746  ;;  %7178 = vmatprep.subr.mxu0 %v5695_v36 }
 0x67b   : > { %13304 = vst [vmem:[#allocation199_spill] sm:$0xff] %v11397_v47  ;;  %v11399_v16 = vpop.permute.xlu0 %4744  ;;  %7179 = vmatpush3.msra.mxu0 %v5695_v36  ;;  %v13318_v47 = vld [vmem:[#allocation126_spill] sm:$0xff] }
 0x67c   : > { %13305 = vst [vmem:[#allocation202_spill] sm:$0xff] %v11399_v16  ;;  %4990 = vrot.lane.b32.xlu1 %v11004_v56, %s7393_s22  ;;  %v5694_v56 = vld [vmem:[%s12477_s5 + $0x30] sm:$0xff] }
 0x67d   : > { %4988 = vrot.lane.b32.xlu0 %v11008_v51, %s7393_s22  ;;  %7180 = vmatprep.subr.mxu0 %v5694_v56 }
 0x67e   : > { %v11408_v25 = vpop.permute.xlu1 %4750  ;;  %7181 = vmatpush3.msra.mxu0 %v5694_v56  ;;  %v5691_v56 = vld [vmem:[%s12477_s5 + $0x18] sm:$0xff] }
 0x67f   : > { %13306 = vst [vmem:[#allocation198_spill] sm:$0xff] %v11408_v25  ;;  %v11410_v41 = vpop.permute.xlu0 %4748 }
 0x680   : > { %13307 = vst [vmem:[#allocation204_spill] sm:$0xff] %v11410_v41  ;;  %4994 = vrot.lane.b32.xlu1 %v11012_v0, %s7393_s22  ;;  %v5693_v0 = vld [vmem:[%s12477_s5 + $0x28] sm:$0xff] }
 0x681   : > { %4992 = vrot.lane.b32.xlu0 %v11016_v46, %s7393_s22  ;;  %7182 = vmatprep.subr.mxu0 %v5693_v0  ;;  %v5692_v46 = vld [vmem:[%s12477_s5 + $0x20] sm:$0xff] }
 0x682   : > { %v11422_v51 = vpop.permute.xlu1 %4754  ;;  %7183 = vmatpush3.msra.mxu0 %v5693_v0 }
 0x683   : > { %13308 = vst [vmem:[#allocation189_spill] sm:$0xff] %v11422_v51  ;;  %v11424_v25 = vpop.permute.xlu0 %4752  ;;  %7184 = vmatprep.subr.mxu0 %v5692_v46  ;;  %v5688_v51 = vld [vmem:[%s12477_s5] sm:$0xff] }
 0x684   : > { %13309 = vst [vmem:[#allocation206_spill] sm:$0xff] %v11424_v25  ;;  %4998 = vrot.lane.b32.xlu1 %v11020_v5, %s7393_s22  ;;  %v13312_v5 = vld [vmem:[#allocation131_spill] sm:$0xff]  ;;  %7185 = vmatpush3.msra.mxu0 %v5692_v46  ;;  %v13314_v46 = vld [vmem:[#allocation105_spill] sm:$0xff] }
 0x685   : > { %4996 = vrot.lane.b32.xlu0 %v11026_v32, %s7393_s22  ;;  %v13313_v32 = vld [vmem:[#allocation110_spill] sm:$0xff]  ;;  %7186 = vmatprep.subr.mxu0 %v5691_v56 }
 0x686   : > { %v11436_v40 = vpop.permute.xlu1 %4758  ;;  %7187 = vmatpush3.msra.mxu0 %v5691_v56 }
 0x687   : > { %13310 = vst [vmem:[#allocation205_spill] sm:$0xff] %v11436_v40  ;;  %v11438_v36 = vpop.permute.xlu0 %4756  ;;  %v5690_v40 = vld [vmem:[%s12477_s5 + $0x10] sm:$0xff] }
 0x688   : > { %13311 = vst [vmem:[#allocation201_spill] sm:$0xff] %v11438_v36  ;;  %5002 = vrot.lane.b32.xlu1 %v13312_v5, %s7393_s22  ;;  %7188 = vmatprep.subr.mxu0 %v5690_v40  ;;  %v5689_v5 = vld [vmem:[%s12477_s5 + $0x8] sm:$0xff] }
 0x689   : > { %5000 = vrot.lane.b32.xlu0 %v13313_v32, %s7393_s22  ;;  %7189 = vmatpush3.msra.mxu0 %v5690_v40  ;;  %v13315_v32 = vld [vmem:[#allocation120_spill] sm:$0xff]  ;;  %v13316_v40 = vld [vmem:[#allocation143_spill] sm:$0xff] }
 0x68a   : > { %v11450_v0 = vpop.permute.xlu1 %4826  ;;  %7190 = vmatprep.subr.mxu0 %v5689_v5 }
 0x68b   : > { %v11452_v36 = vpop.permute.xlu0 %4824  ;;  %7191 = vmatpush3.msra.mxu0 %v5689_v5 }
 0x68c   : > { %5006 = vrot.lane.b32.xlu1 %v13314_v46, %s7393_s22  ;;  %7192 = vmatprep.subr.mxu0 %v5688_v51  ;;  %v13317_v46 = vld [vmem:[#allocation123_spill] sm:$0xff] }
 0x68d   : > { %5004 = vrot.lane.b32.xlu0 %v13315_v32, %s7393_s22  ;;  %7193 = vmatpush3.msra.mxu0 %v5688_v51  ;;  %v4345_v51 = vld [vmem:[#allocation3 + $0x39] sm:$0xff] }
 0x68e   : > { %v11464_v56 = vpop.permute.xlu1 %4830 }
 0x68f   : > { %v11466_v25 = vpop.permute.xlu0 %4828 }
 0x690   : > { %5080 = vrot.lane.b32.xlu1 %v13316_v40, %s7389_s15 }
 0x691   : > { %5008 = vrot.lane.b32.xlu0 %v13317_v46, %s7393_s22 }
 0x692   : > { %v11472_v41 = vpop.permute.xlu1 %4834 }
 0x693   : > { %v11474_v32 = vpop.permute.xlu0 %4832 }
 0x694   : > { %5208 = vrot.lane.b32.xlu1 %v4344_v38, %s7394_s23 }
 0x695   : > { %5082 = vrot.lane.b32.xlu0 %v13318_v47, %s7389_s15 }
 0x696   : > { %v11479_v5 = vpop.permute.xlu1 %4838 }
 0x697   : > { %v11481_v55 = vpop.permute.xlu0 %4836 }
 0x698   : > { %5336 = vrot.lane.b32.xlu1 %v10944_v63, %s7395_s9  ;;  %v13321_v63 = vld [vmem:[#allocation129_spill] sm:$0xff] }
 0x699   : > { %5210 = vrot.lane.b32.xlu0 %v4345_v51, %s7394_s23 }
 0x69a   : > { %v11486_v46 = vpop.permute.xlu1 %4842 }
 0x69b   : > { %v11488_v16 = vpop.permute.xlu0 %4840 }
 0x69c   : > { %5084 = vrot.lane.b32.xlu1 %v13319_v4, %s7389_s15 }
 0x69d   : > { %5338 = vrot.lane.b32.xlu0 %v10940_v14, %s7395_s9 }
 0x69e   : > { %v11494_v38 = vpop.permute.xlu1 %4846 }
 0x69f   : > { %13320 = vst [vmem:[#allocation208_spill] sm:$0xff] %v11494_v38  ;;  %v11496_v60 = vpop.permute.xlu0 %4844  ;;  %v13380_v38 = vld [vmem:[#allocation116_spill] sm:$0xff] }
 0x6a0   : > { %5212 = vrot.lane.b32.xlu1 %v4346_v57, %s7394_s23  ;;  %v4379_v57 = vld [vmem:[#allocation3 + $0x52] sm:$0xff] }
 0x6a1   : > { %5086 = vrot.lane.b32.xlu0 %v13321_v63, %s7389_s15 }
 0x6a2   : > { %v11501_v51 = vpop.permute.xlu1 %4850 }
 0x6a3   : > { %13322 = vst [vmem:[#allocation209_spill] sm:$0xff] %v11501_v51  ;;  %v11503_v13 = vpop.permute.xlu0 %4848 }
 0x6a4   : > { %13323 = vst [vmem:[#allocation207_spill] sm:$0xff] %v11503_v13  ;;  %5340 = vrot.lane.b32.xlu1 %v10952_v11, %s7395_s9  ;;  %v13329_v11 = vld [vmem:[#allocation137_spill] sm:$0xff] }
 0x6a5   : > { %5214 = vrot.lane.b32.xlu0 %v4347_v62, %s7394_s23 }
 0x6a6   : > { %v11508_v14 = vpop.permute.xlu1 %4854 }
 0x6a7   : > { %13324 = vst [vmem:[#allocation254_spill] sm:$0xff] %v11508_v14  ;;  %v11510_v29 = vpop.permute.xlu0 %4852 }
 0x6a8   : > { %13325 = vst [vmem:[#allocation210_spill] sm:$0xff] %v11510_v29  ;;  %5088 = vrot.lane.b32.xlu1 %v13326_v1, %s7389_s15  ;;  %v4349_v1 = vld [vmem:[#allocation3 + $0x69] sm:$0xff] }
 0x6a9   : > { %5342 = vrot.lane.b32.xlu0 %v4379_v57, %s7395_s9 }
 0x6aa   : > { %v11515_v59 = vpop.permute.xlu1 %4858 }
 0x6ab   : > { %13327 = vst [vmem:[#allocation211_spill] sm:$0xff] %v11515_v59  ;;  %v11517_v33 = vpop.permute.xlu0 %4856  ;;  %v13334_v59 = vld [vmem:[#allocation138_spill] sm:$0xff] }
 0x6ac   : > { %13328 = vst [vmem:[#allocation253_spill] sm:$0xff] %v11517_v33  ;;  %5216 = vrot.lane.b32.xlu1 %v4348_v9, %s7394_s23  ;;  %v4381_v9 = vld [vmem:[#allocation3 + $0x6a] sm:$0xff]  ;;  %v4385_v33 = vld [vmem:[#allocation3 + $0x9a] sm:$0xff] }
 0x6ad   : > { %5090 = vrot.lane.b32.xlu0 %v13329_v11, %s7389_s15 }
 0x6ae   : > { %v11522_v62 = vpop.permute.xlu1 %4862 }
 0x6af   : > { %13330 = vst [vmem:[#allocation215_spill] sm:$0xff] %v11522_v62  ;;  %v11524_v21 = vpop.permute.xlu0 %4860 }
 0x6b0   : > { %13331 = vst [vmem:[#allocation214_spill] sm:$0xff] %v11524_v21  ;;  %5344 = vrot.lane.b32.xlu1 %v4380_v27, %s7395_s9  ;;  %v4350_v21 = vld [vmem:[#allocation3 + $0x79] sm:$0xff] }
 0x6b1   : > { %5218 = vrot.lane.b32.xlu0 %v4349_v1, %s7394_s23  ;;  %v13337_v27 = vld [vmem:[#allocation142_spill] sm:$0xff] }
 0x6b2   : > { %v11528_v57 = vpop.permute.xlu1 %4866 }
 0x6b3   : > { %13332 = vst [vmem:[#allocation212_spill] sm:$0xff] %v11528_v57  ;;  %v11530_v35 = vpop.permute.xlu0 %4864 }
 0x6b4   : > { %13333 = vst [vmem:[#allocation213_spill] sm:$0xff] %v11530_v35  ;;  %5092 = vrot.lane.b32.xlu1 %v13334_v59, %s7389_s15  ;;  %v4382_v35 = vld [vmem:[#allocation3 + $0x7a] sm:$0xff] }
 0x6b5   : > { %5346 = vrot.lane.b32.xlu0 %v4381_v9, %s7395_s9  ;;  %v4351_v59 = vld [vmem:[#allocation3 + $0x81] sm:$0xff] }
 0x6b6   : > { %v11535_v11 = vpop.permute.xlu1 %4870 }
 0x6b7   : > { %13335 = vst [vmem:[#allocation217_spill] sm:$0xff] %v11535_v11  ;;  %v11537_v62 = vpop.permute.xlu0 %4868 }
 0x6b8   : > { %13336 = vst [vmem:[#allocation220_spill] sm:$0xff] %v11537_v62  ;;  %5220 = vrot.lane.b32.xlu1 %v4350_v21, %s7394_s23  ;;  %v13342_v21 = vld [vmem:[#allocation9_spill] sm:$0xff]  ;;  %v4383_v62 = vld [vmem:[#allocation3 + $0x82] sm:$0xff] }
 0x6b9   : > { %5094 = vrot.lane.b32.xlu0 %v13337_v27, %s7389_s15 }
 0x6ba   : > { %v11542_v1 = vpop.permute.xlu1 %4874 }
 0x6bb   : > { %13338 = vst [vmem:[#allocation218_spill] sm:$0xff] %v11542_v1  ;;  %v11544_v57 = vpop.permute.xlu0 %4872 }
 0x6bc   : > { %13339 = vst [vmem:[#allocation219_spill] sm:$0xff] %v11544_v57  ;;  %5348 = vrot.lane.b32.xlu1 %v4382_v35, %s7395_s9  ;;  %v13345_v35 = vld [vmem:[#allocation8_spill] sm:$0xff] }
 0x6bd   : > { %5222 = vrot.lane.b32.xlu0 %v4351_v59, %s7394_s23  ;;  %v11564_v59 = vld [vmem:[%s12479_s7] sm:$0xff] }
 0x6be   : > { %v11548_v9 = vpop.permute.xlu1 %4878  ;;  %7292 = vmatprep.subr.mxu1 %v11564_v59  ;;  %7242 = vmatprep.subr.mxu0 %v11564_v59 }
 0x6bf   : > { %13340 = vst [vmem:[#allocation229_spill] sm:$0xff] %v11548_v9  ;;  %v11550_v11 = vpop.permute.xlu0 %4876  ;;  %v13346_v9 = vld [vmem:[#allocation146_spill] sm:$0xff]  ;;  %7293 = vmatpush3.msra.mxu1 %v11564_v59 }
 0x6c0   : > { %13341 = vst [vmem:[#allocation256_spill] sm:$0xff] %v11550_v11  ;;  %6033 = vrot.lane.b32.xlu1 %v13342_v21, %s7398_s20 }
 0x6c1   : > { %5350 = vrot.lane.b32.xlu0 %v4383_v62, %s7395_s9 }
 0x6c2   : > { %v11555_v27 = vpop.permute.xlu1 %4882 }
 0x6c3   : > { %13343 = vst [vmem:[#allocation221_spill] sm:$0xff] %v11555_v27  ;;  %v11557_v1 = vpop.permute.xlu0 %4880  ;;  %v4352_v27 = vld [vmem:[#allocation3 + $0x91] sm:$0xff] }
 0x6c4   : > { %13344 = vst [vmem:[#allocation216_spill] sm:$0xff] %v11557_v1  ;;  %6035 = vrot.lane.b32.xlu1 %v13345_v35, %s7398_s20  ;;  %v13349_v1 = vld [vmem:[#allocation145_spill] sm:$0xff] }
 0x6c5   : > { %5096 = vrot.lane.b32.xlu0 %v13346_v9, %s7389_s15  ;;  %v4353_v9 = vld [vmem:[#allocation3 + $0x99] sm:$0xff] }
 0x6c6   : > { %v11569_v11 = vpop.permute.xlu1 %4886 }
 0x6c7   : > { %13347 = vst [vmem:[#allocation255_spill] sm:$0xff] %v11569_v11  ;;  %v11573_v62 = vpop.permute.xlu0 %4884 }
 0x6c8   : > { %13348 = vst [vmem:[#allocation222_spill] sm:$0xff] %v11573_v62  ;;  %5224 = vrot.lane.b32.xlu1 %v4352_v27, %s7394_s23  ;;  %v4384_v27 = vld [vmem:[#allocation3 + $0x92] sm:$0xff] }
 0x6c9   : > { %5098 = vrot.lane.b32.xlu0 %v13349_v1, %s7389_s15 }
 0x6ca   : > { %v11578_v57 = vpop.permute.xlu1 %4954 }
 0x6cb   : > { %v11580_v22 = vpop.permute.xlu0 %4952 }
 0x6cc   : > { %5226 = vrot.lane.b32.xlu1 %v4353_v9, %s7394_s23  ;;  %v13350_v9 = vld [vmem:[#allocation12_spill] sm:$0xff] }
 0x6cd   : > { %6161 = vrot.lane.b32.xlu0 %v13342_v21, %s7399_s18 }
 0x6ce   : > { %v11585_v11 = vpop.permute.xlu1 %4958 }
 0x6cf   : > { %v11587_v62 = vpop.permute.xlu0 %4956 }
 0x6d0   : > { %6163 = vrot.lane.b32.xlu1 %v13345_v35, %s7399_s18  ;;  %v13352_v35 = vld [vmem:[#allocation149_spill] sm:$0xff] }
 0x6d1   : > { %5352 = vrot.lane.b32.xlu0 %v4384_v27, %s7395_s9 }
 0x6d2   : > { %v11592_v1 = vpop.permute.xlu1 %4962 }
 0x6d3   : > { %v11594_v34 = vpop.permute.xlu0 %4960 }
 0x6d4   : > { %6037 = vrot.lane.b32.xlu1 %v13350_v9, %s7398_s20 }
 0x6d5   : > { %5354 = vrot.lane.b32.xlu0 %v4385_v33, %s7395_s9 }
 0x6d6   : > { %v11599_v21 = vpop.permute.xlu1 %4966 }
 0x6d7   : > { %v11601_v43 = vpop.permute.xlu0 %4964 }
 0x6d8   : > { %6039 = vrot.lane.b32.xlu1 %v13351_v45, %s7398_s20 }
 0x6d9   : > { %5100 = vrot.lane.b32.xlu0 %v13352_v35, %s7389_s15 }
 0x6da   : > { %v11607_v27 = vpop.permute.xlu1 %4970 }
 0x6db   : > { %v11609_v14 = vpop.permute.xlu0 %4968 }
 0x6dc   : > { %5228 = vrot.lane.b32.xlu1 %v4354_v19, %s7394_s23  ;;  %v4386_v19 = vld [vmem:[#allocation3 + $0xaa] sm:$0xff] }
 0x6dd   : > { %5102 = vrot.lane.b32.xlu0 %v13353_v17, %s7389_s15 }
 0x6de   : > { %v11614_v33 = vpop.permute.xlu1 %4974 }
 0x6df   : > { %13354 = vst [vmem:[#allocation226_spill] sm:$0xff] %v11614_v33  ;;  %v11616_v29 = vpop.permute.xlu0 %4972 }
 0x6e0   : > { %5230 = vrot.lane.b32.xlu1 %v4355_v12, %s7394_s23  ;;  %v4387_v12 = vld [vmem:[#allocation3 + $0xb2] sm:$0xff] }
 0x6e1   : > { %6165 = vrot.lane.b32.xlu0 %v13350_v9, %s7399_s18 }
 0x6e2   : > { %v11621_v35 = vpop.permute.xlu1 %4978 }
 0x6e3   : > { %13355 = vst [vmem:[#allocation223_spill] sm:$0xff] %v11621_v35  ;;  %v11623_v26 = vpop.permute.xlu0 %4976 }
 0x6e4   : > { %13356 = vst [vmem:[#allocation228_spill] sm:$0xff] %v11623_v26  ;;  %6167 = vrot.lane.b32.xlu1 %v13351_v45, %s7399_s18  ;;  %v4324_v45 = vld [vmem:[#allocation3 + $0xc0] sm:$0xff]  ;;  %v4325_v26 = vld [vmem:[#allocation3 + $0xc8] sm:$0xff] }
 0x6e5   : > { %5356 = vrot.lane.b32.xlu0 %v4386_v19, %s7395_s9 }
 0x6e6   : > { %v11628_v17 = vpop.permute.xlu1 %4982 }
 0x6e7   : > { %13357 = vst [vmem:[#allocation225_spill] sm:$0xff] %v11628_v17  ;;  %v11630_v51 = vpop.permute.xlu0 %4980 }
 0x6e8   : > { %13358 = vst [vmem:[#allocation232_spill] sm:$0xff] %v11630_v51  ;;  %6041 = vrot.lane.b32.xlu1 %v13359_v10, %s7398_s20  ;;  %v4356_v51 = vld [vmem:[#allocation3 + $0xc1] sm:$0xff] }
 0x6e9   : > { %5358 = vrot.lane.b32.xlu0 %v4387_v12, %s7395_s9 }
 0x6ea   : > { %v11635_v9 = vpop.permute.xlu1 %4986 }
 0x6eb   : > { %13360 = vst [vmem:[#allocation224_spill] sm:$0xff] %v11635_v9  ;;  %v11637_v35 = vpop.permute.xlu0 %4984 }
 0x6ec   : > { %13361 = vst [vmem:[#allocation230_spill] sm:$0xff] %v11637_v35  ;;  %6043 = vrot.lane.b32.xlu1 %v13362_v53, %s7398_s20  ;;  %v4357_v35 = vld [vmem:[#allocation3 + $0xc9] sm:$0xff] }
 0x6ed   : > { %5104 = vrot.lane.b32.xlu0 %v4324_v45, %s7389_s15 }
 0x6ee   : > { %v11642_v19 = vpop.permute.xlu1 %4990 }
 0x6ef   : > { %13363 = vst [vmem:[#allocation231_spill] sm:$0xff] %v11642_v19  ;;  %v11644_v17 = vpop.permute.xlu0 %4988 }
 0x6f0   : > { %13364 = vst [vmem:[#allocation258_spill] sm:$0xff] %v11644_v17  ;;  %5232 = vrot.lane.b32.xlu1 %v4356_v51, %s7394_s23  ;;  %v4388_v51 = vld [vmem:[#allocation3 + $0xc2] sm:$0xff]  ;;  %v4326_v17 = vld [vmem:[#allocation3 + $0xd8] sm:$0xff] }
 0x6f1   : > { %5106 = vrot.lane.b32.xlu0 %v4325_v26, %s7389_s15 }
 0x6f2   : > { %v11648_v12 = vpop.permute.xlu1 %4994 }
 0x6f3   : > { %13365 = vst [vmem:[#allocation233_spill] sm:$0xff] %v11648_v12  ;;  %v11650_v9 = vpop.permute.xlu0 %4992 }
 0x6f4   : > { %13366 = vst [vmem:[#allocation241_spill] sm:$0xff] %v11650_v9  ;;  %5234 = vrot.lane.b32.xlu1 %v4357_v35, %s7394_s23  ;;  %v13371_v9 = vld [vmem:[#allocation17_spill] sm:$0xff]  ;;  %v4389_v35 = vld [vmem:[#allocation3 + $0xca] sm:$0xff] }
 0x6f5   : > { %6169 = vrot.lane.b32.xlu0 %v13359_v10, %s7399_s18 }
 0x6f6   : > { %v11655_v45 = vpop.permute.xlu1 %4998 }
 0x6f7   : > { %13367 = vst [vmem:[#allocation257_spill] sm:$0xff] %v11655_v45  ;;  %v11657_v19 = vpop.permute.xlu0 %4996  ;;  %v4119_v45 = vld [vmem:[#allocation3] sm:$0xff] }
 0x6f8   : > { %13368 = vst [vmem:[#allocation235_spill] sm:$0xff] %v11657_v19  ;;  %6171 = vrot.lane.b32.xlu1 %v13362_v53, %s7399_s18  ;;  %v13374_v53 = vld [vmem:[#allocation15_spill] sm:$0xff] }
 0x6f9   : > { %5360 = vrot.lane.b32.xlu0 %v4388_v51, %s7395_s9  ;;  %v13375_v51 = vld [vmem:[#allocation103_spill] sm:$0xff] }
 0x6fa   : > { %v11662_v26 = vpop.permute.xlu1 %5002 }
 0x6fb   : > { %13369 = vst [vmem:[#allocation227_spill] sm:$0xff] %v11662_v26  ;;  %v11664_v12 = vpop.permute.xlu0 %5000  ;;  %v5432_v26 = vsel %vm585_vm0, %v4119_v45, %v13375_v51  ;;  %v5433_v45 = vsel %vm585_vm0, %v4120_v39, %v13380_v38 }
 0x6fc   : > { %13370 = vst [vmem:[#allocation234_spill] sm:$0xff] %v11664_v12  ;;  %6045 = vrot.lane.b32.xlu1 %v13371_v9, %s7398_s20 }
 0x6fd   : > { %5362 = vrot.lane.b32.xlu0 %v4389_v35, %s7395_s9  ;;  %v4327_v35 = vld [vmem:[#allocation3 + $0xe0] sm:$0xff] }
 0x6fe   : > { %v11669_v10 = vpop.permute.xlu1 %5006 }
 0x6ff   : > { %13372 = vst [vmem:[#allocation238_spill] sm:$0xff] %v11669_v10  ;;  %v11671_v19 = vpop.permute.xlu0 %5004  ;;  %v13377_v10 = vld [vmem:[#allocation118_spill] sm:$0xff] }
 0x700   : > { %13373 = vst [vmem:[#allocation244_spill] sm:$0xff] %v11671_v19  ;;  %6047 = vrot.lane.b32.xlu1 %v13374_v53, %s7398_s20  ;;  %v5464_v19 = vsel %vm13378_vm7, %v5432_v26, %v13377_v10 }
 0x701   : > { %5108 = vrot.lane.b32.xlu0 %v4326_v17, %s7389_s15  ;;  %v5496_v33 = vsel %vm13379_vm8, %v5464_v19, %v11305_v18  ;;  %v13384_v18 = vld [vmem:[#allocation114_spill] sm:$0xff]  ;;  %vm13398_vm8 = vmmov %vm13390_vm11 }
 0x702   : > { %v5081_v12 = vpop.permute.xlu1 %5080  ;;  %v5528_v51 = vsel %vm13381_vm9, %v5496_v33, %v11452_v36  ;;  %v5465_v19 = vsel %vm13385_vm15, %v5433_v45, %v13384_v18  ;;  %v13394_v45 = vld [vmem:[#allocation117_spill] sm:$0xff]  ;;  %vm13399_vm9 = vmmov %vm13387_vm2 }
 0x703   : > { %v11678_v13 = vpop.permute.xlu0 %5008  ;;  %v5497_v36 = vsel %vm13387_vm2, %v5465_v19, %v11303_v54  ;;  %vm13405_vm15 = vmmov %vm13392_vm4 }
 0x704   : > { %13376 = vst [vmem:[#allocation249_spill] sm:$0xff] %v11678_v13  ;;  %5236 = vrot.lane.b32.xlu1 %v4358_v58, %s7394_s23  ;;  %v5560_v58 = vsel %vm13382_vm10, %v5528_v51, %v11580_v22  ;;  %v4390_v22 = vld [vmem:[#allocation3 + $0xda] sm:$0xff]  ;;  %vm13400_vm10 = vmmov %vm13389_vm12 }
 0x705   : > { %5110 = vrot.lane.b32.xlu0 %v4327_v35, %s7389_s15  ;;  %v5592_v26 = vsel %vm13383_vm1, %v5560_v58, %v5081_v12  ;;  %v13395_v51 = vld [vmem:[#allocation125_spill] sm:$0xff]  ;;  %v13397_v58 = vld [vmem:[#allocation20_spill] sm:$0xff]  ;;  %vm13401_vm1 = vmmov %vm13391_vm13 }
 0x706   : > { %v5209_v17 = vpop.permute.xlu1 %5208  ;;  %vm13407_vm2 = vmmov %vm13393_vm5 }
 0x707   : > { %v5083_v13 = vpop.permute.xlu0 %5082  ;;  %v5624_v39 = vsel %vm13386_vm14, %v5592_v26, %v5209_v17  ;;  %v4391_v26 = vld [vmem:[#allocation3 + $0xe2] sm:$0xff]  ;;  %vm13406_vm14 = vmmov %vm13378_vm7 }
 0x708   : > { %5238 = vrot.lane.b32.xlu1 %v4359_v48, %s7394_s23  ;;  %v5529_v48 = vsel %vm13389_vm12, %v5497_v36, %v11450_v0  ;;  %v5434_v0 = vsel %vm585_vm0, %v13395_v51, %v13394_v45  ;;  %v13402_v36 = vld [vmem:[#allocation18_spill] sm:$0xff]  ;;  %vm13409_vm12 = vmmov %vm13396_vm6 }
 0x709   : > { %6173 = vrot.lane.b32.xlu0 %v13371_v9, %s7399_s18  ;;  %v5561_v9 = vsel %vm13391_vm13, %v5529_v48, %v11578_v57  ;;  %v5466_v57 = vsel %vm13378_vm7, %v5434_v0, %v11189_v23  ;;  %v4328_v23 = vld [vmem:[#allocation3 + $0xf0] sm:$0xff]  ;;  %vm13411_vm13 = vmmov %vm13398_vm8 }
 0x70a   : > { %v5337_v38 = vpop.permute.xlu1 %5336  ;;  %v5593_v12 = vsel %vm13392_vm4, %v5561_v9, %v5083_v13  ;;  %v5498_v13 = vsel %vm13399_vm9, %v5466_v57, %v11313_v44  ;;  %vm13412_vm4 = vmmov %vm13401_vm1 }
 0x70b   : > { %v5656_v33 = vsel %vm13388_vm3, %v5624_v39, %v5337_v38  ;;  %v5211_v10 = vpop.permute.xlu0 %5210  ;;  %v5530_v19 = vsel %vm13400_vm10, %v5498_v13, %v11466_v25  ;;  %vm13408_vm3 = vmmov %vm13399_vm9 }
 0x70c   : > { %6175 = vrot.lane.b32.xlu1 %v13374_v53, %s7399_s18  ;;  %7194 = vmatprep.mubr.msk.f32.mxu0 %vm13390_vm11, %v5656_v33  ;;  %v5625_v35 = vsel %vm13393_vm5, %v5593_v12, %v5211_v10  ;;  %v5562_v38 = vsel %vm13401_vm1, %v5530_v19, %v11587_v62  ;;  %v13403_v33 = vld [vmem:[#allocation121_spill] sm:$0xff]  ;;  %v13404_v10 = vld [vmem:[#allocation122_spill] sm:$0xff]  ;;  %vm13410_vm11 = vmmov %vm13400_vm10 }
 0x70d   : > { %5364 = vrot.lane.b32.xlu0 %v4390_v22, %s7395_s9  ;;  %v5435_v48 = vsel %vm585_vm0, %v13404_v10, %v13403_v33  ;;  %vm13413_vm5 = vmmov %vm13405_vm15 }
 0x70e   : > { %v5085_v54 = vpop.permute.xlu1 %5084  ;;  %vm13416_vm7 = vmmov %vm13409_vm12 }
 0x70f   : > { %v5339_v17 = vpop.permute.xlu0 %5338  ;;  %v5594_v44 = vsel %vm13405_vm15, %v5562_v38, %v5085_v54  ;;  %v4329_v54 = vld [vmem:[#allocation3 + $0xf8] sm:$0xff]  ;;  %vm13418_vm9 = vmmov %vm13411_vm13  ;;  %v13422_v38 = vld [vmem:[#allocation127_spill] sm:$0xff] }
 0x710   : > { %v5657_v53 = vsel %vm13396_vm6, %v5625_v35, %v5339_v17  ;;  %6049 = vrot.lane.b32.xlu1 %v13397_v58, %s7398_s20  ;;  %v4360_v35 = vld [vmem:[#allocation3 + $0xf1] sm:$0xff]  ;;  %vm13414_vm6 = vmmov %vm13407_vm2 }
 0x711   : > { %5366 = vrot.lane.b32.xlu0 %v4391_v26, %s7395_s9  ;;  %7195 = vmatmul.mubr.msk.f32.vlgmr.msra.gmra.mxu0 %vm13398_vm8, %v5657_v53  ;;  %v4361_v53 = vld [vmem:[#allocation3 + $0xf9] sm:$0xff]  ;;  %v13415_v26 = vld [vmem:[#allocation124_spill] sm:$0xff]  ;;  %vm13417_vm8 = vmmov %vm13406_vm14 }
 0x712   : > { %v5213_v18 = vpop.permute.xlu1 %5212  ;;  %7243 = vmatpush3.msra.mxu0 %v11564_v59  ;;  %v5467_v59 = vsel %vm13406_vm14, %v5435_v48, %v11187_v3  ;;  %vm13419_vm10 = vmmov %vm13408_vm3 }
 0x713   : > { %v5087_v39 = vpop.permute.xlu0 %5086  ;;  %v5626_v25 = vsel %vm13407_vm2, %v5594_v44, %v5213_v18  ;;  %v5499_v62 = vsel %vm13408_vm3, %v5467_v59, %v11311_v2  ;;  %vm13420_vm1 = vmmov %vm13410_vm11  ;;  %v4393_v44 = vld [vmem:[#allocation3 + $0xfa] sm:$0xff] }
 0x714   : > { %6051 = vrot.lane.b32.xlu1 %v13402_v36, %s7398_s20  ;;  %v5531_v17 = vsel %vm13410_vm11, %v5499_v62, %v11464_v56  ;;  %v5436_v56 = vsel %vm585_vm0, %v13316_v40, %v13415_v26  ;;  %vm13421_vm15 = vmmov %vm13412_vm4  ;;  %v13434_v62 = vld [vmem:[#allocation130_spill] sm:$0xff] }
 0x715   : > { %5112 = vrot.lane.b32.xlu0 %v4328_v23, %s7389_s15  ;;  %v5563_v3 = vsel %vm13412_vm4, %v5531_v17, %v11585_v11  ;;  %v5468_v11 = vsel %vm13417_vm8, %v5436_v56, %v11195_v6  ;;  %v4392_v6 = vld [vmem:[#allocation3 + $0xf2] sm:$0xff]  ;;  %vm13423_vm14 = vmmov %vm13413_vm5 }
 0x716   : > { %v5341_v22 = vpop.permute.xlu1 %5340  ;;  %v5595_v45 = vsel %vm13413_vm5, %v5563_v3, %v5087_v39  ;;  %v5500_v13 = vsel %vm13419_vm10, %v5468_v11, %v11321_v7  ;;  %vm13424_vm2 = vmmov %vm13417_vm8  ;;  %v4363_v11 = vld [vmem:[#allocation3 + $0x111] sm:$0xff] }
 0x717   : > { %v5658_v9 = vsel %vm13409_vm12, %v5626_v25, %v5341_v22  ;;  %v5215_v12 = vpop.permute.xlu0 %5214  ;;  %v5532_v19 = vsel %vm13420_vm1, %v5500_v13, %v11474_v32  ;;  %vm13425_vm3 = vmmov %vm13414_vm6 }
 0x718   : > { %5240 = vrot.lane.b32.xlu1 %v4360_v35, %s7394_s23  ;;  %7197 = vmatprep.mubr.msk.f32.mxu0 %vm13411_vm13, %v5658_v9  ;;  %v5627_v51 = vsel %vm13414_vm6, %v5595_v45, %v5215_v12  ;;  %v5564_v39 = vsel %vm13421_vm15, %v5532_v19, %v11594_v34  ;;  %vm13426_vm12 = vmmov %vm13419_vm10  ;;  %v13436_v12 = vld [vmem:[#allocation21_spill] sm:$0xff]  ;;  %v4330_v35 = vld [vmem:[#allocation3 + $0x108] sm:$0xff] }
 0x719   : > { %5114 = vrot.lane.b32.xlu0 %v4329_v54, %s7389_s15  ;;  %vm13427_vm11 = vmmov %vm13416_vm7  ;;  %v4362_v45 = vld [vmem:[#allocation3 + $0x109] sm:$0xff] }
 0x71a   : > { %v5089_v2 = vpop.permute.xlu1 %5088  ;;  %vm13428_vm13 = vmmov %vm13420_vm1 }
 0x71b   : > { %v5343_v0 = vpop.permute.xlu0 %5342  ;;  %v5596_v23 = vsel %vm13423_vm14, %v5564_v39, %v5089_v2  ;;  %vm13430_vm4 = vmmov %vm13418_vm9 }
 0x71c   : > { %v5659_v57 = vsel %vm13416_vm7, %v5627_v51, %v5343_v0  ;;  %5242 = vrot.lane.b32.xlu1 %v4361_v53, %s7394_s23  ;;  %vm13431_vm5 = vmmov %vm13421_vm15  ;;  %v4331_v51 = vld [vmem:[#allocation3 + $0x110] sm:$0xff] }
 0x71d   : > { %6177 = vrot.lane.b32.xlu0 %v13397_v58, %s7399_s18  ;;  %7198 = vmatmul.mubr.msk.f32.gmra.mxu0 %vm13418_vm9, %v5659_v57  ;;  %v5437_v58 = vsel %vm585_vm0, %v13318_v47, %v13422_v38  ;;  %v13429_v47 = vld [vmem:[#allocation23_spill] sm:$0xff]  ;;  %vm13432_vm6 = vmmov %vm13423_vm14  ;;  %v4395_v38 = vld [vmem:[#allocation3 + $0x112] sm:$0xff] }
 0x71e   : > { %v5217_v18 = vpop.permute.xlu1 %5216  ;;  %v5469_v7 = vsel %vm13424_vm2, %v5437_v58, %v11193_v28  ;;  %vm13433_vm7 = vmmov %vm13425_vm3 }
 0x71f   : > { %v5091_v40 = vpop.permute.xlu0 %5090  ;;  %v5628_v32 = vsel %vm13425_vm3, %v5596_v23, %v5217_v18  ;;  %v5501_v34 = vsel %vm13426_vm12, %v5469_v7, %v11319_v42  ;;  %vm13435_vm8 = vmmov %vm13427_vm11  ;;  %v13456_v7 = vld [vmem:[#allocation24_spill] sm:$0xff] }
 0x720   : > { %6179 = vrot.lane.b32.xlu1 %v13402_v36, %s7399_s18  ;;  %v5533_v48 = vsel %vm13428_vm13, %v5501_v34, %v11472_v41  ;;  %v5438_v41 = vsel %vm585_vm0, %v13319_v4, %v13434_v62  ;;  %vm13437_vm9 = vmmov %vm13424_vm2  ;;  %v13457_v34 = vld [vmem:[#allocation133_spill] sm:$0xff]  ;;  %v4333_v62 = vld [vmem:[#allocation3 + $0x128] sm:$0xff] }
 0x721   : > { %5368 = vrot.lane.b32.xlu0 %v4392_v6, %s7395_s9  ;;  %v5565_v28 = vsel %vm13431_vm5, %v5533_v48, %v11592_v1  ;;  %v5470_v1 = vsel %vm13437_vm9, %v5438_v41, %v11201_v24  ;;  %vm13438_vm10 = vmmov %vm13430_vm4  ;;  %v13442_v24 = vld [vmem:[#allocation128_spill] sm:$0xff]  ;;  %v13455_v6 = vld [vmem:[#allocation26_spill] sm:$0xff] }
 0x722   : > { %v5345_v33 = vpop.permute.xlu1 %5344  ;;  %v5597_v59 = vsel %vm13432_vm6, %v5565_v28, %v5091_v40  ;;  %vm13439_vm1 = vmmov %vm13426_vm12  ;;  %v5439_v0 = vsel %vm585_vm0, %v13321_v63, %v13442_v24  ;;  %v13459_v48 = vld [vmem:[#allocation53_spill] sm:$0xff]  ;;  %v7354_v41 = vld [vmem:[#allocation3 + $0x68] sm:$0xff] }
 0x723   : > { %v5660_v36 = vsel %vm13427_vm11, %v5628_v32, %v5345_v33  ;;  %v5219_v10 = vpop.permute.xlu0 %5218  ;;  %v5502_v17 = vsel %vm13439_vm1, %v5470_v1, %v11327_v37  ;;  %vm13440_vm15 = vmmov %vm13428_vm13  ;;  %v4332_v32 = vld [vmem:[#allocation3 + $0x120] sm:$0xff] }
 0x724   : > { %6053 = vrot.lane.b32.xlu1 %v13429_v47, %s7398_s20  ;;  %7200 = vmatprep.mubr.msk.f32.mxu0 %vm13430_vm4, %v5660_v36  ;;  %v5629_v25 = vsel %vm13433_vm7, %v5597_v59, %v5219_v10  ;;  %v5534_v4 = vsel %vm13440_vm15, %v5502_v17, %v11481_v55  ;;  %vm13441_vm14 = vmmov %vm13431_vm5  ;;  %v7353_v33 = vld [vmem:[#allocation3 + $0x60] sm:$0xff] }
 0x725   : > { %5370 = vrot.lane.b32.xlu0 %v4393_v44, %s7395_s9  ;;  %v5566_v2 = vsel %vm13441_vm14, %v5534_v4, %v11601_v43  ;;  %vm13443_vm2 = vmmov %vm13432_vm6  ;;  %v5440_v36 = vsel %vm585_vm0, %v7353_v33, %v13457_v34  ;;  %v13484_v34 = vld [vmem:[#allocation54_spill] sm:$0xff] }
 0x726   : > { %v5093_v42 = vpop.permute.xlu1 %5092  ;;  %vm13444_vm3 = vmmov %vm13437_vm9 }
 0x727   : > { %v5347_v22 = vpop.permute.xlu0 %5346  ;;  %v5598_v53 = vsel %vm13443_vm2, %v5566_v2, %v5093_v42  ;;  %v5471_v37 = vsel %vm13444_vm3, %v5439_v0, %v11199_v61  ;;  %vm13445_vm12 = vmmov %vm13433_vm7  ;;  %v4364_v42 = vld [vmem:[#allocation3 + $0x121] sm:$0xff] }
 0x728   : > { %v5661_v9 = vsel %vm13435_vm8, %v5629_v25, %v5347_v22  ;;  %6055 = vrot.lane.b32.xlu1 %v13436_v12, %s7398_s20  ;;  %vm13446_vm11 = vmmov %vm13439_vm1 }
 0x729   : > { %5116 = vrot.lane.b32.xlu0 %v4330_v35, %s7389_s15  ;;  %7201 = vmatmul.mubr.msk.f32.gmra.mxu0 %vm13438_vm10, %v5661_v9  ;;  %v5503_v43 = vsel %vm13446_vm11, %v5471_v37, %v11325_v50  ;;  %vm13447_vm13 = vmmov %vm13435_vm8  ;;  %v13462_v9 = vld [vmem:[#allocation132_spill] sm:$0xff]  ;;  %v4396_v37 = vld [vmem:[#allocation3 + $0x122] sm:$0xff] }
 0x72a   : > { %v5221_v54 = vpop.permute.xlu1 %5220  ;;  %vm13448_vm4 = vmmov %vm13440_vm15  ;;  %v13464_v35 = vld [vmem:[#allocation52_spill] sm:$0xff] }
 0x72b   : > { %v5095_v3 = vpop.permute.xlu0 %5094  ;;  %v5630_v55 = vsel %vm13445_vm12, %v5598_v53, %v5221_v54  ;;  %v5535_v63 = vsel %vm13448_vm4, %v5503_v43, %v11479_v5  ;;  %vm13449_vm5 = vmmov %vm13438_vm10  ;;  %v4394_v5 = vld [vmem:[#allocation3 + $0x10a] sm:$0xff] }
 0x72c   : > { %5244 = vrot.lane.b32.xlu1 %v4362_v45, %s7394_s23  ;;  %vm13450_vm6 = vmmov %vm13441_vm14  ;;  %v4397_v43 = vld [vmem:[#allocation3 + $0x12a] sm:$0xff] }
 0x72d   : > { %5118 = vrot.lane.b32.xlu0 %v4331_v51, %s7389_s15  ;;  %v5567_v61 = vsel %vm13450_vm6, %v5535_v63, %v11599_v21  ;;  %vm13451_vm7 = vmmov %vm13443_vm2  ;;  %v4334_v63 = vld [vmem:[#allocation3 + $0x138] sm:$0xff] }
 0x72e   : > { %v5349_v26 = vpop.permute.xlu1 %5348  ;;  %v5599_v13 = vsel %vm13451_vm7, %v5567_v61, %v5095_v3  ;;  %vm13452_vm8 = vmmov %vm13445_vm12  ;;  %v7355_v61 = vld [vmem:[#allocation3 + $0x78] sm:$0xff] }
 0x72f   : > { %v5662_v56 = vsel %vm13447_vm13, %v5630_v55, %v5349_v26  ;;  %v5223_v57 = vpop.permute.xlu0 %5222  ;;  %vm13453_vm9 = vmmov %vm13447_vm13  ;;  %v13475_v26 = vld [vmem:[#allocation29_spill] sm:$0xff] }
 0x730   : > { %5246 = vrot.lane.b32.xlu1 %v4363_v11, %s7394_s23  ;;  %7203 = vmatprep.mubr.msk.f32.mxu0 %vm13449_vm5, %v5662_v56  ;;  %v5631_v18 = vsel %vm13452_vm8, %v5599_v13, %v5223_v57  ;;  %vm13454_vm10 = vmmov %vm13449_vm5  ;;  %v13476_v11 = vld [vmem:[#allocation27_spill] sm:$0xff]  ;;  %v13477_v13 = vld [vmem:[#allocation140_spill] sm:$0xff] }
 0x731   : > { %6181 = vrot.lane.b32.xlu0 %v13429_v47, %s7399_s18  ;;  %vm13458_vm1 = vmmov %vm13444_vm3 }
 0x732   : > { %v6034_v50 = vpop.permute.xlu1 %6033  ;;  %v5472_v10 = vsel %vm13458_vm1, %v5440_v36, %v11209_v49  ;;  %vm13460_vm15 = vmmov %vm13446_vm11 }
 0x733   : > { %v5351_v19 = vpop.permute.xlu0 %5350  ;;  %v6125_v47 = vmul.f32 %v6034_v50, %v13459_v48  ;;  %v5504_v28 = vsel %vm13460_vm15, %v5472_v10, %v11335_v8  ;;  %vm13461_vm14 = vmmov %vm13448_vm4  ;;  %v5442_v50 = vsel %vm585_vm0, %v7355_v61, %v13477_v13  ;;  %v13487_v48 = vld [vmem:[#allocation191_spill] sm:$0xff]  ;;  %v13510_v61 = vld [vmem:[#allocation136_spill] sm:$0xff] }
 0x734   : > { %v5663_v40 = vsel %vm13453_vm9, %v5631_v18, %v5351_v19  ;;  %6183 = vrot.lane.b32.xlu1 %v13436_v12, %s7399_s18  ;;  %v5536_v25 = vsel %vm13461_vm14, %v5504_v28, %v11488_v16  ;;  %v5441_v12 = vsel %vm585_vm0, %v7354_v41, %v13462_v9  ;;  %vm13463_vm2 = vmmov %vm13450_vm6  ;;  %v13479_v19 = vld [vmem:[#allocation55_spill] sm:$0xff] }
 0x735   : > { %5372 = vrot.lane.b32.xlu0 %v4394_v5, %s7395_s9  ;;  %7204 = vmatmul.mubr.msk.f32.gmra.mxu0 %vm13454_vm10, %v5663_v40  ;;  %v5568_v49 = vsel %vm13463_vm2, %v5536_v25, %v11609_v14  ;;  %vm13465_vm3 = vmmov %vm13458_vm1  ;;  %v4365_v14 = vld [vmem:[#allocation3 + $0x129] sm:$0xff] }
 0x736   : > { %v6036_v21 = vpop.permute.xlu1 %6035  ;;  %v5473_v8 = vsel %vm13465_vm3, %v5441_v12, %v11207_v30  ;;  %vm13466_vm12 = vmmov %vm13451_vm7 }
 0x737   : > { %v5097_v39 = vpop.permute.xlu0 %5096  ;;  %v6126_v1 = vmul.f32 %v6036_v21, %v13464_v35  ;;  %v5505_v54 = vsel %vm13446_vm11, %v5473_v8, %v11333_v15  ;;  %vm13467_vm13 = vmmov %vm13452_vm8 }
 0x738   : > { %6057 = vrot.lane.b32.xlu1 %v13455_v6, %s7398_s20  ;;  %v5600_v16 = vsel %vm13466_vm12, %v5568_v49, %v5097_v39  ;;  %v5537_v2 = vsel %vm13448_vm4, %v5505_v54, %v11486_v46  ;;  %vm13468_vm5 = vmmov %vm13453_vm9  ;;  %v4399_v54 = vld [vmem:[#allocation3 + $0x142] sm:$0xff] }
 0x739   : > { %5374 = vrot.lane.b32.xlu0 %v4395_v38, %s7395_s9  ;;  %vm13469_vm6 = vmmov %vm13463_vm2 }
 0x73a   : > { %v5225_v58 = vpop.permute.xlu1 %5224  ;;  %v5569_v30 = vsel %vm13469_vm6, %v5537_v2, %v11607_v27  ;;  %vm13470_vm7 = vmmov %vm13454_vm10  ;;  %v7357_v2 = vld [vmem:[#allocation3 + $0x90] sm:$0xff] }
 0x73b   : > { %v5099_v23 = vpop.permute.xlu0 %5098  ;;  %v5632_v4 = vsel %vm13467_vm13, %v5600_v16, %v5225_v58  ;;  %vm13471_vm8 = vmmov %vm13466_vm12 }
 0x73c   : > { %6059 = vrot.lane.b32.xlu1 %v13456_v7, %s7398_s20  ;;  %v5601_v15 = vsel %vm13471_vm8, %v5569_v30, %v5099_v23  ;;  %vm13472_vm9 = vmmov %vm13467_vm13  ;;  %v4335_v23 = vld [vmem:[#allocation3 + $0x140] sm:$0xff] }
 0x73d   : > { %5120 = vrot.lane.b32.xlu0 %v4332_v32, %s7389_s15  ;;  %vm13473_vm10 = vmmov %vm13468_vm5  ;;  %v13482_v32 = vld [vmem:[#allocation134_spill] sm:$0xff] }
 0x73e   : > { %v5227_v44 = vpop.permute.xlu1 %5226  ;;  %vm13474_vm1 = vmmov %vm13470_vm7 }
 0x73f   : > { %v6162_v59 = vpop.permute.xlu0 %6161  ;;  %v5633_v0 = vsel %vm13472_vm9, %v5601_v15, %v5227_v44  ;;  %vm13478_vm15 = vmmov %vm13465_vm3  ;;  %v13503_v15 = vld [vmem:[#allocation162_spill] sm:$0xff] }
 0x740   : > { %v6253_v22 = vadd.f32 %v6162_v59, %v6125_v47  ;;  %5248 = vrot.lane.b32.xlu1 %v4364_v42, %s7394_s23  ;;  %v5474_v18 = vsel %vm13478_vm15, %v5442_v50, %v11217_v52  ;;  %vm13480_vm14 = vmmov %vm13446_vm11  ;;  %v13490_v42 = vld [vmem:[#allocation208_spill] sm:$0xff] }
 0x741   : > { %5122 = vrot.lane.b32.xlu0 %v4333_v62, %s7389_s15  ;;  %v5506_v21 = vsel %vm13480_vm14, %v5474_v18, %v11343_v20  ;;  %vm13481_vm2 = vmmov %vm13448_vm4  ;;  %v13511_v50 = vld [vmem:[#allocation228_spill] sm:$0xff] }
 0x742   : > { %7250 = vmatprep.mubr.msk.f32.mxu1 %vm585_vm0, %v6253_v22  ;;  %v6164_v17 = vpop.permute.xlu1 %6163  ;;  %v5538_v38 = vsel %vm13481_vm2, %v5506_v21, %v11496_v60  ;;  %vm13483_vm3 = vmmov %vm13469_vm6 }
 0x743   : > { %v6254_v3 = vadd.f32 %v6164_v17, %v6126_v1  ;;  %v5353_v45 = vpop.permute.xlu0 %5352  ;;  %v5570_v52 = vsel %vm13483_vm3, %v5538_v38, %v11616_v29  ;;  %vm13485_vm12 = vmmov %vm13478_vm15  ;;  %v4367_v29 = vld [vmem:[#allocation3 + $0x141] sm:$0xff]  ;;  %v13500_v17 = vld [vmem:[#allocation32_spill] sm:$0xff] }
 0x744   : > { %v5664_v51 = vsel %vm13468_vm5, %v5632_v4, %v5353_v45  ;;  %5250 = vrot.lane.b32.xlu1 %v4365_v14, %s7394_s23  ;;  %vm13486_vm11 = vmmov %vm13471_vm8  ;;  %v4398_v1 = vld [vmem:[#allocation3 + $0x13a] sm:$0xff]  ;;  %v4336_v14 = vld [vmem:[#allocation3 + $0x150] sm:$0xff] }
 0x745   : > { %6185 = vrot.lane.b32.xlu0 %v13455_v6, %s7399_s18  ;;  %7206 = vmatprep.mubr.msk.f32.mxu0 %vm13470_vm7, %v5664_v51  ;;  %v4366_v6 = vld [vmem:[#allocation3 + $0x139] sm:$0xff]  ;;  %vm13488_vm13 = vmmov %vm13480_vm14  ;;  %v13502_v51 = vld [vmem:[#allocation155_spill] sm:$0xff] }
 0x746   : > { %7251 = vmatmul.mubr.msk.f32.vlgmr.msra.gmra.mxu1 %vm585_vm0, %v6254_v3  ;;  %v6038_v24 = vpop.permute.xlu1 %6037  ;;  %vm13489_vm4 = vmmov %vm13472_vm9  ;;  %v13501_v45 = vld [vmem:[#allocation30_spill] sm:$0xff]  ;;  %v5444_v30 = vsel %vm585_vm0, %v7357_v2, %v13502_v51 }
 0x747   : > { %v5355_v46 = vpop.permute.xlu0 %5354  ;;  %v6127_v40 = vmul.f32 %v6038_v24, %v13479_v19  ;;  %vm13491_vm5 = vmmov %vm13481_vm2  ;;  %v13513_v19 = vld [vmem:[#allocation56_spill] sm:$0xff]  ;;  %v13517_v38 = vld [vmem:[#allocation186_spill] sm:$0xff] }
 0x748   : > { %v5665_v53 = vsel %vm13473_vm10, %v5633_v0, %v5355_v46  ;;  %6187 = vrot.lane.b32.xlu1 %v13456_v7, %s7399_s18  ;;  %v7356_v7 = vld [vmem:[#allocation3 + $0x80] sm:$0xff]  ;;  %vm13492_vm6 = vmmov %vm13473_vm10  ;;  %v13505_v0 = vld [vmem:[#allocation57_spill] sm:$0xff] }
 0x749   : > { %5376 = vrot.lane.b32.xlu0 %v4396_v37, %s7395_s9  ;;  %7207 = vmatmul.mubr.msk.f32.gmra.mxu0 %vm13474_vm1, %v5665_v53  ;;  %v5443_v33 = vsel %vm585_vm0, %v7356_v7, %v13482_v32  ;;  %vm13494_vm7 = vmmov %vm13483_vm3  ;;  %v13506_v37 = vld [vmem:[#allocation188_spill] sm:$0xff]  ;;  %v13538_v2 = vld [vmem:[#allocation210_spill] sm:$0xff] }
 0x74a   : > { %v6040_v27 = vpop.permute.xlu1 %6039  ;;  %v5475_v20 = vsel %vm13485_vm12, %v5443_v33, %v11215_v31  ;;  %v13493_v31 = vld [vmem:[#allocation226_spill] sm:$0xff]  ;;  %vm13495_vm8 = vmmov %vm13474_vm1 }
 0x74b   : > { %v5101_v55 = vpop.permute.xlu0 %5100  ;;  %v6128_v36 = vmul.f32 %v6040_v27, %v13484_v34  ;;  %v5507_v47 = vsel %vm13488_vm13, %v5475_v20, %v13487_v48  ;;  %vm13496_vm9 = vmmov %vm13486_vm11  ;;  %v4369_v33 = vld [vmem:[#allocation3 + $0x159] sm:$0xff]  ;;  %v13523_v20 = vld [vmem:[#allocation223_spill] sm:$0xff] }
 0x74c   : > { %6061 = vrot.lane.b32.xlu1 %v13475_v26, %s7398_s20  ;;  %v5602_v60 = vsel %vm13486_vm11, %v5570_v52, %v5101_v55  ;;  %v5539_v25 = vsel %vm13491_vm5, %v5507_v47, %v13490_v42  ;;  %vm13497_vm10 = vmmov %vm13489_vm4  ;;  %v13520_v52 = vld [vmem:[#allocation209_spill] sm:$0xff] }
 0x74d   : > { %5378 = vrot.lane.b32.xlu0 %v4397_v43, %s7395_s9  ;;  %v5571_v62 = vsel %vm13494_vm7, %v5539_v25, %v13493_v31  ;;  %vm13498_vm1 = vmmov %vm13492_vm6  ;;  %v13508_v43 = vld [vmem:[#allocation207_spill] sm:$0xff]  ;;  %v13530_v25 = vld [vmem:[#allocation34_spill] sm:$0xff] }
 0x74e   : > { %v5229_v56 = vpop.permute.xlu1 %5228  ;;  %vm13499_vm15 = vmmov %vm13495_vm8 }
 0x74f   : > { %v5103_v57 = vpop.permute.xlu0 %5102  ;;  %v5634_v44 = vsel %vm13489_vm4, %v5602_v60, %v5229_v56  ;;  %vm13504_vm14 = vmmov %vm13485_vm12 }
 0x750   : > { %6063 = vrot.lane.b32.xlu1 %v13476_v11, %s7398_s20  ;;  %v5603_v41 = vsel %vm13496_vm9, %v5571_v62, %v5103_v57  ;;  %v5476_v24 = vsel %vm13504_vm14, %v5444_v30, %v13503_v15  ;;  %vm13507_vm2 = vmmov %vm13488_vm13  ;;  %v4339_v15 = vld [vmem:[#allocation3 + $0x170] sm:$0xff] }
 0x751   : > { %5124 = vrot.lane.b32.xlu0 %v4334_v63, %s7389_s15  ;;  %v5508_v27 = vsel %vm13507_vm2, %v5476_v24, %v13506_v37  ;;  %vm13509_vm3 = vmmov %vm13491_vm5  ;;  %v7358_v63 = vld [vmem:[#allocation3 + $0x98] sm:$0xff]  ;;  %v7360_v24 = vld [vmem:[#allocation3 + $0xb0] sm:$0xff] }
 0x752   : > { %v5231_v5 = vpop.permute.xlu1 %5230  ;;  %v5540_v56 = vsel %vm13509_vm3, %v5508_v27, %v13508_v43  ;;  %v5445_v13 = vsel %vm585_vm0, %v7358_v63, %v13510_v61  ;;  %vm13512_vm12 = vmmov %vm13494_vm7  ;;  %v13543_v27 = vld [vmem:[#allocation58_spill] sm:$0xff] }
 0x753   : > { %v6166_v39 = vpop.permute.xlu0 %6165  ;;  %v5635_v12 = vsel %vm13497_vm10, %v5603_v41, %v5231_v5  ;;  %v5572_v18 = vsel %vm13512_vm12, %v5540_v56, %v13511_v50  ;;  %v13514_v5 = vld [vmem:[#allocation179_spill] sm:$0xff]  ;;  %vm13515_vm11 = vmmov %vm13504_vm14  ;;  %v13531_v41 = vld [vmem:[#allocation33_spill] sm:$0xff] }
 0x754   : > { %v6255_v58 = vadd.f32 %v6166_v39, %v6127_v40  ;;  %5252 = vrot.lane.b32.xlu1 %v4366_v6, %s7394_s23  ;;  %v5477_v21 = vsel %vm13515_vm11, %v5445_v13, %v13514_v5  ;;  %vm13516_vm13 = vmmov %vm13496_vm9 }
 0x755   : > { %5126 = vrot.lane.b32.xlu0 %v4335_v23, %s7389_s15  ;;  %vm13518_vm4 = vmmov %vm13507_vm2 }
 0x756   : > { %7253 = vmatprep.mubr.msk.f32.mxu1 %vm585_vm0, %v6255_v58  ;;  %v6168_v10 = vpop.permute.xlu1 %6167  ;;  %v5509_v58 = vsel %vm13518_vm4, %v5477_v21, %v13517_v38  ;;  %vm13519_vm5 = vmmov %vm13497_vm10  ;;  %v13553_v21 = vld [vmem:[#allocation225_spill] sm:$0xff] }
 0x757   : > { %v6256_v28 = vadd.f32 %v6168_v10, %v6128_v36  ;;  %v5357_v59 = vpop.permute.xlu0 %5356  ;;  %vm13522_vm7 = vmmov %vm13498_vm1 }
 0x758   : > { %v5666_v22 = vsel %vm13492_vm6, %v5634_v44, %v5357_v59  ;;  %5254 = vrot.lane.b32.xlu1 %v4367_v29, %s7394_s23  ;;  %vm13521_vm6 = vmmov %vm13509_vm3  ;;  %v4400_v59 = vld [vmem:[#allocation3 + $0x152] sm:$0xff] }
 0x759   : > { %6189 = vrot.lane.b32.xlu0 %v13475_v26, %s7399_s18  ;;  %7209 = vmatprep.mubr.msk.f32.mxu0 %vm13495_vm8, %v5666_v22  ;;  %v4368_v26 = vld [vmem:[#allocation3 + $0x151] sm:$0xff]  ;;  %v5541_v34 = vsel %vm13521_vm6, %v5509_v58, %v13520_v52  ;;  %vm13524_vm8 = vmmov %vm13512_vm12  ;;  %v4401_v22 = vld [vmem:[#allocation3 + $0x15a] sm:$0xff] }
 0x75a   : > { %7254 = vmatmul.mubr.msk.f32.gmra.mxu1 %vm585_vm0, %v6256_v28  ;;  %v6042_v9 = vpop.permute.xlu1 %6041  ;;  %v5573_v60 = vsel %vm13524_vm8, %v5541_v34, %v13523_v20  ;;  %vm13525_vm9 = vmmov %vm13499_vm15  ;;  %v13560_v34 = vld [vmem:[#allocation36_spill] sm:$0xff] }
 0x75b   : > { %v5359_v49 = vpop.permute.xlu0 %5358  ;;  %v6129_v46 = vmul.f32 %v6042_v9, %v13505_v0  ;;  %vm13526_vm10 = vmmov %vm13516_vm13  ;;  %v4338_v9 = vld [vmem:[#allocation3 + $0x168] sm:$0xff]  ;;  %v13540_v0 = vld [vmem:[#allocation144_spill] sm:$0xff] }
 0x75c   : > { %v5667_v35 = vsel %vm13498_vm1, %v5635_v12, %v5359_v49  ;;  %6191 = vrot.lane.b32.xlu1 %v13476_v11, %s7399_s18  ;;  %v4337_v11 = vld [vmem:[#allocation3 + $0x158] sm:$0xff]  ;;  %vm13527_vm1 = vmmov %vm13519_vm5  ;;  %v7359_v12 = vld [vmem:[#allocation3 + $0xa8] sm:$0xff] }
 0x75d   : > { %5380 = vrot.lane.b32.xlu0 %v4398_v1, %s7395_s9  ;;  %7210 = vmatmul.mubr.msk.f32.gmra.mxu0 %vm13499_vm15, %v5667_v35  ;;  %vm13528_vm15 = vmmov %vm13522_vm7  ;;  %v13532_v49 = vld [vmem:[#allocation141_spill] sm:$0xff] }
 0x75e   : > { %v6044_v8 = vpop.permute.xlu1 %6043  ;;  %vm13529_vm14 = vmmov %vm13525_vm9  ;;  %v5446_v35 = vsel %vm585_vm0, %v7359_v12, %v13532_v49  ;;  %v13533_v1 = vld [vmem:[#allocation169_spill] sm:$0xff] }
 0x75f   : > { %v5105_v16 = vpop.permute.xlu0 %5104  ;;  %v6130_v40 = vmul.f32 %v6044_v8, %v13513_v19  ;;  %vm13534_vm2 = vmmov %vm13515_vm11  ;;  %v13550_v19 = vld [vmem:[#allocation254_spill] sm:$0xff] }
 0x760   : > { %6065 = vrot.lane.b32.xlu1 %v13500_v17, %s7398_s20  ;;  %v5604_v39 = vsel %vm13516_vm13, %v5572_v18, %v5105_v16  ;;  %v5478_v8 = vsel %vm13534_vm2, %v5446_v35, %v13533_v1  ;;  %v13535_v16 = vld [vmem:[#allocation59_spill] sm:$0xff]  ;;  %vm13537_vm3 = vmmov %vm13518_vm4  ;;  %v4371_v18 = vld [vmem:[#allocation3 + $0x171] sm:$0xff] }
 0x761   : > { %5382 = vrot.lane.b32.xlu0 %v4399_v54, %s7395_s9  ;;  %vm13539_vm12 = vmmov %vm13521_vm6  ;;  %v7362_v35 = vld [vmem:[#allocation3 + $0xc8] sm:$0xff] }
 0x762   : > { %v5233_v4 = vpop.permute.xlu1 %5232  ;;  %vm13542_vm11 = vmmov %vm13524_vm8  ;;  %v13569_v1 = vld [vmem:[#allocation147_spill] sm:$0xff] }
 0x763   : > { %v5107_v3 = vpop.permute.xlu0 %5106  ;;  %v5636_v23 = vsel %vm13519_vm5, %v5604_v39, %v5233_v4  ;;  %v13536_v4 = vld [vmem:[#allocation203_spill] sm:$0xff]  ;;  %vm13545_vm13 = vmmov %vm13534_vm2 }
 0x764   : > { %6067 = vrot.lane.b32.xlu1 %v13501_v45, %s7398_s20  ;;  %v5605_v10 = vsel %vm13526_vm10, %v5573_v60, %v5107_v3  ;;  %v5510_v3 = vsel %vm13537_vm3, %v5478_v8, %v13536_v4  ;;  %vm13546_vm4 = vmmov %vm13526_vm10  ;;  %v5449_v8 = vsel %vm585_vm0, %v7362_v35, %v13569_v1 }
 0x765   : > { %5128 = vrot.lane.b32.xlu0 %v4336_v14, %s7389_s15  ;;  %v4370_v14 = vld [vmem:[#allocation3 + $0x169] sm:$0xff]  ;;  %v5542_v51 = vsel %vm13539_vm12, %v5510_v3, %v13538_v2  ;;  %vm13548_vm5 = vmmov %vm13537_vm3 }
 0x766   : > { %v5235_v53 = vpop.permute.xlu1 %5234  ;;  %vm13549_vm6 = vmmov %vm13527_vm1  ;;  %v13573_v3 = vld [vmem:[#allocation35_spill] sm:$0xff] }
 0x767   : > { %v6170_v55 = vpop.permute.xlu0 %6169  ;;  %v5637_v47 = vsel %vm13527_vm1, %v5605_v10, %v5235_v53  ;;  %v13541_v53 = vld [vmem:[#allocation232_spill] sm:$0xff]  ;;  %vm13552_vm8 = vmmov %vm13528_vm15  ;;  %v4340_v10 = vld [vmem:[#allocation3 + $0x180] sm:$0xff] }
 0x768   : > { %v6257_v57 = vadd.f32 %v6170_v55, %v6129_v46  ;;  %5256 = vrot.lane.b32.xlu1 %v4368_v26, %s7394_s23  ;;  %v5447_v46 = vsel %vm585_vm0, %v7360_v24, %v13540_v0  ;;  %v5574_v37 = vsel %vm13542_vm11, %v5542_v51, %v13541_v53  ;;  %v13544_v26 = vld [vmem:[#allocation168_spill] sm:$0xff]  ;;  %vm13555_vm10 = vmmov %vm13529_vm14  ;;  %v13580_v53 = vld [vmem:[#allocation211_spill] sm:$0xff] }
 0x769   : > { %5130 = vrot.lane.b32.xlu0 %v4337_v11, %s7389_s15  ;;  %v5479_v43 = vsel %vm13545_vm13, %v5447_v46, %v13544_v26  ;;  %v13547_v11 = vld [vmem:[#allocation190_spill] sm:$0xff]  ;;  %vm13556_vm1 = vmmov %vm13546_vm4  ;;  %v13583_v26 = vld [vmem:[#allocation224_spill] sm:$0xff] }
 0x76a   : > { %7256 = vmatprep.mubr.msk.f32.mxu1 %vm585_vm0, %v6257_v57  ;;  %v6172_v6 = vpop.permute.xlu1 %6171  ;;  %v5511_v63 = vsel %vm13548_vm5, %v5479_v43, %v13547_v11  ;;  %vm13559_vm2 = vmmov %vm13555_vm10 }
 0x76b   : > { %v6258_v7 = vadd.f32 %v6172_v6, %v6130_v40  ;;  %v5361_v32 = vpop.permute.xlu0 %5360  ;;  %vm13563_vm3 = vmmov %vm13545_vm13 }
 0x76c   : > { %v5668_v36 = vsel %vm13522_vm7, %v5636_v23, %v5361_v32  ;;  %5258 = vrot.lane.b32.xlu1 %v4369_v33, %s7394_s23  ;;  %vm13551_vm7 = vmmov %vm13539_vm12  ;;  %v4402_v32 = vld [vmem:[#allocation3 + $0x16a] sm:$0xff] }
 0x76d   : > { %6193 = vrot.lane.b32.xlu0 %v13500_v17, %s7399_s18  ;;  %7212 = vmatprep.mubr.msk.f32.mxu0 %vm13525_vm9, %v5668_v36  ;;  %v5543_v40 = vsel %vm13551_vm7, %v5511_v63, %v13550_v19  ;;  %vm13554_vm9 = vmmov %vm13542_vm11  ;;  %v4403_v36 = vld [vmem:[#allocation3 + $0x172] sm:$0xff] }
 0x76e   : > { %7257 = vmatmul.mubr.msk.f32.gmra.mxu1 %vm585_vm0, %v6258_v7  ;;  %v6046_v48 = vpop.permute.xlu1 %6045  ;;  %v5575_v39 = vsel %vm13554_vm9, %v5543_v40, %v13553_v21  ;;  %vm13566_vm12 = vmmov %vm13548_vm5  ;;  %v13590_v21 = vld [vmem:[#allocation38_spill] sm:$0xff] }
 0x76f   : > { %v5363_v44 = vpop.permute.xlu0 %5362  ;;  %v6131_v17 = vmul.f32 %v6046_v48, %v13535_v16  ;;  %v7361_v48 = vld [vmem:[#allocation3 + $0xc0] sm:$0xff]  ;;  %vm13568_vm11 = vmmov %vm13551_vm7 }
 0x770   : > { %v5669_v28 = vsel %vm13528_vm15, %v5637_v47, %v5363_v44  ;;  %6195 = vrot.lane.b32.xlu1 %v13501_v45, %s7399_s18  ;;  %vm13557_vm15 = vmmov %vm13549_vm6  ;;  %v13561_v47 = vld [vmem:[#allocation151_spill] sm:$0xff]  ;;  %v13570_v16 = vld [vmem:[#allocation230_spill] sm:$0xff] }
 0x771   : > { %5384 = vrot.lane.b32.xlu0 %v4400_v59, %s7395_s9  ;;  %7213 = vmatmul.mubr.msk.f32.gmra.mxu0 %vm13529_vm14, %v5669_v28  ;;  %vm13558_vm14 = vmmov %vm13552_vm8  ;;  %v5448_v44 = vsel %vm585_vm0, %v7361_v48, %v13561_v47  ;;  %v13562_v28 = vld [vmem:[#allocation171_spill] sm:$0xff] }
 0x772   : > { %v6048_v29 = vpop.permute.xlu1 %6047  ;;  %v5480_v59 = vsel %vm13563_vm3, %v5448_v44, %v13562_v28  ;;  %vm13571_vm13 = vmmov %vm13554_vm9  ;;  %v7364_v44 = vld [vmem:[#allocation3 + $0xe0] sm:$0xff] }
 0x773   : > { %v5109_v42 = vpop.permute.xlu0 %5108  ;;  %v6132_v55 = vmul.f32 %v6048_v29, %v13543_v27  ;;  %v13564_v29 = vld [vmem:[#allocation61_spill] sm:$0xff]  ;;  %vm13576_vm5 = vmmov %vm13556_vm1  ;;  %v13599_v28 = vld [vmem:[#allocation150_spill] sm:$0xff] }
 0x774   : > { %6069 = vrot.lane.b32.xlu1 %v13530_v25, %s7398_s20  ;;  %v5606_v56 = vsel %vm13546_vm4, %v5574_v37, %v5109_v42  ;;  %vm13575_vm4 = vmmov %vm13563_vm3 }
 0x775   : > { %5386 = vrot.lane.b32.xlu0 %v4401_v22, %s7395_s9  ;;  %v13565_v22 = vld [vmem:[#allocation192_spill] sm:$0xff]  ;;  %vm13579_vm7 = vmmov %vm13557_vm15 }
 0x776   : > { %v5237_v31 = vpop.permute.xlu1 %5236  ;;  %vm13582_vm9 = vmmov %vm13558_vm14 }
 0x777   : > { %v5111_v62 = vpop.permute.xlu0 %5110  ;;  %v5638_v61 = vsel %vm13549_vm6, %v5606_v56, %v5237_v31  ;;  %v5512_v31 = vsel %vm13566_vm12, %v5480_v59, %v13565_v22  ;;  %vm13578_vm6 = vmmov %vm13566_vm12  ;;  %v5451_v59 = vsel %vm585_vm0, %v7364_v44, %v13599_v28 }
 0x778   : > { %6071 = vrot.lane.b32.xlu1 %v13531_v41, %s7398_s20  ;;  %v5607_v6 = vsel %vm13556_vm1, %v5575_v39, %v5111_v62  ;;  %vm13585_vm1 = vmmov %vm13559_vm2  ;;  %v4405_v39 = vld [vmem:[#allocation3 + $0x18a] sm:$0xff] }
 0x779   : > { %5132 = vrot.lane.b32.xlu0 %v4338_v9, %s7389_s15  ;;  %v13567_v9 = vld [vmem:[#allocation253_spill] sm:$0xff]  ;;  %vm13589_vm3 = vmmov %vm13585_vm1 }
 0x77a   : > { %v5239_v54 = vpop.permute.xlu1 %5238  ;;  %v5544_v12 = vsel %vm13568_vm11, %v5512_v31, %v13567_v9  ;;  %vm13593_vm12 = vmmov %vm13575_vm4  ;;  %v4343_v31 = vld [vmem:[#allocation3 + $0x1a0] sm:$0xff] }
 0x77b   : > { %v6174_v45 = vpop.permute.xlu0 %6173  ;;  %v5639_v58 = vsel %vm13557_vm15, %v5607_v6, %v5239_v54  ;;  %v13572_v54 = vld [vmem:[#allocation60_spill] sm:$0xff]  ;;  %vm13586_vm15 = vmmov %vm13576_vm5  ;;  %v7363_v6 = vld [vmem:[#allocation3 + $0xd8] sm:$0xff] }
 0x77c   : > { %v6259_v30 = vadd.f32 %v6174_v45, %v6131_v17  ;;  %5260 = vrot.lane.b32.xlu1 %v4370_v14, %s7394_s23  ;;  %v5576_v17 = vsel %vm13571_vm13, %v5544_v12, %v13570_v16  ;;  %v13574_v45 = vld [vmem:[#allocation170_spill] sm:$0xff] }
 0x77d   : > { %5134 = vrot.lane.b32.xlu0 %v4339_v15, %s7389_s15  ;;  %v5481_v14 = vsel %vm13575_vm4, %v5449_v8, %v13574_v45 }
 0x77e   : > { %7259 = vmatprep.mubr.msk.f32.mxu1 %vm585_vm0, %v6259_v30  ;;  %v6176_v57 = vpop.permute.xlu1 %6175  ;;  %v13577_v30 = vld [vmem:[#allocation187_spill] sm:$0xff] }
 0x77f   : > { %v6260_v13 = vadd.f32 %v6176_v57, %v6132_v55  ;;  %v5365_v50 = vpop.permute.xlu0 %5364  ;;  %v5513_v15 = vsel %vm13578_vm6, %v5481_v14, %v13577_v30  ;;  %v4372_v55 = vld [vmem:[#allocation3 + $0x181] sm:$0xff]  ;;  %v13614_v14 = vld [vmem:[#allocation37_spill] sm:$0xff] }
 0x780   : > { %v5670_v5 = vsel %vm13552_vm8, %v5638_v61, %v5365_v50  ;;  %5262 = vrot.lane.b32.xlu1 %v4371_v18, %s7394_s23  ;;  %vm13581_vm8 = vmmov %vm13568_vm11  ;;  %v4404_v61 = vld [vmem:[#allocation3 + $0x182] sm:$0xff]  ;;  %v4374_v30 = vld [vmem:[#allocation3 + $0x199] sm:$0xff] }
 0x781   : > { %6197 = vrot.lane.b32.xlu0 %v13530_v25, %s7399_s18  ;;  %7215 = vmatprep.mubr.msk.f32.mxu0 %vm13555_vm10, %v5670_v5  ;;  %v5545_v37 = vsel %vm13581_vm8, %v5513_v15, %v13580_v53  ;;  %vm13584_vm10 = vmmov %vm13571_vm13  ;;  %v4373_v50 = vld [vmem:[#allocation3 + $0x189] sm:$0xff] }
 0x782   : > { %7260 = vmatmul.mubr.msk.f32.gmra.mxu1 %vm585_vm0, %v6260_v13  ;;  %v6050_v38 = vpop.permute.xlu1 %6049  ;;  %v5577_v43 = vsel %vm13584_vm10, %v5545_v37, %v13583_v26  ;;  %vm13596_vm11 = vmmov %vm13578_vm6  ;;  %v4375_v37 = vld [vmem:[#allocation3 + $0x1a1] sm:$0xff] }
 0x783   : > { %v5367_v23 = vpop.permute.xlu0 %5366  ;;  %v6133_v42 = vmul.f32 %v6050_v38, %v13564_v29  ;;  %v13591_v38 = vld [vmem:[#allocation152_spill] sm:$0xff]  ;;  %vm13598_vm13 = vmmov %vm13581_vm8  ;;  %v13600_v29 = vld [vmem:[#allocation258_spill] sm:$0xff] }
 0x784   : > { %v5671_v7 = vsel %vm13558_vm14, %v5639_v58, %v5367_v23  ;;  %6199 = vrot.lane.b32.xlu1 %v13531_v41, %s7399_s18  ;;  %v4341_v41 = vld [vmem:[#allocation3 + $0x188] sm:$0xff]  ;;  %vm13587_vm14 = vmmov %vm13579_vm7  ;;  %v5450_v58 = vsel %vm585_vm0, %v7363_v6, %v13591_v38  ;;  %v4342_v23 = vld [vmem:[#allocation3 + $0x198] sm:$0xff] }
 0x785   : > { %5388 = vrot.lane.b32.xlu0 %v4402_v32, %s7395_s9  ;;  %7216 = vmatmul.mubr.msk.f32.gmra.mxu0 %vm13559_vm2, %v5671_v7  ;;  %vm13588_vm2 = vmmov %vm13582_vm9  ;;  %v13592_v7 = vld [vmem:[#allocation172_spill] sm:$0xff] }
 0x786   : > { %v6052_v33 = vpop.permute.xlu1 %6051  ;;  %v5482_v32 = vsel %vm13593_vm12, %v5450_v58, %v13592_v7  ;;  %vm13601_vm4 = vmmov %vm13584_vm10  ;;  %v13628_v38 = vld [vmem:[#allocation40_spill] sm:$0xff]  ;;  %v7366_v58 = vld [vmem:[#allocation3 + $0xf8] sm:$0xff] }
 0x787   : > { %v5113_v52 = vpop.permute.xlu0 %5112  ;;  %v6134_v4 = vmul.f32 %v6052_v33, %v13572_v54  ;;  %v13594_v33 = vld [vmem:[#allocation63_spill] sm:$0xff]  ;;  %vm13605_vm6 = vmmov %vm13586_vm15 }
 0x788   : > { %6073 = vrot.lane.b32.xlu1 %v13560_v34, %s7398_s20  ;;  %v5608_v2 = vsel %vm13576_vm5, %v5576_v17, %v5113_v52  ;;  %vm13604_vm5 = vmmov %vm13593_vm12  ;;  %v13609_v17 = vld [vmem:[#allocation215_spill] sm:$0xff] }
 0x789   : > { %5390 = vrot.lane.b32.xlu0 %v4403_v36, %s7395_s9  ;;  %vm13608_vm8 = vmmov %vm13587_vm14 }
 0x78a   : > { %v5241_v20 = vpop.permute.xlu1 %5240  ;;  %vm13611_vm10 = vmmov %vm13588_vm2 }
 0x78b   : > { %v5115_v60 = vpop.permute.xlu0 %5114  ;;  %v5640_v24 = vsel %vm13579_vm7, %v5608_v2, %v5241_v20  ;;  %vm13607_vm7 = vmmov %vm13596_vm11 }
 0x78c   : > { %5136 = vrot.lane.b32.xlu1 %v4340_v10, %s7389_s15  ;;  %v5609_v56 = vsel %vm13586_vm15, %v5577_v43, %v5115_v60  ;;  %v13597_v10 = vld [vmem:[#allocation214_spill] sm:$0xff]  ;;  %vm13615_vm15 = vmmov %vm13589_vm3 }
 0x78d   : > { %5010 = vrot.lane.b32.xlu0 %v4403_v36, %s7393_s22  ;;  %v13595_v36 = vld [vmem:[#allocation195_spill] sm:$0xff]  ;;  %vm13619_vm12 = vmmov %vm13615_vm15 }
 0x78e   : > { %v5243_v25 = vpop.permute.xlu1 %5242  ;;  %v5514_v20 = vsel %vm13596_vm11, %v5482_v32, %v13595_v36  ;;  %vm13622_vm11 = vmmov %vm13604_vm5  ;;  %v13630_v32 = vld [vmem:[#allocation241_spill] sm:$0xff] }
 0x78f   : > { %v6178_v62 = vpop.permute.xlu0 %6177  ;;  %v5641_v11 = vsel %vm13587_vm14, %v5609_v56, %v5243_v25  ;;  %v5546_v48 = vsel %vm13598_vm13, %v5514_v20, %v13597_v10  ;;  %v13602_v25 = vld [vmem:[#allocation62_spill] sm:$0xff]  ;;  %vm13616_vm14 = vmmov %vm13605_vm6  ;;  %v7365_v56 = vld [vmem:[#allocation3 + $0xf0] sm:$0xff] }
 0x790   : > { %v6261_v49 = vadd.f32 %v6178_v62, %v6133_v42  ;;  %5138 = vrot.lane.b32.xlu1 %v4341_v41, %s7389_s15  ;;  %v5578_v42 = vsel %vm13601_vm4, %v5546_v48, %v13600_v29  ;;  %v13603_v62 = vld [vmem:[#allocation165_spill] sm:$0xff]  ;;  %v13634_v20 = vld [vmem:[#allocation176_spill] sm:$0xff] }
 0x791   : > { %6075 = vrot.lane.b32.xlu0 %v13573_v3, %s7398_s20  ;;  %v5483_v41 = vsel %vm13604_vm5, %v5451_v59, %v13603_v62  ;;  %v13633_v36 = vld [vmem:[#allocation5_spill] sm:$0xff] }
 0x792   : > { %7262 = vmatprep.mubr.msk.f32.mxu1 %vm585_vm0, %v6261_v49  ;;  %v6180_v51 = vpop.permute.xlu1 %6179  ;;  %v13606_v49 = vld [vmem:[#allocation194_spill] sm:$0xff]  ;;  %v13644_v62 = vld [vmem:[#allocation233_spill] sm:$0xff] }
 0x793   : > { %v6262_v0 = vadd.f32 %v6180_v51, %v6134_v4  ;;  %v5369_v46 = vpop.permute.xlu0 %5368  ;;  %v5515_v35 = vsel %vm13607_vm7, %v5483_v41, %v13606_v49 }
 0x794   : > { %v5672_v27 = vsel %vm13582_vm9, %v5640_v24, %v5369_v46  ;;  %6201 = vrot.lane.b32.xlu1 %v13560_v34, %s7399_s18  ;;  %vm13610_vm9 = vmmov %vm13598_vm13  ;;  %v4406_v46 = vld [vmem:[#allocation3 + $0x19a] sm:$0xff] }
 0x795   : > { %5264 = vrot.lane.b32.xlu0 %v4372_v55, %s7394_s23  ;;  %7218 = vmatprep.mubr.msk.f32.mxu0 %vm13585_vm1, %v5672_v27  ;;  %v5547_v54 = vsel %vm13610_vm9, %v5515_v35, %v13609_v17  ;;  %vm13613_vm1 = vmmov %vm13601_vm4  ;;  %v4407_v55 = vld [vmem:[#allocation3 + $0x1a2] sm:$0xff] }
 0x796   : > { %7263 = vmatmul.mubr.msk.f32.gmra.mxu1 %vm585_vm0, %v6262_v0  ;;  %v6054_v57 = vpop.permute.xlu1 %6053  ;;  %vm13625_vm13 = vmmov %vm13607_vm7 }
 0x797   : > { %v5371_v63 = vpop.permute.xlu0 %5370  ;;  %v6135_v52 = vmul.f32 %v6054_v57, %v13594_v33  ;;  %v13620_v57 = vld [vmem:[#allocation167_spill] sm:$0xff]  ;;  %vm13627_vm4 = vmmov %vm13610_vm9 }
 0x798   : > { %v5673_v13 = vsel %vm13588_vm2, %v5641_v11, %v5371_v63  ;;  %5392 = vrot.lane.b32.xlu1 %v4404_v61, %s7395_s9  ;;  %vm13617_vm2 = vmmov %vm13608_vm8  ;;  %v5452_v11 = vsel %vm585_vm0, %v7365_v56, %v13620_v57  ;;  %v13621_v63 = vld [vmem:[#allocation175_spill] sm:$0xff]  ;;  %v13662_v56 = vld [vmem:[#allocation41_spill] sm:$0xff] }
 0x799   : > { %5266 = vrot.lane.b32.xlu0 %v4373_v50, %s7394_s23  ;;  %7219 = vmatmul.mubr.msk.f32.gmra.mxu0 %vm13589_vm3, %v5673_v13  ;;  %vm13618_vm3 = vmmov %vm13611_vm10  ;;  %v13623_v13 = vld [vmem:[#allocation65_spill] sm:$0xff]  ;;  %v7368_v57 = vld [vmem:[#allocation3 + $0x110] sm:$0xff] }
 0x79a   : > { %v6056_v18 = vpop.permute.xlu1 %6055  ;;  %vm13631_vm5 = vmmov %vm13613_vm1 }
 0x79b   : > { %v5117_v19 = vpop.permute.xlu0 %5116  ;;  %v6136_v22 = vmul.f32 %v6056_v18, %v13602_v25  ;;  %vm13636_vm7 = vmmov %vm13616_vm14 }
 0x79c   : > { %5012 = vrot.lane.b32.xlu1 %v4404_v61, %s7393_s22  ;;  %v5610_v9 = vsel %vm13605_vm6, %v5578_v42, %v5117_v19  ;;  %v5484_v61 = vsel %vm13622_vm11, %v5452_v11, %v13621_v63  ;;  %v13624_v19 = vld [vmem:[#allocation196_spill] sm:$0xff]  ;;  %vm13635_vm6 = vmmov %vm13622_vm11 }
 0x79d   : > { %6203 = vrot.lane.b32.xlu0 %v13573_v3, %s7399_s18  ;;  %v13612_v3 = vld [vmem:[#allocation231_spill] sm:$0xff]  ;;  %vm13639_vm9 = vmmov %vm13617_vm2  ;;  %v13640_v42 = vld [vmem:[#allocation212_spill] sm:$0xff] }
 0x79e   : > { %v5245_v40 = vpop.permute.xlu1 %5244  ;;  %v5579_v45 = vsel %vm13613_vm1, %v5547_v54, %v13612_v3  ;;  %vm13642_vm1 = vmmov %vm13618_vm3  ;;  %v13652_v3 = vld [vmem:[#allocation42_spill] sm:$0xff]  ;;  %v13663_v11 = vld [vmem:[#allocation156_spill] sm:$0xff] }
 0x79f   : > { %v5119_v5 = vpop.permute.xlu0 %5118  ;;  %v5642_v1 = vsel %vm13608_vm8, %v5610_v9, %v5245_v40  ;;  %v5516_v40 = vsel %vm13625_vm13, %v5484_v61, %v13624_v19  ;;  %vm13638_vm8 = vmmov %vm13625_vm13  ;;  %v13646_v9 = vld [vmem:[#allocation4_spill] sm:$0xff]  ;;  %v5455_v63 = vsel %vm585_vm0, %v7368_v57, %v13663_v11  ;;  %v13664_v61 = vld [vmem:[#allocation235_spill] sm:$0xff] }
 0x7a0   : > { %6077 = vrot.lane.b32.xlu1 %v13590_v21, %s7398_s20  ;;  %v5611_v2 = vsel %vm13616_vm14, %v5579_v45, %v5119_v5  ;;  %vm13647_vm14 = vmmov %vm13619_vm12  ;;  %v7367_v45 = vld [vmem:[#allocation3 + $0x108] sm:$0xff]  ;;  %v13667_v19 = vld [vmem:[#allocation6_spill] sm:$0xff] }
 0x7a1   : > { %5394 = vrot.lane.b32.xlu0 %v4405_v39, %s7395_s9  ;;  %vm13651_vm11 = vmmov %vm13647_vm14  ;;  %v13705_v57 = vld [vmem:[#allocation227_spill] sm:$0xff] }
 0x7a2   : > { %v5247_v34 = vpop.permute.xlu1 %5246  ;;  %vm13656_vm13 = vmmov %vm13635_vm6 }
 0x7a3   : > { %v6182_v60 = vpop.permute.xlu0 %6181  ;;  %v5643_v15 = vsel %vm13617_vm2, %v5611_v2, %v5247_v34  ;;  %vm13648_vm2 = vmmov %vm13636_vm7 }
 0x7a4   : > { %v6263_v47 = vadd.f32 %v6182_v60, %v6135_v52  ;;  %5140 = vrot.lane.b32.xlu1 %v4342_v23, %s7389_s15  ;;  %v13629_v23 = vld [vmem:[#allocation154_spill] sm:$0xff]  ;;  %v13632_v52 = vld [vmem:[#allocation64_spill] sm:$0xff] }
 0x7a5   : > { %5014 = vrot.lane.b32.xlu0 %v4405_v39, %s7393_s22  ;;  %v5453_v7 = vsel %vm585_vm0, %v7366_v58, %v13629_v23 }
 0x7a6   : > { %7265 = vmatprep.mubr.msk.f32.mxu1 %vm585_vm0, %v6263_v47  ;;  %v6184_v12 = vpop.permute.xlu1 %6183  ;;  %v5485_v60 = vsel %vm13635_vm6, %v5453_v7, %v13634_v20  ;;  %v13637_v47 = vld [vmem:[#allocation193_spill] sm:$0xff] }
 0x7a7   : > { %v6264_v8 = vadd.f32 %v6184_v12, %v6136_v22  ;;  %v5373_v16 = vpop.permute.xlu0 %5372  ;;  %v5517_v44 = vsel %vm13638_vm8, %v5485_v60, %v13637_v47 }
 0x7a8   : > { %v5674_v4 = vsel %vm13611_vm10, %v5642_v1, %v5373_v16  ;;  %5142 = vrot.lane.b32.xlu1 %v4343_v31, %s7389_s15  ;;  %vm13641_vm10 = vmmov %vm13627_vm4  ;;  %v13643_v31 = vld [vmem:[#allocation39_spill] sm:$0xff] }
 0x7a9   : > { %6079 = vrot.lane.b32.xlu0 %v13614_v14, %s7398_s20  ;;  %7221 = vmatprep.mubr.msk.f32.mxu0 %vm13615_vm15, %v5674_v4  ;;  %v5549_v25 = vsel %vm13641_vm10, %v5517_v44, %v13640_v42  ;;  %vm13645_vm15 = vmmov %vm13631_vm5  ;;  %v7369_v42 = vld [vmem:[#allocation3 + $0x120] sm:$0xff] }
 0x7aa   : > { %7266 = vmatmul.mubr.msk.f32.gmra.mxu1 %vm585_vm0, %v6264_v8  ;;  %v6058_v51 = vpop.permute.xlu1 %6057  ;;  %v5581_v41 = vsel %vm13645_vm15, %v5549_v25, %v13644_v62  ;;  %vm13665_vm6 = vmmov %vm13645_vm15  ;;  %v13684_v25 = vld [vmem:[#allocation158_spill] sm:$0xff] }
 0x7ab   : > { %v5375_v24 = vpop.permute.xlu0 %5374  ;;  %v6137_v50 = vmul.f32 %v6058_v51, %v13623_v13  ;;  %v13654_v51 = vld [vmem:[#allocation7_spill] sm:$0xff] }
 0x7ac   : > { %v5675_v0 = vsel %vm13618_vm3, %v5643_v15, %v5375_v24  ;;  %6205 = vrot.lane.b32.xlu1 %v13590_v21, %s7399_s18  ;;  %v13626_v21 = vld [vmem:[#allocation213_spill] sm:$0xff]  ;;  %vm13649_vm3 = vmmov %vm13639_vm9  ;;  %v13657_v24 = vld [vmem:[#allocation67_spill] sm:$0xff] }
 0x7ad   : > { %5268 = vrot.lane.b32.xlu0 %v4374_v30, %s7394_s23  ;;  %7222 = vmatmul.mubr.msk.f32.gmra.mxu0 %vm13619_vm12, %v5675_v0  ;;  %v5548_v39 = vsel %vm13627_vm4, %v5516_v40, %v13626_v21  ;;  %vm13650_vm12 = vmmov %vm13642_vm1  ;;  %v13655_v30 = vld [vmem:[#allocation178_spill] sm:$0xff]  ;;  %v13668_v40 = vld [vmem:[#allocation173_spill] sm:$0xff] }
 0x7ae   : > { %v6060_v53 = vpop.permute.xlu1 %6059  ;;  %v5580_v33 = vsel %vm13631_vm5, %v5548_v39, %v13630_v32  ;;  %vm13659_vm4 = vmmov %vm13638_vm8  ;;  %v13674_v32 = vld [vmem:[#allocation217_spill] sm:$0xff] }
 0x7af   : > { %v5121_v27 = vpop.permute.xlu0 %5120  ;;  %v6138_v34 = vmul.f32 %v6060_v53, %v13632_v52  ;;  %v13658_v53 = vld [vmem:[#allocation200_spill] sm:$0xff]  ;;  %vm13661_vm5 = vmmov %vm13641_vm10 }
 0x7b0   : > { %5396 = vrot.lane.b32.xlu1 %v4406_v46, %s7395_s9  ;;  %v5612_v10 = vsel %vm13636_vm7, %v5580_v33, %v5121_v27  ;;  %vm13669_vm7 = vmmov %vm13656_vm13 }
 0x7b1   : > { %5270 = vrot.lane.b32.xlu0 %v4375_v37, %s7394_s23  ;;  %vm13670_vm8 = vmmov %vm13648_vm2 }
 0x7b2   : > { %v5249_v26 = vpop.permute.xlu1 %5248  ;;  %vm13673_vm10 = vmmov %vm13649_vm3 }
 0x7b3   : > { %v5123_v43 = vpop.permute.xlu0 %5122  ;;  %v5644_v28 = vsel %vm13639_vm9, %v5612_v10, %v5249_v26  ;;  %vm13672_vm9 = vmmov %vm13659_vm4 }
 0x7b4   : > { %5398 = vrot.lane.b32.xlu1 %v4407_v55, %s7395_s9  ;;  %v5613_v12 = vsel %vm13648_vm2, %v5581_v41, %v5123_v43  ;;  %v13660_v55 = vld [vmem:[#allocation220_spill] sm:$0xff]  ;;  %vm13676_vm15 = vmmov %vm13650_vm12  ;;  %v13687_v41 = vld [vmem:[#allocation69_spill] sm:$0xff] }
 0x7b5   : > { %6207 = vrot.lane.b32.xlu0 %v13614_v14, %s7399_s18  ;;  %v13653_v14 = vld [vmem:[#allocation153_spill] sm:$0xff]  ;;  %vm13679_vm2 = vmmov %vm13651_vm11 }
 0x7b6   : > { %v5251_v18 = vpop.permute.xlu1 %5250  ;;  %v5454_v2 = vsel %vm585_vm0, %v7367_v45, %v13653_v14  ;;  %v13693_v45 = vld [vmem:[#allocation234_spill] sm:$0xff] }
 0x7b7   : > { %v6186_v5 = vpop.permute.xlu0 %6185  ;;  %v5645_v35 = vsel %vm13649_vm3, %v5613_v12, %v5251_v18  ;;  %v5486_v15 = vsel %vm13656_vm13, %v5454_v2, %v13655_v30  ;;  %vm13680_vm3 = vmmov %vm13670_vm8  ;;  %v13695_v2 = vld [vmem:[#allocation68_spill] sm:$0xff]  ;;  %v13696_v30 = vld [vmem:[#allocation174_spill] sm:$0xff] }
 0x7b8   : > { %v6265_v6 = vadd.f32 %v6186_v5, %v6137_v50  ;;  %6081 = vrot.lane.b32.xlu1 %v13628_v38, %s7398_s20  ;;  %v5518_v37 = vsel %vm13659_vm4, %v5486_v15, %v13658_v53  ;;  %v13666_v50 = vld [vmem:[#allocation66_spill] sm:$0xff]  ;;  %v5487_v5 = vsel %vm13669_vm7, %v5455_v63, %v13668_v40  ;;  %vm13683_vm13 = vmmov %vm13679_vm2 }
 0x7b9   : > { %6025 = vrot.lane.b32.xlu0 %v13633_v36, %s7398_s20  ;;  %v5550_v26 = vsel %vm13661_vm5, %v5518_v37, %v13660_v55  ;;  %vm13686_vm4 = vmmov %vm13669_vm7 }
 0x7ba   : > { %7268 = vmatprep.mubr.msk.f32.mxu1 %vm585_vm0, %v6265_v6  ;;  %v6188_v48 = vpop.permute.xlu1 %6187  ;;  %v5582_v13 = vsel %vm13665_vm6, %v5550_v26, %v13664_v61  ;;  %v13671_v6 = vld [vmem:[#allocation197_spill] sm:$0xff]  ;;  %v13702_v26 = vld [vmem:[#allocation218_spill] sm:$0xff] }
 0x7bb   : > { %v6266_v59 = vadd.f32 %v6188_v48, %v6138_v34  ;;  %v5377_v29 = vpop.permute.xlu0 %5376  ;;  %v13677_v34 = vld [vmem:[#allocation257_spill] sm:$0xff] }
 0x7bc   : > { %v5676_v22 = vsel %vm13642_vm1, %v5644_v28, %v5377_v29  ;;  %6083 = vrot.lane.b32.xlu1 %v13643_v31, %s7398_s20  ;;  %vm13675_vm1 = vmmov %vm13661_vm5 }
 0x7bd   : > { %6027 = vrot.lane.b32.xlu0 %v13646_v9, %s7398_s20  ;;  %7224 = vmatprep.mubr.msk.f32.mxu0 %vm13647_vm14, %v5676_v22  ;;  %vm13678_vm14 = vmmov %vm13665_vm6  ;;  %v5456_v22 = vsel %vm585_vm0, %v7369_v42, %v13684_v25  ;;  %v13723_v42 = vld [vmem:[#allocation70_spill] sm:$0xff] }
 0x7be   : > { %7269 = vmatmul.mubr.msk.f32.gmra.mxu1 %vm585_vm0, %v6266_v59  ;;  %v6062_v49 = vpop.permute.xlu1 %6061  ;;  %vm13689_vm5 = vmmov %vm13672_vm9 }
 0x7bf   : > { %v5379_v1 = vpop.permute.xlu0 %5378  ;;  %v6139_v0 = vmul.f32 %v6062_v49, %v13657_v24  ;;  %v13688_v49 = vld [vmem:[#allocation202_spill] sm:$0xff]  ;;  %vm13691_vm6 = vmmov %vm13675_vm1 }
 0x7c0   : > { %v5677_v8 = vsel %vm13650_vm12, %v5645_v35, %v5379_v1  ;;  %6209 = vrot.lane.b32.xlu1 %v13628_v38, %s7399_s18  ;;  %v5519_v38 = vsel %vm13672_vm9, %v5487_v5, %v13671_v6  ;;  %vm13681_vm12 = vmmov %vm13673_vm10  ;;  %v13712_v6 = vld [vmem:[#allocation160_spill] sm:$0xff] }
 0x7c1   : > { %6153 = vrot.lane.b32.xlu0 %v13633_v36, %s7399_s18  ;;  %7225 = vmatmul.mubr.msk.f32.gmra.mxu0 %vm13651_vm11, %v5677_v8  ;;  %v5551_v33 = vsel %vm13675_vm1, %v5519_v38, %v13674_v32  ;;  %vm13682_vm11 = vmmov %vm13676_vm15  ;;  %v13690_v8 = vld [vmem:[#allocation219_spill] sm:$0xff] }
 0x7c2   : > { %v6064_v16 = vpop.permute.xlu1 %6063  ;;  %v5583_v36 = vsel %vm13678_vm14, %v5551_v33, %v13677_v34  ;;  %vm13694_vm7 = vmmov %vm13678_vm14 }
 0x7c3   : > { %v5125_v17 = vpop.permute.xlu0 %5124  ;;  %v6140_v18 = vmul.f32 %v6064_v16, %v13666_v50  ;;  %vm13698_vm9 = vmmov %vm13680_vm3 }
 0x7c4   : > { %6211 = vrot.lane.b32.xlu1 %v13643_v31, %s7399_s18  ;;  %v5614_v21 = vsel %vm13670_vm8, %v5582_v13, %v5125_v17  ;;  %v13685_v31 = vld [vmem:[#allocation180_spill] sm:$0xff]  ;;  %vm13697_vm8 = vmmov %vm13686_vm4 }
 0x7c5   : > { %6155 = vrot.lane.b32.xlu0 %v13646_v9, %s7399_s18  ;;  %v5488_v62 = vsel %vm13686_vm4, %v5456_v22, %v13685_v31  ;;  %vm13701_vm1 = vmmov %vm13681_vm12  ;;  %v13724_v22 = vld [vmem:[#allocation181_spill] sm:$0xff] }
 0x7c6   : > { %v5253_v54 = vpop.permute.xlu1 %5252  ;;  %v5520_v35 = vsel %vm13689_vm5, %v5488_v62, %v13688_v49  ;;  %vm13704_vm14 = vmmov %vm13682_vm11 }
 0x7c7   : > { %v5127_v4 = vpop.permute.xlu0 %5126  ;;  %v5646_v58 = vsel %vm13673_vm10, %v5614_v21, %v5253_v54  ;;  %v5552_v16 = vsel %vm13691_vm6, %v5520_v35, %v13690_v8  ;;  %v7370_v54 = vld [vmem:[#allocation3 + $0x128] sm:$0xff]  ;;  %vm13700_vm10 = vmmov %vm13689_vm5  ;;  %v13730_v8 = vld [vmem:[#allocation229_spill] sm:$0xff] }
 0x7c8   : > { %6085 = vrot.lane.b32.xlu1 %v13652_v3, %s7398_s20  ;;  %v5615_v20 = vsel %vm13680_vm3, %v5583_v36, %v5127_v4  ;;  %v13692_v4 = vld [vmem:[#allocation157_spill] sm:$0xff]  ;;  %v5584_v14 = vsel %vm13694_vm7, %v5552_v16, %v13693_v45  ;;  %vm13707_vm3 = vmmov %vm13683_vm13 }
 0x7c9   : > { %6029 = vrot.lane.b32.xlu0 %v13654_v51, %s7398_s20  ;;  %vm13711_vm4 = vmmov %vm13707_vm3 }
 0x7ca   : > { %v5255_v46 = vpop.permute.xlu1 %5254  ;;  %vm13714_vm5 = vmmov %vm13697_vm8 }
 0x7cb   : > { %v6190_v27 = vpop.permute.xlu0 %6189  ;;  %v5647_v10 = vsel %vm13681_vm12, %v5615_v20, %v5255_v46  ;;  %v13699_v46 = vld [vmem:[#allocation199_spill] sm:$0xff]  ;;  %vm13708_vm12 = vmmov %vm13698_vm9  ;;  %v13718_v20 = vld [vmem:[#allocation256_spill] sm:$0xff] }
 0x7cc   : > { %v6267_v43 = vadd.f32 %v6190_v27, %v6139_v0  ;;  %6087 = vrot.lane.b32.xlu1 %v13662_v56, %s7398_s20 }
 0x7cd   : > { %6031 = vrot.lane.b32.xlu0 %v13667_v19, %s7398_s20 }
 0x7ce   : > { %7271 = vmatprep.mubr.msk.f32.mxu1 %vm585_vm0, %v6267_v43  ;;  %v6192_v39 = vpop.permute.xlu1 %6191 }
 0x7cf   : > { %v6268_v23 = vadd.f32 %v6192_v39, %v6140_v18  ;;  %v5381_v7 = vpop.permute.xlu0 %5380  ;;  %v7371_v39 = vld [vmem:[#allocation3 + $0x138] sm:$0xff] }
 0x7d0   : > { %v5678_v52 = vsel %vm13676_vm15, %v5646_v58, %v5381_v7  ;;  %6213 = vrot.lane.b32.xlu1 %v13652_v3, %s7399_s18  ;;  %v5457_v3 = vsel %vm585_vm0, %v7370_v54, %v13692_v4  ;;  %vm13703_vm15 = vmmov %vm13691_vm6  ;;  %v5458_v38 = vsel %vm585_vm0, %v7371_v39, %v13712_v6  ;;  %v13713_v58 = vld [vmem:[#allocation182_spill] sm:$0xff]  ;;  %v13715_v7 = vld [vmem:[#allocation71_spill] sm:$0xff] }
 0x7d1   : > { %6157 = vrot.lane.b32.xlu0 %v13654_v51, %s7399_s18  ;;  %7227 = vmatprep.mubr.msk.f32.mxu0 %vm13679_vm2, %v5678_v52  ;;  %v5489_v15 = vsel %vm13697_vm8, %v5457_v3, %v13696_v30  ;;  %vm13706_vm2 = vmmov %vm13694_vm7  ;;  %v13716_v52 = vld [vmem:[#allocation204_spill] sm:$0xff]  ;;  %v13733_v4 = vld [vmem:[#allocation238_spill] sm:$0xff] }
 0x7d2   : > { %7272 = vmatmul.mubr.msk.f32.gmra.mxu1 %vm585_vm0, %v6268_v23  ;;  %v6066_v60 = vpop.permute.xlu1 %6065  ;;  %v5521_v53 = vsel %vm13700_vm10, %v5489_v15, %v13699_v46  ;;  %v5490_v23 = vsel %vm13714_vm5, %v5458_v38, %v13713_v58  ;;  %vm13717_vm6 = vmmov %vm13700_vm10 }
 0x7d3   : > { %v5383_v48 = vpop.permute.xlu0 %5382  ;;  %v6141_v9 = vmul.f32 %v6066_v60, %v13687_v41  ;;  %v5553_v43 = vsel %vm13703_vm15, %v5521_v53, %v13702_v26  ;;  %v5522_v34 = vsel %vm13717_vm6, %v5490_v23, %v13716_v52  ;;  %vm13719_vm7 = vmmov %vm13703_vm15  ;;  %v13740_v26 = vld [vmem:[#allocation164_spill] sm:$0xff] }
 0x7d4   : > { %v5679_v47 = vsel %vm13682_vm11, %v5647_v10, %v5383_v48  ;;  %6215 = vrot.lane.b32.xlu1 %v13662_v56, %s7399_s18  ;;  %v5585_v11 = vsel %vm13706_vm2, %v5553_v43, %v13705_v57  ;;  %vm13709_vm11 = vmmov %vm13701_vm1  ;;  %v5554_v60 = vsel %vm13719_vm7, %v5522_v34, %v13718_v20  ;;  %v12250_v10 = vpop.f32.mrf.mxu0 }
 0x7d5   : > { %6159 = vrot.lane.b32.xlu0 %v13667_v19, %s7399_s18  ;;  %7228 = vmatmul.mubr.msk.f32.gmra.mxu0 %vm13683_vm13, %v5679_v47  ;;  %vm13710_vm13 = vmmov %vm13704_vm14  ;;  %v7372_v47 = vld [vmem:[#allocation3 + $0x140] sm:$0xff] }
 0x7d6   : > { %v6068_v44 = vpop.permute.xlu1 %6067  ;;  %vm13722_vm8 = vmmov %vm13706_vm2 }
 0x7d7   : > { %v5129_v28 = vpop.permute.xlu0 %5128  ;;  %v6142_v51 = vmul.f32 %v6068_v44, %v13695_v2  ;;  %v13720_v44 = vld [vmem:[#allocation159_spill] sm:$0xff]  ;;  %vm13726_vm10 = vmmov %vm13708_vm12 }
 0x7d8   : > { %v5616_v24 = vsel %vm13698_vm9, %v5584_v14, %v5129_v28  ;;  %v5459_v28 = vsel %vm585_vm0, %v7372_v47, %v13720_v44  ;;  %vm13725_vm9 = vmmov %vm13714_vm5  ;;  %v7374_v47 = vld [vmem:[#allocation3 + $0x158] sm:$0xff] }
 0x7d9   : > { %v5491_v31 = vsel %vm13725_vm9, %v5459_v28, %v13724_v22  ;;  %vm13729_vm15 = vmmov %vm13709_vm11  ;;  %v13754_v44 = vld [vmem:[#allocation161_spill] sm:$0xff] }
 0x7da   : > { %v5257_v59 = vpop.permute.xlu1 %5256  ;;  %vm13732_vm2 = vmmov %vm13710_vm13  ;;  %v5461_v28 = vsel %vm585_vm0, %v7374_v47, %v13754_v44 }
 0x7db   : > { %v5131_v29 = vpop.permute.xlu0 %5130  ;;  %v5648_v37 = vsel %vm13701_vm1, %v5616_v24, %v5257_v59  ;;  %v13721_v59 = vld [vmem:[#allocation244_spill] sm:$0xff]  ;;  %vm13728_vm1 = vmmov %vm13717_vm6 }
 0x7dc   : > { %v5617_v63 = vsel %vm13708_vm12, %v5585_v11, %v5131_v29  ;;  %v5586_v29 = vsel %vm13722_vm8, %v5554_v60, %v13721_v59  ;;  %vm13735_vm12 = vmmov %vm13711_vm4  ;;  %v13741_v11 = vld [vmem:[#allocation177_spill] sm:$0xff]  ;;  %v13755_v59 = vld [vmem:[#allocation183_spill] sm:$0xff] }
 0x7dd   : > { %vm13739_vm5 = vmmov %vm13735_vm12 }
 0x7de   : > { %v5259_v12 = vpop.permute.xlu1 %5258  ;;  %vm13742_vm6 = vmmov %vm13725_vm9 }
 0x7df   : > { %v6194_v1 = vpop.permute.xlu0 %6193  ;;  %v5649_v13 = vsel %vm13709_vm11, %v5617_v63, %v5259_v12  ;;  %vm13736_vm11 = vmmov %vm13726_vm10 }
 0x7e0   : > { %v6269_v17 = vadd.f32 %v6194_v1, %v6141_v9  ;;  %v13727_v9 = vld [vmem:[#allocation198_spill] sm:$0xff] }
 0x7e1   : > { %v5523_v12 = vsel %vm13728_vm1, %v5491_v31, %v13727_v9  ;;  %v13758_v31 = vld [vmem:[#allocation189_spill] sm:$0xff] }
 0x7e2   : > { %7274 = vmatprep.mubr.msk.f32.mxu1 %vm585_vm0, %v6269_v17  ;;  %v6196_v0 = vpop.permute.xlu1 %6195  ;;  %v12266_v17 = vpop.f32.mrf.mxu0  ;;  %v13760_v9 = vld [vmem:[#allocation221_spill] sm:$0xff] }
 0x7e3   : > { %v6270_v27 = vadd.f32 %v6196_v0, %v6142_v51  ;;  %v5385_v55 = vpop.permute.xlu0 %5384 }
 0x7e4   : > { %v5680_v56 = vsel %vm13704_vm14, %v5648_v37, %v5385_v55  ;;  %vm13731_vm14 = vmmov %vm13719_vm7  ;;  %v12273_v45 = vpop.f32.mrf.mxu0  ;;  %v7373_v55 = vld [vmem:[#allocation3 + $0x150] sm:$0xff] }
 0x7e5   : > { %7230 = vmatprep.mubr.msk.f32.mxu0 %vm13707_vm3, %v5680_v56  ;;  %7275 = vmatmul.mubr.msk.f32.gmra.mxu1 %vm585_vm0, %v6270_v27  ;;  %v5555_v16 = vsel %vm13731_vm14, %v5523_v12, %v13730_v8  ;;  %vm13734_vm3 = vmmov %vm13722_vm8  ;;  %v5460_v43 = vsel %vm585_vm0, %v7373_v55, %v13740_v26  ;;  %v12286_v56 = vld [vmem:[%s12478_s6] ss:$0 sm:$0xff]  ;;  %v13767_v55 = vld [vmem:[#allocation166_spill] sm:$0xff] }
 0x7e6   : > { %v6070_v61 = vpop.permute.xlu1 %6069  ;;  %v5587_v3 = vsel %vm13734_vm3, %v5555_v16, %v13733_v4  ;;  %v12279_v24 = vpop.f32.mrf.mxu0  ;;  %v5492_v63 = vsel %vm13742_vm6, %v5460_v43, %v13741_v11  ;;  %vm13745_vm7 = vmmov %vm13728_vm1 }
 0x7e7   : > { %v5387_v50 = vpop.permute.xlu0 %5386  ;;  %v6143_v32 = vmul.f32 %v6070_v61, %v13715_v7  ;;  %vm13747_vm8 = vmmov %vm13731_vm14  ;;  %v13748_v7 = vld [vmem:[#allocation249_spill] sm:$0xff] }
 0x7e8   : > { %v5681_v18 = vsel %vm13710_vm13, %v5649_v13, %v5387_v50  ;;  %vm13737_vm13 = vmmov %vm13729_vm15  ;;  %v13743_v13 = vld [vmem:[#allocation19_spill] sm:$0xff] }
 0x7e9   : > { %7231 = vmatmul.mubr.msk.f32.gmra.mxu0 %vm13711_vm4, %v5681_v18  ;;  %vm13738_vm4 = vmmov %vm13732_vm2  ;;  %v7202_v53 = vpop.f32.mrf.mxu0  ;;  %v13744_v18 = vld [vmem:[#allocation206_spill] sm:$0xff] }
 0x7ea   : > { %v6072_v19 = vpop.permute.xlu1 %6071  ;;  %v5892_v61 = vadd.f32 %v7202_v53, %v12286_v56  ;;  %vm13749_vm9 = vmmov %vm13734_vm3 }
 0x7eb   : > { %v5133_v40 = vpop.permute.xlu0 %5132  ;;  %v6144_v25 = vmul.f32 %v6072_v19, %v13723_v42  ;;  %v5886_v57 = vpop.f32.mrf.mxu0  ;;  %v5524_v19 = vsel %vm13745_vm7, %v5492_v63, %v13744_v18  ;;  %vm13750_vm1 = vmmov %vm13742_vm6  ;;  %v13757_v42 = vld [vmem:[#allocation11_spill] sm:$0xff]  ;;  %v13770_v63 = vld [vmem:[#allocation25_spill] sm:$0xff] }
 0x7ec   : > { %v5618_v62 = vsel %vm13726_vm10, %v5586_v29, %v5133_v40  ;;  %v5887_v6 = vadd.f32 %v12286_v56, %v5886_v57  ;;  %vm13752_vm14 = vmmov %vm13750_vm1  ;;  %v13768_v57 = vld [vmem:[#allocation185_spill] sm:$0xff] }
 0x7ed   : > { %vm13753_vm3 = vmmov %vm13739_vm5 }
 0x7ee   : > { %v5261_v5 = vpop.permute.xlu1 %5260 }
 0x7ef   : > { %v5135_v21 = vpop.permute.xlu0 %5134  ;;  %v5650_v49 = vsel %vm13729_vm15, %v5618_v62, %v5261_v5  ;;  %vm13751_vm15 = vmmov %vm13737_vm13 }
 0x7f0   : > { %v5619_v14 = vsel %vm13736_vm11, %v5587_v3, %v5135_v21  ;;  %v13746_v21 = vld [vmem:[#allocation216_spill] sm:$0xff]  ;;  %vm13759_vm11 = vmmov %vm13745_vm7 }
 0x7f1   : > { %v5556_v39 = vsel %vm13747_vm8, %v5524_v19, %v13746_v21  ;;  %vm13764_vm6 = vmmov %vm13751_vm15 }
 0x7f2   : > { %v5263_v33 = vpop.permute.xlu1 %5262  ;;  %vm13765_vm7 = vmmov %vm13732_vm2 }
 0x7f3   : > { %v6198_v36 = vpop.permute.xlu0 %6197  ;;  %v5651_v51 = vsel %vm13737_vm13, %v5619_v14, %v5263_v33  ;;  %vm13761_vm13 = vmmov %vm13747_vm8 }
 0x7f4   : > { %v6271_v48 = vadd.f32 %v6198_v36, %v6143_v32  ;;  %v5588_v32 = vsel %vm13749_vm9, %v5556_v39, %v13748_v7  ;;  %vm13766_vm8 = vmmov %vm13753_vm3  ;;  %v13779_v7 = vld [vmem:[#allocation184_spill] sm:$0xff] }
 0x7f5   : > { %v7205_v4 = vpop.f32.mrf.mxu0 }
 0x7f6   : > { %7277 = vmatprep.mubr.msk.f32.mxu1 %vm585_vm0, %v6271_v48  ;;  %v6200_v41 = vpop.permute.xlu1 %6199 }
 0x7f7   : > { %v6272_v35 = vadd.f32 %v6200_v41, %v6144_v25  ;;  %v5389_v1 = vpop.permute.xlu0 %5388 }
 0x7f8   : > { %v5682_v54 = vsel %vm13732_vm2, %v5650_v49, %v5389_v1 }
 0x7f9   : > { %7233 = vmatprep.mubr.msk.f32.mxu0 %vm13735_vm12, %v5682_v54  ;;  %7278 = vmatmul.mubr.msk.f32.gmra.mxu1 %vm585_vm0, %v6272_v35  ;;  %vm13756_vm12 = vmmov %vm13750_vm1 }
 0x7fa   : > { %v6074_v2 = vpop.permute.xlu1 %6073  ;;  %v5493_v29 = vsel %vm13756_vm12, %v5461_v28, %v13755_v59 }
 0x7fb   : > { %v5391_v30 = vpop.permute.xlu0 %5390  ;;  %v6145_v50 = vmul.f32 %v6074_v2, %v13743_v13  ;;  %v5525_v62 = vsel %vm13759_vm11, %v5493_v29, %v13758_v31  ;;  %v13791_v29 = vld [vmem:[#allocation16_spill] sm:$0xff] }
 0x7fc   : > { %v5683_v15 = vsel %vm13738_vm4, %v5651_v51, %v5391_v30  ;;  %v5557_v12 = vsel %vm13761_vm13, %v5525_v62, %v13760_v9  ;;  %vm13762_vm4 = vmmov %vm13749_vm9  ;;  %v5896_v51 = vpop.f32.mrf.mxu0  ;;  %v5902_v30 = vadd.f32 %v7205_v4, %v12286_v56 }
 0x7fd   : > { %7234 = vmatmul.mubr.msk.f32.gmra.mxu0 %vm13739_vm5, %v5683_v15  ;;  %vm13763_vm5 = vmmov %vm13726_vm10 }
 0x7fe   : > { %v5137_v0 = vpop.permute.xlu1 %5136  ;;  %vm13769_vm9 = vmmov %vm13750_vm1 }
 0x7ff   : > { %v5011_v46 = vpop.permute.xlu0 %5010  ;;  %v5620_v52 = vsel %vm13726_vm10, %v5588_v32, %v5137_v0  ;;  %vm13771_vm10 = vmmov %vm13750_vm1 }
 0x800   : > { %v5589_v35 = vsel %vm13762_vm4, %v5557_v12, %v5011_v46  ;;  %v5897_v46 = vadd.f32 %v12286_v56, %v5896_v51  ;;  %vm13781_vm12 = vmmov %vm13763_vm5 }
 0x802   : > { %v5139_v37 = vpop.permute.xlu1 %5138 }
 0x803   : > { %v6076_v27 = vpop.permute.xlu0 %6075  ;;  %v5621_v1 = vsel %vm13763_vm5, %v5589_v35, %v5139_v37  ;;  %vm13787_vm5 = vmmov %vm13765_vm7 }
 0x804   : > { %v6146_v25 = vmul.f32 %v6076_v27, %v13757_v42  ;;  %v7375_v27 = vld [vmem:[#allocation3 + $0x168] sm:$0xff] }
 0x805   : > { %v5462_v26 = vsel %vm585_vm0, %v7375_v27, %v13767_v55  ;;  %v13799_v55 = vld [vmem:[#allocation22_spill] sm:$0xff] }
 0x806   : > { %v7252_v40 = vpop.f32.mrf.mxu1  ;;  %v6202_v5 = vpop.permute.xlu1 %6201  ;;  %v5494_v11 = vsel %vm13769_vm9, %v5462_v26, %v13768_v57 }
 0x807   : > { %v6608_v38 = vadd.f32 %v7252_v40, %v5892_v61  ;;  %v6273_v58 = vadd.f32 %v6202_v5, %v6145_v50  ;;  %v5265_v23 = vpop.permute.xlu0 %5264  ;;  %v13772_v50 = vld [vmem:[#allocation201_spill] sm:$0xff]  ;;  %v13774_v40 = vld [vmem:[#allocation222_spill] sm:$0xff] }
 0x808   : > { %v6464_v33 = vpop.f32.mrf.mxu1  ;;  %v5652_v36 = vsel %vm13751_vm15, %v5620_v52, %v5265_v23  ;;  %vm13775_vm15 = vmmov %vm13761_vm13  ;;  %v13782_v52 = vld [vmem:[#allocation205_spill] sm:$0xff] }
 0x809   : > { %6640 = vst.msk [vmem:[%s12298_s19 + $0x28] sm:$0xff] %vm13750_vm1, %v6608_v38  ;;  %v6607_v34 = vadd.f32 %v6464_v33, %v5887_v6  ;;  %7280 = vmatprep.mubr.msk.f32.mxu1 %vm585_vm0, %v6273_v58  ;;  %vm13773_vm1 = vmmov %vm13759_vm11  ;;  %v7376_v6 = vld [vmem:[#allocation3 + $0x170] sm:$0xff]  ;;  %v13777_v38 = vld [vmem:[#allocation163_spill] sm:$0xff] }
 0x80a   : > { %v5393_v20 = vpop.permute.xlu1 %5392  ;;  %v5526_v18 = vsel %vm13773_vm1, %v5494_v11, %v13772_v50  ;;  %v5463_v58 = vsel %vm585_vm0, %v7376_v6, %v13777_v38  ;;  %vm13783_vm11 = vmmov %vm13773_vm1  ;;  %v13801_v6 = vld [vmem:[#allocation72_spill] sm:$0xff] }
 0x80b   : > { %6639 = vst.msk [vmem:[%s12298_s19 + $0x20] sm:$0xff] %vm13752_vm14, %v6607_v34  ;;  %v5684_v60 = vsel %vm13732_vm2, %v5652_v36, %v5393_v20  ;;  %v5267_v48 = vpop.permute.xlu0 %5266  ;;  %v5558_v5 = vsel %vm13775_vm15, %v5526_v18, %v13774_v40  ;;  %vm13776_vm14 = vmmov %vm13769_vm9 }
 0x80c   : > { %7236 = vmatprep.mubr.msk.f32.mxu0 %vm13753_vm3, %v5684_v60  ;;  %v5653_v16 = vsel %vm13764_vm6, %v5621_v1, %v5267_v48  ;;  %vm13778_vm2 = vmmov %vm13762_vm4  ;;  %v13785_v60 = vld [vmem:[#allocation255_spill] sm:$0xff] }
 0x80d   : > { %vm13780_vm3 = vmmov %vm13769_vm9 }
 0x80e   : > { %v5013_v22 = vpop.permute.xlu1 %5012  ;;  %v5495_v32 = vsel %vm13780_vm3, %v5463_v58, %v13779_v7  ;;  %vm13784_vm13 = vmmov %vm13764_vm6  ;;  %v13802_v58 = vld [vmem:[#allocation51_spill] sm:$0xff] }
 0x80f   : > { %v6204_v41 = vpop.permute.xlu0 %6203  ;;  %v5590_v23 = vsel %vm13778_vm2, %v5558_v5, %v5013_v22  ;;  %v5527_v34 = vsel %vm13783_vm11, %v5495_v32, %v13782_v52  ;;  %vm13786_vm4 = vmmov %vm13775_vm15 }
 0x810   : > { %v6274_v49 = vadd.f32 %v6204_v41, %v6146_v25  ;;  %v5559_v48 = vsel %vm13786_vm4, %v5527_v34, %v13785_v60  ;;  %vm13788_vm6 = vmmov %vm13778_vm2  ;;  %v7208_v41 = vpop.f32.mrf.mxu0 }
 0x811   : > { %vm13792_vm9 = vmmov %vm13784_vm13  ;;  %v5912_v1 = vadd.f32 %v7208_v41, %v12286_v56 }
 0x812   : > { %7281 = vmatmul.mubr.msk.f32.gmra.mxu1 %vm585_vm0, %v6274_v49  ;;  %v6078_v8 = vpop.permute.xlu1 %6077  ;;  %v5906_v35 = vpop.f32.mrf.mxu0  ;;  %vm13796_vm15 = vmmov %vm13780_vm3 }
 0x813   : > { %v5395_v54 = vpop.permute.xlu0 %5394  ;;  %v6147_v61 = vmul.f32 %v6078_v8, %v13770_v63  ;;  %vm13804_vm2 = vmmov %vm13780_vm3 }
 0x814   : > { %v5685_v3 = vsel %vm13765_vm7, %v5653_v16, %v5395_v54  ;;  %vm13789_vm7 = vmmov %vm13766_vm8  ;;  %v5907_v54 = vadd.f32 %v12286_v56, %v5906_v35 }
 0x815   : > { %7237 = vmatmul.mubr.msk.f32.gmra.mxu0 %vm13766_vm8, %v5685_v3  ;;  %vm13790_vm8 = vmmov %vm13781_vm12 }
 0x816   : > { %v5141_v14 = vpop.permute.xlu1 %5140  ;;  %vm13794_vm1 = vmmov %vm13789_vm7 }
 0x817   : > { %v5015_v2 = vpop.permute.xlu0 %5014  ;;  %v5622_v33 = vsel %vm13781_vm12, %v5590_v23, %v5141_v14  ;;  %vm13807_vm12 = vmmov %vm13804_vm2 }
 0x818   : > { %v5591_v28 = vsel %vm13788_vm6, %v5559_v48, %v5015_v2  ;;  %v13795_v2 = vld [vmem:[#allocation31_spill] sm:$0xff]  ;;  %v13803_v48 = vld [vmem:[#allocation28_spill] sm:$0xff]  ;;  %vm13808_vm11 = vmmov %vm13804_vm2 }
 0x81a   : > { %v7255_v15 = vpop.f32.mrf.mxu1  ;;  %v5143_v0 = vpop.permute.xlu1 %5142 }
 0x81b   : > { %v6610_v53 = vadd.f32 %v7255_v15, %v5902_v30  ;;  %v6080_v37 = vpop.permute.xlu0 %6079  ;;  %v5623_v59 = vsel %vm13790_vm8, %v5591_v28, %v5143_v0  ;;  %v13797_v15 = vld [vmem:[#allocation49_spill] sm:$0xff]  ;;  %v13805_v28 = vld [vmem:[#allocation50_spill] sm:$0xff] }
 0x81c   : > { %v6474_v43 = vpop.f32.mrf.mxu1  ;;  %v6148_v42 = vmul.f32 %v6080_v37, %v13791_v29 }
 0x81d   : > { %6642 = vst.msk [vmem:[%s12298_s19 + $0x38] sm:$0xff] %vm13771_vm10, %v6610_v53  ;;  %v6609_v13 = vadd.f32 %v6474_v43, %v5897_v46  ;;  %vm13793_vm10 = vmmov %vm13787_vm5  ;;  %v13800_v43 = vld [vmem:[#allocation47_spill] sm:$0xff] }
 0x81e   : > { %v6206_v19 = vpop.permute.xlu1 %6205 }
 0x81f   : > { %6641 = vst.msk [vmem:[%s12298_s19 + $0x30] sm:$0xff] %vm13776_vm14, %v6609_v13  ;;  %v6275_v21 = vadd.f32 %v6206_v19, %v6147_v61  ;;  %v5269_v39 = vpop.permute.xlu0 %5268  ;;  %vm13798_vm14 = vmmov %vm13780_vm3  ;;  %v7211_v19 = vpop.f32.mrf.mxu0 }
 0x820   : > { %v5654_v36 = vsel %vm13784_vm13, %v5622_v33, %v5269_v39  ;;  %v5922_v39 = vadd.f32 %v7211_v19, %v12286_v56  ;;  %vm13806_vm3 = vmmov %vm13804_vm2 }
 0x821   : > { %7283 = vmatprep.mubr.msk.f32.mxu1 %vm585_vm0, %v6275_v21  ;;  %v5916_v21 = vpop.f32.mrf.mxu0 }
 0x822   : > { %v5397_v20 = vpop.permute.xlu1 %5396  ;;  %v5917_v33 = vadd.f32 %v12286_v56, %v5916_v21 }
 0x823   : > { %v5686_v47 = vsel %vm13787_vm5, %v5654_v36, %v5397_v20  ;;  %v5271_v44 = vpop.permute.xlu0 %5270 }
 0x824   : > { %7239 = vmatprep.mubr.msk.f32.mxu0 %vm13789_vm7, %v5686_v47  ;;  %v5655_v25 = vsel %vm13792_vm9, %v5623_v59, %v5271_v44 }
 0x826   : > { %v5399_v22 = vpop.permute.xlu1 %5398 }
 0x827   : > { %v5687_v31 = vsel %vm13793_vm10, %v5655_v25, %v5399_v22  ;;  %v6208_v62 = vpop.permute.xlu0 %6207 }
 0x828   : > { %v6276_v9 = vadd.f32 %v6208_v62, %v6148_v42  ;;  %7240 = vmatmul.mubr.msk.f32.gmra.mxu0 %vm13794_vm1, %v5687_v31 }
 0x82a   : > { %7284 = vmatmul.mubr.msk.f32.gmra.mxu1 %vm585_vm0, %v6276_v9  ;;  %v6082_v12 = vpop.permute.xlu1 %6081 }
 0x82b   : > { %v6026_v49 = vpop.permute.xlu0 %6025  ;;  %v6149_v51 = vmul.f32 %v6082_v12, %v13795_v2 }
 0x82c   : > { %v6121_v0 = vmul.f32 %v6026_v49, %v13797_v15 }
 0x82e   : > { %v7258_v8 = vpop.f32.mrf.mxu1  ;;  %v6084_v16 = vpop.permute.xlu1 %6083 }
 0x82f   : > { %v6612_v4 = vadd.f32 %v7258_v8, %v5912_v1  ;;  %v6028_v3 = vpop.permute.xlu0 %6027  ;;  %v6150_v26 = vmul.f32 %v6084_v16, %v13799_v55 }
 0x830   : > { %v6484_v14 = vpop.f32.mrf.mxu1  ;;  %v6122_v57 = vmul.f32 %v6028_v3, %v13800_v43 }
 0x831   : > { %6644 = vst.msk [vmem:[%s12298_s19 + $0x48] sm:$0xff] %vm13796_vm15, %v6612_v4  ;;  %v6611_v30 = vadd.f32 %v6484_v14, %v5907_v54  ;;  %v7214_v31 = vpop.f32.mrf.mxu0 }
 0x832   : > { %v6210_v46 = vpop.permute.xlu1 %6209  ;;  %v5932_v41 = vadd.f32 %v7214_v31, %v12286_v56 }
 0x833   : > { %6643 = vst.msk [vmem:[%s12298_s19 + $0x40] sm:$0xff] %vm13798_vm14, %v6611_v30  ;;  %v6277_v53 = vadd.f32 %v6210_v46, %v6149_v51  ;;  %v6154_v37 = vpop.permute.xlu0 %6153  ;;  %v5926_v62 = vpop.f32.mrf.mxu0 }
 0x834   : > { %v6249_v27 = vadd.f32 %v6154_v37, %v6121_v0  ;;  %v5927_v12 = vadd.f32 %v12286_v56, %v5926_v62 }
 0x835   : > { %7286 = vmatprep.mubr.msk.f32.mxu1 %vm585_vm0, %v6277_v53 }
 0x836   : > { %7244 = vmatprep.mubr.msk.f32.mxu0 %vm585_vm0, %v6249_v27  ;;  %v6212_v11 = vpop.permute.xlu1 %6211 }
 0x837   : > { %v6278_v63 = vadd.f32 %v6212_v11, %v6150_v26  ;;  %v6156_v61 = vpop.permute.xlu0 %6155 }
 0x838   : > { %v6250_v13 = vadd.f32 %v6156_v61, %v6122_v57 }
 0x839   : > { %7287 = vmatmul.mubr.msk.f32.gmra.mxu1 %vm585_vm0, %v6278_v63 }
 0x83a   : > { %7245 = vmatmul.mubr.msk.f32.vlgmr.msra.gmra.mxu0 %vm585_vm0, %v6250_v13  ;;  %v6086_v50 = vpop.permute.xlu1 %6085 }
 0x83b   : > { %v6030_v18 = vpop.permute.xlu0 %6029  ;;  %v6151_v38 = vmul.f32 %v6086_v50, %v13801_v6 }
 0x83c   : > { %v6123_v23 = vmul.f32 %v6030_v18, %v13802_v58 }
 0x83e   : > { %v6088_v40 = vpop.permute.xlu1 %6087 }
 0x83f   : > { %v6032_v5 = vpop.permute.xlu0 %6031  ;;  %v6152_v47 = vmul.f32 %v6088_v40, %v13803_v48 }
 0x840   : > { %v6124_v59 = vmul.f32 %v6032_v5, %v13805_v28 }
 0x842   : > { %v7261_v7 = vpop.f32.mrf.mxu1  ;;  %v6214_v32 = vpop.permute.xlu1 %6213 }
 0x843   : > { %v6614_v52 = vadd.f32 %v7261_v7, %v5922_v39  ;;  %v6279_v34 = vadd.f32 %v6214_v32, %v6151_v38  ;;  %v6158_v36 = vpop.permute.xlu0 %6157 }
 0x844   : > { %v6251_v20 = vadd.f32 %v6158_v36, %v6123_v23  ;;  %v6494_v60 = vpop.f32.mrf.mxu1 }
 0x845   : > { %6646 = vst.msk [vmem:[%s12298_s19 + $0x58] sm:$0xff] %vm13804_vm2, %v6614_v52  ;;  %v6613_v44 = vadd.f32 %v6494_v60, %v5917_v33  ;;  %7289 = vmatprep.mubr.msk.f32.mxu1 %vm585_vm0, %v6279_v34  ;;  %v7217_v8 = vpop.f32.mrf.mxu0 }
 0x846   : > { %7247 = vmatprep.mubr.msk.f32.mxu0 %vm585_vm0, %v6251_v20  ;;  %v6216_v29 = vpop.permute.xlu1 %6215  ;;  %v5942_v54 = vadd.f32 %v7217_v8, %v12286_v56 }
 0x847   : > { %6645 = vst.msk [vmem:[%s12298_s19 + $0x50] sm:$0xff] %vm13806_vm3, %v6613_v44  ;;  %v6280_v42 = vadd.f32 %v6216_v29, %v6152_v47  ;;  %v6160_v25 = vpop.permute.xlu0 %6159  ;;  %v5936_v16 = vpop.f32.mrf.mxu0 }
 0x848   : > { %v6252_v22 = vadd.f32 %v6160_v25, %v6124_v59  ;;  %v5937_v3 = vadd.f32 %v12286_v56, %v5936_v16 }
 0x849   : > { %7290 = vmatmul.mubr.msk.f32.gmra.mxu1 %vm585_vm0, %v6280_v42 }
 0x84a   : > { %7248 = vmatmul.mubr.msk.f32.gmra.mxu0 %vm585_vm0, %v6252_v22  ;;  %vm13809_vm0 = vmmov %vm13804_vm2 }
 0x84b   : > { %vm13810_vm13 = vmmov %vm13809_vm0 }
 0x84c   : > { %vm13811_vm4 = vmmov %vm13809_vm0 }
 0x84d   : > { %vm13812_vm5 = vmmov %vm13809_vm0 }
 0x84e   : > { %vm13813_vm6 = vmmov %vm13809_vm0 }
 0x84f   : > { %vm13814_vm7 = vmmov %vm13809_vm0 }
 0x850   : > { %vm13815_vm8 = vmmov %vm13809_vm0 }
 0x851   : > { %vm13816_vm9 = vmmov %vm13809_vm0 }
 0x852   : > { %vm13817_vm10 = vmmov %vm13809_vm0 }
 0x853   : > { %vm13818_vm1 = vmmov %vm13809_vm0 }
 0x854   : > { %vm13819_vm15 = vmmov %vm13809_vm0 }
 0x855   : > { %vm13820_vm14 = vmmov %vm13809_vm0 }
 0x856   : > { %v7264_v9 = vpop.f32.mrf.mxu1  ;;  %vm13821_vm2 = vmmov %vm13809_vm0 }
 0x857   : > { %v6616_v49 = vadd.f32 %v7264_v9, %v5932_v41  ;;  %vm13822_vm3 = vmmov %vm13809_vm0 }
 0x858   : > { %v6504_v35 = vpop.f32.mrf.mxu1 }
 0x859   : > { %6648 = vst.msk [vmem:[%s12298_s19 + $0x68] sm:$0xff] %vm13807_vm12, %v6616_v49  ;;  %v6615_v1 = vadd.f32 %v6504_v35, %v5927_v12  ;;  %v7220_v30 = vpop.f32.mrf.mxu0  ;;  %vm13823_vm12 = vmmov %vm13809_vm0 }
 0x85a   : > { %v5952_v0 = vadd.f32 %v7220_v30, %v12286_v56 }
 0x85b   : > { %6647 = vst.msk [vmem:[%s12298_s19 + $0x60] sm:$0xff] %vm13808_vm11, %v6615_v1  ;;  %v5946_v15 = vpop.f32.mrf.mxu0  ;;  %vm13824_vm11 = vmmov %vm13809_vm0 }
 0x85c   : > { %v5947_v53 = vadd.f32 %v12286_v56, %v5946_v15 }
 0x86a   : > { %v7267_v4 = vpop.f32.mrf.mxu1 }
 0x86b   : > { %v6618_v14 = vadd.f32 %v7267_v4, %v5942_v54  ;;  %v5872_v54 = vadd.f32 %v12250_v10, %v12286_v56 }
 0x86c   : > { %v6514_v2 = vpop.f32.mrf.mxu1 }
 0x86d   : > { %6650 = vst.msk [vmem:[%s12298_s19 + $0x78] sm:$0xff] %vm13809_vm0, %v6618_v14  ;;  %v6617_v51 = vadd.f32 %v6514_v2, %v5937_v3  ;;  %v7223_v26 = vpop.f32.mrf.mxu0 }
 0x86e   : > { %v5962_v57 = vadd.f32 %v7223_v26, %v12286_v56 }
 0x86f   : > { %6649 = vst.msk [vmem:[%s12298_s19 + $0x70] sm:$0xff] %vm13810_vm13, %v6617_v51  ;;  %v5956_v43 = vpop.f32.mrf.mxu0  ;;  %v5867_v51 = vadd.f32 %v12286_v56, %v12266_v17  ;;  %vm13825_vm13 = vmmov %vm13809_vm0  ;;  %v5882_v17 = vadd.f32 %v12273_v45, %v12286_v56 }
 0x870   : > { %v5957_v63 = vadd.f32 %v12286_v56, %v5956_v43  ;;  %v5877_v43 = vadd.f32 %v12286_v56, %v12279_v24 }
 0x87e   : > { %v7270_v46 = vpop.f32.mrf.mxu1 }
 0x87f   : > { %v6620_v37 = vadd.f32 %v7270_v46, %v5952_v0 }
 0x880   : > { %v6524_v27 = vpop.f32.mrf.mxu1 }
 0x881   : > { %6652 = vst.msk [vmem:[%s12298_s19 + $0x88] sm:$0xff] %vm13811_vm4, %v6620_v37  ;;  %v6619_v55 = vadd.f32 %v6524_v27, %v5947_v53  ;;  %v7226_v18 = vpop.f32.mrf.mxu0  ;;  %vm13826_vm4 = vmmov %vm13809_vm0 }
 0x882   : > { %v5972_v40 = vadd.f32 %v7226_v18, %v12286_v56 }
 0x883   : > { %6651 = vst.msk [vmem:[%s12298_s19 + $0x80] sm:$0xff] %vm13812_vm5, %v6619_v55  ;;  %v5966_v19 = vpop.f32.mrf.mxu0  ;;  %vm13827_vm5 = vmmov %vm13809_vm0 }
 0x884   : > { %v5967_v21 = vadd.f32 %v12286_v56, %v5966_v19 }
 0x892   : > { %v7273_v11 = vpop.f32.mrf.mxu1 }
 0x893   : > { %v6622_v61 = vadd.f32 %v7273_v11, %v5962_v57 }
 0x894   : > { %v6534_v13 = vpop.f32.mrf.mxu1 }
 0x895   : > { %6654 = vst.msk [vmem:[%s12298_s19 + $0x98] sm:$0xff] %vm13813_vm6, %v6622_v61  ;;  %v6621_v50 = vadd.f32 %v6534_v13, %v5957_v63  ;;  %v7229_v58 = vpop.f32.mrf.mxu0  ;;  %vm13828_vm6 = vmmov %vm13809_vm0 }
 0x896   : > { %v5982_v7 = vadd.f32 %v7229_v58, %v12286_v56 }
 0x897   : > { %6653 = vst.msk [vmem:[%s12298_s19 + $0x90] sm:$0xff] %vm13814_vm7, %v6621_v50  ;;  %v5976_v23 = vpop.f32.mrf.mxu0  ;;  %vm13829_vm7 = vmmov %vm13809_vm0 }
 0x898   : > { %v5977_v33 = vadd.f32 %v12286_v56, %v5976_v23 }
 0x8a5   : > { %v7276_v5 = vpop.f32.mrf.mxu1 }
 0x8a6   : > { %v6624_v39 = vadd.f32 %v7276_v5, %v5972_v40 }
 0x8a7   : > { %v6544_v6 = vpop.f32.mrf.mxu1 }
 0x8a8   : > { %6656 = vst.msk [vmem:[%s12298_s19 + $0xa8] sm:$0xff] %vm13815_vm8, %v6624_v39  ;;  %v6623_v38 = vadd.f32 %v6544_v6, %v5967_v21 }
 0x8a9   : > { %v7232_v20 = vpop.f32.mrf.mxu0 }
 0x8aa   : > { %6655 = vst.msk [vmem:[%s12298_s19 + $0xa0] sm:$0xff] %vm13816_vm9, %v6623_v38  ;;  %v5992_v48 = vadd.f32 %v7232_v20, %v12286_v56 }
 0x8ab   : > { %v5986_v60 = vpop.f32.mrf.mxu0 }
 0x8ac   : > { %v5987_v44 = vadd.f32 %v12286_v56, %v5986_v60 }
 0x8b9   : > { %v7279_v32 = vpop.f32.mrf.mxu1 }
 0x8ba   : > { %v6626_v52 = vadd.f32 %v7279_v32, %v5982_v7 }
 0x8bb   : > { %v6554_v34 = vpop.f32.mrf.mxu1 }
 0x8bc   : > { %6658 = vst.msk [vmem:[%s12298_s19 + $0xb8] sm:$0xff] %vm13817_vm10, %v6626_v52  ;;  %v6625_v36 = vadd.f32 %v6554_v34, %v5977_v33 }
 0x8bd   : > { %v7235_v42 = vpop.f32.mrf.mxu0 }
 0x8be   : > { %6657 = vst.msk [vmem:[%s12298_s19 + $0xb0] sm:$0xff] %vm13818_vm1, %v6625_v36  ;;  %v6002_v22 = vadd.f32 %v7235_v42, %v12286_v56 }
 0x8bf   : > { %v5996_v25 = vpop.f32.mrf.mxu0 }
 0x8c0   : > { %v5997_v62 = vadd.f32 %v12286_v56, %v5996_v25 }
 0x8d2   : > { %v7282_v47 = vpop.f32.mrf.mxu1 }
 0x8d3   : > { %v6628_v28 = vadd.f32 %v7282_v47, %v5992_v48 }
 0x8d4   : > { %v6564_v59 = vpop.f32.mrf.mxu1 }
 0x8d5   : > { %6660 = vst.msk [vmem:[%s12298_s19 + $0xc8] sm:$0xff] %vm13819_vm15, %v6628_v28  ;;  %v6627_v29 = vadd.f32 %v6564_v59, %v5987_v44  ;;  %v7238_v49 = vpop.f32.mrf.mxu0 }
 0x8d6   : > { %v6012_v8 = vadd.f32 %v7238_v49, %v12286_v56 }
 0x8d7   : > { %6659 = vst.msk [vmem:[%s12298_s19 + $0xc0] sm:$0xff] %vm13820_vm14, %v6627_v29  ;;  %v6006_v35 = vpop.f32.mrf.mxu0 }
 0x8d8   : > { %v6007_v3 = vadd.f32 %v12286_v56, %v6006_v35 }
 0x8e8   : > { %v7241_v1 = vpop.f32.mrf.mxu0 }
 0x8e9   : > { %v6022_v10 = vadd.f32 %v7241_v1, %v12286_v56 }
 0x8ea   : > { %v7285_v31 = vpop.f32.mrf.mxu1  ;;  %v6016_v16 = vpop.f32.mrf.mxu0 }
 0x8eb   : > { %v6630_v41 = vadd.f32 %v7285_v31, %v6002_v22  ;;  %v6017_v27 = vadd.f32 %v12286_v56, %v6016_v16 }
 0x8ec   : > { %v6574_v9 = vpop.f32.mrf.mxu1 }
 0x8ed   : > { %6662 = vst.msk [vmem:[%s12298_s19 + $0xd8] sm:$0xff] %vm13821_vm2, %v6630_v41  ;;  %v6629_v12 = vadd.f32 %v6574_v9, %v5997_v62 }
 0x8ef   : > { %6661 = vst.msk [vmem:[%s12298_s19 + $0xd0] sm:$0xff] %vm13822_vm3, %v6629_v12 }
 0x8f9   : > { %v7288_v4 = vpop.f32.mrf.mxu1 }
 0x8fa   : > { %v7246_v14 = vpop.f32.mrf.mxu0  ;;  %v6632_v2 = vadd.f32 %v7288_v4, %v6012_v8 }
 0x8fb   : > { %v6604_v30 = vadd.f32 %v7246_v14, %v5872_v54  ;;  %v6584_v15 = vpop.f32.mrf.mxu1 }
 0x8fc   : > { %6664 = vst.msk [vmem:[%s12298_s19 + $0xe8] sm:$0xff] %vm13823_vm12, %v6632_v2  ;;  %v6444_v0 = vpop.f32.mrf.mxu0  ;;  %v6631_v46 = vadd.f32 %v6584_v15, %v6007_v3 }
 0x8fd   : > { %6636 = vst.msk [vmem:[%s12298_s19 + $0x8] sm:$0xff] %vm13824_vm11, %v6604_v30  ;;  %v6603_v53 = vadd.f32 %v6444_v0, %v5867_v51 }
 0x8fe   : > { %6663 = vst.msk [vmem:[%s12298_s19 + $0xe0] sm:$0xff] %vm13809_vm0, %v6631_v46 }
 0x8ff   : > { %6635 = vst.msk [vmem:[%s12298_s19] sm:$0xff] %vm13825_vm13, %v6603_v53 }
 0x909   : > { %v7291_v37 = vpop.f32.mrf.mxu1 }
 0x90a   : > { %v7249_v55 = vpop.f32.mrf.mxu0  ;;  %v6634_v26 = vadd.f32 %v7291_v37, %v6022_v10 }
 0x90b   : > { %v6606_v57 = vadd.f32 %v7249_v55, %v5882_v17  ;;  %v6594_v11 = vpop.f32.mrf.mxu1 }
 0x90c   : > { %6666 = vst.msk [vmem:[%s12298_s19 + $0xf8] sm:$0xff] %vm13826_vm4, %v6634_v26  ;;  %v6454_v63 = vpop.f32.mrf.mxu0  ;;  %v6633_v61 = vadd.f32 %v6594_v11, %v6017_v27 }
 0x90d   : > { %6638 = vst.msk [vmem:[%s12298_s19 + $0x18] sm:$0xff] %vm13827_vm5, %v6606_v57  ;;  %v6605_v13 = vadd.f32 %v6454_v63, %v5877_v43 }
 0x90e   : > { %6665 = vst.msk [vmem:[%s12298_s19 + $0xf0] sm:$0xff] %vm13828_vm6, %v6633_v61 }
 0x90f   : > { %6637 = vst.msk [vmem:[%s12298_s19 + $0x10] sm:$0xff] %vm13829_vm7, %v6605_v13 }
 0x910 PF: > { %s18_s27 = sadd.s32 1, %s7383_s27  }
 0x911   : > { %p15_p4 = scmp.ge.s32.totalorder %s18_s27, 4  }
 0x913   :  { %17 = sbr.rel (!%p15_p4) target bundleno = 1 (0x1), region = 89 }

</bundles_post_ra>
